<compile_context>
chip_gen: v5e
topology: v5e:2x2
jax: 0.10.0
libtpu: 0.0.40
codegen_flags: <defaults>
</compile_context>

<pallas_src>
import functools

import numpy as np
import jax
import jax.numpy as jnp
from jax.experimental import pallas as pl
from jax.experimental.pallas import tpu as pltpu

_VMEM = pl.BlockSpec(memory_space=pltpu.MemorySpace.VMEM)


def _round_up(n, m):
    return ((n + m - 1) // m) * m


# ---------------------------------------------------------------------------
# Kernel A: conv1 + pool + relu + conv2 + pool + relu, fully VMEM-resident.
# ---------------------------------------------------------------------------

def _conv_stage_kernel(p1_ref, w1_ref, b1_ref, sel_ref, w2_ref, b2_ref,
                       out_ref, o1s_ref, *, batch, rs):
    n1 = batch * 100          # conv1 pooled positions: row = b*100 + h*10 + w
    npos = batch * 25         # conv2 pooled positions: row = b*25 + ho*5 + wo

    # ---- conv1 (im2col matmul, all 4 pool phases at once) + bias + maxpool + ReLU
    # p1_ref: (4*n1, 9) bf16, pool-phase major.
    y1 = jnp.dot(p1_ref[...], w1_ref[...], preferred_element_type=jnp.float32)
    y1 = jnp.maximum(jnp.maximum(y1[0:n1], y1[n1:2 * n1]),
                     jnp.maximum(y1[2 * n1:3 * n1], y1[3 * n1:4 * n1]))
    o1 = jnp.maximum(y1 + b1_ref[...], 0.0).astype(jnp.bfloat16)        # (n1, 64)

    # ---- zero-pad + pool-phase "slot" split of o1 as a 0/1 selection matmul.
    # slot (oy, ox) in [0,4)^2 holds o1pad[b, 2*ho+oy, 2*wo+ox, :] at row
    # slot*rs + b*25 + ho*5 + wo (rs = rows per slot, /8-aligned).
    o1s_ref[...] = jnp.dot(sel_ref[...], o1,
                           preferred_element_type=jnp.float32).astype(jnp.bfloat16)

    # ---- conv2: 9 shifted matmuls per pool phase (taps read as aligned slot
    # slices, slots (oy, kx) and (oy, kx+1) are contiguous -> one 2*rs-row LHS
    # covers pool phases (dy, 0) and (dy, 1) at once), then bias + maxpool + ReLU.
    acc = [jnp.zeros((2 * rs, 64), jnp.float32) for _ in range(2)]
    for dy in range(2):
        for ky in range(3):
            for kx in range(3):
                t = ky * 3 + kx
                s0 = ((dy + ky) * 4 + kx) * rs
                lhs = o1s_ref[pl.ds(s0, 2 * rs), :]                      # (2*rs, 64)
                acc[dy] = acc[dy] + jnp.dot(lhs, w2_ref[t],
                                            preferred_element_type=jnp.float32)
    y2 = jnp.maximum(jnp.maximum(acc[0][0:rs], acc[0][rs:2 * rs]),
                     jnp.maximum(acc[1][0:rs], acc[1][rs:2 * rs]))
    o2 = jnp.maximum(y2 + b2_ref[...], 0.0)                              # (rs, 64)
    out_ref[...] = o2[0:npos, :].astype(out_ref.dtype)


def conv_stage(patches, sel, params, *, batch):
    rs = _round_up(batch * 25, 8)
    kernel = functools.partial(_conv_stage_kernel, batch=batch, rs=rs)
    return pl.pallas_call(
        kernel,
        out_shape=jax.ShapeDtypeStruct((batch * 25, 64), jnp.bfloat16),
        in_specs=[_VMEM] * 6,
        out_specs=_VMEM,
        scratch_shapes=[pltpu.VMEM((16 * rs, 64), jnp.bfloat16)],
    )(patches, params["w1"], params["b1"], sel, params["w2"], params["b2"])


# ---------------------------------------------------------------------------
# Kernel B: fc1 + ReLU + fc2 + ReLU + fc3, one kernel.
# ---------------------------------------------------------------------------

def _fc_kernel(h_ref, w1_ref, b1_ref, w2_ref, b2_ref, w3_ref, b3_ref, out_ref):
    a = jnp.dot(h_ref[...], w1_ref[...], preferred_element_type=jnp.float32)
    a = jnp.maximum(a + b1_ref[...], 0.0).astype(jnp.bfloat16)
    a = jnp.dot(a, w2_ref[...], preferred_element_type=jnp.float32)
    a = jnp.maximum(a + b2_ref[...], 0.0).astype(jnp.bfloat16)
    a = jnp.dot(a, w3_ref[...], preferred_element_type=jnp.float32) + b3_ref[...]
    out_ref[...] = a.astype(out_ref.dtype)


def fc_stage(h, params):
    b = h.shape[0]
    nc = params["bfc3"].shape[-1]
    return pl.pallas_call(
        _fc_kernel,
        out_shape=jax.ShapeDtypeStruct((b, nc), jnp.float32),
        in_specs=[_VMEM] * 7,
        out_specs=_VMEM,
    )(h, params["wfc1"], params["bfc1"], params["wfc2"], params["bfc2"],
      params["wfc3"], params["bfc3"])


# ---------------------------------------------------------------------------
# Host/XLA-side prep (tiny input only) and one-time weight repacking.
# ---------------------------------------------------------------------------

def _conv1_pool_patches(x):
    """Pool-phase-split im2col patches for conv1 (3x3, pad 1) + 2x2 maxpool.

    Returns (4*B*100, 9) bf16, pool-phase major; row = b*100 + h*10 + w with
    (h, w) the pooled-output coordinate; tap = ky*3 + kx."""
    b = x.shape[0]
    xp = jnp.pad(x, ((0, 0), (1, 1), (1, 1)))                      # (B, 22, 22)
    views = [[xp[:, oy:oy + 20:2, ox:ox + 20:2].reshape(b * 100)   # xp[b, 2h+oy, 2w+ox]
              for ox in range(4)] for oy in range(4)]
    phases = []
    for dy in range(2):
        for dx in range(2):
            taps = [views[dy + ky][dx + kx] for ky in range(3) for kx in range(3)]
            phases.append(jnp.stack(taps, axis=-1))                # (B*100, 9)
    return jnp.concatenate(phases, axis=0).astype(jnp.bfloat16)    # (4*B*100, 9)


def _make_slot_select(batch):
    """0/1 matrix: conv1 pooled rows -> zero-padded, pool-phase-split slot rows."""
    rs = _round_up(batch * 25, 8)
    sel = np.zeros((16 * rs, batch * 100), dtype=np.float32)
    for oy in range(4):
        for ox in range(4):
            slot = oy * 4 + ox
            for b in range(batch):
                for ho in range(5):
                    for wo in range(5):
                        h = 2 * ho + oy - 1
                        w = 2 * wo + ox - 1
                        if 0 <= h < 10 and 0 <= w < 10:
                            sel[slot * rs + b * 25 + ho * 5 + wo,
                                b * 100 + h * 10 + w] = 1.0
    return sel


def prepare_params(raw):
    """One-time repack of PyTorch-convention weights into kernel layouts."""
    f32, bf16 = jnp.float32, jnp.bfloat16
    nc = raw["fc3_b"].shape[0]
    w1 = jnp.asarray(raw["conv1_w"], f32).reshape(64, 9).T                     # (tap, cout)
    w2 = jnp.transpose(jnp.asarray(raw["conv2_w"], f32), (2, 3, 1, 0)).reshape(9, 64, 64)
    # fold PyTorch's NCHW flatten (index c*25 + r) into fc1: column order r*64 + c
    wfc1 = jnp.transpose(jnp.asarray(raw["fc1_w"], f32).reshape(512, 64, 25),
                         (2, 1, 0)).reshape(1600, 512)
    return {
        "w1": w1.astype(bf16),
        "b1": jnp.asarray(raw["conv1_b"], f32).reshape(1, 64),
        "w2": w2.astype(bf16),
        "b2": jnp.asarray(raw["conv2_b"], f32).reshape(1, 64),
        "wfc1": wfc1.astype(bf16),
        "bfc1": jnp.asarray(raw["fc1_b"], f32).reshape(1, 512),
        "wfc2": jnp.asarray(raw["fc2_w"], f32).T.astype(bf16),
        "bfc2": jnp.asarray(raw["fc2_b"], f32).reshape(1, 128),
        "wfc3": jnp.asarray(raw["fc3_w"], f32).T.astype(bf16),
        "bfc3": jnp.asarray(raw["fc3_b"], f32).reshape(1, nc),
    }


def cnn_forward(x, params):
    """x: (B, 20, 20) float32 (PyTorch does x.unsqueeze(1) -> (B, 1, 20, 20))."""
    b, hh, ww = x.shape
    assert (hh, ww) == (20, 20), "fc1(1600) implies a 20x20 input"
    patches = _conv1_pool_patches(x)                                # (4*B*100, 9) bf16
    sel = jnp.asarray(_make_slot_select(b), jnp.bfloat16)           # trace-time constant
    o2 = conv_stage(patches, sel, params, batch=b)                  # (B*25, 64) bf16
    h_flat = o2.reshape(b, 25 * 64)                                 # free row-major reshape
    logits = fc_stage(h_flat, params)                               # (B, num_classes) f32
    # .squeeze(1) in PyTorch is a no-op here (dim 1 == num_classes != 1)
    # TODO(synk): optional CrossEntropyLoss path (targets is not None) not implemented.
    return {"logits": logits}


# ---------------------------------------------------------------------------
# Parameter init (PyTorch-convention shapes) and pure-JAX reference.
# ---------------------------------------------------------------------------

def init_params(key, num_classes=18):
    ks = jax.random.split(key, 10)

    def w(k, shape, scale):
        return jax.random.normal(k, shape, jnp.float32) * scale

    return {
        "conv1_w": w(ks[0], (64, 1, 3, 3), 0.10), "conv1_b": w(ks[1], (64,), 0.10),
        "conv2_w": w(ks[2], (64, 64, 3, 3), 0.05), "conv2_b": w(ks[3], (64,), 0.05),
        "fc1_w": w(ks[4], (512, 1600), 0.02), "fc1_b": w(ks[5], (512,), 0.02),
        "fc2_w": w(ks[6], (128, 512), 0.05), "fc2_b": w(ks[7], (128,), 0.05),
        "fc3_w": w(ks[8], (num_classes, 128), 0.05), "fc3_b": w(ks[9], (num_classes,), 0.05),
    }


def _reference_forward(x, raw):
    def conv3x3(h, w_oihw, bias):
        return jax.lax.conv_general_dilated(
            h, jnp.transpose(w_oihw, (2, 3, 1, 0)), (1, 1), "SAME",
            dimension_numbers=("NHWC", "HWIO", "NHWC")) + bias

    def pool_relu(h):
        p = jax.lax.reduce_window(h, -jnp.inf, jax.lax.max,
                                  (1, 2, 2, 1), (1, 2, 2, 1), "VALID")
        return jnp.maximum(p, 0.0)

    h = x[..., None]
    h = pool_relu(conv3x3(h, raw["conv1_w"], raw["conv1_b"]))
    h = pool_relu(conv3x3(h, raw["conv2_w"], raw["conv2_b"]))
    h = jnp.transpose(h, (0, 3, 1, 2)).reshape(x.shape[0], -1)
    h = jnp.maximum(h @ raw["fc1_w"].T + raw["fc1_b"], 0.0)
    h = jnp.maximum(h @ raw["fc2_w"].T + raw["fc2_b"], 0.0)
    return h @ raw["fc3_w"].T + raw["fc3_b"]


if __name__ == "__main__":
    key = jax.random.PRNGKey(0)
    pkey, xkey = jax.random.split(key)
    raw = init_params(pkey)
    params = prepare_params(raw)                       # one-time weight repack (bf16)
    x = jax.random.normal(xkey, (2, 20, 20), jnp.float32)

    out = jax.jit(cnn_forward)(x, params)
    logits = jax.block_until_ready(out["logits"])

    assert logits.shape == (2, 18) and logits.dtype == jnp.float32
    assert bool(jnp.all(jnp.isfinite(logits)))
    ref = _reference_forward(x, raw)
    err = float(jnp.max(jnp.abs(logits - ref)))
    assert err < 5e-2, f"mismatch vs f32 reference: max abs err {err}"
    print("KERNEL_OK")
</pallas_src>

<mosaic_0001>
module attributes {stable_mosaic.version = 11 : i64} {
  func.func @_conv_stage_kernel(%arg0: memref<800x9xbf16, #tpu.memory_space<vmem>>, %arg1: memref<9x64xbf16, #tpu.memory_space<vmem>>, %arg2: memref<1x64xf32, #tpu.memory_space<vmem>>, %arg3: memref<896x200xbf16, #tpu.memory_space<vmem>>, %arg4: memref<9x64x64xbf16, #tpu.memory_space<vmem>>, %arg5: memref<1x64xf32, #tpu.memory_space<vmem>>, %arg6: memref<50x64xbf16, #tpu.memory_space<vmem>>, %arg7: memref<896x64xbf16, #tpu.memory_space<vmem>>) attributes {dimension_semantics = [], scalar_prefetch = 0 : i64, scratch_operands = 1 : i64, tpu.core_type = #tpu.core_type<tc>} {
    %c0 = arith.constant 0 : index
    %c0_0 = arith.constant 0 : index
    %0 = vector.load %arg0[%c0, %c0_0] : memref<800x9xbf16, #tpu.memory_space<vmem>>, vector<800x9xbf16>
    %c0_1 = arith.constant 0 : index
    %c0_2 = arith.constant 0 : index
    %1 = vector.load %arg1[%c0_1, %c0_2] : memref<9x64xbf16, #tpu.memory_space<vmem>>, vector<9x64xbf16>
    %cst = arith.constant dense<0.000000e+00> : vector<800x64xf32>
    %2 = tpu.matmul %0, %1, %cst {dimension_numbers = #tpu.dot_dimension_numbers<[1], [0], [0], [1], [0, 0, 1, 1], [], []>} : vector<800x9xbf16>, vector<9x64xbf16>, vector<800x64xf32> -> vector<800x64xf32>
    %3 = vector.extract_strided_slice %2 {offsets = [0, 0], sizes = [200, 64], strides = [1, 1]} : vector<800x64xf32> to vector<200x64xf32>
    %4 = vector.extract_strided_slice %2 {offsets = [200, 0], sizes = [200, 64], strides = [1, 1]} : vector<800x64xf32> to vector<200x64xf32>
    %5 = arith.maximumf %3, %4 : vector<200x64xf32>
    %6 = vector.extract_strided_slice %2 {offsets = [400, 0], sizes = [200, 64], strides = [1, 1]} : vector<800x64xf32> to vector<200x64xf32>
    %7 = vector.extract_strided_slice %2 {offsets = [600, 0], sizes = [200, 64], strides = [1, 1]} : vector<800x64xf32> to vector<200x64xf32>
    %8 = arith.maximumf %6, %7 : vector<200x64xf32>
    %9 = arith.maximumf %5, %8 : vector<200x64xf32>
    %c0_3 = arith.constant 0 : index
    %c0_4 = arith.constant 0 : index
    %10 = vector.load %arg2[%c0_3, %c0_4] : memref<1x64xf32, #tpu.memory_space<vmem>>, vector<1x64xf32>
    %11 = vector.broadcast %10 : vector<1x64xf32> to vector<200x64xf32>
    %12 = arith.addf %9, %11 : vector<200x64xf32>
    %cst_5 = arith.constant 0.000000e+00 : f32
    %13 = vector.broadcast %cst_5 : f32 to vector<200x64xf32>
    %14 = arith.maximumf %12, %13 : vector<200x64xf32>
    %15 = arith.truncf %14 : vector<200x64xf32> to vector<200x64xbf16>
    %c0_6 = arith.constant 0 : index
    %c0_7 = arith.constant 0 : index
    %16 = vector.load %arg3[%c0_6, %c0_7] : memref<896x200xbf16, #tpu.memory_space<vmem>>, vector<896x200xbf16>
    %cst_8 = arith.constant dense<0.000000e+00> : vector<896x64xf32>
    %17 = tpu.matmul %16, %15, %cst_8 {dimension_numbers = #tpu.dot_dimension_numbers<[1], [0], [0], [1], [0, 0, 1, 1], [], []>} : vector<896x200xbf16>, vector<200x64xbf16>, vector<896x64xf32> -> vector<896x64xf32>
    %18 = arith.truncf %17 : vector<896x64xf32> to vector<896x64xbf16>
    %c0_9 = arith.constant 0 : index
    %c0_10 = arith.constant 0 : index
    %19 = vector.load %arg7[%c0_9, %c0_10] : memref<896x64xbf16, #tpu.memory_space<vmem>>, vector<896x64xbf16>
    tpu.vector_store %arg7[%c0_9, %c0_10], %18 {strides = array<i32>} : memref<896x64xbf16, #tpu.memory_space<vmem>>, vector<896x64xbf16>,
    %cst_11 = arith.constant 0.000000e+00 : f32
    %20 = vector.broadcast %cst_11 : f32 to vector<112x64xf32>
    %cst_12 = arith.constant 0.000000e+00 : f32
    %21 = vector.broadcast %cst_12 : f32 to vector<112x64xf32>
    %c0_13 = arith.constant 0 : index
    %c0_14 = arith.constant 0 : index
    %22 = vector.load %arg7[%c0_13, %c0_14] : memref<896x64xbf16, #tpu.memory_space<vmem>>, vector<112x64xbf16>
    %c0_15 = arith.constant 0 : index
    %c0_16 = arith.constant 0 : index
    %c0_17 = arith.constant 0 : index
    %23 = vector.load %arg4[%c0_15, %c0_16, %c0_17] : memref<9x64x64xbf16, #tpu.memory_space<vmem>>, vector<1x64x64xbf16>
    %24 = vector.shape_cast %23 : vector<1x64x64xbf16> to vector<64x64xbf16>
    %cst_18 = arith.constant dense<0.000000e+00> : vector<112x64xf32>
    %25 = tpu.matmul %22, %24, %cst_18 {dimension_numbers = #tpu.dot_dimension_numbers<[1], [0], [0], [1], [0, 0, 1, 1], [], []>} : vector<112x64xbf16>, vector<64x64xbf16>, vector<112x64xf32> -> vector<112x64xf32>
    %26 = arith.addf %20, %25 : vector<112x64xf32>
    %c56 = arith.constant 56 : index
    %c0_19 = arith.constant 0 : index
    %27 = vector.load %arg7[%c56, %c0_19] : memref<896x64xbf16, #tpu.memory_space<vmem>>, vector<112x64xbf16>
    %c1 = arith.constant 1 : index
    %c0_20 = arith.constant 0 : index
    %c0_21 = arith.constant 0 : index
    %28 = vector.load %arg4[%c1, %c0_20, %c0_21] : memref<9x64x64xbf16, #tpu.memory_space<vmem>>, vector<1x64x64xbf16>
    %29 = vector.shape_cast %28 : vector<1x64x64xbf16> to vector<64x64xbf16>
    %cst_22 = arith.constant dense<0.000000e+00> : vector<112x64xf32>
    %30 = tpu.matmul %27, %29, %cst_22 {dimension_numbers = #tpu.dot_dimension_numbers<[1], [0], [0], [1], [0, 0, 1, 1], [], []>} : vector<112x64xbf16>, vector<64x64xbf16>, vector<112x64xf32> -> vector<112x64xf32>
    %31 = arith.addf %26, %30 : vector<112x64xf32>
    %c112 = arith.constant 112 : index
    %c0_23 = arith.constant 0 : index
    %32 = vector.load %arg7[%c112, %c0_23] : memref<896x64xbf16, #tpu.memory_space<vmem>>, vector<112x64xbf16>
    %c2 = arith.constant 2 : index
    %c0_24 = arith.constant 0 : index
    %c0_25 = arith.constant 0 : index
    %33 = vector.load %arg4[%c2, %c0_24, %c0_25] : memref<9x64x64xbf16, #tpu.memory_space<vmem>>, vector<1x64x64xbf16>
    %34 = vector.shape_cast %33 : vector<1x64x64xbf16> to vector<64x64xbf16>
    %cst_26 = arith.constant dense<0.000000e+00> : vector<112x64xf32>
    %35 = tpu.matmul %32, %34, %cst_26 {dimension_numbers = #tpu.dot_dimension_numbers<[1], [0], [0], [1], [0, 0, 1, 1], [], []>} : vector<112x64xbf16>, vector<64x64xbf16>, vector<112x64xf32> -> vector<112x64xf32>
    %36 = arith.addf %31, %35 : vector<112x64xf32>
    %c224 = arith.constant 224 : index
    %c0_27 = arith.constant 0 : index
    %37 = vector.load %arg7[%c224, %c0_27] : memref<896x64xbf16, #tpu.memory_space<vmem>>, vector<112x64xbf16>
    %c3 = arith.constant 3 : index
    %c0_28 = arith.constant 0 : index
    %c0_29 = arith.constant 0 : index
    %38 = vector.load %arg4[%c3, %c0_28, %c0_29] : memref<9x64x64xbf16, #tpu.memory_space<vmem>>, vector<1x64x64xbf16>
    %39 = vector.shape_cast %38 : vector<1x64x64xbf16> to vector<64x64xbf16>
    %cst_30 = arith.constant dense<0.000000e+00> : vector<112x64xf32>
    %40 = tpu.matmul %37, %39, %cst_30 {dimension_numbers = #tpu.dot_dimension_numbers<[1], [0], [0], [1], [0, 0, 1, 1], [], []>} : vector<112x64xbf16>, vector<64x64xbf16>, vector<112x64xf32> -> vector<112x64xf32>
    %41 = arith.addf %36, %40 : vector<112x64xf32>
    %c280 = arith.constant 280 : index
    %c0_31 = arith.constant 0 : index
    %42 = vector.load %arg7[%c280, %c0_31] : memref<896x64xbf16, #tpu.memory_space<vmem>>, vector<112x64xbf16>
    %c4 = arith.constant 4 : index
    %c0_32 = arith.constant 0 : index
    %c0_33 = arith.constant 0 : index
    %43 = vector.load %arg4[%c4, %c0_32, %c0_33] : memref<9x64x64xbf16, #tpu.memory_space<vmem>>, vector<1x64x64xbf16>
    %44 = vector.shape_cast %43 : vector<1x64x64xbf16> to vector<64x64xbf16>
    %cst_34 = arith.constant dense<0.000000e+00> : vector<112x64xf32>
    %45 = tpu.matmul %42, %44, %cst_34 {dimension_numbers = #tpu.dot_dimension_numbers<[1], [0], [0], [1], [0, 0, 1, 1], [], []>} : vector<112x64xbf16>, vector<64x64xbf16>, vector<112x64xf32> -> vector<112x64xf32>
    %46 = arith.addf %41, %45 : vector<112x64xf32>
    %c336 = arith.constant 336 : index
    %c0_35 = arith.constant 0 : index
    %47 = vector.load %arg7[%c336, %c0_35] : memref<896x64xbf16, #tpu.memory_space<vmem>>, vector<112x64xbf16>
    %c5 = arith.constant 5 : index
    %c0_36 = arith.constant 0 : index
    %c0_37 = arith.constant 0 : index
    %48 = vector.load %arg4[%c5, %c0_36, %c0_37] : memref<9x64x64xbf16, #tpu.memory_space<vmem>>, vector<1x64x64xbf16>
    %49 = vector.shape_cast %48 : vector<1x64x64xbf16> to vector<64x64xbf16>
    %cst_38 = arith.constant dense<0.000000e+00> : vector<112x64xf32>
    %50 = tpu.matmul %47, %49, %cst_38 {dimension_numbers = #tpu.dot_dimension_numbers<[1], [0], [0], [1], [0, 0, 1, 1], [], []>} : vector<112x64xbf16>, vector<64x64xbf16>, vector<112x64xf32> -> vector<112x64xf32>
    %51 = arith.addf %46, %50 : vector<112x64xf32>
    %c448 = arith.constant 448 : index
    %c0_39 = arith.constant 0 : index
    %52 = vector.load %arg7[%c448, %c0_39] : memref<896x64xbf16, #tpu.memory_space<vmem>>, vector<112x64xbf16>
    %c6 = arith.constant 6 : index
    %c0_40 = arith.constant 0 : index
    %c0_41 = arith.constant 0 : index
    %53 = vector.load %arg4[%c6, %c0_40, %c0_41] : memref<9x64x64xbf16, #tpu.memory_space<vmem>>, vector<1x64x64xbf16>
    %54 = vector.shape_cast %53 : vector<1x64x64xbf16> to vector<64x64xbf16>
    %cst_42 = arith.constant dense<0.000000e+00> : vector<112x64xf32>
    %55 = tpu.matmul %52, %54, %cst_42 {dimension_numbers = #tpu.dot_dimension_numbers<[1], [0], [0], [1], [0, 0, 1, 1], [], []>} : vector<112x64xbf16>, vector<64x64xbf16>, vector<112x64xf32> -> vector<112x64xf32>
    %56 = arith.addf %51, %55 : vector<112x64xf32>
    %c504 = arith.constant 504 : index
    %c0_43 = arith.constant 0 : index
    %57 = vector.load %arg7[%c504, %c0_43] : memref<896x64xbf16, #tpu.memory_space<vmem>>, vector<112x64xbf16>
    %c7 = arith.constant 7 : index
    %c0_44 = arith.constant 0 : index
    %c0_45 = arith.constant 0 : index
    %58 = vector.load %arg4[%c7, %c0_44, %c0_45] : memref<9x64x64xbf16, #tpu.memory_space<vmem>>, vector<1x64x64xbf16>
    %59 = vector.shape_cast %58 : vector<1x64x64xbf16> to vector<64x64xbf16>
    %cst_46 = arith.constant dense<0.000000e+00> : vector<112x64xf32>
    %60 = tpu.matmul %57, %59, %cst_46 {dimension_numbers = #tpu.dot_dimension_numbers<[1], [0], [0], [1], [0, 0, 1, 1], [], []>} : vector<112x64xbf16>, vector<64x64xbf16>, vector<112x64xf32> -> vector<112x64xf32>
    %61 = arith.addf %56, %60 : vector<112x64xf32>
    %c560 = arith.constant 560 : index
    %c0_47 = arith.constant 0 : index
    %62 = vector.load %arg7[%c560, %c0_47] : memref<896x64xbf16, #tpu.memory_space<vmem>>, vector<112x64xbf16>
    %c8 = arith.constant 8 : index
    %c0_48 = arith.constant 0 : index
    %c0_49 = arith.constant 0 : index
    %63 = vector.load %arg4[%c8, %c0_48, %c0_49] : memref<9x64x64xbf16, #tpu.memory_space<vmem>>, vector<1x64x64xbf16>
    %64 = vector.shape_cast %63 : vector<1x64x64xbf16> to vector<64x64xbf16>
    %cst_50 = arith.constant dense<0.000000e+00> : vector<112x64xf32>
    %65 = tpu.matmul %62, %64, %cst_50 {dimension_numbers = #tpu.dot_dimension_numbers<[1], [0], [0], [1], [0, 0, 1, 1], [], []>} : vector<112x64xbf16>, vector<64x64xbf16>, vector<112x64xf32> -> vector<112x64xf32>
    %66 = arith.addf %61, %65 : vector<112x64xf32>
    %c224_51 = arith.constant 224 : index
    %c0_52 = arith.constant 0 : index
    %67 = vector.load %arg7[%c224_51, %c0_52] : memref<896x64xbf16, #tpu.memory_space<vmem>>, vector<112x64xbf16>
    %c0_53 = arith.constant 0 : index
    %c0_54 = arith.constant 0 : index
    %c0_55 = arith.constant 0 : index
    %68 = vector.load %arg4[%c0_53, %c0_54, %c0_55] : memref<9x64x64xbf16, #tpu.memory_space<vmem>>, vector<1x64x64xbf16>
    %69 = vector.shape_cast %68 : vector<1x64x64xbf16> to vector<64x64xbf16>
    %cst_56 = arith.constant dense<0.000000e+00> : vector<112x64xf32>
    %70 = tpu.matmul %67, %69, %cst_56 {dimension_numbers = #tpu.dot_dimension_numbers<[1], [0], [0], [1], [0, 0, 1, 1], [], []>} : vector<112x64xbf16>, vector<64x64xbf16>, vector<112x64xf32> -> vector<112x64xf32>
    %71 = arith.addf %21, %70 : vector<112x64xf32>
    %c280_57 = arith.constant 280 : index
    %c0_58 = arith.constant 0 : index
    %72 = vector.load %arg7[%c280_57, %c0_58] : memref<896x64xbf16, #tpu.memory_space<vmem>>, vector<112x64xbf16>
    %c1_59 = arith.constant 1 : index
    %c0_60 = arith.constant 0 : index
    %c0_61 = arith.constant 0 : index
    %73 = vector.load %arg4[%c1_59, %c0_60, %c0_61] : memref<9x64x64xbf16, #tpu.memory_space<vmem>>, vector<1x64x64xbf16>
    %74 = vector.shape_cast %73 : vector<1x64x64xbf16> to vector<64x64xbf16>
    %cst_62 = arith.constant dense<0.000000e+00> : vector<112x64xf32>
    %75 = tpu.matmul %72, %74, %cst_62 {dimension_numbers = #tpu.dot_dimension_numbers<[1], [0], [0], [1], [0, 0, 1, 1], [], []>} : vector<112x64xbf16>, vector<64x64xbf16>, vector<112x64xf32> -> vector<112x64xf32>
    %76 = arith.addf %71, %75 : vector<112x64xf32>
    %c336_63 = arith.constant 336 : index
    %c0_64 = arith.constant 0 : index
    %77 = vector.load %arg7[%c336_63, %c0_64] : memref<896x64xbf16, #tpu.memory_space<vmem>>, vector<112x64xbf16>
    %c2_65 = arith.constant 2 : index
    %c0_66 = arith.constant 0 : index
    %c0_67 = arith.constant 0 : index
    %78 = vector.load %arg4[%c2_65, %c0_66, %c0_67] : memref<9x64x64xbf16, #tpu.memory_space<vmem>>, vector<1x64x64xbf16>
    %79 = vector.shape_cast %78 : vector<1x64x64xbf16> to vector<64x64xbf16>
    %cst_68 = arith.constant dense<0.000000e+00> : vector<112x64xf32>
    %80 = tpu.matmul %77, %79, %cst_68 {dimension_numbers = #tpu.dot_dimension_numbers<[1], [0], [0], [1], [0, 0, 1, 1], [], []>} : vector<112x64xbf16>, vector<64x64xbf16>, vector<112x64xf32> -> vector<112x64xf32>
    %81 = arith.addf %76, %80 : vector<112x64xf32>
    %c448_69 = arith.constant 448 : index
    %c0_70 = arith.constant 0 : index
    %82 = vector.load %arg7[%c448_69, %c0_70] : memref<896x64xbf16, #tpu.memory_space<vmem>>, vector<112x64xbf16>
    %c3_71 = arith.constant 3 : index
    %c0_72 = arith.constant 0 : index
    %c0_73 = arith.constant 0 : index
    %83 = vector.load %arg4[%c3_71, %c0_72, %c0_73] : memref<9x64x64xbf16, #tpu.memory_space<vmem>>, vector<1x64x64xbf16>
    %84 = vector.shape_cast %83 : vector<1x64x64xbf16> to vector<64x64xbf16>
    %cst_74 = arith.constant dense<0.000000e+00> : vector<112x64xf32>
    %85 = tpu.matmul %82, %84, %cst_74 {dimension_numbers = #tpu.dot_dimension_numbers<[1], [0], [0], [1], [0, 0, 1, 1], [], []>} : vector<112x64xbf16>, vector<64x64xbf16>, vector<112x64xf32> -> vector<112x64xf32>
    %86 = arith.addf %81, %85 : vector<112x64xf32>
    %c504_75 = arith.constant 504 : index
    %c0_76 = arith.constant 0 : index
    %87 = vector.load %arg7[%c504_75, %c0_76] : memref<896x64xbf16, #tpu.memory_space<vmem>>, vector<112x64xbf16>
    %c4_77 = arith.constant 4 : index
    %c0_78 = arith.constant 0 : index
    %c0_79 = arith.constant 0 : index
    %88 = vector.load %arg4[%c4_77, %c0_78, %c0_79] : memref<9x64x64xbf16, #tpu.memory_space<vmem>>, vector<1x64x64xbf16>
    %89 = vector.shape_cast %88 : vector<1x64x64xbf16> to vector<64x64xbf16>
    %cst_80 = arith.constant dense<0.000000e+00> : vector<112x64xf32>
    %90 = tpu.matmul %87, %89, %cst_80 {dimension_numbers = #tpu.dot_dimension_numbers<[1], [0], [0], [1], [0, 0, 1, 1], [], []>} : vector<112x64xbf16>, vector<64x64xbf16>, vector<112x64xf32> -> vector<112x64xf32>
    %91 = arith.addf %86, %90 : vector<112x64xf32>
    %c560_81 = arith.constant 560 : index
    %c0_82 = arith.constant 0 : index
    %92 = vector.load %arg7[%c560_81, %c0_82] : memref<896x64xbf16, #tpu.memory_space<vmem>>, vector<112x64xbf16>
    %c5_83 = arith.constant 5 : index
    %c0_84 = arith.constant 0 : index
    %c0_85 = arith.constant 0 : index
    %93 = vector.load %arg4[%c5_83, %c0_84, %c0_85] : memref<9x64x64xbf16, #tpu.memory_space<vmem>>, vector<1x64x64xbf16>
    %94 = vector.shape_cast %93 : vector<1x64x64xbf16> to vector<64x64xbf16>
    %cst_86 = arith.constant dense<0.000000e+00> : vector<112x64xf32>
    %95 = tpu.matmul %92, %94, %cst_86 {dimension_numbers = #tpu.dot_dimension_numbers<[1], [0], [0], [1], [0, 0, 1, 1], [], []>} : vector<112x64xbf16>, vector<64x64xbf16>, vector<112x64xf32> -> vector<112x64xf32>
    %96 = arith.addf %91, %95 : vector<112x64xf32>
    %c672 = arith.constant 672 : index
    %c0_87 = arith.constant 0 : index
    %97 = vector.load %arg7[%c672, %c0_87] : memref<896x64xbf16, #tpu.memory_space<vmem>>, vector<112x64xbf16>
    %c6_88 = arith.constant 6 : index
    %c0_89 = arith.constant 0 : index
    %c0_90 = arith.constant 0 : index
    %98 = vector.load %arg4[%c6_88, %c0_89, %c0_90] : memref<9x64x64xbf16, #tpu.memory_space<vmem>>, vector<1x64x64xbf16>
    %99 = vector.shape_cast %98 : vector<1x64x64xbf16> to vector<64x64xbf16>
    %cst_91 = arith.constant dense<0.000000e+00> : vector<112x64xf32>
    %100 = tpu.matmul %97, %99, %cst_91 {dimension_numbers = #tpu.dot_dimension_numbers<[1], [0], [0], [1], [0, 0, 1, 1], [], []>} : vector<112x64xbf16>, vector<64x64xbf16>, vector<112x64xf32> -> vector<112x64xf32>
    %101 = arith.addf %96, %100 : vector<112x64xf32>
    %c728 = arith.constant 728 : index
    %c0_92 = arith.constant 0 : index
    %102 = vector.load %arg7[%c728, %c0_92] : memref<896x64xbf16, #tpu.memory_space<vmem>>, vector<112x64xbf16>
    %c7_93 = arith.constant 7 : index
    %c0_94 = arith.constant 0 : index
    %c0_95 = arith.constant 0 : index
    %103 = vector.load %arg4[%c7_93, %c0_94, %c0_95] : memref<9x64x64xbf16, #tpu.memory_space<vmem>>, vector<1x64x64xbf16>
    %104 = vector.shape_cast %103 : vector<1x64x64xbf16> to vector<64x64xbf16>
    %cst_96 = arith.constant dense<0.000000e+00> : vector<112x64xf32>
    %105 = tpu.matmul %102, %104, %cst_96 {dimension_numbers = #tpu.dot_dimension_numbers<[1], [0], [0], [1], [0, 0, 1, 1], [], []>} : vector<112x64xbf16>, vector<64x64xbf16>, vector<112x64xf32> -> vector<112x64xf32>
    %106 = arith.addf %101, %105 : vector<112x64xf32>
    %c784 = arith.constant 784 : index
    %c0_97 = arith.constant 0 : index
    %107 = vector.load %arg7[%c784, %c0_97] : memref<896x64xbf16, #tpu.memory_space<vmem>>, vector<112x64xbf16>
    %c8_98 = arith.constant 8 : index
    %c0_99 = arith.constant 0 : index
    %c0_100 = arith.constant 0 : index
    %108 = vector.load %arg4[%c8_98, %c0_99, %c0_100] : memref<9x64x64xbf16, #tpu.memory_space<vmem>>, vector<1x64x64xbf16>
    %109 = vector.shape_cast %108 : vector<1x64x64xbf16> to vector<64x64xbf16>
    %cst_101 = arith.constant dense<0.000000e+00> : vector<112x64xf32>
    %110 = tpu.matmul %107, %109, %cst_101 {dimension_numbers = #tpu.dot_dimension_numbers<[1], [0], [0], [1], [0, 0, 1, 1], [], []>} : vector<112x64xbf16>, vector<64x64xbf16>, vector<112x64xf32> -> vector<112x64xf32>
    %111 = arith.addf %106, %110 : vector<112x64xf32>
    %112 = vector.extract_strided_slice %66 {offsets = [0, 0], sizes = [56, 64], strides = [1, 1]} : vector<112x64xf32> to vector<56x64xf32>
    %113 = vector.extract_strided_slice %66 {offsets = [56, 0], sizes = [56, 64], strides = [1, 1]} : vector<112x64xf32> to vector<56x64xf32>
    %114 = arith.maximumf %112, %113 : vector<56x64xf32>
    %115 = vector.extract_strided_slice %111 {offsets = [0, 0], sizes = [56, 64], strides = [1, 1]} : vector<112x64xf32> to vector<56x64xf32>
    %116 = vector.extract_strided_slice %111 {offsets = [56, 0], sizes = [56, 64], strides = [1, 1]} : vector<112x64xf32> to vector<56x64xf32>
    %117 = arith.maximumf %115, %116 : vector<56x64xf32>
    %118 = arith.maximumf %114, %117 : vector<56x64xf32>
    %c0_102 = arith.constant 0 : index
    %c0_103 = arith.constant 0 : index
    %119 = vector.load %arg5[%c0_102, %c0_103] : memref<1x64xf32, #tpu.memory_space<vmem>>, vector<1x64xf32>
    %120 = vector.broadcast %119 : vector<1x64xf32> to vector<56x64xf32>
    %121 = arith.addf %118, %120 : vector<56x64xf32>
    %cst_104 = arith.constant 0.000000e+00 : f32
    %122 = vector.broadcast %cst_104 : f32 to vector<56x64xf32>
    %123 = arith.maximumf %121, %122 : vector<56x64xf32>
    %124 = vector.extract_strided_slice %123 {offsets = [0, 0], sizes = [50, 64], strides = [1, 1]} : vector<56x64xf32> to vector<50x64xf32>
    %125 = arith.truncf %124 : vector<50x64xf32> to vector<50x64xbf16>
    %c0_105 = arith.constant 0 : index
    %c0_106 = arith.constant 0 : index
    %126 = vector.load %arg6[%c0_105, %c0_106] : memref<50x64xbf16, #tpu.memory_space<vmem>>, vector<50x64xbf16>
    tpu.vector_store %arg6[%c0_105, %c0_106], %125 {strides = array<i32>} : memref<50x64xbf16, #tpu.memory_space<vmem>>, vector<50x64xbf16>,
    return
  }
}

module attributes {stable_mosaic.version = 11 : i64} {
  func.func @_fc_kernel(%arg0: memref<2x1600xbf16, #tpu.memory_space<vmem>>, %arg1: memref<1600x512xbf16, #tpu.memory_space<vmem>>, %arg2: memref<1x512xf32, #tpu.memory_space<vmem>>, %arg3: memref<512x128xbf16, #tpu.memory_space<vmem>>, %arg4: memref<1x128xf32, #tpu.memory_space<vmem>>, %arg5: memref<128x18xbf16, #tpu.memory_space<vmem>>, %arg6: memref<1x18xf32, #tpu.memory_space<vmem>>, %arg7: memref<2x18xf32, #tpu.memory_space<vmem>>) attributes {dimension_semantics = [], scalar_prefetch = 0 : i64, scratch_operands = 0 : i64, tpu.core_type = #tpu.core_type<tc>} {
    %c0 = arith.constant 0 : index
    %c0_0 = arith.constant 0 : index
    %0 = vector.load %arg0[%c0, %c0_0] : memref<2x1600xbf16, #tpu.memory_space<vmem>>, vector<2x1600xbf16>
    %c0_1 = arith.constant 0 : index
    %c0_2 = arith.constant 0 : index
    %1 = vector.load %arg1[%c0_1, %c0_2] : memref<1600x512xbf16, #tpu.memory_space<vmem>>, vector<1600x512xbf16>
    %cst = arith.constant dense<0.000000e+00> : vector<2x512xf32>
    %2 = tpu.matmul %0, %1, %cst {dimension_numbers = #tpu.dot_dimension_numbers<[1], [0], [0], [1], [0, 0, 1, 1], [], []>} : vector<2x1600xbf16>, vector<1600x512xbf16>, vector<2x512xf32> -> vector<2x512xf32>
    %c0_3 = arith.constant 0 : index
    %c0_4 = arith.constant 0 : index
    %3 = vector.load %arg2[%c0_3, %c0_4] : memref<1x512xf32, #tpu.memory_space<vmem>>, vector<1x512xf32>
    %4 = vector.broadcast %3 : vector<1x512xf32> to vector<2x512xf32>
    %5 = arith.addf %2, %4 : vector<2x512xf32>
    %cst_5 = arith.constant 0.000000e+00 : f32
    %6 = vector.broadcast %cst_5 : f32 to vector<2x512xf32>
    %7 = arith.maximumf %5, %6 : vector<2x512xf32>
    %8 = arith.truncf %7 : vector<2x512xf32> to vector<2x512xbf16>
    %c0_6 = arith.constant 0 : index
    %c0_7 = arith.constant 0 : index
    %9 = vector.load %arg3[%c0_6, %c0_7] : memref<512x128xbf16, #tpu.memory_space<vmem>>, vector<512x128xbf16>
    %cst_8 = arith.constant dense<0.000000e+00> : vector<2x128xf32>
    %10 = tpu.matmul %8, %9, %cst_8 {dimension_numbers = #tpu.dot_dimension_numbers<[1], [0], [0], [1], [0, 0, 1, 1], [], []>} : vector<2x512xbf16>, vector<512x128xbf16>, vector<2x128xf32> -> vector<2x128xf32>
    %c0_9 = arith.constant 0 : index
    %c0_10 = arith.constant 0 : index
    %11 = vector.load %arg4[%c0_9, %c0_10] : memref<1x128xf32, #tpu.memory_space<vmem>>, vector<1x128xf32>
    %12 = vector.broadcast %11 : vector<1x128xf32> to vector<2x128xf32>
    %13 = arith.addf %10, %12 : vector<2x128xf32>
    %cst_11 = arith.constant 0.000000e+00 : f32
    %14 = vector.broadcast %cst_11 : f32 to vector<2x128xf32>
    %15 = arith.maximumf %13, %14 : vector<2x128xf32>
    %16 = arith.truncf %15 : vector<2x128xf32> to vector<2x128xbf16>
    %c0_12 = arith.constant 0 : index
    %c0_13 = arith.constant 0 : index
    %17 = vector.load %arg5[%c0_12, %c0_13] : memref<128x18xbf16, #tpu.memory_space<vmem>>, vector<128x18xbf16>
    %cst_14 = arith.constant dense<0.000000e+00> : vector<2x18xf32>
    %18 = tpu.matmul %16, %17, %cst_14 {dimension_numbers = #tpu.dot_dimension_numbers<[1], [0], [0], [1], [0, 0, 1, 1], [], []>} : vector<2x128xbf16>, vector<128x18xbf16>, vector<2x18xf32> -> vector<2x18xf32>
    %c0_15 = arith.constant 0 : index
    %c0_16 = arith.constant 0 : index
    %19 = vector.load %arg6[%c0_15, %c0_16] : memref<1x18xf32, #tpu.memory_space<vmem>>, vector<1x18xf32>
    %20 = vector.broadcast %19 : vector<1x18xf32> to vector<2x18xf32>
    %21 = arith.addf %18, %20 : vector<2x18xf32>
    %c0_17 = arith.constant 0 : index
    %c0_18 = arith.constant 0 : index
    %22 = vector.load %arg7[%c0_17, %c0_18] : memref<2x18xf32, #tpu.memory_space<vmem>>, vector<2x18xf32>
    tpu.vector_store %arg7[%c0_17, %c0_18], %21 {strides = array<i32>} : memref<2x18xf32, #tpu.memory_space<vmem>>, vector<2x18xf32>,
    return
  }
}

</mosaic_0001>

<bundles_post_ra>
// kernel: cnn_forward.3
= control target key start
LH: loop header
LB: loop body
LE: loop exit
PB: predicated region body
PF: predicated region fallthrough
CT: control target
= control target key end

     0   :  { %12 = vsyncpa [#allocation3], 0  ;;  %s6258_s0 = inlined_call_operand.vmem [shape: bf16[2,1600], index: 0, kind: input, shape index: {}]   ;;  %s6259_s1 = inlined_call_operand.hbm [shape: bf16[1600,512], index: 1, kind: input, shape index: {}]   ;;  %s6260_s2 = inlined_call_operand.hbm [shape: f32[1,512], index: 2, kind: input, shape index: {}]   ;;  %s6261_s3 = inlined_call_operand.hbm [shape: bf16[512,128], index: 3, kind: input, shape index: {}]   ;;  %s6262_s4 = inlined_call_operand.hbm [shape: f32[1,128], index: 4, kind: input, shape index: {}]   ;;  %s6263_s5 = inlined_call_operand.vmem [shape: bf16[128,18], index: 5, kind: input, shape index: {}]   ;;  %s6264_s6 = inlined_call_operand.hbm [shape: f32[1,18], index: 6, kind: input, shape index: {}]   ;;  %s6265_s7 = inlined_call_operand.hbm [shape: f32[2,18], index: 7, kind: output, shape index: {}]  }
   0x1   :  { %13 = vsyncpa [#allocation6], 0 }
   0x2   :  { %14 = vsyncpa [#allocation9], 0  ;;  %s36_s26 = sshll.u32 %s6260_s2, 4  ;;  %s37_s26 = int_to_ptr.hbm [resolvable:$true] %s36_s26 }
   0x3   :  { %15 = vsyncpa [#allocation4], 0  ;;  %s6018_s27 = smov [#allocation5]   ;;  %s60_s8 = sshll.u32 %s6262_s4, 4  ;;  %s61_s8 = int_to_ptr.hbm [resolvable:$true] %s60_s8 }
   0x4   :  { %s38_s28 = sshll.u32 %s6018_s27, 4  ;;  %s6019_s9 = smov [#allocation8]   ;;  %s39_s28 = int_to_ptr.vmem [resolvable:$true] %s38_s28 }
   0x5   :  { %41 = dma.hbm_to_vmem [thread:$0]  %s37_s26, 64, %s39_s28, [#allocation6]  }
   0x6   :  { %s62_s10 = sshll.u32 %s6019_s9, 4  ;;  %s22_s13 = sshll.u32 %s6259_s1, 4  ;;  %s63_s10 = int_to_ptr.vmem [resolvable:$true] %s62_s10  ;;  %s23_s13 = int_to_ptr.hbm [resolvable:$true] %s22_s13 }
   0x7   :  { %65 = dma.hbm_to_vmem [thread:$0]  %s61_s8, 16, %s63_s10, [#allocation9]  }
   0x8   :  { %s6020_s2 = smov [#allocation2]   ;;  %s46_s17 = sshll.u32 %s6261_s3, 4  ;;  %s47_s17 = int_to_ptr.hbm [resolvable:$true] %s46_s17 }
   0x9   :  { %s24_s14 = sshll.u32 %s6020_s2, 4  ;;  %s6021_s18 = smov 256   ;;  %s25_s14 = int_to_ptr.vmem [resolvable:$true] %s24_s14 }
   0xa   :  { %s6022_s4 = smov 16   ;;  %s6023_s19 = smov [#allocation7]  }
   0xb   :  { %30 = dma.hbm_to_vmem [thread:$0]  %s23_s13, 51200, %s25_s14, [#allocation3], %s6021_s18, %s6021_s18, %s6022_s4  }
   0xc   :  { %s48_s20 = sshll.u32 %s6023_s19, 4  ;;  %s6024_s21 = smov 64   ;;  %s49_s20 = int_to_ptr.vmem [resolvable:$true] %s48_s20 }
   0xd   :  { %s6025_s22 = smov 4   ;;  %s73_s24 = sshll.u32 %s6264_s6, 4  ;;  %s74_s24 = int_to_ptr.hbm [resolvable:$true] %s73_s24 }
   0xe   :  { %54 = dma.hbm_to_vmem [thread:$0]  %s47_s17, 4096, %s49_s20, [#allocation6], %s6024_s21, %s6024_s21, %s6025_s22  }
   0xf   :  { %s6026_s25 = smov [#allocation10]  }
  0x10   :  { %s75_s26 = sshll.u32 %s6026_s25, 4  ;;  %s76_s26 = int_to_ptr.vmem [resolvable:$true] %s75_s26 }
  0x11   :  { %78 = dma.hbm_to_vmem [thread:$0]  %s74_s24, 16, %s76_s26, [#allocation9]  }
  0x12   :  { %6010 = dma.done.wait [#allocation3], 51200  }
  0x13   :  { %6011 = vsyncadd [#allocation3], 4294916096 }
  0x14   :  { %6012 = dma.done.wait [#allocation6], 4160  }
  0x15   :  { %6013 = vsyncadd [#allocation6], 4294963136 }
  0x16   :  { %6014 = dma.done.wait [#allocation9], 32  }
  0x17   :  { %6015 = vsyncadd [#allocation9], 4294967264  ;;  %v3758_v0 = vld [vmem:[#allocation2 + $0xe0] sm:$0xf]  ;;  %v5438_v1 = vld [vmem:[#allocation2 + $0xec] sm:$0xf0] }
  0x18   :  { %v3886_v2 = vld [vmem:[#allocation2 + $0x1e0] sm:$0xf]  ;;  %v3759_v3 = vor.u32 %v5438_v1, %v3758_v0  ;;  %v5470_v4 = vld [vmem:[#allocation2 + $0x1ec] sm:$0xf0]  ;;  %vm2541_vm0 = vcmask 523264   ;;  %s6027_s19 = smov [#allocation11]  }
  0x19   :  { %v4014_v5 = vld [vmem:[#allocation2 + $0x2e0] sm:$0xf]  ;;  %v5502_v6 = vld [vmem:[#allocation2 + $0x2ec] sm:$0xf0]  ;;  %v3887_v7 = vor.u32 %v5470_v4, %v3886_v2  ;;  %s3630_s20 = sshll.u32 %s6027_s19, 4  ;;  %s3632_s1 = sshll.u32 %s6265_s7, 4  ;;  %s3631_s20 = int_to_ptr.vmem [resolvable:$true] %s3630_s20  ;;  %s3633_s1 = int_to_ptr.hbm [resolvable:$true] %s3632_s1 }
  0x1a   :  { %v4015_v8 = vor.u32 %v5502_v6, %v4014_v5  ;;  %v4142_v9 = vld [vmem:[#allocation2 + $0x3e0] sm:$0xf]  ;;  %v5534_v10 = vld [vmem:[#allocation2 + $0x3ec] sm:$0xf0]  ;;  %2544 = vmatpush.bf16.msra.mxu0 %v3759_v3  ;;  %vm3623_vm1 = vcmask 140288  }
  0x1b   :  { %v3742_v11 = vld [vmem:[#allocation2 + $0xc0] sm:$0xf]  ;;  %v4143_v12 = vor.u32 %v5534_v10, %v4142_v9  ;;  %v5434_v13 = vld [vmem:[#allocation2 + $0xcc] sm:$0xf0]  ;;  %2557 = vmatpush.bf16.msra.mxu1 %v3887_v7 }
  0x1c   :  { %v3870_v14 = vld [vmem:[#allocation2 + $0x1c0] sm:$0xf]  ;;  %v5466_v15 = vld [vmem:[#allocation2 + $0x1cc] sm:$0xf0]  ;;  %2570 = vmatpush.bf16.msra.mxu2 %v4015_v8  ;;  %v3743_v16 = vor.u32 %v5434_v13, %v3742_v11 }
  0x1d   :  { %v3871_v17 = vor.u32 %v5466_v15, %v3870_v14  ;;  %v3998_v18 = vld [vmem:[#allocation2 + $0x2c0] sm:$0xf]  ;;  %v5498_v19 = vld [vmem:[#allocation2 + $0x2cc] sm:$0xf0]  ;;  %2583 = vmatpush.bf16.msra.mxu3 %v4143_v12 }
  0x1e   :  { %v4126_v20 = vld [vmem:[#allocation2 + $0x3c0] sm:$0xf]  ;;  %v3999_v21 = vor.u32 %v5498_v19, %v3998_v18  ;;  %v5530_v22 = vld [vmem:[#allocation2 + $0x3cc] sm:$0xf0]  ;;  %2545 = vmatpush.bf16.msra.mxu0 %v3743_v16 }
  0x1f   :  { %v3726_v23 = vld [vmem:[#allocation2 + $0xa0] sm:$0xf]  ;;  %v5430_v24 = vld [vmem:[#allocation2 + $0xac] sm:$0xf0]  ;;  %v4127_v25 = vor.u32 %v5530_v22, %v4126_v20  ;;  %2558 = vmatpush.bf16.msra.mxu1 %v3871_v17 }
  0x20   :  { %v3854_v26 = vld [vmem:[#allocation2 + $0x1a0] sm:$0xf]  ;;  %v5462_v27 = vld [vmem:[#allocation2 + $0x1ac] sm:$0xf0]  ;;  %v3727_v29 = vor.u32 %v5430_v24, %v3726_v23  ;;  %2571 = vmatpush.bf16.msra.mxu2 %v3999_v21 }
  0x21   :  { %v3982_v28 = vld [vmem:[#allocation2 + $0x2a0] sm:$0xf]  ;;  %v5494_v30 = vld [vmem:[#allocation2 + $0x2ac] sm:$0xf0]  ;;  %v3855_v33 = vor.u32 %v5462_v27, %v3854_v26  ;;  %2584 = vmatpush.bf16.msra.mxu3 %v4127_v25 }
  0x22   :  { %v4110_v31 = vld [vmem:[#allocation2 + $0x3a0] sm:$0xf]  ;;  %v5526_v32 = vld [vmem:[#allocation2 + $0x3ac] sm:$0xf0]  ;;  %v3983_v34 = vor.u32 %v5494_v30, %v3982_v28  ;;  %2546 = vmatpush.bf16.msra.mxu0 %v3727_v29 }
  0x23   :  { %v3710_v35 = vld [vmem:[#allocation2 + $0x80] sm:$0xf]  ;;  %v5426_v36 = vld [vmem:[#allocation2 + $0x8c] sm:$0xf0]  ;;  %v4111_v38 = vor.u32 %v5526_v32, %v4110_v31  ;;  %2559 = vmatpush.bf16.msra.mxu1 %v3855_v33 }
  0x24   :  { %v3838_v37 = vld [vmem:[#allocation2 + $0x180] sm:$0xf]  ;;  %v5458_v39 = vld [vmem:[#allocation2 + $0x18c] sm:$0xf0]  ;;  %v3711_v44 = vor.u32 %v5426_v36, %v3710_v35  ;;  %2572 = vmatpush.bf16.msra.mxu2 %v3983_v34 }
  0x25   :  { %v3966_v40 = vld [vmem:[#allocation2 + $0x280] sm:$0xf]  ;;  %v5490_v41 = vld [vmem:[#allocation2 + $0x28c] sm:$0xf0]  ;;  %v3839_v45 = vor.u32 %v5458_v39, %v3838_v37  ;;  %2585 = vmatpush.bf16.msra.mxu3 %v4111_v38 }
  0x26   :  { %v4094_v42 = vld [vmem:[#allocation2 + $0x380] sm:$0xf]  ;;  %v5522_v43 = vld [vmem:[#allocation2 + $0x38c] sm:$0xf0]  ;;  %v3967_v46 = vor.u32 %v5490_v41, %v3966_v40  ;;  %2547 = vmatpush.bf16.msra.mxu0 %v3711_v44 }
  0x27   :  { %v3694_v47 = vld [vmem:[#allocation2 + $0x60] sm:$0xf]  ;;  %v5422_v48 = vld [vmem:[#allocation2 + $0x6c] sm:$0xf0]  ;;  %v4095_v50 = vor.u32 %v5522_v43, %v4094_v42  ;;  %2560 = vmatpush.bf16.msra.mxu1 %v3839_v45 }
  0x28   :  { %v3822_v49 = vld [vmem:[#allocation2 + $0x160] sm:$0xf]  ;;  %v5454_v51 = vld [vmem:[#allocation2 + $0x16c] sm:$0xf0]  ;;  %v3695_v56 = vor.u32 %v5422_v48, %v3694_v47  ;;  %2573 = vmatpush.bf16.msra.mxu2 %v3967_v46 }
  0x29   :  { %v3950_v52 = vld [vmem:[#allocation2 + $0x260] sm:$0xf]  ;;  %v5486_v53 = vld [vmem:[#allocation2 + $0x26c] sm:$0xf0]  ;;  %v3823_v57 = vor.u32 %v5454_v51, %v3822_v49  ;;  %2586 = vmatpush.bf16.msra.mxu3 %v4095_v50 }
  0x2a   :  { %v4078_v54 = vld [vmem:[#allocation2 + $0x360] sm:$0xf]  ;;  %v5518_v55 = vld [vmem:[#allocation2 + $0x36c] sm:$0xf0]  ;;  %v3951_v58 = vor.u32 %v5486_v53, %v3950_v52  ;;  %2548 = vmatpush.bf16.msra.mxu0 %v3695_v56 }
  0x2b   :  { %v3678_v59 = vld [vmem:[#allocation2 + $0x40] sm:$0xf]  ;;  %v5418_v60 = vld [vmem:[#allocation2 + $0x4c] sm:$0xf0]  ;;  %v4079_v62 = vor.u32 %v5518_v55, %v4078_v54  ;;  %2561 = vmatpush.bf16.msra.mxu1 %v3823_v57 }
  0x2c   :  { %v3806_v61 = vld [vmem:[#allocation2 + $0x140] sm:$0xf]  ;;  %v5450_v63 = vld [vmem:[#allocation2 + $0x14c] sm:$0xf0]  ;;  %v3679_v4 = vor.u32 %v5418_v60, %v3678_v59  ;;  %2574 = vmatpush.bf16.msra.mxu2 %v3951_v58  ;;  %v100_v59 = vld [vmem:[%s6258_s0] sm:$0xff] }
  0x2d   :  { %v3934_v0 = vld [vmem:[#allocation2 + $0x240] sm:$0xf]  ;;  %v5482_v1 = vld [vmem:[#allocation2 + $0x24c] sm:$0xf0]  ;;  %v3807_v5 = vor.u32 %v5450_v63, %v3806_v61  ;;  %2587 = vmatpush.bf16.msra.mxu3 %v4079_v62  ;;  %513 = vst [vmem:[#allocation1] ss:$9 sm:$0xff] %v100_v59 }
  0x2e   :  { %v4062_v2 = vld [vmem:[#allocation2 + $0x340] sm:$0xf]  ;;  %v5514_v3 = vld [vmem:[#allocation2 + $0x34c] sm:$0xf0]  ;;  %v3935_v6 = vor.u32 %v5482_v1, %v3934_v0  ;;  %2549 = vmatpush.bf16.msra.mxu0 %v3679_v4 }
  0x2f   :  { %v3662_v7 = vld [vmem:[#allocation2 + $0x20] sm:$0xf]  ;;  %v5414_v8 = vld [vmem:[#allocation2 + $0x2c] sm:$0xf0]  ;;  %v4063_v10 = vor.u32 %v5514_v3, %v4062_v2  ;;  %2562 = vmatpush.bf16.msra.mxu1 %v3807_v5 }
  0x30   :  { %v3790_v9 = vld [vmem:[#allocation2 + $0x120] sm:$0xf]  ;;  %v5446_v11 = vld [vmem:[#allocation2 + $0x12c] sm:$0xf0]  ;;  %v3663_v16 = vor.u32 %v5414_v8, %v3662_v7  ;;  %2575 = vmatpush.bf16.msra.mxu2 %v3935_v6 }
  0x31   :  { %v3918_v12 = vld [vmem:[#allocation2 + $0x220] sm:$0xf]  ;;  %v5478_v13 = vld [vmem:[#allocation2 + $0x22c] sm:$0xf0]  ;;  %v3791_v19 = vor.u32 %v5446_v11, %v3790_v9  ;;  %2588 = vmatpush.bf16.msra.mxu3 %v4063_v10 }
  0x32   :  { %v4046_v14 = vld [vmem:[#allocation2 + $0x320] sm:$0xf]  ;;  %v5510_v15 = vld [vmem:[#allocation2 + $0x32c] sm:$0xf0]  ;;  %v3919_v20 = vor.u32 %v5478_v13, %v3918_v12  ;;  %2550 = vmatpush.bf16.msra.mxu0 %v3663_v16 }
  0x33   :  { %v3646_v17 = vld [vmem:[#allocation2] sm:$0xf]  ;;  %v5410_v18 = vld [vmem:[#allocation2 + $0xc] sm:$0xf0]  ;;  %v4047_v24 = vor.u32 %v5510_v15, %v4046_v14  ;;  %2563 = vmatpush.bf16.msra.mxu1 %v3791_v19 }
  0x34   :  { %v3774_v21 = vld [vmem:[#allocation2 + $0x100] sm:$0xf]  ;;  %v5442_v22 = vld [vmem:[#allocation2 + $0x10c] sm:$0xf0]  ;;  %v3647_v31 = vor.u32 %v5410_v18, %v3646_v17  ;;  %2576 = vmatpush.bf16.msra.mxu2 %v3919_v20 }
  0x35   :  { %v3902_v23 = vld [vmem:[#allocation2 + $0x200] sm:$0xf]  ;;  %v5474_v25 = vld [vmem:[#allocation2 + $0x20c] sm:$0xf0]  ;;  %v3775_v35 = vor.u32 %v5442_v22, %v3774_v21  ;;  %2589 = vmatpush.bf16.msra.mxu3 %v4047_v24  ;;  %v6088_v21 = vld [vmem:[#allocation1] sm:$0xff] }
  0x36   :  { %v4030_v26 = vld [vmem:[#allocation2 + $0x300] sm:$0xf]  ;;  %v5506_v27 = vld [vmem:[#allocation2 + $0x30c] sm:$0xf0]  ;;  %v3903_v36 = vor.u32 %v5474_v25, %v3902_v23  ;;  %2551 = vmatpush.bf16.msra.mxu0 %v3647_v31 }
  0x37   :  { %v4270_v28 = vld [vmem:[#allocation2 + $0x4e0] sm:$0xf]  ;;  %v5566_v29 = vld [vmem:[#allocation2 + $0x4ec] sm:$0xf0]  ;;  %v4031_v39 = vor.u32 %v5506_v27, %v4030_v26  ;;  %2564 = vmatpush.bf16.msra.mxu1 %v3775_v35 }
  0x38   :  { %v4398_v30 = vld [vmem:[#allocation2 + $0x5e0] sm:$0xf]  ;;  %v5598_v32 = vld [vmem:[#allocation2 + $0x5ec] sm:$0xf0]  ;;  %v4271_v40 = vor.u32 %v5566_v29, %v4270_v28  ;;  %2577 = vmatpush.bf16.msra.mxu2 %v3903_v36 }
  0x39   :  { %v4526_v33 = vld [vmem:[#allocation2 + $0x6e0] sm:$0xf]  ;;  %v5630_v34 = vld [vmem:[#allocation2 + $0x6ec] sm:$0xf0]  ;;  %v4399_v41 = vor.u32 %v5598_v32, %v4398_v30  ;;  %2590 = vmatpush.bf16.msra.mxu3 %v4031_v39  ;;  %2552 = vmatmul.bf16.vlgmr.msra.gmra.mxu0 %v6088_v21 }
  0x3a   :  { %v4654_v37 = vld [vmem:[#allocation2 + $0x7e0] sm:$0xf]  ;;  %v5662_v38 = vld [vmem:[#allocation2 + $0x7ec] sm:$0xf0]  ;;  %v4527_v42 = vor.u32 %v5630_v34, %v4526_v33  ;;  %2596 = vmatpush.bf16.msrb.mxu0 %v4271_v40 }
  0x3b   :  { %v4254_v43 = vld [vmem:[#allocation2 + $0x4c0] sm:$0xf]  ;;  %v5562_v44 = vld [vmem:[#allocation2 + $0x4cc] sm:$0xf0]  ;;  %v4655_v46 = vor.u32 %v5662_v38, %v4654_v37  ;;  %2609 = vmatpush.bf16.msrb.mxu1 %v4399_v41 }
  0x3c   :  { %v4382_v45 = vld [vmem:[#allocation2 + $0x5c0] sm:$0xf]  ;;  %v5594_v47 = vld [vmem:[#allocation2 + $0x5cc] sm:$0xf0]  ;;  %v4255_v52 = vor.u32 %v5562_v44, %v4254_v43  ;;  %2622 = vmatpush.bf16.msrb.mxu2 %v4527_v42 }
  0x3d   :  { %v4510_v48 = vld [vmem:[#allocation2 + $0x6c0] sm:$0xf]  ;;  %v5626_v49 = vld [vmem:[#allocation2 + $0x6cc] sm:$0xf0]  ;;  %v4383_v55 = vor.u32 %v5594_v47, %v4382_v45  ;;  %2635 = vmatpush.bf16.msrb.mxu3 %v4655_v46 }
  0x3e   :  { %v4638_v50 = vld [vmem:[#allocation2 + $0x7c0] sm:$0xf]  ;;  %v5658_v51 = vld [vmem:[#allocation2 + $0x7cc] sm:$0xf0]  ;;  %v4511_v56 = vor.u32 %v5626_v49, %v4510_v48  ;;  %2597 = vmatpush.bf16.msrb.mxu0 %v4255_v52 }
  0x3f   :  { %v4238_v53 = vld [vmem:[#allocation2 + $0x4a0] sm:$0xf]  ;;  %v5558_v54 = vld [vmem:[#allocation2 + $0x4ac] sm:$0xf0]  ;;  %v4639_v60 = vor.u32 %v5658_v51, %v4638_v50  ;;  %2610 = vmatpush.bf16.msrb.mxu1 %v4383_v55 }
  0x40   :  { %v4366_v57 = vld [vmem:[#allocation2 + $0x5a0] sm:$0xf]  ;;  %v5590_v58 = vld [vmem:[#allocation2 + $0x5ac] sm:$0xf0]  ;;  %v4239_v1 = vor.u32 %v5558_v54, %v4238_v53  ;;  %2623 = vmatpush.bf16.msrb.mxu2 %v4511_v56 }
  0x41   :  { %v4494_v61 = vld [vmem:[#allocation2 + $0x6a0] sm:$0xf]  ;;  %v5622_v62 = vld [vmem:[#allocation2 + $0x6ac] sm:$0xf0]  ;;  %v4367_v2 = vor.u32 %v5590_v58, %v4366_v57  ;;  %2636 = vmatpush.bf16.msrb.mxu3 %v4639_v60 }
  0x42   :  { %v4622_v63 = vld [vmem:[#allocation2 + $0x7a0] sm:$0xf]  ;;  %v5654_v0 = vld [vmem:[#allocation2 + $0x7ac] sm:$0xf0]  ;;  %v4495_v3 = vor.u32 %v5622_v62, %v4494_v61  ;;  %2598 = vmatpush.bf16.msrb.mxu0 %v4239_v1 }
  0x43   :  { %v4222_v4 = vld [vmem:[#allocation2 + $0x480] sm:$0xf]  ;;  %v5554_v5 = vld [vmem:[#allocation2 + $0x48c] sm:$0xf0]  ;;  %v4623_v7 = vor.u32 %v5654_v0, %v4622_v63  ;;  %2611 = vmatpush.bf16.msrb.mxu1 %v4367_v2 }
  0x44   :  { %v4350_v6 = vld [vmem:[#allocation2 + $0x580] sm:$0xf]  ;;  %v5586_v8 = vld [vmem:[#allocation2 + $0x58c] sm:$0xf0]  ;;  %v4223_v14 = vor.u32 %v5554_v5, %v4222_v4  ;;  %2624 = vmatpush.bf16.msrb.mxu2 %v4495_v3 }
  0x45   :  { %v4478_v9 = vld [vmem:[#allocation2 + $0x680] sm:$0xf]  ;;  %v5618_v10 = vld [vmem:[#allocation2 + $0x68c] sm:$0xf0]  ;;  %v4351_v18 = vor.u32 %v5586_v8, %v4350_v6  ;;  %2637 = vmatpush.bf16.msrb.mxu3 %v4623_v7 }
  0x46   :  { %v4606_v11 = vld [vmem:[#allocation2 + $0x780] sm:$0xf]  ;;  %v5650_v12 = vld [vmem:[#allocation2 + $0x78c] sm:$0xf0]  ;;  %v4479_v19 = vor.u32 %v5618_v10, %v4478_v9  ;;  %2599 = vmatpush.bf16.msrb.mxu0 %v4223_v14 }
  0x47   :  { %v4206_v13 = vld [vmem:[#allocation2 + $0x460] sm:$0xf]  ;;  %v5550_v15 = vld [vmem:[#allocation2 + $0x46c] sm:$0xf0]  ;;  %v4607_v23 = vor.u32 %v5650_v12, %v4606_v11  ;;  %2612 = vmatpush.bf16.msrb.mxu1 %v4351_v18 }
  0x48   :  { %v4334_v16 = vld [vmem:[#allocation2 + $0x560] sm:$0xf]  ;;  %v5582_v17 = vld [vmem:[#allocation2 + $0x56c] sm:$0xf0]  ;;  %v4207_v29 = vor.u32 %v5550_v15, %v4206_v13  ;;  %2625 = vmatpush.bf16.msrb.mxu2 %v4479_v19 }
  0x49   :  { %v6086_v20 = vld [vmem:[#allocation1 + $0x12] sm:$0xff]  ;;  %v6090_v22 = vld [vmem:[#allocation1 + $0x1b] sm:$0xff]  ;;  %v4462_v24 = vld [vmem:[#allocation2 + $0x660] sm:$0xf]  ;;  %v4335_v30 = vor.u32 %v5582_v17, %v4334_v16  ;;  %2638 = vmatpush.bf16.msrb.mxu3 %v4607_v23 }
  0x4a   :  { %v5614_v25 = vld [vmem:[#allocation2 + $0x66c] sm:$0xf0]  ;;  %2578 = vmatmul.bf16.vlgmr.msra.gmra.mxu2 %v6086_v20  ;;  %v6093_v26 = vld [vmem:[#allocation1 + $0x9] sm:$0xff]  ;;  %2591 = vmatmul.bf16.vlgmr.msra.gmra.mxu3 %v6090_v22 }
  0x4b   :  { %v4590_v27 = vld [vmem:[#allocation2 + $0x760] sm:$0xf]  ;;  %v5646_v28 = vld [vmem:[#allocation2 + $0x76c] sm:$0xf0]  ;;  %2565 = vmatmul.bf16.vlgmr.msra.gmra.mxu1 %v6093_v26  ;;  %v4463_v31 = vor.u32 %v5614_v25, %v4462_v24  ;;  %2600 = vmatpush.bf16.msrb.mxu0 %v4207_v29 }
  0x4c   :  { %v4190_v32 = vld [vmem:[#allocation2 + $0x440] sm:$0xf]  ;;  %v5546_v33 = vld [vmem:[#allocation2 + $0x44c] sm:$0xf0]  ;;  %v4591_v35 = vor.u32 %v5646_v28, %v4590_v27  ;;  %2613 = vmatpush.bf16.msrb.mxu1 %v4335_v30 }
  0x4d   :  { %v4318_v34 = vld [vmem:[#allocation2 + $0x540] sm:$0xf]  ;;  %v5578_v36 = vld [vmem:[#allocation2 + $0x54c] sm:$0xf0]  ;;  %v4191_v41 = vor.u32 %v5546_v33, %v4190_v32  ;;  %2626 = vmatpush.bf16.msrb.mxu2 %v4463_v31  ;;  %v6102_v32 = vld [vmem:[#allocation1 + $0x3f] sm:$0xff] }
  0x4e   :  { %v4446_v37 = vld [vmem:[#allocation2 + $0x640] sm:$0xf]  ;;  %v5610_v38 = vld [vmem:[#allocation2 + $0x64c] sm:$0xf0]  ;;  %v4319_v42 = vor.u32 %v5578_v36, %v4318_v34  ;;  %2639 = vmatpush.bf16.msrb.mxu3 %v4591_v35  ;;  %v6104_v33 = vld [vmem:[#allocation1 + $0x2d] sm:$0xff] }
  0x4f   :  { %v4574_v39 = vld [vmem:[#allocation2 + $0x740] sm:$0xf]  ;;  %v5642_v40 = vld [vmem:[#allocation2 + $0x74c] sm:$0xf0]  ;;  %v4447_v43 = vor.u32 %v5610_v38, %v4446_v37  ;;  %2601 = vmatpush.bf16.msrb.mxu0 %v4191_v41 }
  0x50   :  { %v4174_v44 = vld [vmem:[#allocation2 + $0x420] sm:$0xf]  ;;  %v5542_v45 = vld [vmem:[#allocation2 + $0x42c] sm:$0xf0]  ;;  %v4575_v47 = vor.u32 %v5642_v40, %v4574_v39  ;;  %2614 = vmatpush.bf16.msrb.mxu1 %v4319_v42 }
  0x51   :  { %v4302_v46 = vld [vmem:[#allocation2 + $0x520] sm:$0xf]  ;;  %v5574_v48 = vld [vmem:[#allocation2 + $0x52c] sm:$0xf0]  ;;  %v4175_v53 = vor.u32 %v5542_v45, %v4174_v44  ;;  %2627 = vmatpush.bf16.msrb.mxu2 %v4447_v43 }
  0x52   :  { %v4430_v49 = vld [vmem:[#allocation2 + $0x620] sm:$0xf]  ;;  %v5606_v50 = vld [vmem:[#allocation2 + $0x62c] sm:$0xf0]  ;;  %v4303_v56 = vor.u32 %v5574_v48, %v4302_v46  ;;  %2640 = vmatpush.bf16.msrb.mxu3 %v4575_v47 }
  0x53   :  { %v4558_v51 = vld [vmem:[#allocation2 + $0x720] sm:$0xf]  ;;  %v5638_v52 = vld [vmem:[#allocation2 + $0x72c] sm:$0xf0]  ;;  %v4431_v57 = vor.u32 %v5606_v50, %v4430_v49  ;;  %2602 = vmatpush.bf16.msrb.mxu0 %v4175_v53 }
  0x54   :  { %v4158_v54 = vld [vmem:[#allocation2 + $0x400] sm:$0xf]  ;;  %v5538_v55 = vld [vmem:[#allocation2 + $0x40c] sm:$0xf0]  ;;  %v4559_v61 = vor.u32 %v5638_v52, %v4558_v51  ;;  %2615 = vmatpush.bf16.msrb.mxu1 %v4303_v56 }
  0x55   :  { %v4286_v58 = vld [vmem:[#allocation2 + $0x500] sm:$0xf]  ;;  %v5570_v59 = vld [vmem:[#allocation2 + $0x50c] sm:$0xf0]  ;;  %v4159_v4 = vor.u32 %v5538_v55, %v4158_v54  ;;  %2628 = vmatpush.bf16.msrb.mxu2 %v4431_v57 }
  0x56   :  { %v4414_v60 = vld [vmem:[#allocation2 + $0x600] sm:$0xf]  ;;  %v5602_v62 = vld [vmem:[#allocation2 + $0x60c] sm:$0xf0]  ;;  %v4287_v8 = vor.u32 %v5570_v59, %v4286_v58  ;;  %2641 = vmatpush.bf16.msrb.mxu3 %v4559_v61 }
  0x57   :  { %v4542_v63 = vld [vmem:[#allocation2 + $0x700] sm:$0xf]  ;;  %v5634_v0 = vld [vmem:[#allocation2 + $0x70c] sm:$0xf0]  ;;  %v4415_v9 = vor.u32 %v5602_v62, %v4414_v60  ;;  %2603 = vmatpush.bf16.msrb.mxu0 %v4159_v4 }
  0x58   :  { %v4782_v1 = vld [vmem:[#allocation2 + $0x8e0] sm:$0xf]  ;;  %v5694_v2 = vld [vmem:[#allocation2 + $0x8ec] sm:$0xf0]  ;;  %v4543_v12 = vor.u32 %v5634_v0, %v4542_v63  ;;  %2616 = vmatpush.bf16.msrb.mxu1 %v4287_v8 }
  0x59   :  { %v4910_v3 = vld [vmem:[#allocation2 + $0x9e0] sm:$0xf]  ;;  %v5726_v5 = vld [vmem:[#allocation2 + $0x9ec] sm:$0xf0]  ;;  %v4783_v13 = vor.u32 %v5694_v2, %v4782_v1  ;;  %2629 = vmatpush.bf16.msrb.mxu2 %v4415_v9 }
  0x5a   :  { %v5038_v6 = vld [vmem:[#allocation2 + $0xae0] sm:$0xf]  ;;  %v5758_v7 = vld [vmem:[#allocation2 + $0xaec] sm:$0xf0]  ;;  %v4911_v14 = vor.u32 %v5726_v5, %v4910_v3  ;;  %2642 = vmatpush.bf16.msrb.mxu3 %v4543_v12 }
  0x5b   :  { %v5166_v10 = vld [vmem:[#allocation2 + $0xbe0] sm:$0xf]  ;;  %v5790_v11 = vld [vmem:[#allocation2 + $0xbec] sm:$0xf0]  ;;  %v5039_v15 = vor.u32 %v5758_v7, %v5038_v6  ;;  %2648 = vmatpush.bf16.msra.mxu0 %v4783_v13  ;;  %2617 = vmatmul.bf16.vlgmr.msrb.gmra.mxu1 %v6104_v33 }
  0x5c   :  { %v4766_v16 = vld [vmem:[#allocation2 + $0x8c0] sm:$0xf]  ;;  %v5690_v17 = vld [vmem:[#allocation2 + $0x8cc] sm:$0xf0]  ;;  %v5167_v19 = vor.u32 %v5790_v11, %v5166_v10  ;;  %2661 = vmatpush.bf16.msra.mxu1 %v4911_v14 }
  0x5d   :  { %v4894_v18 = vld [vmem:[#allocation2 + $0x9c0] sm:$0xf]  ;;  %v5722_v23 = vld [vmem:[#allocation2 + $0x9cc] sm:$0xf0]  ;;  %v4767_v30 = vor.u32 %v5690_v17, %v4766_v16  ;;  %2674 = vmatpush.bf16.msra.mxu2 %v5039_v15  ;;  %2643 = vmatmul.bf16.vlgmr.msrb.gmra.mxu3 %v6102_v32 }
  0x5e   :  { %v5022_v24 = vld [vmem:[#allocation2 + $0xac0] sm:$0xf]  ;;  %v5754_v25 = vld [vmem:[#allocation2 + $0xacc] sm:$0xf0]  ;;  %v4895_v34 = vor.u32 %v5722_v23, %v4894_v18  ;;  %2687 = vmatpush.bf16.msra.mxu3 %v5167_v19 }
  0x5f   :  { %v6098_v27 = vld [vmem:[#allocation1 + $0x36] sm:$0xff]  ;;  %v5150_v28 = vld [vmem:[#allocation2 + $0xbc0] sm:$0xf]  ;;  %v5023_v35 = vor.u32 %v5754_v25, %v5022_v24  ;;  %2649 = vmatpush.bf16.msra.mxu0 %v4767_v30 }
  0x60   :  { %v5786_v29 = vld [vmem:[#allocation2 + $0xbcc] sm:$0xf0]  ;;  %v6100_v31 = vld [vmem:[#allocation1 + $0x24] sm:$0xff]  ;;  %2630 = vmatmul.bf16.vlgmr.msrb.gmra.mxu2 %v6098_v27  ;;  %2662 = vmatpush.bf16.msra.mxu1 %v4895_v34 }
  0x61   :  { %v4750_v36 = vld [vmem:[#allocation2 + $0x8a0] sm:$0xf]  ;;  %v5686_v37 = vld [vmem:[#allocation2 + $0x8ac] sm:$0xf0]  ;;  %v5151_v39 = vor.u32 %v5786_v29, %v5150_v28  ;;  %2604 = vmatmul.bf16.vlgmr.msrb.gmra.mxu0 %v6100_v31  ;;  %2675 = vmatpush.bf16.msra.mxu2 %v5023_v35 }
  0x62   :  { %v4878_v38 = vld [vmem:[#allocation2 + $0x9a0] sm:$0xf]  ;;  %v5718_v40 = vld [vmem:[#allocation2 + $0x9ac] sm:$0xf0]  ;;  %v4751_v45 = vor.u32 %v5686_v37, %v4750_v36 }
  0x63   :  { %v5006_v41 = vld [vmem:[#allocation2 + $0xaa0] sm:$0xf]  ;;  %v5750_v42 = vld [vmem:[#allocation2 + $0xaac] sm:$0xf0]  ;;  %v4879_v46 = vor.u32 %v5718_v40, %v4878_v38  ;;  %2688 = vmatpush.bf16.msra.mxu3 %v5151_v39 }
  0x64   :  { %v5134_v43 = vld [vmem:[#allocation2 + $0xba0] sm:$0xf]  ;;  %v5782_v44 = vld [vmem:[#allocation2 + $0xbac] sm:$0xf0]  ;;  %v5007_v47 = vor.u32 %v5750_v42, %v5006_v41  ;;  %2650 = vmatpush.bf16.msra.mxu0 %v4751_v45 }
  0x65   :  { %v4734_v48 = vld [vmem:[#allocation2 + $0x880] sm:$0xf]  ;;  %v5682_v49 = vld [vmem:[#allocation2 + $0x88c] sm:$0xf0]  ;;  %v5135_v51 = vor.u32 %v5782_v44, %v5134_v43  ;;  %2663 = vmatpush.bf16.msra.mxu1 %v4879_v46 }
  0x66   :  { %v4862_v50 = vld [vmem:[#allocation2 + $0x980] sm:$0xf]  ;;  %v5714_v52 = vld [vmem:[#allocation2 + $0x98c] sm:$0xf0]  ;;  %v4735_v58 = vor.u32 %v5682_v49, %v4734_v48  ;;  %2676 = vmatpush.bf16.msra.mxu2 %v5007_v47 }
  0x67   :  { %v4990_v53 = vld [vmem:[#allocation2 + $0xa80] sm:$0xf]  ;;  %v5746_v54 = vld [vmem:[#allocation2 + $0xa8c] sm:$0xf0]  ;;  %v4863_v59 = vor.u32 %v5714_v52, %v4862_v50  ;;  %2689 = vmatpush.bf16.msra.mxu3 %v5135_v51  ;;  %v5468_v52 = vld [vmem:[#allocation2 + $0x1e4] sm:$0xf] }
  0x68   :  { %v5118_v55 = vld [vmem:[#allocation2 + $0xb80] sm:$0xf]  ;;  %v5778_v56 = vld [vmem:[#allocation2 + $0xb8c] sm:$0xf0]  ;;  %v4991_v60 = vor.u32 %v5746_v54, %v4990_v53  ;;  %2651 = vmatpush.bf16.msra.mxu0 %v4735_v58  ;;  %v3888_v54 = vld [vmem:[#allocation2 + $0x1f0] sm:$0xf0] }
  0x69   :  { %v101_v57 = vld [vmem:[%s6258_s0 + $0x8] sm:$0x1f]  ;;  %v5678_v62 = vld [vmem:[#allocation2 + $0x86c] sm:$0xf0]  ;;  %v5119_v0 = vor.u32 %v5778_v56, %v5118_v55  ;;  %2664 = vmatpush.bf16.msra.mxu1 %v4863_v59  ;;  %v4016_v56 = vld [vmem:[#allocation2 + $0x2f0] sm:$0xf0] }
  0x6a   :  { %523 = vst [vmem:[#allocation1] ss:$9 sm:$0xff] %v101_v57  ;;  %v4718_v61 = vld [vmem:[#allocation2 + $0x860] sm:$0xf]  ;;  %v5710_v1 = vld [vmem:[#allocation2 + $0x96c] sm:$0xf0]  ;;  %2677 = vmatpush.bf16.msra.mxu2 %v4991_v60 }
  0x6b   :  { %v4846_v63 = vld [vmem:[#allocation2 + $0x960] sm:$0xf]  ;;  %v5742_v3 = vld [vmem:[#allocation2 + $0xa6c] sm:$0xf0]  ;;  %v4719_v6 = vor.u32 %v5678_v62, %v4718_v61  ;;  %2690 = vmatpush.bf16.msra.mxu3 %v5119_v0  ;;  %v5500_v55 = vld [vmem:[#allocation2 + $0x2e4] sm:$0xf]  ;;  %v3891_v0 = vor.u32 %v5468_v52, %v3888_v54 }
  0x6c   :  { %v4974_v2 = vld [vmem:[#allocation2 + $0xa60] sm:$0xf]  ;;  %v5774_v5 = vld [vmem:[#allocation2 + $0xb6c] sm:$0xf0]  ;;  %v4847_v7 = vor.u32 %v5710_v1, %v4846_v63  ;;  %v5532_v59 = vld [vmem:[#allocation2 + $0x3e4] sm:$0xf]  ;;  %v4019_v1 = vor.u32 %v5500_v55, %v4016_v56 }
  0x6d   :  { %v5102_v4 = vld [vmem:[#allocation2 + $0xb60] sm:$0xf]  ;;  %v4975_v8 = vor.u32 %v5742_v3, %v4974_v2  ;;  %v5674_v10 = vld [vmem:[#allocation2 + $0x84c] sm:$0xf0]  ;;  %2652 = vmatpush.bf16.msra.mxu0 %v4719_v6  ;;  %v4144_v60 = vld [vmem:[#allocation2 + $0x3f0] sm:$0xf0] }
  0x6e   :  { %v4702_v9 = vld [vmem:[#allocation2 + $0x840] sm:$0xf]  ;;  %v5103_v12 = vor.u32 %v5774_v5, %v5102_v4  ;;  %v5706_v13 = vld [vmem:[#allocation2 + $0x94c] sm:$0xf0]  ;;  %2665 = vmatpush.bf16.msra.mxu1 %v4847_v7  ;;  %v5464_v3 = vld [vmem:[#allocation2 + $0x1c4] sm:$0xf]  ;;  %v4147_v5 = vor.u32 %v5532_v59, %v4144_v60 }
  0x6f   :  { %v4830_v11 = vld [vmem:[#allocation2 + $0x940] sm:$0xf]  ;;  %v5738_v15 = vld [vmem:[#allocation2 + $0xa4c] sm:$0xf0]  ;;  %v4703_v18 = vor.u32 %v5674_v10, %v4702_v9  ;;  %2678 = vmatpush.bf16.msra.mxu2 %v4975_v8  ;;  %v3872_v4 = vld [vmem:[#allocation2 + $0x1d0] sm:$0xf0] }
  0x70   :  { %v4958_v14 = vld [vmem:[#allocation2 + $0xa40] sm:$0xf]  ;;  %v5770_v17 = vld [vmem:[#allocation2 + $0xb4c] sm:$0xf0]  ;;  %v4831_v19 = vor.u32 %v5706_v13, %v4830_v11  ;;  %2691 = vmatpush.bf16.msra.mxu3 %v5103_v12  ;;  %v5496_v6 = vld [vmem:[#allocation2 + $0x2c4] sm:$0xf] }
  0x71   :  { %v5086_v16 = vld [vmem:[#allocation2 + $0xb40] sm:$0xf]  ;;  %v4959_v23 = vor.u32 %v5738_v15, %v4958_v14  ;;  %v5670_v25 = vld [vmem:[#allocation2 + $0x82c] sm:$0xf0]  ;;  %2653 = vmatpush.bf16.msra.mxu0 %v4703_v18  ;;  %v4000_v7 = vld [vmem:[#allocation2 + $0x2d0] sm:$0xf0] }
  0x72   :  { %v4686_v24 = vld [vmem:[#allocation2 + $0x820] sm:$0xf]  ;;  %v5087_v29 = vor.u32 %v5770_v17, %v5086_v16  ;;  %v5702_v30 = vld [vmem:[#allocation2 + $0x92c] sm:$0xf0]  ;;  %2666 = vmatpush.bf16.msra.mxu1 %v4831_v19  ;;  %v5528_v8 = vld [vmem:[#allocation2 + $0x3c4] sm:$0xf]  ;;  %v3875_v17 = vor.u32 %v5464_v3, %v3872_v4  ;;  %v4003_v18 = vor.u32 %v5496_v6, %v4000_v7 }
  0x73   :  { %v4814_v28 = vld [vmem:[#allocation2 + $0x920] sm:$0xf]  ;;  %v5734_v35 = vld [vmem:[#allocation2 + $0xa2c] sm:$0xf0]  ;;  %v4687_v38 = vor.u32 %v5670_v25, %v4686_v24  ;;  %2679 = vmatpush.bf16.msra.mxu2 %v4959_v23  ;;  %v4128_v10 = vld [vmem:[#allocation2 + $0x3d0] sm:$0xf0] }
  0x74   :  { %v4942_v34 = vld [vmem:[#allocation2 + $0xa20] sm:$0xf]  ;;  %v5766_v37 = vld [vmem:[#allocation2 + $0xb2c] sm:$0xf0]  ;;  %v4815_v41 = vor.u32 %v5702_v30, %v4814_v28  ;;  %2692 = vmatpush.bf16.msra.mxu3 %v5087_v29  ;;  %v6115_v12 = vld [vmem:[#allocation1] sm:$0xff]  ;;  %v4131_v24 = vor.u32 %v5528_v8, %v4128_v10 }
  0x75   :  { %v5070_v36 = vld [vmem:[#allocation2 + $0xb20] sm:$0xf]  ;;  %v5666_v40 = vld [vmem:[#allocation2 + $0x80c] sm:$0xf0]  ;;  %v4943_v42 = vor.u32 %v5734_v35, %v4942_v34  ;;  %2654 = vmatpush.bf16.msra.mxu0 %v4687_v38  ;;  %v5460_v19 = vld [vmem:[#allocation2 + $0x1a4] sm:$0xf] }
  0x76   :  { %v4670_v39 = vld [vmem:[#allocation2 + $0x800] sm:$0xf]  ;;  %v5698_v44 = vld [vmem:[#allocation2 + $0x90c] sm:$0xf0]  ;;  %v5071_v46 = vor.u32 %v5766_v37, %v5070_v36  ;;  %2667 = vmatpush.bf16.msra.mxu1 %v4815_v41  ;;  %v3856_v23 = vld [vmem:[#allocation2 + $0x1b0] sm:$0xf0] }
  0x77   :  { %v4798_v43 = vld [vmem:[#allocation2 + $0x900] sm:$0xf]  ;;  %v5730_v47 = vld [vmem:[#allocation2 + $0xa0c] sm:$0xf0]  ;;  %v4671_v53 = vor.u32 %v5666_v40, %v4670_v39  ;;  %2680 = vmatpush.bf16.msra.mxu2 %v4943_v42  ;;  %v5492_v25 = vld [vmem:[#allocation2 + $0x2a4] sm:$0xf]  ;;  %v3859_v36 = vor.u32 %v5460_v19, %v3856_v23 }
  0x78   :  { %v4926_v45 = vld [vmem:[#allocation2 + $0xa00] sm:$0xf]  ;;  %v5762_v49 = vld [vmem:[#allocation2 + $0xb0c] sm:$0xf0]  ;;  %v4799_v57 = vor.u32 %v5698_v44, %v4798_v43  ;;  %2693 = vmatpush.bf16.msra.mxu3 %v5071_v46  ;;  %v3984_v28 = vld [vmem:[#allocation2 + $0x2b0] sm:$0xf0] }
  0x79   :  { %v5054_v48 = vld [vmem:[#allocation2 + $0xb00] sm:$0xf]  ;;  %v5806_v51 = vld [vmem:[#allocation2 + $0xc6c] sm:$0xf0]  ;;  %v4927_v58 = vor.u32 %v5730_v47, %v4926_v45  ;;  %2655 = vmatpush.bf16.msra.mxu0 %v4671_v53  ;;  %v5524_v29 = vld [vmem:[#allocation2 + $0x3a4] sm:$0xf]  ;;  %v3987_v37 = vor.u32 %v5492_v25, %v3984_v28 }
  0x7a   :  { %v5230_v50 = vld [vmem:[#allocation2 + $0xc60] sm:$0xf]  ;;  %v5055_v61 = vor.u32 %v5762_v49, %v5054_v48  ;;  %v5802_v2 = vld [vmem:[#allocation2 + $0xc4c] sm:$0xf0]  ;;  %2668 = vmatpush.bf16.msra.mxu1 %v4799_v57  ;;  %v4112_v30 = vld [vmem:[#allocation2 + $0x3b0] sm:$0xf0] }
  0x7b   :  { %v5231_v62 = vor.u32 %v5806_v51, %v5230_v50  ;;  %v5214_v63 = vld [vmem:[#allocation2 + $0xc40] sm:$0xf]  ;;  %2681 = vmatpush.bf16.msra.mxu2 %v4927_v58  ;;  %v6117_v13 = vld [vmem:[#allocation1 + $0x12] sm:$0xff]  ;;  %v6119_v16 = vld [vmem:[#allocation1 + $0x1b] sm:$0xff]  ;;  %v4115_v41 = vor.u32 %v5524_v29, %v4112_v30 }
  0x7c   :  { %v6113_v9 = vld [vmem:[#allocation1 + $0x9] sm:$0xff]  ;;  %2694 = vmatpush.bf16.msra.mxu3 %v5055_v61  ;;  %v5215_v14 = vor.u32 %v5802_v2, %v5214_v63  ;;  %v5798_v15 = vld [vmem:[#allocation2 + $0xc2c] sm:$0xf0]  ;;  %2656 = vmatmul.bf16.vlgmr.msra.gmra.mxu0 %v6115_v12  ;;  %v3840_v40 = vld [vmem:[#allocation2 + $0x190] sm:$0xf0] }
  0x7d   :  { %v5198_v11 = vld [vmem:[#allocation2 + $0xc20] sm:$0xf]  ;;  %2752 = vmatpush.bf16.msrb.mxu0 %v4147_v5  ;;  %2669 = vmatmul.bf16.vlgmr.msra.gmra.mxu1 %v6113_v9  ;;  %v5794_v38 = vld [vmem:[#allocation2 + $0xc0c] sm:$0xf0]  ;;  %v5456_v39 = vld [vmem:[#allocation2 + $0x184] sm:$0xf] }
  0x7e   :  { %2704 = vmatpush.bf16.msrb.mxu1 %v5231_v62  ;;  %2682 = vmatmul.bf16.vlgmr.msra.gmra.mxu2 %v6117_v13  ;;  %v5199_v34 = vor.u32 %v5798_v15, %v5198_v11  ;;  %v5182_v35 = vld [vmem:[#allocation2 + $0xc00] sm:$0xf]  ;;  %v5488_v42 = vld [vmem:[#allocation2 + $0x284] sm:$0xf]  ;;  %v3968_v43 = vld [vmem:[#allocation2 + $0x290] sm:$0xf0]  ;;  %v3843_v49 = vor.u32 %v5456_v39, %v3840_v40 }
  0x7f   :  { %2726 = vmatpush.bf16.msrb.mxu2 %v3891_v0  ;;  %2695 = vmatmul.bf16.vlgmr.msra.gmra.mxu3 %v6119_v16  ;;  %v5520_v44 = vld [vmem:[#allocation2 + $0x384] sm:$0xf]  ;;  %v4096_v45 = vld [vmem:[#allocation2 + $0x390] sm:$0xf0]  ;;  %v5183_v48 = vor.u32 %v5794_v38, %v5182_v35  ;;  %v3971_v50 = vor.u32 %v5488_v42, %v3968_v43  ;;  %v6125_v10 = vld [vmem:[#allocation1 + $0x24] sm:$0xff] }
  0x80   :  { %2739 = vmatpush.bf16.msrb.mxu3 %v4019_v1  ;;  %v5436_v46 = vld [vmem:[#allocation2 + $0xe4] sm:$0xf]  ;;  %v3760_v47 = vld [vmem:[#allocation2 + $0xf0] sm:$0xf0]  ;;  %v4099_v53 = vor.u32 %v5520_v44, %v4096_v45 }
  0x81   :  { %2753 = vmatpush.bf16.msrb.mxu0 %v4131_v24  ;;  %v5452_v51 = vld [vmem:[#allocation2 + $0x164] sm:$0xf]  ;;  %v3824_v52 = vld [vmem:[#allocation2 + $0x170] sm:$0xf0]  ;;  %v3763_v54 = vor.u32 %v5436_v46, %v3760_v47 }
  0x82   :  { %2705 = vmatpush.bf16.msrb.mxu1 %v5215_v14  ;;  %v5484_v55 = vld [vmem:[#allocation2 + $0x264] sm:$0xf]  ;;  %v3952_v56 = vld [vmem:[#allocation2 + $0x270] sm:$0xf0]  ;;  %v3827_v61 = vor.u32 %v5452_v51, %v3824_v52 }
  0x83   :  { %2727 = vmatpush.bf16.msrb.mxu2 %v3875_v17  ;;  %v5516_v57 = vld [vmem:[#allocation2 + $0x364] sm:$0xf]  ;;  %v4080_v58 = vld [vmem:[#allocation2 + $0x370] sm:$0xf0]  ;;  %v3955_v62 = vor.u32 %v5484_v55, %v3952_v56 }
  0x84   :  { %2740 = vmatpush.bf16.msrb.mxu3 %v4003_v18  ;;  %v5432_v59 = vld [vmem:[#allocation2 + $0xc4] sm:$0xf]  ;;  %v3744_v60 = vld [vmem:[#allocation2 + $0xd0] sm:$0xf0]  ;;  %v4083_v1 = vor.u32 %v5516_v57, %v4080_v58 }
  0x85   :  { %2754 = vmatpush.bf16.msrb.mxu0 %v4115_v41  ;;  %v5448_v63 = vld [vmem:[#allocation2 + $0x144] sm:$0xf]  ;;  %v3808_v0 = vld [vmem:[#allocation2 + $0x150] sm:$0xf0]  ;;  %v3747_v2 = vor.u32 %v5432_v59, %v3744_v60 }
  0x86   :  { %2706 = vmatpush.bf16.msrb.mxu1 %v5199_v34  ;;  %v5480_v3 = vld [vmem:[#allocation2 + $0x244] sm:$0xf]  ;;  %v3936_v4 = vld [vmem:[#allocation2 + $0x250] sm:$0xf0]  ;;  %v3811_v11 = vor.u32 %v5448_v63, %v3808_v0 }
  0x87   :  { %2728 = vmatpush.bf16.msrb.mxu2 %v3859_v36  ;;  %v5512_v5 = vld [vmem:[#allocation2 + $0x344] sm:$0xf]  ;;  %v4064_v6 = vld [vmem:[#allocation2 + $0x350] sm:$0xf0]  ;;  %v3939_v14 = vor.u32 %v5480_v3, %v3936_v4 }
  0x88   :  { %2741 = vmatpush.bf16.msrb.mxu3 %v3987_v37  ;;  %v5428_v7 = vld [vmem:[#allocation2 + $0xa4] sm:$0xf]  ;;  %v3728_v8 = vld [vmem:[#allocation2 + $0xb0] sm:$0xf0]  ;;  %v4067_v18 = vor.u32 %v5512_v5, %v4064_v6 }
  0x89   :  { %2755 = vmatpush.bf16.msrb.mxu0 %v4099_v53  ;;  %v5444_v15 = vld [vmem:[#allocation2 + $0x124] sm:$0xf]  ;;  %v3792_v17 = vld [vmem:[#allocation2 + $0x130] sm:$0xf0]  ;;  %v3731_v19 = vor.u32 %v5428_v7, %v3728_v8 }
  0x8a   :  { %2707 = vmatpush.bf16.msrb.mxu1 %v5183_v48  ;;  %v5476_v23 = vld [vmem:[#allocation2 + $0x224] sm:$0xf]  ;;  %v3920_v24 = vld [vmem:[#allocation2 + $0x230] sm:$0xf0]  ;;  %v3795_v34 = vor.u32 %v5444_v15, %v3792_v17 }
  0x8b   :  { %2729 = vmatpush.bf16.msrb.mxu2 %v3843_v49  ;;  %v5508_v25 = vld [vmem:[#allocation2 + $0x324] sm:$0xf]  ;;  %v4048_v28 = vld [vmem:[#allocation2 + $0x330] sm:$0xf0]  ;;  %v3923_v35 = vor.u32 %v5476_v23, %v3920_v24 }
  0x8c   :  { %2742 = vmatpush.bf16.msrb.mxu3 %v3971_v50  ;;  %v5424_v29 = vld [vmem:[#allocation2 + $0x84] sm:$0xf]  ;;  %v3712_v30 = vld [vmem:[#allocation2 + $0x90] sm:$0xf0]  ;;  %v4051_v39 = vor.u32 %v5508_v25, %v4048_v28 }
  0x8d   :  { %2756 = vmatpush.bf16.msrb.mxu0 %v4083_v1  ;;  %5244 = vmatmul.msk.bf16.vlgmr.msrb.gmra.mxu1 %vm2541_vm0, %v6125_v10  ;;  %v5440_v36 = vld [vmem:[#allocation2 + $0x104] sm:$0xf]  ;;  %v3776_v37 = vld [vmem:[#allocation2 + $0x110] sm:$0xf0]  ;;  %v3715_v40 = vor.u32 %v5424_v29, %v3712_v30 }
  0x8e   :  { %2713 = vmatpush.bf16.msra.mxu1 %v3763_v54  ;;  %v5472_v38 = vld [vmem:[#allocation2 + $0x204] sm:$0xf]  ;;  %v3904_v41 = vld [vmem:[#allocation2 + $0x210] sm:$0xf0]  ;;  %v3779_v50 = vor.u32 %v5440_v36, %v3776_v37 }
  0x8f   :  { %2730 = vmatpush.bf16.msrb.mxu2 %v3827_v61  ;;  %v5504_v42 = vld [vmem:[#allocation2 + $0x304] sm:$0xf]  ;;  %v4032_v43 = vld [vmem:[#allocation2 + $0x310] sm:$0xf0]  ;;  %v3907_v51 = vor.u32 %v5472_v38, %v3904_v41 }
  0x90   :  { %2743 = vmatpush.bf16.msrb.mxu3 %v3955_v62  ;;  %v5420_v44 = vld [vmem:[#allocation2 + $0x64] sm:$0xf]  ;;  %v3696_v45 = vld [vmem:[#allocation2 + $0x70] sm:$0xf0]  ;;  %v4035_v54 = vor.u32 %v5504_v42, %v4032_v43 }
  0x91   :  { %2757 = vmatpush.bf16.msrb.mxu0 %v4067_v18  ;;  %v5596_v46 = vld [vmem:[#allocation2 + $0x5e4] sm:$0xf]  ;;  %v4400_v47 = vld [vmem:[#allocation2 + $0x5f0] sm:$0xf0]  ;;  %v3699_v55 = vor.u32 %v5420_v44, %v3696_v45 }
  0x92   :  { %2714 = vmatpush.bf16.msra.mxu1 %v3747_v2  ;;  %v5628_v48 = vld [vmem:[#allocation2 + $0x6e4] sm:$0xf]  ;;  %v4528_v49 = vld [vmem:[#allocation2 + $0x6f0] sm:$0xf0]  ;;  %v4403_v56 = vor.u32 %v5596_v46, %v4400_v47 }
  0x93   :  { %2731 = vmatpush.bf16.msrb.mxu2 %v3811_v11  ;;  %v5660_v52 = vld [vmem:[#allocation2 + $0x7e4] sm:$0xf]  ;;  %v4656_v53 = vld [vmem:[#allocation2 + $0x7f0] sm:$0xf0]  ;;  %v4531_v57 = vor.u32 %v5628_v48, %v4528_v49 }
  0x94   :  { %2744 = vmatpush.bf16.msrb.mxu3 %v3939_v14  ;;  %v5416_v58 = vld [vmem:[#allocation2 + $0x44] sm:$0xf]  ;;  %v3680_v59 = vld [vmem:[#allocation2 + $0x50] sm:$0xf0]  ;;  %v4659_v61 = vor.u32 %v5660_v52, %v4656_v53 }
  0x95   :  { %2758 = vmatpush.bf16.msrb.mxu0 %v4051_v39  ;;  %v5592_v60 = vld [vmem:[#allocation2 + $0x5c4] sm:$0xf]  ;;  %v4384_v62 = vld [vmem:[#allocation2 + $0x5d0] sm:$0xf0]  ;;  %v3683_v3 = vor.u32 %v5416_v58, %v3680_v59 }
  0x96   :  { %2715 = vmatpush.bf16.msra.mxu1 %v3731_v19  ;;  %v5624_v63 = vld [vmem:[#allocation2 + $0x6c4] sm:$0xf]  ;;  %v4512_v0 = vld [vmem:[#allocation2 + $0x6d0] sm:$0xf0]  ;;  %v4387_v4 = vor.u32 %v5592_v60, %v4384_v62 }
  0x97   :  { %2732 = vmatpush.bf16.msrb.mxu2 %v3795_v34  ;;  %v5656_v1 = vld [vmem:[#allocation2 + $0x7c4] sm:$0xf]  ;;  %v4640_v2 = vld [vmem:[#allocation2 + $0x7d0] sm:$0xf0]  ;;  %v4515_v5 = vor.u32 %v5624_v63, %v4512_v0 }
  0x98   :  { %2745 = vmatpush.bf16.msrb.mxu3 %v3923_v35  ;;  %v5412_v6 = vld [vmem:[#allocation2 + $0x24] sm:$0xf]  ;;  %v3664_v7 = vld [vmem:[#allocation2 + $0x30] sm:$0xf0]  ;;  %v4643_v11 = vor.u32 %v5656_v1, %v4640_v2 }
  0x99   :  { %2759 = vmatpush.bf16.msrb.mxu0 %v4035_v54  ;;  %v5588_v8 = vld [vmem:[#allocation2 + $0x5a4] sm:$0xf]  ;;  %v4368_v14 = vld [vmem:[#allocation2 + $0x5b0] sm:$0xf0]  ;;  %v3667_v23 = vor.u32 %v5412_v6, %v3664_v7 }
  0x9a   :  { %2716 = vmatpush.bf16.msra.mxu1 %v3715_v40  ;;  %v5620_v15 = vld [vmem:[#allocation2 + $0x6a4] sm:$0xf]  ;;  %v4496_v17 = vld [vmem:[#allocation2 + $0x6b0] sm:$0xf0]  ;;  %v4371_v25 = vor.u32 %v5588_v8, %v4368_v14 }
  0x9b   :  { %2733 = vmatpush.bf16.msrb.mxu2 %v3779_v50  ;;  %v5652_v18 = vld [vmem:[#allocation2 + $0x7a4] sm:$0xf]  ;;  %v4624_v19 = vld [vmem:[#allocation2 + $0x7b0] sm:$0xf0]  ;;  %v4499_v28 = vor.u32 %v5620_v15, %v4496_v17 }
  0x9c   :  { %2746 = vmatpush.bf16.msrb.mxu3 %v3907_v51  ;;  %2760 = vmatmul.bf16.vlgmr.msrb.gmra.mxu0 %v6090_v22  ;;  %v5408_v24 = vld [vmem:[#allocation2 + $0x4] sm:$0xf]  ;;  %v3648_v29 = vld [vmem:[#allocation2 + $0x10] sm:$0xf0]  ;;  %v4627_v35 = vor.u32 %v5652_v18, %v4624_v19 }
  0x9d   :  { %2804 = vmatpush.bf16.msra.mxu0 %v4659_v61  ;;  %v5584_v30 = vld [vmem:[#allocation2 + $0x584] sm:$0xf]  ;;  %v4352_v34 = vld [vmem:[#allocation2 + $0x590] sm:$0xf0]  ;;  %v3651_v42 = vor.u32 %v5408_v24, %v3648_v29 }
  0x9e   :  { %2717 = vmatpush.bf16.msra.mxu1 %v3699_v55  ;;  %2734 = vmatmul.bf16.vlgmr.msrb.gmra.mxu2 %v6093_v26  ;;  %v5616_v36 = vld [vmem:[#allocation2 + $0x684] sm:$0xf]  ;;  %v4480_v37 = vld [vmem:[#allocation2 + $0x690] sm:$0xf0]  ;;  %v4355_v43 = vor.u32 %v5584_v30, %v4352_v34 }
  0x9f   :  { %2778 = vmatpush.bf16.msra.mxu2 %v4403_v56  ;;  %2747 = vmatmul.bf16.vlgmr.msrb.gmra.mxu3 %v6086_v20  ;;  %v5648_v38 = vld [vmem:[#allocation2 + $0x784] sm:$0xf]  ;;  %v4608_v39 = vld [vmem:[#allocation2 + $0x790] sm:$0xf0]  ;;  %v4483_v44 = vor.u32 %v5616_v36, %v4480_v37 }
  0xa0   :  { %2791 = vmatpush.bf16.msra.mxu3 %v4531_v57  ;;  %v5564_v40 = vld [vmem:[#allocation2 + $0x4e4] sm:$0xf]  ;;  %v4272_v41 = vld [vmem:[#allocation2 + $0x4f0] sm:$0xf0]  ;;  %v4611_v47 = vor.u32 %v5648_v38, %v4608_v39 }
  0xa1   :  { %2805 = vmatpush.bf16.msra.mxu0 %v4643_v11  ;;  %v5580_v45 = vld [vmem:[#allocation2 + $0x564] sm:$0xf]  ;;  %v4336_v46 = vld [vmem:[#allocation2 + $0x570] sm:$0xf0]  ;;  %v4275_v48 = vor.u32 %v5564_v40, %v4272_v41 }
  0xa2   :  { %2718 = vmatpush.bf16.msra.mxu1 %v3683_v3  ;;  %v5612_v49 = vld [vmem:[#allocation2 + $0x664] sm:$0xf]  ;;  %v4464_v50 = vld [vmem:[#allocation2 + $0x670] sm:$0xf0]  ;;  %v4339_v55 = vor.u32 %v5580_v45, %v4336_v46 }
  0xa3   :  { %2779 = vmatpush.bf16.msra.mxu2 %v4387_v4  ;;  %v5644_v51 = vld [vmem:[#allocation2 + $0x764] sm:$0xf]  ;;  %v4592_v52 = vld [vmem:[#allocation2 + $0x770] sm:$0xf0]  ;;  %v4467_v56 = vor.u32 %v5612_v49, %v4464_v50 }
  0xa4   :  { %2792 = vmatpush.bf16.msra.mxu3 %v4515_v5  ;;  %v5560_v53 = vld [vmem:[#allocation2 + $0x4c4] sm:$0xf]  ;;  %v4256_v54 = vld [vmem:[#allocation2 + $0x4d0] sm:$0xf0]  ;;  %v4595_v59 = vor.u32 %v5644_v51, %v4592_v52 }
  0xa5   :  { %2806 = vmatpush.bf16.msra.mxu0 %v4627_v35  ;;  %v5576_v57 = vld [vmem:[#allocation2 + $0x544] sm:$0xf]  ;;  %v4320_v58 = vld [vmem:[#allocation2 + $0x550] sm:$0xf0]  ;;  %v4259_v60 = vor.u32 %v5560_v53, %v4256_v54 }
  0xa6   :  { %2719 = vmatpush.bf16.msra.mxu1 %v3667_v23  ;;  %v5608_v61 = vld [vmem:[#allocation2 + $0x644] sm:$0xf]  ;;  %v4448_v62 = vld [vmem:[#allocation2 + $0x650] sm:$0xf0]  ;;  %v4323_v3 = vor.u32 %v5576_v57, %v4320_v58 }
  0xa7   :  { %2780 = vmatpush.bf16.msra.mxu2 %v4371_v25  ;;  %v5640_v63 = vld [vmem:[#allocation2 + $0x744] sm:$0xf]  ;;  %v4576_v0 = vld [vmem:[#allocation2 + $0x750] sm:$0xf0]  ;;  %v4451_v4 = vor.u32 %v5608_v61, %v4448_v62 }
  0xa8   :  { %2793 = vmatpush.bf16.msra.mxu3 %v4499_v28  ;;  %v5556_v1 = vld [vmem:[#allocation2 + $0x4a4] sm:$0xf]  ;;  %v4240_v2 = vld [vmem:[#allocation2 + $0x4b0] sm:$0xf0]  ;;  %v4579_v7 = vor.u32 %v5640_v63, %v4576_v0 }
  0xa9   :  { %2807 = vmatpush.bf16.msra.mxu0 %v4611_v47  ;;  %v5572_v5 = vld [vmem:[#allocation2 + $0x524] sm:$0xf]  ;;  %v4304_v6 = vld [vmem:[#allocation2 + $0x530] sm:$0xf0]  ;;  %v4243_v8 = vor.u32 %v5556_v1, %v4240_v2 }
  0xaa   :  { %2720 = vmatpush.bf16.msra.mxu1 %v3651_v42  ;;  %v5604_v11 = vld [vmem:[#allocation2 + $0x624] sm:$0xf]  ;;  %v4432_v14 = vld [vmem:[#allocation2 + $0x630] sm:$0xf0]  ;;  %v4307_v23 = vor.u32 %v5572_v5, %v4304_v6 }
  0xab   :  { %2781 = vmatpush.bf16.msra.mxu2 %v4355_v43  ;;  %v5636_v15 = vld [vmem:[#allocation2 + $0x724] sm:$0xf]  ;;  %v4560_v17 = vld [vmem:[#allocation2 + $0x730] sm:$0xf0]  ;;  %v4435_v24 = vor.u32 %v5604_v11, %v4432_v14 }
  0xac   :  { %2794 = vmatpush.bf16.msra.mxu3 %v4483_v44  ;;  %v5552_v18 = vld [vmem:[#allocation2 + $0x484] sm:$0xf]  ;;  %v4224_v19 = vld [vmem:[#allocation2 + $0x490] sm:$0xf0]  ;;  %v4563_v30 = vor.u32 %v5636_v15, %v4560_v17 }
  0xad   :  { %2721 = vmatmul.bf16.vlgmr.msra.gmra.mxu1 %v6088_v21  ;;  %2808 = vmatpush.bf16.msra.mxu0 %v4595_v59  ;;  %v5568_v25 = vld [vmem:[#allocation2 + $0x504] sm:$0xf]  ;;  %v4288_v28 = vld [vmem:[#allocation2 + $0x510] sm:$0xf0]  ;;  %v4227_v34 = vor.u32 %v5552_v18, %v4224_v19 }
  0xae   :  { %2765 = vmatpush.bf16.msrb.mxu1 %v4275_v48  ;;  %v5600_v29 = vld [vmem:[#allocation2 + $0x604] sm:$0xf]  ;;  %v4416_v35 = vld [vmem:[#allocation2 + $0x610] sm:$0xf0]  ;;  %v4291_v44 = vor.u32 %v5568_v25, %v4288_v28 }
  0xaf   :  { %2782 = vmatpush.bf16.msra.mxu2 %v4339_v55  ;;  %v5632_v36 = vld [vmem:[#allocation2 + $0x704] sm:$0xf]  ;;  %v4544_v37 = vld [vmem:[#allocation2 + $0x710] sm:$0xf0]  ;;  %v4419_v45 = vor.u32 %v5600_v29, %v4416_v35 }
  0xb0   :  { %2795 = vmatpush.bf16.msra.mxu3 %v4467_v56  ;;  %v5548_v38 = vld [vmem:[#allocation2 + $0x464] sm:$0xf]  ;;  %v4208_v39 = vld [vmem:[#allocation2 + $0x470] sm:$0xf0]  ;;  %v4547_v48 = vor.u32 %v5632_v36, %v4544_v37 }
  0xb1   :  { %2809 = vmatpush.bf16.msra.mxu0 %v4579_v7  ;;  %v5724_v40 = vld [vmem:[#allocation2 + $0x9e4] sm:$0xf]  ;;  %v4912_v41 = vld [vmem:[#allocation2 + $0x9f0] sm:$0xf0]  ;;  %v4211_v49 = vor.u32 %v5548_v38, %v4208_v39 }
  0xb2   :  { %2766 = vmatpush.bf16.msrb.mxu1 %v4259_v60  ;;  %v5756_v42 = vld [vmem:[#allocation2 + $0xae4] sm:$0xf]  ;;  %v5040_v43 = vld [vmem:[#allocation2 + $0xaf0] sm:$0xf0]  ;;  %v4915_v50 = vor.u32 %v5724_v40, %v4912_v41 }
  0xb3   :  { %2783 = vmatpush.bf16.msra.mxu2 %v4323_v3  ;;  %v5788_v46 = vld [vmem:[#allocation2 + $0xbe4] sm:$0xf]  ;;  %v5168_v47 = vld [vmem:[#allocation2 + $0xbf0] sm:$0xf0]  ;;  %v5043_v51 = vor.u32 %v5756_v42, %v5040_v43 }
  0xb4   :  { %2796 = vmatpush.bf16.msra.mxu3 %v4451_v4  ;;  %v5544_v52 = vld [vmem:[#allocation2 + $0x444] sm:$0xf]  ;;  %v4192_v53 = vld [vmem:[#allocation2 + $0x450] sm:$0xf0]  ;;  %v5171_v55 = vor.u32 %v5788_v46, %v5168_v47  ;;  %v6136_v46 = vld [vmem:[#allocation5] sm:$0xf] }
  0xb5   :  { %2810 = vmatpush.bf16.msra.mxu0 %v4563_v30  ;;  %v5720_v54 = vld [vmem:[#allocation2 + $0x9c4] sm:$0xf]  ;;  %v4896_v56 = vld [vmem:[#allocation2 + $0x9d0] sm:$0xf0]  ;;  %v4195_v61 = vor.u32 %v5544_v52, %v4192_v53 }
  0xb6   :  { %2767 = vmatpush.bf16.msrb.mxu1 %v4243_v8  ;;  %v5752_v57 = vld [vmem:[#allocation2 + $0xac4] sm:$0xf]  ;;  %v5024_v58 = vld [vmem:[#allocation2 + $0xad0] sm:$0xf0]  ;;  %v4899_v62 = vor.u32 %v5720_v54, %v4896_v56  ;;  %v504_v54 = vperm.slane %v6136_v46, 0 }
  0xb7   :  { %2784 = vmatpush.bf16.msra.mxu2 %v4307_v23  ;;  %v5784_v59 = vld [vmem:[#allocation2 + $0xbc4] sm:$0xf]  ;;  %v5152_v60 = vld [vmem:[#allocation2 + $0xbd0] sm:$0xf0]  ;;  %v5027_v63 = vor.u32 %v5752_v57, %v5024_v58 }
  0xb8   :  { %2797 = vmatpush.bf16.msra.mxu3 %v4435_v24  ;;  %v5540_v0 = vld [vmem:[#allocation2 + $0x424] sm:$0xf]  ;;  %v4176_v1 = vld [vmem:[#allocation2 + $0x430] sm:$0xf0]  ;;  %v5155_v3 = vor.u32 %v5784_v59, %v5152_v60 }
  0xb9   :  { %2811 = vmatpush.bf16.msra.mxu0 %v4547_v48  ;;  %v5716_v2 = vld [vmem:[#allocation2 + $0x9a4] sm:$0xf]  ;;  %v4880_v4 = vld [vmem:[#allocation2 + $0x9b0] sm:$0xf0]  ;;  %v4179_v11 = vor.u32 %v5540_v0, %v4176_v1 }
  0xba   :  { %2768 = vmatpush.bf16.msrb.mxu1 %v4227_v34  ;;  %v5748_v5 = vld [vmem:[#allocation2 + $0xaa4] sm:$0xf]  ;;  %v5008_v6 = vld [vmem:[#allocation2 + $0xab0] sm:$0xf0]  ;;  %v4883_v15 = vor.u32 %v5716_v2, %v4880_v4 }
  0xbb   :  { %2785 = vmatpush.bf16.msra.mxu2 %v4291_v44  ;;  %v5780_v7 = vld [vmem:[#allocation2 + $0xba4] sm:$0xf]  ;;  %v5136_v8 = vld [vmem:[#allocation2 + $0xbb0] sm:$0xf0]  ;;  %v5011_v17 = vor.u32 %v5748_v5, %v5008_v6 }
  0xbc   :  { %2798 = vmatpush.bf16.msra.mxu3 %v4419_v45  ;;  %2812 = vmatmul.bf16.vlgmr.msra.gmra.mxu0 %v6102_v32  ;;  %v5536_v14 = vld [vmem:[#allocation2 + $0x404] sm:$0xf]  ;;  %v4160_v18 = vld [vmem:[#allocation2 + $0x410] sm:$0xf0]  ;;  %v5139_v24 = vor.u32 %v5780_v7, %v5136_v8 }
  0xbd   :  { %2856 = vmatpush.bf16.msrb.mxu0 %v5171_v55  ;;  %v5712_v19 = vld [vmem:[#allocation2 + $0x984] sm:$0xf]  ;;  %v4864_v23 = vld [vmem:[#allocation2 + $0x990] sm:$0xf0]  ;;  %v4163_v36 = vor.u32 %v5536_v14, %v4160_v18 }
  0xbe   :  { %2769 = vmatpush.bf16.msrb.mxu1 %v4211_v49  ;;  %2786 = vmatmul.bf16.vlgmr.msra.gmra.mxu2 %v6104_v33  ;;  %v5744_v25 = vld [vmem:[#allocation2 + $0xa84] sm:$0xf]  ;;  %v4992_v28 = vld [vmem:[#allocation2 + $0xa90] sm:$0xf0]  ;;  %v4867_v37 = vor.u32 %v5712_v19, %v4864_v23 }
  0xbf   :  { %2830 = vmatpush.bf16.msrb.mxu2 %v4915_v50  ;;  %2799 = vmatmul.bf16.vlgmr.msra.gmra.mxu3 %v6098_v27  ;;  %v5776_v29 = vld [vmem:[#allocation2 + $0xb84] sm:$0xf]  ;;  %v5120_v30 = vld [vmem:[#allocation2 + $0xb90] sm:$0xf0]  ;;  %v4995_v38 = vor.u32 %v5744_v25, %v4992_v28 }
  0xc0   :  { %2843 = vmatpush.bf16.msrb.mxu3 %v5043_v51  ;;  %v5692_v34 = vld [vmem:[#allocation2 + $0x8e4] sm:$0xf]  ;;  %v4784_v35 = vld [vmem:[#allocation2 + $0x8f0] sm:$0xf0]  ;;  %v5123_v42 = vor.u32 %v5776_v29, %v5120_v30 }
  0xc1   :  { %2857 = vmatpush.bf16.msrb.mxu0 %v5155_v3  ;;  %v5708_v39 = vld [vmem:[#allocation2 + $0x964] sm:$0xf]  ;;  %v4848_v40 = vld [vmem:[#allocation2 + $0x970] sm:$0xf0]  ;;  %v4787_v43 = vor.u32 %v5692_v34, %v4784_v35 }
  0xc2   :  { %2770 = vmatpush.bf16.msrb.mxu1 %v4195_v61  ;;  %v5740_v41 = vld [vmem:[#allocation2 + $0xa64] sm:$0xf]  ;;  %v4976_v44 = vld [vmem:[#allocation2 + $0xa70] sm:$0xf0]  ;;  %v4851_v50 = vor.u32 %v5708_v39, %v4848_v40 }
  0xc3   :  { %2831 = vmatpush.bf16.msrb.mxu2 %v4899_v62  ;;  %v5772_v45 = vld [vmem:[#allocation2 + $0xb64] sm:$0xf]  ;;  %v5104_v47 = vld [vmem:[#allocation2 + $0xb70] sm:$0xf0]  ;;  %v4979_v51 = vor.u32 %v5740_v41, %v4976_v44  ;;  %v5439_v44 = vld [vmem:[#allocation2 + $0xf4] sm:$0xf0] }
  0xc4   :  { %2844 = vmatpush.bf16.msrb.mxu3 %v5027_v63  ;;  %v5688_v48 = vld [vmem:[#allocation2 + $0x8c4] sm:$0xf]  ;;  %v4768_v49 = vld [vmem:[#allocation2 + $0x8d0] sm:$0xf0]  ;;  %v5107_v55 = vor.u32 %v5772_v45, %v5104_v47  ;;  %v2553_v63 = vpop.f32.mrf.mxu0  ;;  %v3894_v45 = vld [vmem:[#allocation2 + $0x1e8] sm:$0xf] }
  0xc5   :  { %2858 = vmatpush.bf16.msrb.mxu0 %v5139_v24  ;;  %v5704_v52 = vld [vmem:[#allocation2 + $0x944] sm:$0xf]  ;;  %v4832_v53 = vld [vmem:[#allocation2 + $0x950] sm:$0xf0]  ;;  %v4771_v56 = vor.u32 %v5688_v48, %v4768_v49  ;;  %v2554_v4 = vadd.f32 %v2553_v63, %v504_v54  ;;  %v5471_v47 = vld [vmem:[#allocation2 + $0x1f4] sm:$0xf0] }
  0xc6   :  { %2771 = vmatpush.bf16.msrb.mxu1 %v4179_v11  ;;  %v5736_v57 = vld [vmem:[#allocation2 + $0xa44] sm:$0xf]  ;;  %v4960_v58 = vld [vmem:[#allocation2 + $0xa50] sm:$0xf0]  ;;  %v4835_v0 = vor.u32 %v5704_v52, %v4832_v53  ;;  %v4022_v52 = vld [vmem:[#allocation2 + $0x2e8] sm:$0xf] }
  0xc7   :  { %2832 = vmatpush.bf16.msrb.mxu2 %v4883_v15  ;;  %v5768_v59 = vld [vmem:[#allocation2 + $0xb44] sm:$0xf]  ;;  %v5088_v60 = vld [vmem:[#allocation2 + $0xb50] sm:$0xf0]  ;;  %v4963_v1 = vor.u32 %v5736_v57, %v4960_v58  ;;  %v5503_v53 = vld [vmem:[#allocation2 + $0x2f4] sm:$0xf0]  ;;  %v3895_v58 = vor.u32 %v5471_v47, %v3894_v45 }
  0xc8   :  { %2845 = vmatpush.bf16.msrb.mxu3 %v5011_v17  ;;  %v5684_v61 = vld [vmem:[#allocation2 + $0x8a4] sm:$0xf]  ;;  %v4752_v62 = vld [vmem:[#allocation2 + $0x8b0] sm:$0xf0]  ;;  %v2566_v5 = vpop.f32.mrf.mxu1  ;;  %v5091_v6 = vor.u32 %v5768_v59, %v5088_v60  ;;  %v5435_v63 = vld [vmem:[#allocation2 + $0xd4] sm:$0xf0] }
  0xc9   :  { %2859 = vmatpush.bf16.msrb.mxu0 %v5123_v42  ;;  %v5700_v2 = vld [vmem:[#allocation2 + $0x924] sm:$0xf]  ;;  %v4816_v3 = vld [vmem:[#allocation2 + $0x930] sm:$0xf0]  ;;  %v4755_v7 = vor.u32 %v5684_v61, %v4752_v62  ;;  %v2567_v19 = vadd.f32 %v2566_v5, %v2554_v4  ;;  %v3750_v61 = vld [vmem:[#allocation2 + $0xc8] sm:$0xf]  ;;  %v4023_v62 = vor.u32 %v5503_v53, %v4022_v52 }
  0xca   :  { %2772 = vmatpush.bf16.msrb.mxu1 %v4163_v36  ;;  %v5732_v8 = vld [vmem:[#allocation2 + $0xa24] sm:$0xf]  ;;  %v4944_v11 = vld [vmem:[#allocation2 + $0xa30] sm:$0xf0]  ;;  %v4819_v23 = vor.u32 %v5700_v2, %v4816_v3  ;;  %v4006_v2 = vld [vmem:[#allocation2 + $0x2c8] sm:$0xf] }
  0xcb   :  { %2833 = vmatpush.bf16.msrb.mxu2 %v4867_v37  ;;  %v5764_v14 = vld [vmem:[#allocation2 + $0xb24] sm:$0xf]  ;;  %v5072_v15 = vld [vmem:[#allocation2 + $0xb30] sm:$0xf0]  ;;  %v4947_v24 = vor.u32 %v5732_v8, %v4944_v11  ;;  %v5499_v3 = vld [vmem:[#allocation2 + $0x2d4] sm:$0xf0] }
  0xcc   :  { %2846 = vmatpush.bf16.msrb.mxu3 %v4995_v38  ;;  %v5680_v17 = vld [vmem:[#allocation2 + $0x884] sm:$0xf]  ;;  %v4736_v18 = vld [vmem:[#allocation2 + $0x890] sm:$0xf0]  ;;  %v5075_v34 = vor.u32 %v5764_v14, %v5072_v15  ;;  %v2555_v49 = vpop.f32.mrf.mxu0  ;;  %v3734_v15 = vld [vmem:[#allocation2 + $0xa8] sm:$0xf] }
  0xcd   :  { %2773 = vmatmul.bf16.vlgmr.msrb.gmra.mxu1 %v6100_v31  ;;  %2860 = vmatpush.bf16.msrb.mxu0 %v5107_v55  ;;  %v5696_v25 = vld [vmem:[#allocation2 + $0x904] sm:$0xf]  ;;  %v4800_v28 = vld [vmem:[#allocation2 + $0x910] sm:$0xf0]  ;;  %v2579_v30 = vpop.f32.mrf.mxu2  ;;  %v4739_v35 = vor.u32 %v5680_v17, %v4736_v18  ;;  %v2592_v40 = vpop.f32.mrf.mxu3  ;;  %v4007_v17 = vor.u32 %v5499_v3, %v4006_v2  ;;  %v5431_v18 = vld [vmem:[#allocation2 + $0xb4] sm:$0xf0] }
  0xce   :  { %2817 = vmatpush.bf16.msra.mxu1 %v4787_v43  ;;  %v5728_v29 = vld [vmem:[#allocation2 + $0xa04] sm:$0xf]  ;;  %v4928_v36 = vld [vmem:[#allocation2 + $0xa10] sm:$0xf0]  ;;  %v2580_v39 = vadd.f32 %v2579_v30, %v2567_v19  ;;  %v3766_v43 = vld [vmem:[#allocation2 + $0xe8] sm:$0xf]  ;;  %v3735_v30 = vor.u32 %v5431_v18, %v3734_v15 }
  0xcf   :  { %2834 = vmatpush.bf16.msrb.mxu2 %v4851_v50  ;;  %v5760_v37 = vld [vmem:[#allocation2 + $0xb04] sm:$0xf]  ;;  %v5056_v38 = vld [vmem:[#allocation2 + $0xb10] sm:$0xf0]  ;;  %v4803_v50 = vor.u32 %v5696_v25, %v4800_v28  ;;  %v3767_v57 = vor.u32 %v5439_v44, %v3766_v43  ;;  %v3862_v19 = vld [vmem:[#allocation2 + $0x1a8] sm:$0xf] }
  0xd0   :  { %2847 = vmatpush.bf16.msrb.mxu3 %v4979_v51  ;;  %v5676_v41 = vld [vmem:[#allocation2 + $0x864] sm:$0xf]  ;;  %v4720_v42 = vld [vmem:[#allocation2 + $0x870] sm:$0xf0]  ;;  %v6140_v48 = vadd.f32 %v2592_v40, %v2580_v39  ;;  %v4931_v51 = vor.u32 %v5728_v29, %v4928_v36  ;;  %v2568_v54 = vpop.f32.mrf.mxu1  ;;  %v5059_v55 = vor.u32 %v5760_v37, %v5056_v38  ;;  %v5495_v25 = vld [vmem:[#allocation2 + $0x2b4] sm:$0xf0] }
  0xd1   :  { %2861 = vmatpush.bf16.msrb.mxu0 %v5091_v6  ;;  %v5672_v59 = vld [vmem:[#allocation2 + $0x844] sm:$0xf]  ;;  %v4704_v60 = vld [vmem:[#allocation2 + $0x850] sm:$0xf0]  ;;  %v3718_v36 = vld [vmem:[#allocation2 + $0x88] sm:$0xf] }
  0xd2   :  { %2818 = vmatpush.bf16.msra.mxu1 %v4771_v56  ;;  %v4723_v56 = vor.u32 %v5676_v41, %v4720_v42  ;;  %v4707_v5 = vor.u32 %v5672_v59, %v4704_v60  ;;  %v5668_v11 = vld [vmem:[#allocation2 + $0x824] sm:$0xf]  ;;  %v4688_v14 = vld [vmem:[#allocation2 + $0x830] sm:$0xf0]  ;;  %v5427_v37 = vld [vmem:[#allocation2 + $0x94] sm:$0xf0] }
  0xd3   :  { %2835 = vmatpush.bf16.msrb.mxu2 %v4835_v0  ;;  %v3878_v0 = vld [vmem:[#allocation2 + $0x1c8] sm:$0xf]  ;;  %v4691_v28 = vor.u32 %v5668_v11, %v4688_v14  ;;  %v5664_v29 = vld [vmem:[#allocation2 + $0x804] sm:$0xf]  ;;  %v5491_v41 = vld [vmem:[#allocation2 + $0x294] sm:$0xf0]  ;;  %v3719_v44 = vor.u32 %v5427_v37, %v3718_v36 }
  0xd4   :  { %2848 = vmatpush.bf16.msrb.mxu3 %v4963_v1  ;;  %v5467_v1 = vld [vmem:[#allocation2 + $0x1d4] sm:$0xf0]  ;;  %v3846_v39 = vld [vmem:[#allocation2 + $0x188] sm:$0xf]  ;;  %v5804_v42 = vld [vmem:[#allocation2 + $0xc64] sm:$0xf] }
  0xd5   :  { %2862 = vmatpush.bf16.msrb.mxu0 %v5075_v34  ;;  %v2581_v4 = vpop.f32.mrf.mxu2  ;;  %v2594_v6 = vpop.f32.mrf.mxu3  ;;  %v3879_v8 = vor.u32 %v5467_v1, %v3878_v0  ;;  %v3974_v40 = vld [vmem:[#allocation2 + $0x288] sm:$0xf]  ;;  %v5800_v59 = vld [vmem:[#allocation2 + $0xc44] sm:$0xf]  ;;  %v5216_v60 = vld [vmem:[#allocation2 + $0xc50] sm:$0xf0] }
  0xd6   :  { %2819 = vmatpush.bf16.msra.mxu1 %v4755_v7  ;;  %v3751_v7 = vor.u32 %v5435_v63, %v3750_v61  ;;  %v3702_v49 = vld [vmem:[#allocation2 + $0x68] sm:$0xf]  ;;  %v3975_v52 = vor.u32 %v5491_v41, %v3974_v40  ;;  %v5419_v0 = vld [vmem:[#allocation2 + $0x54] sm:$0xf0]  ;;  %v5219_v2 = vor.u32 %v5800_v59, %v5216_v60  ;;  %v5796_v11 = vld [vmem:[#allocation2 + $0xc24] sm:$0xf] }
  0xd7   :  { %2836 = vmatpush.bf16.msrb.mxu2 %v4819_v23  ;;  %v5463_v23 = vld [vmem:[#allocation2 + $0x1b4] sm:$0xf0]  ;;  %v3830_v54 = vld [vmem:[#allocation2 + $0x168] sm:$0xf]  ;;  %v5200_v14 = vld [vmem:[#allocation2 + $0xc30] sm:$0xf0] }
  0xd8   :  { %2849 = vmatpush.bf16.msrb.mxu3 %v4947_v24  ;;  %v3990_v24 = vld [vmem:[#allocation2 + $0x2a8] sm:$0xf]  ;;  %v3863_v34 = vor.u32 %v5463_v23, %v3862_v19  ;;  %v5792_v36 = vld [vmem:[#allocation2 + $0xc04] sm:$0xf]  ;;  %v5184_v37 = vld [vmem:[#allocation2 + $0xc10] sm:$0xf0] }
  0xd9   :  { %2863 = vmatpush.bf16.msrb.mxu0 %v5059_v55  ;;  %v3991_v38 = vor.u32 %v5495_v25, %v3990_v24  ;;  %v5455_v55 = vld [vmem:[#allocation2 + $0x174] sm:$0xf0]  ;;  %v3814_v4 = vld [vmem:[#allocation2 + $0x148] sm:$0xf] }
  0xda   :  { %2820 = vmatpush.bf16.msra.mxu1 %v4739_v35  ;;  %v4672_v35 = vld [vmem:[#allocation2 + $0x810] sm:$0xf0]  ;;  %v3942_v6 = vld [vmem:[#allocation2 + $0x248] sm:$0xf]  ;;  %v5415_v24 = vld [vmem:[#allocation2 + $0x34] sm:$0xf0] }
  0xdb   :  { %2837 = vmatpush.bf16.msrb.mxu2 %v4803_v50  ;;  %v5423_v50 = vld [vmem:[#allocation2 + $0x74] sm:$0xf0]  ;;  %v3670_v23 = vld [vmem:[#allocation2 + $0x28] sm:$0xf] }
  0xdc   :  { %2850 = vmatpush.bf16.msrb.mxu3 %v4931_v51  ;;  %2864 = vmatmul.bf16.vlgmr.msrb.gmra.mxu0 %v6119_v16  ;;  %v4675_v16 = vor.u32 %v5664_v29, %v4672_v35  ;;  %v2618_v51 = vpop.f32.mrf.mxu1  ;;  %v3703_v61 = vor.u32 %v5423_v50, %v3702_v49  ;;  %v5203_v29 = vor.u32 %v5796_v11, %v5200_v14  ;;  %v5479_v35 = vld [vmem:[#allocation2 + $0x234] sm:$0xf0]  ;;  %v3654_v41 = vld [vmem:[#allocation2 + $0x8] sm:$0xf] }
  0xdd   :  { %2908 = vmatpush.bf16.msra.mxu0 %v4023_v62  ;;  %v3831_v62 = vor.u32 %v5455_v55, %v3830_v54  ;;  %v5475_v49 = vld [vmem:[#allocation2 + $0x214] sm:$0xf0]  ;;  %v4406_v54 = vld [vmem:[#allocation2 + $0x5e8] sm:$0xf] }
  0xde   :  { %2821 = vmatpush.bf16.msra.mxu1 %v4723_v56  ;;  %2838 = vmatmul.bf16.vlgmr.msrb.gmra.mxu2 %v6113_v9  ;;  %v5459_v9 = vld [vmem:[#allocation2 + $0x194] sm:$0xf0]  ;;  %v2605_v43 = vpop.f32.mrf.mxu0  ;;  %v3958_v56 = vld [vmem:[#allocation2 + $0x268] sm:$0xf] }
  0xdf   :  { %2882 = vmatpush.bf16.msra.mxu2 %v3767_v57  ;;  %2851 = vmatmul.bf16.vlgmr.msrb.gmra.mxu3 %v6117_v13  ;;  %v5232_v13 = vld [vmem:[#allocation2 + $0xc70] sm:$0xf0]  ;;  %v3847_v45 = vor.u32 %v5459_v9, %v3846_v39  ;;  %v2606_v47 = vadd.f32 %v2605_v43, %v6140_v48  ;;  %v5487_v57 = vld [vmem:[#allocation2 + $0x274] sm:$0xf0]  ;;  %v3686_v48 = vld [vmem:[#allocation2 + $0x48] sm:$0xf]  ;;  %v3671_v9 = vor.u32 %v5415_v24, %v3670_v23 }
  0xe0   :  { %2895 = vmatpush.bf16.msra.mxu3 %v3895_v58  ;;  %v5235_v53 = vor.u32 %v5804_v42, %v5232_v13  ;;  %v3959_v1 = vor.u32 %v5487_v57, %v3958_v56  ;;  %v3687_v18 = vor.u32 %v5419_v0, %v3686_v48  ;;  %v5535_v39 = vld [vmem:[#allocation2 + $0x3f4] sm:$0xf0]  ;;  %v3782_v13 = vld [vmem:[#allocation2 + $0x108] sm:$0xf] }
  0xe1   :  { %2909 = vmatpush.bf16.msra.mxu0 %v4007_v17  ;;  %v2619_v58 = vadd.f32 %v2618_v51, %v2606_v47  ;;  %v5411_v42 = vld [vmem:[#allocation2 + $0x14] sm:$0xf0]  ;;  %v3910_v47 = vld [vmem:[#allocation2 + $0x208] sm:$0xf] }
  0xe2   :  { %2822 = vmatpush.bf16.msra.mxu1 %v4707_v5  ;;  %v5451_v5 = vld [vmem:[#allocation2 + $0x154] sm:$0xf0]  ;;  %v4534_v56 = vld [vmem:[#allocation2 + $0x6e8] sm:$0xf] }
  0xe3   :  { %2883 = vmatpush.bf16.msra.mxu2 %v3751_v7  ;;  %v2631_v63 = vpop.f32.mrf.mxu2  ;;  %v2644_v7 = vpop.f32.mrf.mxu3  ;;  %v3815_v19 = vor.u32 %v5451_v5, %v3814_v4  ;;  %v5599_v55 = vld [vmem:[#allocation2 + $0x5f4] sm:$0xf0]  ;;  %v4134_v60 = vld [vmem:[#allocation2 + $0x3c8] sm:$0xf] }
  0xe4   :  { %2896 = vmatpush.bf16.msra.mxu3 %v3879_v8  ;;  %v2632_v3 = vadd.f32 %v2631_v63, %v2619_v58  ;;  %v5483_v8 = vld [vmem:[#allocation2 + $0x254] sm:$0xf0]  ;;  %v2620_v25 = vpop.f32.mrf.mxu1  ;;  %v3655_v58 = vor.u32 %v5411_v42, %v3654_v41  ;;  %v4407_v48 = vor.u32 %v5599_v55, %v4406_v54  ;;  %v4374_v24 = vld [vmem:[#allocation2 + $0x5a8] sm:$0xf] }
  0xe5   :  { %2910 = vmatpush.bf16.msra.mxu0 %v3991_v38  ;;  %v4150_v38 = vld [vmem:[#allocation2 + $0x3e8] sm:$0xf]  ;;  %v5631_v57 = vld [vmem:[#allocation2 + $0x6f4] sm:$0xf0] }
  0xe6   :  { %2823 = vmatpush.bf16.msra.mxu1 %v4691_v28  ;;  %v6147_v15 = vadd.f32 %v2644_v7, %v2632_v3  ;;  %v2607_v17 = vpop.f32.mrf.mxu0  ;;  %v3943_v28 = vor.u32 %v5483_v8, %v3942_v6  ;;  %v4151_v51 = vor.u32 %v5535_v39, %v4150_v38  ;;  %v4535_v0 = vor.u32 %v5631_v57, %v4534_v56  ;;  %v4390_v3 = vld [vmem:[#allocation2 + $0x5c8] sm:$0xf]  ;;  %v5595_v5 = vld [vmem:[#allocation2 + $0x5d4] sm:$0xf0] }
  0xe7   :  { %2884 = vmatpush.bf16.msra.mxu2 %v3735_v30  ;;  %v3798_v30 = vld [vmem:[#allocation2 + $0x128] sm:$0xf]  ;;  %v5627_v7 = vld [vmem:[#allocation2 + $0x6d4] sm:$0xf0]  ;;  %v4391_v17 = vor.u32 %v5595_v5, %v4390_v3 }
  0xe8   :  { %2897 = vmatpush.bf16.msra.mxu3 %v3863_v34  ;;  %v5447_v34 = vld [vmem:[#allocation2 + $0x134] sm:$0xf0]  ;;  %v4518_v6 = vld [vmem:[#allocation2 + $0x6c8] sm:$0xf] }
  0xe9   :  { %2911 = vmatpush.bf16.msra.mxu0 %v3975_v52  ;;  %v3799_v40 = vor.u32 %v5447_v34, %v3798_v30  ;;  %v4278_v52 = vld [vmem:[#allocation2 + $0x4e8] sm:$0xf]  ;;  %v5527_v11 = vld [vmem:[#allocation2 + $0x3b4] sm:$0xf0] }
  0xea   :  { %2824 = vmatpush.bf16.msra.mxu1 %v4675_v16  ;;  %v4118_v8 = vld [vmem:[#allocation2 + $0x3a8] sm:$0xf]  ;;  %v5559_v23 = vld [vmem:[#allocation2 + $0x4b4] sm:$0xf0] }
  0xeb   :  { %2885 = vmatpush.bf16.msra.mxu2 %v3719_v44  ;;  %v2633_v16 = vpop.f32.mrf.mxu2  ;;  %v5187_v44 = vor.u32 %v5792_v36, %v5184_v37  ;;  %v2646_v50 = vpop.f32.mrf.mxu3  ;;  %v4119_v25 = vor.u32 %v5527_v11, %v4118_v8  ;;  %v5623_v30 = vld [vmem:[#allocation2 + $0x6b4] sm:$0xf0]  ;;  %v4102_v34 = vld [vmem:[#allocation2 + $0x388] sm:$0xf] }
  0xec   :  { %2898 = vmatpush.bf16.msra.mxu3 %v3847_v45  ;;  %v5443_v45 = vld [vmem:[#allocation2 + $0x114] sm:$0xf0]  ;;  %v4230_v38 = vld [vmem:[#allocation2 + $0x488] sm:$0xf] }
  0xed   :  { %2825 = vmatmul.bf16.vlgmr.msra.gmra.mxu1 %v6115_v12  ;;  %2912 = vmatpush.bf16.msra.mxu0 %v3959_v1  ;;  %v3926_v12 = vld [vmem:[#allocation2 + $0x228] sm:$0xf]  ;;  %v3783_v59 = vor.u32 %v5443_v45, %v3782_v13  ;;  %v5555_v39 = vld [vmem:[#allocation2 + $0x494] sm:$0xf0] }
  0xee   :  { %2873 = vmatpush.bf16.msrb.mxu1 %v5235_v53  ;;  %v3927_v43 = vor.u32 %v5479_v35, %v3926_v12  ;;  %v5567_v53 = vld [vmem:[#allocation2 + $0x4f4] sm:$0xf0]  ;;  %v4262_v1 = vld [vmem:[#allocation2 + $0x4c8] sm:$0xf]  ;;  %v4231_v45 = vor.u32 %v5555_v39, %v4230_v38 }
  0xef   :  { %2886 = vmatpush.bf16.msra.mxu2 %v3703_v61  ;;  %v5531_v61 = vld [vmem:[#allocation2 + $0x3d4] sm:$0xf0]  ;;  %v4279_v63 = vor.u32 %v5567_v53, %v4278_v52  ;;  %v4486_v42 = vld [vmem:[#allocation2 + $0x688] sm:$0xf] }
  0xf0   :  { %2899 = vmatpush.bf16.msra.mxu3 %v3831_v62  ;;  %v3911_v62 = vor.u32 %v5475_v49, %v3910_v47  ;;  %v4135_v4 = vor.u32 %v5531_v61, %v4134_v60  ;;  %v5523_v12 = vld [vmem:[#allocation2 + $0x394] sm:$0xf0]  ;;  %v4086_v16 = vld [vmem:[#allocation2 + $0x368] sm:$0xf] }
  0xf1   :  { %2913 = vmatpush.bf16.msra.mxu0 %v3943_v28  ;;  %v5591_v28 = vld [vmem:[#allocation2 + $0x5b4] sm:$0xf0]  ;;  %v4342_v53 = vld [vmem:[#allocation2 + $0x568] sm:$0xf] }
  0xf2   :  { %2874 = vmatpush.bf16.msrb.mxu1 %v5219_v2  ;;  %v5563_v2 = vld [vmem:[#allocation2 + $0x4d4] sm:$0xf0]  ;;  %v4375_v36 = vor.u32 %v5591_v28, %v4374_v24  ;;  %v4470_v56 = vld [vmem:[#allocation2 + $0x668] sm:$0xf] }
  0xf3   :  { %2887 = vmatpush.bf16.msra.mxu2 %v3687_v18  ;;  %v4263_v14 = vor.u32 %v5563_v2, %v4262_v1  ;;  %v4519_v18 = vor.u32 %v5627_v7, %v4518_v6  ;;  %v5587_v41 = vld [vmem:[#allocation2 + $0x594] sm:$0xf0]  ;;  %v4054_v11 = vld [vmem:[#allocation2 + $0x328] sm:$0xf] }
  0xf4   :  { %2900 = vmatpush.bf16.msra.mxu3 %v3815_v19  ;;  %v4246_v19 = vld [vmem:[#allocation2 + $0x4a8] sm:$0xf]  ;;  %v5551_v52 = vld [vmem:[#allocation2 + $0x474] sm:$0xf0] }
  0xf5   :  { %2914 = vmatpush.bf16.msra.mxu0 %v3927_v43  ;;  %v4247_v35 = vor.u32 %v5559_v23, %v4246_v19  ;;  %v5519_v43 = vld [vmem:[#allocation2 + $0x374] sm:$0xf0]  ;;  %v4662_v38 = vld [vmem:[#allocation2 + $0x7e8] sm:$0xf] }
  0xf6   :  { %2875 = vmatpush.bf16.msrb.mxu1 %v5203_v29  ;;  %v4502_v29 = vld [vmem:[#allocation2 + $0x6a8] sm:$0xf]  ;;  %v4087_v54 = vor.u32 %v5519_v43, %v4086_v16  ;;  %v5583_v55 = vld [vmem:[#allocation2 + $0x574] sm:$0xf0] }
  0xf7   :  { %2888 = vmatpush.bf16.msra.mxu2 %v3671_v9  ;;  %v4503_v37 = vor.u32 %v5623_v30, %v4502_v29  ;;  %v4358_v9 = vld [vmem:[#allocation2 + $0x588] sm:$0xf]  ;;  %v5615_v57 = vld [vmem:[#allocation2 + $0x674] sm:$0xf0] }
  0xf8   :  { %2901 = vmatpush.bf16.msra.mxu3 %v3799_v40  ;;  %v4103_v40 = vor.u32 %v5523_v12, %v4102_v34  ;;  %v4359_v49 = vor.u32 %v5587_v41, %v4358_v9  ;;  %v5515_v60 = vld [vmem:[#allocation2 + $0x354] sm:$0xf0]  ;;  %v4310_v29 = vld [vmem:[#allocation2 + $0x528] sm:$0xf] }
  0xf9   :  { %2915 = vmatpush.bf16.msra.mxu0 %v3911_v62  ;;  %v4343_v62 = vor.u32 %v5583_v55, %v4342_v53  ;;  %v5579_v3 = vld [vmem:[#allocation2 + $0x554] sm:$0xf0]  ;;  %v4438_v12 = vld [vmem:[#allocation2 + $0x628] sm:$0xf] }
  0xfa   :  { %2876 = vmatpush.bf16.msrb.mxu1 %v5187_v44  ;;  %v2670_v13 = vpop.f32.mrf.mxu1  ;;  %v2657_v44 = vpop.f32.mrf.mxu0  ;;  %v5611_v5 = vld [vmem:[#allocation2 + $0x654] sm:$0xf0]  ;;  %v4422_v43 = vld [vmem:[#allocation2 + $0x608] sm:$0xf] }
  0xfb   :  { %2889 = vmatpush.bf16.msra.mxu2 %v3655_v58  ;;  %v2658_v47 = vadd.f32 %v2657_v44, %v6147_v15  ;;  %v4198_v15 = vld [vmem:[#allocation2 + $0x448] sm:$0xf]  ;;  %v5543_v28 = vld [vmem:[#allocation2 + $0x434] sm:$0xf0] }
  0xfc   :  { %2902 = vmatpush.bf16.msra.mxu3 %v3783_v59  ;;  %2916 = vmatmul.bf16.vlgmr.msra.gmra.mxu0 %v6086_v20  ;;  %v4070_v59 = vld [vmem:[#allocation2 + $0x348] sm:$0xf]  ;;  %v5575_v34 = vld [vmem:[#allocation2 + $0x534] sm:$0xf0] }
  0xfd   :  { %2960 = vmatpush.bf16.msrb.mxu0 %v4535_v0  ;;  %5245 = vmatmul.msk.bf16.vlgmr.msrb.gmra.mxu1 %vm2541_vm0, %v6125_v10  ;;  %v5619_v10 = vld [vmem:[#allocation2 + $0x694] sm:$0xf0]  ;;  %v2671_v58 = vadd.f32 %v2670_v13, %v2658_v47  ;;  %v4326_v0 = vld [vmem:[#allocation2 + $0x548] sm:$0xf]  ;;  %v4071_v2 = vor.u32 %v5515_v60, %v4070_v59 }
  0xfe   :  { %2921 = vmatpush.bf16.msra.mxu1 %v4151_v51  ;;  %2890 = vmatmul.bf16.vlgmr.msra.gmra.mxu2 %v6088_v21  ;;  %v4487_v50 = vor.u32 %v5619_v10, %v4486_v42  ;;  %v4214_v51 = vld [vmem:[#allocation2 + $0x468] sm:$0xf]  ;;  %v4327_v23 = vor.u32 %v5579_v3, %v4326_v0  ;;  %v5663_v9 = vld [vmem:[#allocation2 + $0x7f4] sm:$0xf0]  ;;  %v4311_v42 = vor.u32 %v5575_v34, %v4310_v29 }
  0xff   :  { %2934 = vmatpush.bf16.msrb.mxu2 %v4279_v63  ;;  %2903 = vmatmul.bf16.vlgmr.msra.gmra.mxu3 %v6093_v26  ;;  %v4215_v61 = vor.u32 %v5551_v52, %v4214_v51  ;;  %v4471_v63 = vor.u32 %v5615_v57, %v4470_v56  ;;  %v5539_v41 = vld [vmem:[#allocation2 + $0x414] sm:$0xf0]  ;;  %v4294_v13 = vld [vmem:[#allocation2 + $0x508] sm:$0xf]  ;;  %v4663_v51 = vor.u32 %v5663_v9, %v4662_v38 }
 0x100   :  { %2947 = vmatpush.bf16.msrb.mxu3 %v4407_v48  ;;  %v5547_v48 = vld [vmem:[#allocation2 + $0x454] sm:$0xf0]  ;;  %v4790_v47 = vld [vmem:[#allocation2 + $0x8e8] sm:$0xf] }
 0x101   :  { %2961 = vmatpush.bf16.msrb.mxu0 %v4519_v18  ;;  %v2683_v1 = vpop.f32.mrf.mxu2  ;;  %v5571_v16 = vld [vmem:[#allocation2 + $0x514] sm:$0xf0]  ;;  %v4918_v52 = vld [vmem:[#allocation2 + $0x9e8] sm:$0xf] }
 0x102   :  { %2922 = vmatpush.bf16.msra.mxu1 %v4135_v4  ;;  %v4454_v4 = vld [vmem:[#allocation2 + $0x648] sm:$0xf]  ;;  %v2684_v6 = vadd.f32 %v2683_v1, %v2671_v58  ;;  %v2672_v7 = vpop.f32.mrf.mxu1  ;;  %v2696_v8 = vpop.f32.mrf.mxu3  ;;  %v5727_v53 = vld [vmem:[#allocation2 + $0x9f4] sm:$0xf0] }
 0x103   :  { %2935 = vmatpush.bf16.msrb.mxu2 %v4263_v14  ;;  %v5511_v14 = vld [vmem:[#allocation2 + $0x334] sm:$0xf0]  ;;  %v2659_v18 = vpop.f32.mrf.mxu0  ;;  %v4455_v24 = vor.u32 %v5611_v5, %v4454_v4  ;;  %v4646_v59 = vld [vmem:[#allocation2 + $0x7c8] sm:$0xf] }
 0x104   :  { %2948 = vmatpush.bf16.msrb.mxu3 %v4391_v17  ;;  %v4199_v17 = vor.u32 %v5547_v48, %v4198_v15  ;;  %v2697_v19 = vadd.f32 %v2696_v8, %v2684_v6  ;;  %v4055_v30 = vor.u32 %v5511_v14, %v4054_v11  ;;  %v5759_v58 = vld [vmem:[#allocation2 + $0xaf4] sm:$0xf0]  ;;  %v4919_v48 = vor.u32 %v5727_v53, %v4918_v52  ;;  %v4774_v0 = vld [vmem:[#allocation2 + $0x8c8] sm:$0xf] }
 0x105   :  { %2962 = vmatpush.bf16.msrb.mxu0 %v4503_v37  ;;  %v5507_v37 = vld [vmem:[#allocation2 + $0x314] sm:$0xf0]  ;;  %v4902_v4 = vld [vmem:[#allocation2 + $0x9c8] sm:$0xf] }
 0x106   :  { %2923 = vmatpush.bf16.msra.mxu1 %v4119_v25  ;;  %v4182_v25 = vld [vmem:[#allocation2 + $0x428] sm:$0xf]  ;;  %v5659_v60 = vld [vmem:[#allocation2 + $0x7d4] sm:$0xf0] }
 0x107   :  { %2936 = vmatpush.bf16.msrb.mxu2 %v4247_v35  ;;  %v5607_v35 = vld [vmem:[#allocation2 + $0x634] sm:$0xf0]  ;;  %v4183_v39 = vor.u32 %v5543_v28, %v4182_v25  ;;  %v4647_v3 = vor.u32 %v5659_v60, %v4646_v59  ;;  %v5030_v6 = vld [vmem:[#allocation2 + $0xac8] sm:$0xf] }
 0x108   :  { %2949 = vmatpush.bf16.msrb.mxu3 %v4375_v36  ;;  %v4038_v36 = vld [vmem:[#allocation2 + $0x308] sm:$0xf]  ;;  %v4439_v10 = vor.u32 %v5607_v35, %v4438_v12  ;;  %v5691_v1 = vld [vmem:[#allocation2 + $0x8d4] sm:$0xf0] }
 0x109   :  { %2963 = vmatpush.bf16.msrb.mxu0 %v4487_v50  ;;  %v4039_v44 = vor.u32 %v5507_v37, %v4038_v36  ;;  %v2685_v50 = vpop.f32.mrf.mxu2  ;;  %v5723_v5 = vld [vmem:[#allocation2 + $0x9d4] sm:$0xf0]  ;;  %v4630_v8 = vld [vmem:[#allocation2 + $0x7a8] sm:$0xf]  ;;  %v4775_v14 = vor.u32 %v5691_v1, %v4774_v0 }
 0x10a   :  { %2924 = vmatpush.bf16.msra.mxu1 %v4103_v40  ;;  %v4166_v40 = vld [vmem:[#allocation2 + $0x408] sm:$0xf]  ;;  %v2698_v55 = vpop.f32.mrf.mxu3  ;;  %v2709_v56 = vpop.f32.mrf.mxu1  ;;  %v5755_v7 = vld [vmem:[#allocation2 + $0xad4] sm:$0xf0] }
 0x10b   :  { %2937 = vmatpush.bf16.msrb.mxu2 %v4231_v45  ;;  %v5603_v45 = vld [vmem:[#allocation2 + $0x614] sm:$0xf0]  ;;  %v4167_v57 = vor.u32 %v5539_v41, %v4166_v40  ;;  %v4758_v18 = vld [vmem:[#allocation2 + $0x8a8] sm:$0xf] }
 0x10c   :  { %2950 = vmatpush.bf16.msrb.mxu3 %v4359_v49  ;;  %v5695_v49 = vld [vmem:[#allocation2 + $0x8f4] sm:$0xf0]  ;;  %v4886_v25 = vld [vmem:[#allocation2 + $0x9a8] sm:$0xf] }
 0x10d   :  { %2964 = vmatpush.bf16.msrb.mxu0 %v4471_v63  ;;  %v4423_v63 = vor.u32 %v5603_v45, %v4422_v43  ;;  %v4791_v15 = vor.u32 %v5695_v49, %v4790_v47  ;;  %v5655_v11 = vld [vmem:[#allocation2 + $0x7b4] sm:$0xf0]  ;;  %v5014_v29 = vld [vmem:[#allocation2 + $0xaa8] sm:$0xf] }
 0x10e   :  { %2925 = vmatpush.bf16.msra.mxu1 %v4087_v54  ;;  %v5046_v54 = vld [vmem:[#allocation2 + $0xae8] sm:$0xf]  ;;  %v5719_v28 = vld [vmem:[#allocation2 + $0x9b4] sm:$0xf0] }
 0x10f   :  { %2938 = vmatpush.bf16.msrb.mxu2 %v4215_v61  ;;  %v6155_v61 = vadd.f32 %v2709_v56, %v2697_v19  ;;  %v5687_v19 = vld [vmem:[#allocation2 + $0x8b4] sm:$0xf0]  ;;  %v4614_v34 = vld [vmem:[#allocation2 + $0x788] sm:$0xf]  ;;  %v4887_v37 = vor.u32 %v5719_v28, %v4886_v25  ;;  %v505_v28 = vperm.slane %v6136_v46, 1 }
 0x110   :  { %2951 = vmatpush.bf16.msrb.mxu3 %v4343_v62  ;;  %v4295_v62 = vor.u32 %v5571_v16, %v4294_v13  ;;  %v5651_v12 = vld [vmem:[#allocation2 + $0x794] sm:$0xf0]  ;;  %v4759_v36 = vor.u32 %v5687_v19, %v4758_v18  ;;  %v4742_v38 = vld [vmem:[#allocation2 + $0x888] sm:$0xf] }
 0x111   :  { %2965 = vmatpush.bf16.msrb.mxu0 %v4455_v24  ;;  %v4631_v24 = vor.u32 %v5655_v11, %v4630_v8  ;;  %v4615_v40 = vor.u32 %v5651_v12, %v4614_v34  ;;  %v4870_v41 = vld [vmem:[#allocation2 + $0x988] sm:$0xf]  ;;  %v5747_v13 = vld [vmem:[#allocation2 + $0xa94] sm:$0xf0] }
 0x112   :  { %2926 = vmatpush.bf16.msra.mxu1 %v4071_v2  ;;  %v5047_v2 = vor.u32 %v5759_v58, %v5046_v54  ;;  %v2711_v35 = vpop.f32.mrf.mxu1  ;;  %v4598_v16 = vld [vmem:[#allocation2 + $0x768] sm:$0xf]  ;;  %v5647_v43 = vld [vmem:[#allocation2 + $0x774] sm:$0xf0] }
 0x113   :  { %2939 = vmatpush.bf16.msrb.mxu2 %v4199_v17  ;;  %v4903_v17 = vor.u32 %v5723_v5, %v4902_v4  ;;  %v4726_v47 = vld [vmem:[#allocation2 + $0x868] sm:$0xf]  ;;  %v5679_v49 = vld [vmem:[#allocation2 + $0x874] sm:$0xf0] }
 0x114   :  { %2952 = vmatpush.bf16.msrb.mxu3 %v4327_v23  ;;  %v5031_v23 = vor.u32 %v5755_v7, %v5030_v6  ;;  %v4854_v52 = vld [vmem:[#allocation2 + $0x968] sm:$0xf]  ;;  %v5711_v53 = vld [vmem:[#allocation2 + $0x974] sm:$0xf0]  ;;  %v4727_v58 = vor.u32 %v5679_v49, %v4726_v47  ;;  %v3768_v47 = vld [vmem:[#allocation2 + $0xf8] sm:$0xf0] }
 0x115   :  { %2966 = vmatpush.bf16.msrb.mxu0 %v4439_v10  ;;  %v4998_v10 = vld [vmem:[#allocation2 + $0xa88] sm:$0xf]  ;;  %v5743_v55 = vld [vmem:[#allocation2 + $0xa74] sm:$0xf0]  ;;  %v4855_v59 = vor.u32 %v5711_v53, %v4854_v52  ;;  %v3896_v52 = vld [vmem:[#allocation2 + $0x1f8] sm:$0xf0] }
 0x116   :  { %2927 = vmatpush.bf16.msra.mxu1 %v4055_v30  ;;  %v5751_v30 = vld [vmem:[#allocation2 + $0xab4] sm:$0xf0]  ;;  %v4999_v50 = vor.u32 %v5747_v13, %v4998_v10  ;;  %v4982_v54 = vld [vmem:[#allocation2 + $0xa68] sm:$0xf] }
 0x117   :  { %2940 = vmatpush.bf16.msrb.mxu2 %v4183_v39  ;;  %v5683_v39 = vld [vmem:[#allocation2 + $0x894] sm:$0xf0]  ;;  %v5015_v9 = vor.u32 %v5751_v30, %v5014_v29  ;;  %v4582_v56 = vld [vmem:[#allocation2 + $0x748] sm:$0xf] }
 0x118   :  { %2953 = vmatpush.bf16.msrb.mxu3 %v4311_v42  ;;  %v5715_v42 = vld [vmem:[#allocation2 + $0x994] sm:$0xf0]  ;;  %v4710_v60 = vld [vmem:[#allocation2 + $0x848] sm:$0xf] }
 0x119   :  { %2967 = vmatpush.bf16.msrb.mxu0 %v4423_v63  ;;  %v4871_v45 = vor.u32 %v5715_v42, %v4870_v41  ;;  %v4983_v63 = vor.u32 %v5743_v55, %v4982_v54  ;;  %v5707_v0 = vld [vmem:[#allocation2 + $0x954] sm:$0xf0]  ;;  %v4966_v1 = vld [vmem:[#allocation2 + $0xa48] sm:$0xf]  ;;  %v6161_v7 = vpop.f32.mrf.mxu0 }
 0x11a   :  { %2928 = vmatpush.bf16.msra.mxu1 %v4039_v44  ;;  %v4743_v44 = vor.u32 %v5683_v39, %v4742_v38  ;;  %v4566_v4 = vld [vmem:[#allocation2 + $0x728] sm:$0xf]  ;;  %v5639_v5 = vld [vmem:[#allocation2 + $0x734] sm:$0xf0] }
 0x11b   :  { %2941 = vmatpush.bf16.msrb.mxu2 %v4167_v57  ;;  %v5643_v57 = vld [vmem:[#allocation2 + $0x754] sm:$0xf0]  ;;  %v4822_v18 = vld [vmem:[#allocation2 + $0x928] sm:$0xf] }
 0x11c   :  { %2954 = vmatpush.bf16.msrb.mxu3 %v4295_v62  ;;  %2968 = vmatmul.bf16.vlgmr.msrb.gmra.mxu0 %v6098_v27  ;;  %v5675_v62 = vld [vmem:[#allocation2 + $0x854] sm:$0xf0]  ;;  %v4950_v25 = vld [vmem:[#allocation2 + $0xa28] sm:$0xf] }
 0x11d   :  { %3012 = vmatpush.bf16.msra.mxu0 %v5047_v2  ;;  %2929 = vmatmul.bf16.vlgmr.msra.gmra.mxu1 %v6090_v22  ;;  %v4711_v8 = vor.u32 %v5675_v62, %v4710_v60  ;;  %v5735_v29 = vld [vmem:[#allocation2 + $0xa34] sm:$0xf0]  ;;  %v4550_v30 = vld [vmem:[#allocation2 + $0x708] sm:$0xf] }
 0x11e   :  { %2973 = vmatpush.bf16.msrb.mxu1 %v4663_v51  ;;  %2942 = vmatmul.bf16.vlgmr.msrb.gmra.mxu2 %v6100_v31  ;;  %v4599_v51 = vor.u32 %v5647_v43, %v4598_v16  ;;  %v5635_v34 = vld [vmem:[#allocation2 + $0x714] sm:$0xf0]  ;;  %v5174_v12 = vld [vmem:[#allocation2 + $0xbe8] sm:$0xf] }
 0x11f   :  { %2986 = vmatpush.bf16.msra.mxu2 %v4791_v15  ;;  %2955 = vmatmul.bf16.vlgmr.msrb.gmra.mxu3 %v6104_v33  ;;  %v4583_v15 = vor.u32 %v5643_v57, %v4582_v56  ;;  %v5791_v35 = vld [vmem:[#allocation2 + $0xbf4] sm:$0xf0]  ;;  %v4678_v38 = vld [vmem:[#allocation2 + $0x808] sm:$0xf]  ;;  %v4551_v41 = vor.u32 %v5635_v34, %v4550_v30 }
 0x120   :  { %2999 = vmatpush.bf16.msra.mxu3 %v4919_v48  ;;  %v4838_v48 = vld [vmem:[#allocation2 + $0x948] sm:$0xf]  ;;  %v5667_v39 = vld [vmem:[#allocation2 + $0x814] sm:$0xf0]  ;;  %v5175_v43 = vor.u32 %v5791_v35, %v5174_v12 }
 0x121   :  { %3013 = vmatpush.bf16.msra.mxu0 %v5031_v23  ;;  %v2735_v2 = vpop.f32.mrf.mxu2  ;;  %v4839_v11 = vor.u32 %v5707_v0, %v4838_v48  ;;  %v4567_v23 = vor.u32 %v5639_v5, %v4566_v4  ;;  %v4806_v42 = vld [vmem:[#allocation2 + $0x908] sm:$0xf]  ;;  %v5699_v10 = vld [vmem:[#allocation2 + $0x914] sm:$0xf0]  ;;  %v4679_v55 = vor.u32 %v5667_v39, %v4678_v38  ;;  %v5433_v48 = vld [vmem:[#allocation2 + $0xcc] sm:$0xf] }
 0x122   :  { %2974 = vmatpush.bf16.msrb.mxu1 %v4647_v3  ;;  %v5739_v3 = vld [vmem:[#allocation2 + $0xa54] sm:$0xf0]  ;;  %v2748_v6 = vpop.f32.mrf.mxu3  ;;  %v4934_v13 = vld [vmem:[#allocation2 + $0xa08] sm:$0xf]  ;;  %v3752_v0 = vld [vmem:[#allocation2 + $0xd8] sm:$0xf0] }
 0x123   :  { %2987 = vmatpush.bf16.msra.mxu2 %v4775_v14  ;;  %v4694_v14 = vld [vmem:[#allocation2 + $0x828] sm:$0xf]  ;;  %v4967_v19 = vor.u32 %v5739_v3, %v4966_v1  ;;  %v5787_v56 = vld [vmem:[#allocation2 + $0xbd4] sm:$0xf0]  ;;  %v5465_v4 = vld [vmem:[#allocation2 + $0x1cc] sm:$0xf] }
 0x124   :  { %3000 = vmatpush.bf16.msra.mxu3 %v4903_v17  ;;  %v5671_v17 = vld [vmem:[#allocation2 + $0x834] sm:$0xf0]  ;;  %v5158_v53 = vld [vmem:[#allocation2 + $0xbc8] sm:$0xf] }
 0x125   :  { %3014 = vmatpush.bf16.msra.mxu0 %v5015_v9  ;;  %v5238_v57 = vld [vmem:[#allocation2 + $0xc68] sm:$0xf]  ;;  %v5159_v1 = vor.u32 %v5787_v56, %v5158_v53  ;;  %v6168_v34 = vld [vmem:[#allocation1] sm:$0xff] }
 0x126   :  { %2975 = vmatpush.bf16.msrb.mxu1 %v4631_v24  ;;  %v5703_v24 = vld [vmem:[#allocation2 + $0x934] sm:$0xf0]  ;;  %v5142_v5 = vld [vmem:[#allocation2 + $0xba8] sm:$0xf]  ;;  %v3704_v56 = vld [vmem:[#allocation2 + $0x78] sm:$0xf0] }
 0x127   :  { %2988 = vmatpush.bf16.msra.mxu2 %v4759_v36  ;;  %v4695_v36 = vor.u32 %v5671_v17, %v4694_v14  ;;  %v5222_v14 = vld [vmem:[#allocation2 + $0xc48] sm:$0xf]  ;;  %v5803_v17 = vld [vmem:[#allocation2 + $0xc54] sm:$0xf0] }
 0x128   :  { %3001 = vmatpush.bf16.msra.mxu3 %v4887_v37  ;;  %v4823_v37 = vor.u32 %v5703_v24, %v4822_v18  ;;  %v3755_v18 = vor.u32 %v5433_v48, %v3752_v0  ;;  %v3736_v24 = vld [vmem:[#allocation2 + $0xb8] sm:$0xf0]  ;;  %v5126_v30 = vld [vmem:[#allocation2 + $0xb88] sm:$0xf]  ;;  %v5779_v35 = vld [vmem:[#allocation2 + $0xb94] sm:$0xf0] }
 0x129   :  { %3015 = vmatpush.bf16.msra.mxu0 %v4999_v50  ;;  %v2737_v16 = vpop.f32.mrf.mxu2  ;;  %v2763_v50 = vpop.f32.mrf.mxu0  ;;  %v6171_v12 = vld [vmem:[#allocation1 + $0x9] sm:$0xff]  ;;  %v6174_v38 = vld [vmem:[#allocation1 + $0x12] sm:$0xff] }
 0x12a   :  { %2976 = vmatpush.bf16.msrb.mxu1 %v4615_v40  ;;  %v2722_v9 = vpop.f32.mrf.mxu1  ;;  %v4951_v40 = vor.u32 %v5735_v29, %v4950_v25  ;;  %v2750_v49 = vpop.f32.mrf.mxu3  ;;  %v3864_v29 = vld [vmem:[#allocation2 + $0x1b8] sm:$0xf0]  ;;  %v5110_v16 = vld [vmem:[#allocation2 + $0xb68] sm:$0xf] }
 0x12b   :  { %2989 = vmatpush.bf16.msra.mxu2 %v4743_v44  ;;  %v2723_v46 = vadd.f32 %v2722_v9, %v505_v28  ;;  %v5731_v44 = vld [vmem:[#allocation2 + $0xa14] sm:$0xf0]  ;;  %v5461_v28 = vld [vmem:[#allocation2 + $0x1ac] sm:$0xf]  ;;  %v4152_v49 = vld [vmem:[#allocation2 + $0x3f8] sm:$0xf0] }
 0x12c   :  { %3002 = vmatpush.bf16.msra.mxu3 %v4871_v45  ;;  %v5437_v45 = vld [vmem:[#allocation2 + $0xec] sm:$0xf]  ;;  %v4935_v60 = vor.u32 %v5731_v44, %v4934_v13  ;;  %v3867_v9 = vor.u32 %v5461_v28, %v3864_v29  ;;  %v5190_v44 = vld [vmem:[#allocation2 + $0xc08] sm:$0xf] }
 0x12d   :  { %3016 = vmatpush.bf16.msra.mxu0 %v4983_v63  ;;  %v2736_v54 = vadd.f32 %v2735_v2, %v2723_v46  ;;  %v3771_v63 = vor.u32 %v5437_v45, %v3768_v47  ;;  %v3880_v2 = vld [vmem:[#allocation2 + $0x1d8] sm:$0xf0]  ;;  %v5457_v13 = vld [vmem:[#allocation2 + $0x18c] sm:$0xf]  ;;  %v5795_v45 = vld [vmem:[#allocation2 + $0xc14] sm:$0xf0] }
 0x12e   :  { %2977 = vmatpush.bf16.msrb.mxu1 %v4599_v51  ;;  %v5469_v51 = vld [vmem:[#allocation2 + $0x1ec] sm:$0xf]  ;;  %v3848_v46 = vld [vmem:[#allocation2 + $0x198] sm:$0xf0] }
 0x12f   :  { %2990 = vmatpush.bf16.msra.mxu2 %v4727_v58  ;;  %v5807_v58 = vld [vmem:[#allocation2 + $0xc74] sm:$0xf0]  ;;  %v2749_v62 = vadd.f32 %v2748_v6, %v2736_v54  ;;  %v5533_v47 = vld [vmem:[#allocation2 + $0x3ec] sm:$0xf] }
 0x130   :  { %3003 = vmatpush.bf16.msra.mxu3 %v4855_v59  ;;  %v4807_v59 = vor.u32 %v5699_v10, %v4806_v42  ;;  %v5239_v3 = vor.u32 %v5807_v58, %v5238_v57  ;;  %v5127_v42 = vor.u32 %v5779_v35, %v5126_v30  ;;  %v5453_v57 = vld [vmem:[#allocation2 + $0x16c] sm:$0xf]  ;;  %v3832_v58 = vld [vmem:[#allocation2 + $0x178] sm:$0xf0] }
 0x131   :  { %3017 = vmatpush.bf16.msra.mxu0 %v4967_v19  ;;  %v3883_v19 = vor.u32 %v5465_v4, %v3880_v2  ;;  %v3835_v0 = vor.u32 %v5453_v57, %v3832_v58  ;;  %v3688_v4 = vld [vmem:[#allocation2 + $0x58] sm:$0xf0]  ;;  %v5449_v2 = vld [vmem:[#allocation2 + $0x14c] sm:$0xf] }
 0x132   :  { %2978 = vmatpush.bf16.msrb.mxu1 %v4583_v15  ;;  %v3899_v15 = vor.u32 %v5469_v51, %v3896_v52  ;;  %v2724_v6 = vpop.f32.mrf.mxu1  ;;  %v3851_v51 = vor.u32 %v5457_v13, %v3848_v46  ;;  %v5421_v52 = vld [vmem:[#allocation2 + $0x6c] sm:$0xf]  ;;  %v3672_v30 = vld [vmem:[#allocation2 + $0x38] sm:$0xf0] }
 0x133   :  { %2991 = vmatpush.bf16.msra.mxu2 %v4711_v8  ;;  %v6165_v8 = vadd.f32 %v6161_v7, %v2749_v62  ;;  %v5223_v7 = vor.u32 %v5803_v17, %v5222_v14  ;;  %v5771_v62 = vld [vmem:[#allocation2 + $0xb54] sm:$0xf0]  ;;  %v3707_v48 = vor.u32 %v5421_v52, %v3704_v56  ;;  %v5078_v17 = vld [vmem:[#allocation2 + $0xb28] sm:$0xf]  ;;  %v5445_v35 = vld [vmem:[#allocation2 + $0x12c] sm:$0xf] }
 0x134   :  { %3004 = vmatpush.bf16.msra.mxu3 %v4839_v11  ;;  %v5783_v11 = vld [vmem:[#allocation2 + $0xbb4] sm:$0xf0]  ;;  %v4104_v13 = vld [vmem:[#allocation2 + $0x398] sm:$0xf0]  ;;  %v5565_v56 = vld [vmem:[#allocation2 + $0x4ec] sm:$0xf] }
 0x135   :  { %3018 = vmatpush.bf16.msra.mxu0 %v4951_v40  ;;  %v5143_v25 = vor.u32 %v5783_v11, %v5142_v5  ;;  %v5425_v40 = vld [vmem:[#allocation2 + $0x8c] sm:$0xf]  ;;  %v3816_v5 = vld [vmem:[#allocation2 + $0x158] sm:$0xf0]  ;;  %v5767_v6 = vld [vmem:[#allocation2 + $0xb34] sm:$0xf0] }
 0x136   :  { %2979 = vmatpush.bf16.msrb.mxu1 %v4567_v23  ;;  %v5429_v23 = vld [vmem:[#allocation2 + $0xac] sm:$0xf]  ;;  %v5079_v29 = vor.u32 %v5767_v6, %v5078_v17  ;;  %v4280_v57 = vld [vmem:[#allocation2 + $0x4f8] sm:$0xf0] }
 0x137   :  { %2992 = vmatpush.bf16.msra.mxu2 %v4695_v36  ;;  %v5206_v36 = vld [vmem:[#allocation2 + $0xc28] sm:$0xf]  ;;  %v3739_v39 = vor.u32 %v5429_v23, %v3736_v24  ;;  %v4120_v23 = vld [vmem:[#allocation2 + $0x3b8] sm:$0xf0]  ;;  %v5597_v58 = vld [vmem:[#allocation2 + $0x5ec] sm:$0xf] }
 0x138   :  { %3005 = vmatpush.bf16.msra.mxu3 %v4823_v37  ;;  %v5799_v37 = vld [vmem:[#allocation2 + $0xc34] sm:$0xf0]  ;;  %v4264_v17 = vld [vmem:[#allocation2 + $0x4d8] sm:$0xf0]  ;;  %v5593_v6 = vld [vmem:[#allocation2 + $0x5cc] sm:$0xf] }
 0x139   :  { %3019 = vmatpush.bf16.msra.mxu0 %v4935_v60  ;;  %v5207_v10 = vor.u32 %v5799_v37, %v5206_v36  ;;  %v6177_v53 = vpop.f32.mrf.mxu0  ;;  %v5094_v60 = vld [vmem:[#allocation2 + $0xb48] sm:$0xf]  ;;  %v3800_v36 = vld [vmem:[#allocation2 + $0x138] sm:$0xf0] }
 0x13a   :  { %2980 = vmatpush.bf16.msrb.mxu1 %v4551_v41  ;;  %v3720_v41 = vld [vmem:[#allocation2 + $0x98] sm:$0xf0] }
 0x13b   :  { %2993 = vmatpush.bf16.msra.mxu2 %v4679_v55  ;;  %v3723_v50 = vor.u32 %v5425_v40, %v3720_v41  ;;  %v5191_v55 = vor.u32 %v5795_v45, %v5190_v44  ;;  %v5501_v40 = vld [vmem:[#allocation2 + $0x2ec] sm:$0xf]  ;;  %v6179_v41 = vld [vmem:[#allocation1 + $0x24] sm:$0xff] }
 0x13c   :  { %3006 = vmatpush.bf16.msra.mxu3 %v4807_v59  ;;  %3020 = vmatmul.bf16.vlgmr.msra.gmra.mxu0 %v6174_v38  ;;  %v4155_v59 = vor.u32 %v5533_v47, %v4152_v49  ;;  %v5409_v44 = vld [vmem:[#allocation2 + $0xc] sm:$0xf]  ;;  %v3656_v49 = vld [vmem:[#allocation2 + $0x18] sm:$0xf0] }
 0x13d   :  { %2981 = vmatmul.bf16.vlgmr.msrb.gmra.mxu1 %v6102_v32  ;;  %3064 = vmatpush.bf16.msrb.mxu0 %v3899_v15  ;;  %v4136_v15 = vld [vmem:[#allocation2 + $0x3d8] sm:$0xf0] }
 0x13e   :  { %3025 = vmatpush.bf16.msra.mxu1 %v5175_v43  ;;  %2994 = vmatmul.bf16.vlgmr.msra.gmra.mxu2 %v6168_v34  ;;  %v5775_v43 = vld [vmem:[#allocation2 + $0xb74] sm:$0xf0] }
 0x13f   :  { %3042 = vmatpush.bf16.msrb.mxu2 %v5239_v3  ;;  %3007 = vmatmul.bf16.vlgmr.msra.gmra.mxu3 %v6171_v12  ;;  %v5111_v54 = vor.u32 %v5775_v43, %v5110_v16  ;;  %v5095_v3 = vor.u32 %v5771_v62, %v5094_v60  ;;  %v3803_v16 = vor.u32 %v5445_v35, %v3800_v36  ;;  %v4408_v62 = vld [vmem:[#allocation2 + $0x5f8] sm:$0xf0] }
 0x140   :  { %3051 = vmatpush.bf16.msrb.mxu3 %v3771_v63  ;;  %v5529_v63 = vld [vmem:[#allocation2 + $0x3cc] sm:$0xf] }
 0x141   :  { %3065 = vmatpush.bf16.msrb.mxu0 %v3883_v19  ;;  %v2787_v11 = vpop.f32.mrf.mxu2  ;;  %v4139_v14 = vor.u32 %v5529_v63, %v4136_v15  ;;  %v5525_v19 = vld [vmem:[#allocation2 + $0x3ac] sm:$0xf]  ;;  %v2815_v28 = vpop.f32.mrf.mxu0  ;;  %v4008_v15 = vld [vmem:[#allocation2 + $0x2d8] sm:$0xf0] }
 0x142   :  { %3026 = vmatpush.bf16.msra.mxu1 %v5159_v1  ;;  %v5417_v1 = vld [vmem:[#allocation2 + $0x4c] sm:$0xf]  ;;  %v4123_v37 = vor.u32 %v5525_v19, %v4120_v23  ;;  %v4392_v23 = vld [vmem:[#allocation2 + $0x5d8] sm:$0xf0] }
 0x143   :  { %3043 = vmatpush.bf16.msrb.mxu2 %v5223_v7  ;;  %v3691_v24 = vor.u32 %v5417_v1, %v3688_v4  ;;  %v5413_v7 = vld [vmem:[#allocation2 + $0x2c] sm:$0xf]  ;;  %v4072_v28 = vld [vmem:[#allocation2 + $0x358] sm:$0xf0]  ;;  %v4395_v35 = vor.u32 %v5593_v6, %v4392_v23 }
 0x144   :  { %3052 = vmatpush.bf16.msrb.mxu3 %v3755_v18  ;;  %v2800_v18 = vpop.f32.mrf.mxu3  ;;  %v3675_v46 = vor.u32 %v5413_v7, %v3672_v30  ;;  %v5497_v63 = vld [vmem:[#allocation2 + $0x2cc] sm:$0xf]  ;;  %v6187_v7 = vld [vmem:[#allocation1 + $0x1b] sm:$0xff] }
 0x145   :  { %3066 = vmatpush.bf16.msrb.mxu0 %v3867_v9  ;;  %v5763_v9 = vld [vmem:[#allocation2 + $0xb14] sm:$0xf0]  ;;  %v5545_v6 = vld [vmem:[#allocation2 + $0x44c] sm:$0xf] }
 0x146   :  { %3027 = vmatpush.bf16.msra.mxu1 %v5143_v25  ;;  %v3819_v25 = vor.u32 %v5449_v2, %v3816_v5  ;;  %v4411_v2 = vor.u32 %v5597_v58, %v4408_v62  ;;  %v4011_v5 = vor.u32 %v5497_v63, %v4008_v15  ;;  %v4216_v62 = vld [vmem:[#allocation2 + $0x478] sm:$0xf0]  ;;  %v5581_v63 = vld [vmem:[#allocation2 + $0x56c] sm:$0xf] }
 0x147   :  { %3044 = vmatpush.bf16.msrb.mxu2 %v5207_v10  ;;  %v5521_v10 = vld [vmem:[#allocation2 + $0x38c] sm:$0xf] }
 0x148   :  { %3053 = vmatpush.bf16.msrb.mxu3 %v3739_v39  ;;  %v5062_v39 = vld [vmem:[#allocation2 + $0xb08] sm:$0xf]  ;;  %v5577_v23 = vld [vmem:[#allocation2 + $0x54c] sm:$0xf] }
 0x149   :  { %3067 = vmatpush.bf16.msrb.mxu0 %v3851_v51  ;;  %v5063_v45 = vor.u32 %v5763_v9, %v5062_v39  ;;  %v3784_v51 = vld [vmem:[#allocation2 + $0x118] sm:$0xf0]  ;;  %v2789_v52 = vpop.f32.mrf.mxu2  ;;  %v5589_v39 = vld [vmem:[#allocation2 + $0x5ac] sm:$0xf] }
 0x14a   :  { %3028 = vmatpush.bf16.msra.mxu1 %v5127_v42  ;;  %v4024_v42 = vld [vmem:[#allocation2 + $0x2f8] sm:$0xf0]  ;;  %v2774_v43 = vpop.f32.mrf.mxu1  ;;  %v5485_v52 = vld [vmem:[#allocation2 + $0x26c] sm:$0xf] }
 0x14b   :  { %3045 = vmatpush.bf16.msrb.mxu2 %v5191_v55  ;;  %v2775_v47 = vadd.f32 %v2774_v43, %v6165_v8  ;;  %v4107_v55 = vor.u32 %v5521_v10, %v4104_v13  ;;  %v4088_v8 = vld [vmem:[#allocation2 + $0x378] sm:$0xf0]  ;;  %v5509_v13 = vld [vmem:[#allocation2 + $0x32c] sm:$0xf] }
 0x14c   :  { %3054 = vmatpush.bf16.msrb.mxu3 %v3723_v50  ;;  %v5441_v50 = vld [vmem:[#allocation2 + $0x10c] sm:$0xf]  ;;  %v3976_v10 = vld [vmem:[#allocation2 + $0x298] sm:$0xf0] }
 0x14d   :  { %3068 = vmatpush.bf16.msrb.mxu0 %v3835_v0  ;;  %v2788_v60 = vadd.f32 %v2787_v11, %v2775_v47  ;;  %v5517_v0 = vld [vmem:[#allocation2 + $0x36c] sm:$0xf]  ;;  %v3787_v1 = vor.u32 %v5441_v50, %v3784_v51  ;;  %v4232_v47 = vld [vmem:[#allocation2 + $0x498] sm:$0xf0] }
 0x14e   :  { %3029 = vmatpush.bf16.msra.mxu1 %v5111_v54  ;;  %5246 = vmatmul.msk.bf16.vlgmr.msrb.gmra.mxu2 %vm2541_vm0, %v6179_v41  ;;  %v4027_v54 = vor.u32 %v5501_v40, %v4024_v42  ;;  %v4091_v11 = vor.u32 %v5517_v0, %v4088_v8  ;;  %v4376_v40 = vld [vmem:[#allocation2 + $0x5b8] sm:$0xf0]  ;;  %v5489_v42 = vld [vmem:[#allocation2 + $0x28c] sm:$0xf] }
 0x14f   :  { %3090 = vmatpush.bf16.msra.mxu2 %v4155_v59  ;;  %v2802_v59 = vpop.f32.mrf.mxu3  ;;  %v2801_v4 = vadd.f32 %v2800_v18, %v2788_v60  ;;  %v5513_v18 = vld [vmem:[#allocation2 + $0x34c] sm:$0xf]  ;;  %v4379_v43 = vor.u32 %v5589_v39, %v4376_v40  ;;  %v4360_v51 = vld [vmem:[#allocation2 + $0x598] sm:$0xf0] }
 0x150   :  { %3055 = vmatpush.bf16.msrb.mxu3 %v3707_v48  ;;  %v3659_v48 = vor.u32 %v5409_v44, %v3656_v49  ;;  %v4075_v9 = vor.u32 %v5513_v18, %v4072_v28  ;;  %v3979_v44 = vor.u32 %v5489_v42, %v3976_v10  ;;  %v5585_v49 = vld [vmem:[#allocation2 + $0x58c] sm:$0xf]  ;;  %v4344_v0 = vld [vmem:[#allocation2 + $0x578] sm:$0xf0] }
 0x151   :  { %3069 = vmatpush.bf16.msrb.mxu0 %v3819_v25  ;;  %v6185_v19 = vadd.f32 %v6177_v53, %v2801_v4  ;;  %v3992_v25 = vld [vmem:[#allocation2 + $0x2b8] sm:$0xf0]  ;;  %v5557_v53 = vld [vmem:[#allocation2 + $0x4ac] sm:$0xf]  ;;  %v4363_v58 = vor.u32 %v5585_v49, %v4360_v51 }
 0x152   :  { %3030 = vmatpush.bf16.msra.mxu1 %v5095_v3  ;;  %v4283_v3 = vor.u32 %v5565_v56, %v4280_v57  ;;  %v5661_v57 = vld [vmem:[#allocation2 + $0x7ec] sm:$0xf]  ;;  %v3928_v18 = vld [vmem:[#allocation2 + $0x238] sm:$0xf0] }
 0x153   :  { %3091 = vmatpush.bf16.msra.mxu2 %v4139_v14  ;;  %v5561_v14 = vld [vmem:[#allocation2 + $0x4cc] sm:$0xf]  ;;  %v4184_v40 = vld [vmem:[#allocation2 + $0x438] sm:$0xf0] }
 0x154   :  { %3056 = vmatpush.bf16.msrb.mxu3 %v3691_v24  ;;  %v5493_v24 = vld [vmem:[#allocation2 + $0x2ac] sm:$0xf]  ;;  %v4267_v30 = vor.u32 %v5561_v14, %v4264_v17  ;;  %v4347_v14 = vor.u32 %v5581_v63, %v4344_v0 }
 0x155   :  { %3070 = vmatpush.bf16.msrb.mxu0 %v3803_v16  ;;  %v3995_v36 = vor.u32 %v5493_v24, %v3992_v25  ;;  %v5549_v60 = vld [vmem:[#allocation2 + $0x46c] sm:$0xf]  ;;  %v4328_v24 = vld [vmem:[#allocation2 + $0x558] sm:$0xf0] }
 0x156   :  { %3031 = vmatpush.bf16.msra.mxu1 %v5079_v29  ;;  %v2776_v29 = vpop.f32.mrf.mxu1  ;;  %v5481_v8 = vld [vmem:[#allocation2 + $0x24c] sm:$0xf]  ;;  %v4219_v4 = vor.u32 %v5549_v60, %v4216_v62 }
 0x157   :  { %3092 = vmatpush.bf16.msra.mxu2 %v4123_v37  ;;  %v4248_v37 = vld [vmem:[#allocation2 + $0x4b8] sm:$0xf0]  ;;  %v5477_v25 = vld [vmem:[#allocation2 + $0x22c] sm:$0xf] }
 0x158   :  { %3057 = vmatpush.bf16.msrb.mxu3 %v3675_v46  ;;  %v4056_v46 = vld [vmem:[#allocation2 + $0x338] sm:$0xf0]  ;;  %v4251_v16 = vor.u32 %v5557_v53, %v4248_v37  ;;  %v4331_v37 = vor.u32 %v5577_v23, %v4328_v24  ;;  %v3931_v39 = vor.u32 %v5477_v25, %v3928_v18  ;;  %v5573_v42 = vld [vmem:[#allocation2 + $0x52c] sm:$0xf] }
 0x159   :  { %3071 = vmatpush.bf16.msrb.mxu0 %v3787_v1  ;;  %v4059_v50 = vor.u32 %v5509_v13, %v4056_v46  ;;  %v6192_v15 = vpop.f32.mrf.mxu0  ;;  %v3944_v1 = vld [vmem:[#allocation2 + $0x258] sm:$0xf0]  ;;  %v5473_v46 = vld [vmem:[#allocation2 + $0x20c] sm:$0xf] }
 0x15a   :  { %3032 = vmatpush.bf16.msra.mxu1 %v5063_v45  ;;  %v5553_v45 = vld [vmem:[#allocation2 + $0x48c] sm:$0xf]  ;;  %v3947_v17 = vor.u32 %v5481_v8, %v3944_v1  ;;  %v4632_v53 = vld [vmem:[#allocation2 + $0x7b8] sm:$0xf0] }
 0x15b   :  { %3093 = vmatpush.bf16.msra.mxu2 %v4107_v55  ;;  %v5505_v55 = vld [vmem:[#allocation2 + $0x30c] sm:$0xf]  ;;  %v4235_v56 = vor.u32 %v5553_v45, %v4232_v47  ;;  %v4312_v13 = vld [vmem:[#allocation2 + $0x538] sm:$0xf0] }
 0x15c   :  { %3058 = vmatpush.bf16.msrb.mxu3 %v3659_v48  ;;  %3072 = vmatmul.bf16.vlgmr.msrb.gmra.mxu0 %v6093_v26  ;;  %v4664_v26 = vld [vmem:[#allocation2 + $0x7f8] sm:$0xf0]  ;;  %v5649_v49 = vld [vmem:[#allocation2 + $0x78c] sm:$0xf] }
 0x15d   :  { %3033 = vmatmul.bf16.vlgmr.msra.gmra.mxu1 %v6187_v7  ;;  %3116 = vmatpush.bf16.msra.mxu0 %v4411_v2  ;;  %v5657_v2 = vld [vmem:[#allocation2 + $0x7cc] sm:$0xf]  ;;  %v4536_v45 = vld [vmem:[#allocation2 + $0x6f8] sm:$0xf0] }
 0x15e   :  { %3077 = vmatpush.bf16.msrb.mxu1 %v4027_v54  ;;  %v3960_v54 = vld [vmem:[#allocation2 + $0x278] sm:$0xf0]  ;;  %v5537_v51 = vld [vmem:[#allocation2 + $0x40c] sm:$0xf] }
 0x15f   :  { %3094 = vmatpush.bf16.msra.mxu2 %v4091_v11  ;;  %3059 = vmatmul.bf16.vlgmr.msrb.gmra.mxu3 %v6088_v21  ;;  %v4040_v21 = vld [vmem:[#allocation2 + $0x318] sm:$0xf0]  ;;  %v3963_v59 = vor.u32 %v5485_v52, %v3960_v54  ;;  %v4315_v54 = vor.u32 %v5573_v42, %v4312_v13  ;;  %v5725_v60 = vld [vmem:[#allocation2 + $0x9ec] sm:$0xf] }
 0x160   :  { %3103 = vmatpush.bf16.msra.mxu3 %v4283_v3  ;;  %v4043_v48 = vor.u32 %v5505_v55, %v4040_v21  ;;  %v4667_v3 = vor.u32 %v5661_v57, %v4664_v26  ;;  %v4200_v11 = vld [vmem:[#allocation2 + $0x458] sm:$0xf0]  ;;  %v5625_v0 = vld [vmem:[#allocation2 + $0x6cc] sm:$0xf] }
 0x161   :  { %3117 = vmatpush.bf16.msra.mxu0 %v4395_v35  ;;  %v2839_v28 = vpop.f32.mrf.mxu2  ;;  %v4203_v35 = vor.u32 %v5545_v6, %v4200_v11  ;;  %v2867_v10 = vpop.f32.mrf.mxu0  ;;  %v4168_v21 = vld [vmem:[#allocation2 + $0x418] sm:$0xf0]  ;;  %v5689_v23 = vld [vmem:[#allocation2 + $0x8cc] sm:$0xf] }
 0x162   :  { %3078 = vmatpush.bf16.msrb.mxu1 %v4011_v5  ;;  %v4648_v5 = vld [vmem:[#allocation2 + $0x7d8] sm:$0xf0]  ;;  %v5721_v25 = vld [vmem:[#allocation2 + $0x9cc] sm:$0xf] }
 0x163   :  { %3095 = vmatpush.bf16.msra.mxu2 %v4075_v9  ;;  %v4651_v29 = vor.u32 %v5657_v2, %v4648_v5  ;;  %v5541_v9 = vld [vmem:[#allocation2 + $0x42c] sm:$0xf]  ;;  %v4296_v57 = vld [vmem:[#allocation2 + $0x518] sm:$0xf0] }
 0x164   :  { %3104 = vmatpush.bf16.msra.mxu3 %v4267_v30  ;;  %v2852_v30 = vpop.f32.mrf.mxu3  ;;  %v4187_v47 = vor.u32 %v5541_v9, %v4184_v40  ;;  %v4520_v8 = vld [vmem:[#allocation2 + $0x6d8] sm:$0xf0]  ;;  %v5645_v2 = vld [vmem:[#allocation2 + $0x76c] sm:$0xf] }
 0x165   :  { %3118 = vmatpush.bf16.msra.mxu0 %v4379_v43  ;;  %v4600_v5 = vld [vmem:[#allocation2 + $0x778] sm:$0xf0]  ;;  %v4523_v11 = vor.u32 %v5625_v0, %v4520_v8  ;;  %v5685_v42 = vld [vmem:[#allocation2 + $0x8ac] sm:$0xf] }
 0x166   :  { %3079 = vmatpush.bf16.msrb.mxu1 %v3995_v36  ;;  %v5653_v36 = vld [vmem:[#allocation2 + $0x7ac] sm:$0xf]  ;;  %v4776_v24 = vld [vmem:[#allocation2 + $0x8d8] sm:$0xf0]  ;;  %v4603_v18 = vor.u32 %v5645_v2, %v4600_v5 }
 0x167   :  { %3096 = vmatpush.bf16.msra.mxu2 %v4059_v50  ;;  %v4635_v43 = vor.u32 %v5653_v36, %v4632_v53  ;;  %v4616_v50 = vld [vmem:[#allocation2 + $0x798] sm:$0xf0]  ;;  %v5641_v53 = vld [vmem:[#allocation2 + $0x74c] sm:$0xf] }
 0x168   :  { %3105 = vmatpush.bf16.msra.mxu3 %v4251_v16  ;;  %v3912_v16 = vld [vmem:[#allocation2 + $0x218] sm:$0xf0]  ;;  %v4619_v63 = vor.u32 %v5649_v49, %v4616_v50  ;;  %v5717_v13 = vld [vmem:[#allocation2 + $0x9ac] sm:$0xf] }
 0x169   :  { %3119 = vmatpush.bf16.msra.mxu0 %v4363_v58  ;;  %v3915_v55 = vor.u32 %v5473_v46, %v3912_v16  ;;  %v5693_v58 = vld [vmem:[#allocation2 + $0x8ec] sm:$0xf]  ;;  %v2841_v62 = vpop.f32.mrf.mxu2  ;;  %v4504_v36 = vld [vmem:[#allocation2 + $0x6b8] sm:$0xf0] }
 0x16a   :  { %3080 = vmatpush.bf16.msrb.mxu1 %v3979_v44  ;;  %v5629_v44 = vld [vmem:[#allocation2 + $0x6ec] sm:$0xf]  ;;  %v2826_v52 = vpop.f32.mrf.mxu1  ;;  %v4760_v10 = vld [vmem:[#allocation2 + $0x8b8] sm:$0xf0] }
 0x16b   :  { %3097 = vmatpush.bf16.msra.mxu2 %v4043_v48  ;;  %v2827_v26 = vadd.f32 %v2826_v52, %v6185_v19  ;;  %v4920_v48 = vld [vmem:[#allocation2 + $0x9f8] sm:$0xf0]  ;;  %v5681_v50 = vld [vmem:[#allocation2 + $0x88c] sm:$0xf] }
 0x16c   :  { %3106 = vmatpush.bf16.msra.mxu3 %v4235_v56  ;;  %v5569_v56 = vld [vmem:[#allocation2 + $0x50c] sm:$0xf]  ;;  %v2854_v1 = vpop.f32.mrf.mxu3  ;;  %v4923_v6 = vor.u32 %v5725_v60, %v4920_v48  ;;  %v4888_v16 = vld [vmem:[#allocation2 + $0x9b8] sm:$0xf0] }
 0x16d   :  { %3120 = vmatpush.bf16.msra.mxu0 %v4347_v14  ;;  %v4299_v14 = vor.u32 %v5569_v56, %v4296_v57  ;;  %v5713_v52 = vld [vmem:[#allocation2 + $0x98c] sm:$0xf]  ;;  %v4472_v56 = vld [vmem:[#allocation2 + $0x678] sm:$0xf0] }
 0x16e   :  { %3081 = vmatpush.bf16.msrb.mxu1 %v3963_v59  ;;  %3098 = vmatmul.bf16.vlgmr.msra.gmra.mxu2 %v6090_v22  ;;  %v4539_v22 = vor.u32 %v5629_v44, %v4536_v45  ;;  %v4792_v59 = vld [vmem:[#allocation2 + $0x8f8] sm:$0xf0]  ;;  %v5637_v44 = vld [vmem:[#allocation2 + $0x72c] sm:$0xf]  ;;  %v4763_v45 = vor.u32 %v5685_v42, %v4760_v10 }
 0x16f   :  { %3142 = vmatpush.bf16.msrb.mxu2 %v4667_v3  ;;  %v2840_v3 = vadd.f32 %v2839_v28, %v2827_v26  ;;  %v4795_v19 = vor.u32 %v5693_v58, %v4792_v59  ;;  %v5633_v57 = vld [vmem:[#allocation2 + $0x70c] sm:$0xf]  ;;  %v4728_v62 = vld [vmem:[#allocation2 + $0x878] sm:$0xf0] }
 0x170   :  { %3107 = vmatpush.bf16.msra.mxu3 %v4219_v4  ;;  %v4171_v4 = vor.u32 %v5537_v51, %v4168_v21  ;;  %v4744_v51 = vld [vmem:[#allocation2 + $0x898] sm:$0xf0]  ;;  %v5613_v21 = vld [vmem:[#allocation2 + $0x66c] sm:$0xf] }
 0x171   :  { %3121 = vmatpush.bf16.msra.mxu0 %v4331_v37  ;;  %v4584_v37 = vld [vmem:[#allocation2 + $0x758] sm:$0xf0]  ;;  %v4747_v26 = vor.u32 %v5681_v50, %v4744_v51  ;;  %v4475_v59 = vor.u32 %v5613_v21, %v4472_v56  ;;  %v5677_v60 = vld [vmem:[#allocation2 + $0x86c] sm:$0xf] }
 0x172   :  { %3082 = vmatpush.bf16.msrb.mxu1 %v3947_v17  ;;  %v2853_v17 = vadd.f32 %v2852_v30, %v2840_v3  ;;  %v2828_v30 = vpop.f32.mrf.mxu1  ;;  %v4587_v46 = vor.u32 %v5641_v53, %v4584_v37  ;;  %v4856_v8 = vld [vmem:[#allocation2 + $0x978] sm:$0xf0]  ;;  %v5609_v1 = vld [vmem:[#allocation2 + $0x64c] sm:$0xf]  ;;  %v4731_v5 = vor.u32 %v5677_v60, %v4728_v62 }
 0x173   :  { %3143 = vmatpush.bf16.msrb.mxu2 %v4651_v29  ;;  %v4904_v29 = vld [vmem:[#allocation2 + $0x9d8] sm:$0xf0]  ;;  %v5781_v37 = vld [vmem:[#allocation2 + $0xbac] sm:$0xf] }
 0x174   :  { %3108 = vmatpush.bf16.msra.mxu3 %v4203_v35  ;;  %v5621_v35 = vld [vmem:[#allocation2 + $0x6ac] sm:$0xf]  ;;  %v2866_v28 = vadd.f32 %v6192_v15, %v2853_v17  ;;  %v4907_v9 = vor.u32 %v5721_v25, %v4904_v29  ;;  %v4488_v15 = vld [vmem:[#allocation2 + $0x698] sm:$0xf0] }
 0x175   :  { %3122 = vmatpush.bf16.msra.mxu0 %v4315_v54  ;;  %v4507_v40 = vor.u32 %v5621_v35, %v4504_v36  ;;  %v4456_v3 = vld [vmem:[#allocation2 + $0x658] sm:$0xf0]  ;;  %v5669_v42 = vld [vmem:[#allocation2 + $0x82c] sm:$0xf] }
 0x176   :  { %3083 = vmatpush.bf16.msrb.mxu1 %v3931_v39  ;;  %v4779_v39 = vor.u32 %v5689_v23, %v4776_v24  ;;  %v4712_v23 = vld [vmem:[#allocation2 + $0x858] sm:$0xf0]  ;;  %v5705_v24 = vld [vmem:[#allocation2 + $0x94c] sm:$0xf] }
 0x177   :  { %3144 = vmatpush.bf16.msrb.mxu2 %v4635_v43  ;;  %v5617_v43 = vld [vmem:[#allocation2 + $0x68c] sm:$0xf]  ;;  %v4840_v25 = vld [vmem:[#allocation2 + $0x958] sm:$0xf0] }
 0x178   :  { %3109 = vmatpush.bf16.msra.mxu3 %v4187_v47  ;;  %v4891_v47 = vor.u32 %v5717_v13, %v4888_v16  ;;  %v4491_v49 = vor.u32 %v5617_v43, %v4488_v15  ;;  %v4440_v29 = vld [vmem:[#allocation2 + $0x638] sm:$0xf0]  ;;  %v5701_v13 = vld [vmem:[#allocation2 + $0x92c] sm:$0xf] }
 0x179   :  { %3123 = vmatpush.bf16.msra.mxu0 %v4299_v14  ;;  %v5785_v14 = vld [vmem:[#allocation2 + $0xbcc] sm:$0xf]  ;;  %v6202_v35 = vpop.f32.mrf.mxu0  ;;  %v5144_v30 = vld [vmem:[#allocation2 + $0xbb8] sm:$0xf0] }
 0x17a   :  { %3084 = vmatpush.bf16.msrb.mxu1 %v3915_v55  ;;  %v4872_v55 = vld [vmem:[#allocation2 + $0x998] sm:$0xf0]  ;;  %v2878_v48 = vpop.f32.mrf.mxu1  ;;  %v5601_v16 = vld [vmem:[#allocation2 + $0x60c] sm:$0xf] }
 0x17b   :  { %3145 = vmatpush.bf16.msrb.mxu2 %v4619_v63  ;;  %v4875_v58 = vor.u32 %v5713_v52, %v4872_v55  ;;  %v5709_v63 = vld [vmem:[#allocation2 + $0x96c] sm:$0xf]  ;;  %v4696_v10 = vld [vmem:[#allocation2 + $0x838] sm:$0xf0] }
 0x17c   :  { %3110 = vmatpush.bf16.msra.mxu3 %v4171_v4  ;;  %3124 = vmatmul.bf16.vlgmr.msra.gmra.mxu0 %v6104_v33  ;;  %v5176_v33 = vld [vmem:[#allocation2 + $0xbf8] sm:$0xf0]  ;;  %v6200_v4 = vadd.f32 %v2878_v48, %v2866_v28  ;;  %v4859_v17 = vor.u32 %v5709_v63, %v4856_v8  ;;  %v5697_v21 = vld [vmem:[#allocation2 + $0x90c] sm:$0xf] }
 0x17d   :  { %3085 = vmatmul.bf16.vlgmr.msrb.gmra.mxu1 %v6086_v20  ;;  %3168 = vmatpush.bf16.msrb.mxu0 %v4923_v6  ;;  %v4568_v20 = vld [vmem:[#allocation2 + $0x738] sm:$0xf0]  ;;  %v4459_v6 = vor.u32 %v5609_v1, %v4456_v3  ;;  %v5773_v62 = vld [vmem:[#allocation2 + $0xb6c] sm:$0xf] }
 0x17e   :  { %3129 = vmatpush.bf16.msra.mxu1 %v4539_v22  ;;  %v4571_v54 = vor.u32 %v5637_v44, %v4568_v20  ;;  %v5789_v22 = vld [vmem:[#allocation2 + $0xbec] sm:$0xf]  ;;  %v4424_v43 = vld [vmem:[#allocation2 + $0x618] sm:$0xf0]  ;;  %v5147_v44 = vor.u32 %v5781_v37, %v5144_v30 }
 0x17f   :  { %3146 = vmatpush.bf16.msrb.mxu2 %v4603_v18  ;;  %3111 = vmatmul.bf16.vlgmr.msra.gmra.mxu3 %v6100_v31  ;;  %v4552_v31 = vld [vmem:[#allocation2 + $0x718] sm:$0xf0]  ;;  %v5179_v2 = vor.u32 %v5789_v22, %v5176_v33  ;;  %v5605_v18 = vld [vmem:[#allocation2 + $0x62c] sm:$0xf]  ;;  %v4427_v52 = vor.u32 %v5601_v16, %v4424_v43 }
 0x180   :  { %3155 = vmatpush.bf16.msrb.mxu3 %v4795_v19  ;;  %v4555_v0 = vor.u32 %v5633_v57, %v4552_v31  ;;  %v5160_v19 = vld [vmem:[#allocation2 + $0xbd8] sm:$0xf0]  ;;  %v5757_v20 = vld [vmem:[#allocation2 + $0xaec] sm:$0xf] }
 0x181   :  { %3169 = vmatpush.bf16.msrb.mxu0 %v4907_v9  ;;  %v5163_v36 = vor.u32 %v5785_v14, %v5160_v19  ;;  %v6204_v28 = vpop.f32.mrf.mxu2  ;;  %v4843_v9 = vor.u32 %v5705_v24, %v4840_v25  ;;  %v5128_v50 = vld [vmem:[#allocation2 + $0xb98] sm:$0xf0]  ;;  %v5805_v57 = vld [vmem:[#allocation2 + $0xc6c] sm:$0xf]  ;;  %v5814_v24 = vld [vmem:[#allocation7 + $0x30] sm:$0xff] }
 0x182   :  { %3130 = vmatpush.bf16.msra.mxu1 %v4523_v11  ;;  %v5673_v11 = vld [vmem:[#allocation2 + $0x84c] sm:$0xf]  ;;  %v2880_v15 = vpop.f32.mrf.mxu1  ;;  %v4680_v55 = vld [vmem:[#allocation2 + $0x818] sm:$0xf0] }
 0x183   :  { %3147 = vmatpush.bf16.msrb.mxu2 %v4587_v46  ;;  %v4715_v53 = vor.u32 %v5673_v11, %v4712_v23  ;;  %v4824_v46 = vld [vmem:[#allocation2 + $0x938] sm:$0xf0]  ;;  %v5753_v33 = vld [vmem:[#allocation2 + $0xacc] sm:$0xf] }
 0x184   :  { %3156 = vmatpush.bf16.msrb.mxu3 %v4779_v39  ;;  %v6206_v39 = vpop.f32.mrf.mxu3  ;;  %v4827_v51 = vor.u32 %v5701_v13, %v4824_v46  ;;  %v4808_v56 = vld [vmem:[#allocation2 + $0x918] sm:$0xf0]  ;;  %v5749_v19 = vld [vmem:[#allocation2 + $0xaac] sm:$0xf] }
 0x185   :  { %3170 = vmatpush.bf16.msrb.mxu0 %v4891_v47  ;;  %v4699_v47 = vor.u32 %v5669_v42, %v4696_v10  ;;  %v5240_v31 = vld [vmem:[#allocation2 + $0xc78] sm:$0xf0]  ;;  %v5765_v30 = vld [vmem:[#allocation2 + $0xb2c] sm:$0xf] }
 0x186   :  { %3131 = vmatpush.bf16.msra.mxu1 %v4507_v40  ;;  %v4443_v40 = vor.u32 %v5605_v18, %v4440_v29  ;;  %v5112_v63 = vld [vmem:[#allocation2 + $0xb78] sm:$0xf0]  ;;  %v5243_v8 = vor.u32 %v5805_v57, %v5240_v31  ;;  %v5797_v18 = vld [vmem:[#allocation2 + $0xc2c] sm:$0xf]  ;;  %v5810_v31 = vld [vmem:[#allocation7 + $0x10] sm:$0xff] }
 0x187   :  { %3148 = vmatpush.bf16.msrb.mxu2 %v4571_v54  ;;  %v5665_v54 = vld [vmem:[#allocation2 + $0x80c] sm:$0xf]  ;;  %v5815_v1 = vld [vmem:[#allocation7 + $0x38] sm:$0xff]  ;;  %v5115_v14 = vor.u32 %v5773_v62, %v5112_v63 }
 0x188   :  { %3157 = vmatpush.bf16.msrb.mxu3 %v4763_v45  ;;  %v5048_v45 = vld [vmem:[#allocation2 + $0xaf8] sm:$0xf0]  ;;  %v4683_v60 = vor.u32 %v5665_v54, %v4680_v55  ;;  %v5793_v10 = vld [vmem:[#allocation2 + $0xc0c] sm:$0xf] }
 0x189   :  { %3171 = vmatpush.bf16.msrb.mxu0 %v4875_v58  ;;  %v5032_v58 = vld [vmem:[#allocation2 + $0xad8] sm:$0xf0]  ;;  %v5741_v16 = vld [vmem:[#allocation2 + $0xa6c] sm:$0xf] }
 0x18a   :  { %3132 = vmatpush.bf16.msra.mxu1 %v4491_v49  ;;  %v5777_v49 = vld [vmem:[#allocation2 + $0xb8c] sm:$0xf]  ;;  %v5035_v3 = vor.u32 %v5753_v33, %v5032_v58  ;;  %v5096_v11 = vld [vmem:[#allocation2 + $0xb58] sm:$0xf0] }
 0x18b   :  { %3149 = vmatpush.bf16.msrb.mxu2 %v4555_v0  ;;  %v5131_v22 = vor.u32 %v5777_v49, %v5128_v50  ;;  %v4811_v0 = vor.u32 %v5697_v21, %v4808_v56  ;;  %v5208_v29 = vld [vmem:[#allocation2 + $0xc38] sm:$0xf0]  ;;  %v5737_v49 = vld [vmem:[#allocation2 + $0xa4c] sm:$0xf]  ;;  %v5830_v56 = vld [vmem:[#allocation7 + $0xb0] sm:$0xff] }
 0x18c   :  { %3158 = vmatpush.bf16.msrb.mxu3 %v4747_v26  ;;  %v2919_v26 = vpop.f32.mrf.mxu0  ;;  %v2906_v48 = vpop.f32.mrf.mxu3  ;;  %v5000_v37 = vld [vmem:[#allocation2 + $0xa98] sm:$0xf0]  ;;  %v5733_v21 = vld [vmem:[#allocation2 + $0xa2c] sm:$0xf] }
 0x18d   :  { %3172 = vmatpush.bf16.msrb.mxu0 %v4859_v17  ;;  %v5016_v17 = vld [vmem:[#allocation2 + $0xab8] sm:$0xf0]  ;;  %v5729_v58 = vld [vmem:[#allocation2 + $0xa0c] sm:$0xf] }
 0x18e   :  { %3133 = vmatpush.bf16.msra.mxu1 %v4475_v59  ;;  %3150 = vmatmul.bf16.vlgmr.msrb.gmra.mxu2 %v6102_v32  ;;  %v5051_v32 = vor.u32 %v5757_v20, %v5048_v45  ;;  %v2893_v59 = vpop.f32.mrf.mxu2  ;;  %v5019_v25 = vor.u32 %v5749_v19, %v5016_v17  ;;  %v5192_v13 = vld [vmem:[#allocation2 + $0xc18] sm:$0xf0]  ;;  %v5812_v20 = vld [vmem:[#allocation7 + $0x20] sm:$0xff]  ;;  %v5829_v62 = vld [vmem:[#allocation7 + $0xa8] sm:$0xff] }
 0x18f   :  { %3194 = vmatpush.bf16.msra.mxu2 %v5179_v2  ;;  %v5801_v2 = vld [vmem:[#allocation2 + $0xc4c] sm:$0xf]  ;;  %v4984_v43 = vld [vmem:[#allocation2 + $0xa78] sm:$0xf0] }
 0x190   :  { %3159 = vmatpush.bf16.msrb.mxu3 %v4731_v5  ;;  %v5224_v5 = vld [vmem:[#allocation2 + $0xc58] sm:$0xf0]  ;;  %v5809_v63 = vld [vmem:[#allocation7 + $0x8] sm:$0xff] }
 0x191   :  { %3173 = vmatpush.bf16.msrb.mxu0 %v4843_v9  ;;  %v5227_v23 = vor.u32 %v5801_v2, %v5224_v5  ;;  %v5211_v9 = vor.u32 %v5797_v18, %v5208_v29  ;;  %v5064_v15 = vld [vmem:[#allocation2 + $0xb18] sm:$0xf0]  ;;  %v3220_v5 = vmax.f32 %v6155_v61, 0.0  ;;  %v5820_v61 = vld [vmem:[#allocation7 + $0x60] sm:$0xff] }
 0x192   :  { %3134 = vmatpush.bf16.msra.mxu1 %v4459_v6  ;;  %v5769_v6 = vld [vmem:[#allocation2 + $0xb4c] sm:$0xf]  ;;  %v4968_v50 = vld [vmem:[#allocation2 + $0xa58] sm:$0xf0] }
 0x193   :  { %3195 = vmatpush.bf16.msra.mxu2 %v5163_v36  ;;  %v5099_v36 = vor.u32 %v5769_v6, %v5096_v11  ;;  %v5811_v54 = vld [vmem:[#allocation7 + $0x18] sm:$0xff]  ;;  %v4971_v55 = vor.u32 %v5737_v49, %v4968_v50  ;;  %v3224_v6 = vpack.c.bf16 %v3220_v5, %v3220_v5  ;;  %v5821_v11 = vld [vmem:[#allocation7 + $0x68] sm:$0xff] }
 0x194   :  { %3160 = vmatpush.bf16.msrb.mxu3 %v4715_v53  ;;  %v5745_v53 = vld [vmem:[#allocation2 + $0xa8c] sm:$0xf]  ;;  %v4936_v59 = vld [vmem:[#allocation2 + $0xa18] sm:$0xf0] }
 0x195   :  { %3174 = vmatpush.bf16.msrb.mxu0 %v4827_v51  ;;  %v5003_v42 = vor.u32 %v5745_v53, %v5000_v37  ;;  %v4939_v48 = vor.u32 %v5729_v58, %v4936_v59  ;;  %v5827_v19 = vld [vmem:[#allocation7 + $0x98] sm:$0xff]  ;;  %v5818_v37 = vld [vmem:[#allocation7 + $0x50] sm:$0xff] }
 0x196   :  { %3135 = vmatpush.bf16.msra.mxu1 %v4443_v40  ;;  %v5813_v40 = vld [vmem:[#allocation7 + $0x28] sm:$0xff] }
 0x197   :  { %3196 = vmatpush.bf16.msra.mxu2 %v5147_v44  ;;  %v5195_v44 = vor.u32 %v5793_v10, %v5192_v13  ;;  %v3221_v13 = vmax.f32 %v6200_v4, 0.0 }
 0x198   :  { %3161 = vmatpush.bf16.msrb.mxu3 %v4699_v47 }
 0x199   :  { %3175 = vmatpush.bf16.msrb.mxu0 %v4811_v0  ;;  %v6214_v51 = vpop.f32.mrf.mxu0  ;;  %v5823_v0 = vld [vmem:[#allocation7 + $0x78] sm:$0xff] }
 0x19a   :  { %3136 = vmatpush.bf16.msra.mxu1 %v4427_v52  ;;  %v6212_v47 = vpop.f32.mrf.mxu1  ;;  %v5831_v52 = vld [vmem:[#allocation7 + $0xb8] sm:$0xff] }
 0x19b   :  { %3197 = vmatpush.bf16.msra.mxu2 %v5131_v22 }
 0x19c   :  { %3162 = vmatpush.bf16.msrb.mxu3 %v4683_v60  ;;  %3176 = vmatmul.bf16.vlgmr.msrb.gmra.mxu0 %v6171_v12  ;;  %v4987_v12 = vor.u32 %v5741_v16, %v4984_v43 }
 0x19d   :  { %3137 = vmatmul.bf16.vlgmr.msra.gmra.mxu1 %v6098_v27  ;;  %3488 = vmatpush.bf16.msra.mxu0 %v5815_v1  ;;  %v5080_v27 = vld [vmem:[#allocation2 + $0xb38] sm:$0xf0]  ;;  %v6219_v1 = vld [vmem:[#allocation5] sm:$0xf] }
 0x19e   :  { %3181 = vmatpush.bf16.msrb.mxu1 %v5051_v32  ;;  %v5083_v46 = vor.u32 %v5765_v30, %v5080_v27  ;;  %v4952_v32 = vld [vmem:[#allocation2 + $0xa38] sm:$0xf0] }
 0x19f   :  { %3198 = vmatpush.bf16.msra.mxu2 %v5115_v14  ;;  %3163 = vmatmul.bf16.vlgmr.msrb.gmra.mxu3 %v6168_v34  ;;  %v5761_v34 = vld [vmem:[#allocation2 + $0xb0c] sm:$0xf]  ;;  %v4955_v22 = vor.u32 %v5733_v21, %v4952_v32  ;;  %v5822_v14 = vld [vmem:[#allocation7 + $0x70] sm:$0xff] }
 0x1a0   :  { %3211 = vmatpush.bf16.msra.mxu3 %v5243_v8  ;;  %v5067_v45 = vor.u32 %v5761_v34, %v5064_v15  ;;  %v3225_v15 = vpack.c.bf16 %v3221_v13, %v3221_v13 }
 0x1a1   :  { %3489 = vmatpush.bf16.msra.mxu0 %v5814_v24  ;;  %v2943_v57 = vpop.f32.mrf.mxu2  ;;  %v2971_v60 = vpop.f32.mrf.mxu0 }
 0x1a2   :  { %3182 = vmatpush.bf16.msrb.mxu1 %v5035_v3  ;;  %v2956_v26 = vpop.f32.mrf.mxu3  ;;  %v2932_v33 = vpop.f32.mrf.mxu1  ;;  %v506_v3 = vperm.slane %v6219_v1, 2  ;;  %v5838_v60 = vld [vmem:[#allocation7 + $0xf0] sm:$0xff] }
 0x1a3   :  { %3199 = vmatpush.bf16.msra.mxu2 %v5099_v36  ;;  %v5839_v33 = vld [vmem:[#allocation7 + $0xf8] sm:$0xff] }
 0x1a4   :  { %3212 = vmatpush.bf16.msra.mxu3 %v5227_v23  ;;  %v2892_v17 = vadd.f32 %v6204_v28, %v506_v3  ;;  %v5826_v23 = vld [vmem:[#allocation7 + $0x90] sm:$0xff]  ;;  %v5819_v28 = vld [vmem:[#allocation7 + $0x58] sm:$0xff] }
 0x1a5   :  { %3490 = vmatpush.bf16.msra.mxu0 %v5813_v40  ;;  %v5817_v40 = vld [vmem:[#allocation7 + $0x48] sm:$0xff] }
 0x1a6   :  { %3183 = vmatpush.bf16.msrb.mxu1 %v5019_v25  ;;  %v2905_v24 = vadd.f32 %v6206_v39, %v2892_v17  ;;  %v5825_v25 = vld [vmem:[#allocation7 + $0x88] sm:$0xff] }
 0x1a7   :  { %3200 = vmatpush.bf16.msra.mxu2 %v5083_v46 }
 0x1a8   :  { %3213 = vmatpush.bf16.msra.mxu3 %v5211_v9  ;;  %v2918_v29 = vadd.f32 %v6202_v35, %v2905_v24  ;;  %v5816_v35 = vld [vmem:[#allocation7 + $0x40] sm:$0xff] }
 0x1a9   :  { %3491 = vmatpush.bf16.msra.mxu0 %v5812_v20  ;;  %v2945_v8 = vpop.f32.mrf.mxu2 }
 0x1aa   :  { %3184 = vmatpush.bf16.msrb.mxu1 %v5003_v42  ;;  %v2958_v2 = vpop.f32.mrf.mxu3  ;;  %v2931_v36 = vadd.f32 %v6212_v47, %v2918_v29  ;;  %v507_v8 = vperm.slane %v6219_v1, 3 }
 0x1ab   :  { %3201 = vmatpush.bf16.msra.mxu2 %v5067_v45 }
 0x1ac   :  { %3214 = vmatpush.bf16.msra.mxu3 %v5195_v44  ;;  %v2944_v27 = vadd.f32 %v2943_v57, %v2931_v36 }
 0x1ad   :  { %3492 = vmatpush.bf16.msra.mxu0 %v5811_v54 }
 0x1ae   :  { %3185 = vmatpush.bf16.msrb.mxu1 %v4987_v12  ;;  %3202 = vmatmul.bf16.vlgmr.msra.gmra.mxu2 %v6187_v7  ;;  %v5828_v7 = vld [vmem:[#allocation7 + $0xa0] sm:$0xff]  ;;  %v2957_v42 = vadd.f32 %v2956_v26, %v2944_v27 }
 0x1af   :  { %3514 = vmatpush.bf16.msrb.mxu2 %v5831_v52  ;;  %5247 = vmatmul.msk.bf16.vlgmr.msra.gmra.mxu3 %vm2541_vm0, %v6179_v41  ;;  %v5808_v41 = vld [vmem:[#allocation7] sm:$0xff] }
 0x1b0   :  { %v2970_v46 = vadd.f32 %v6214_v51, %v2957_v42  ;;  %3527 = vmatpush.bf16.msrb.mxu3 %v5839_v33 }
 0x1b1   :  { %3493 = vmatpush.bf16.msra.mxu0 %v5810_v31 }
 0x1b2   :  { %3186 = vmatpush.bf16.msrb.mxu1 %v4971_v55 }
 0x1b3   :  { %3515 = vmatpush.bf16.msrb.mxu2 %v5830_v56 }
 0x1b4   :  { %3528 = vmatpush.bf16.msrb.mxu3 %v5838_v60 }
 0x1b5   :  { %3494 = vmatpush.bf16.msra.mxu0 %v5809_v63  ;;  %v5837_v63 = vld [vmem:[#allocation7 + $0xe8] sm:$0xff] }
 0x1b6   :  { %3187 = vmatpush.bf16.msrb.mxu1 %v4955_v22 }
 0x1b7   :  { %3516 = vmatpush.bf16.msrb.mxu2 %v5829_v62 }
 0x1b8   :  { %3529 = vmatpush.bf16.msrb.mxu3 %v5837_v63 }
 0x1b9   :  { %3495 = vmatpush.bf16.msra.mxu0 %v5808_v41  ;;  %v3021_v53 = vpop.f32.mrf.mxu0  ;;  %v5834_v41 = vld [vmem:[#allocation7 + $0xd0] sm:$0xff] }
 0x1ba   :  { %3188 = vmatpush.bf16.msrb.mxu1 %v4939_v48  ;;  %v2982_v18 = vpop.f32.mrf.mxu1  ;;  %v5836_v48 = vld [vmem:[#allocation7 + $0xe0] sm:$0xff] }
 0x1bb   :  { %3517 = vmatpush.bf16.msrb.mxu2 %v5828_v7  ;;  %v2983_v34 = vadd.f32 %v2982_v18, %v2970_v46  ;;  %v5835_v7 = vld [vmem:[#allocation7 + $0xd8] sm:$0xff] }
 0x1bc   :  { %3496 = vmatmul.bf16.vlgmr.msra.gmra.mxu0 %v3224_v6  ;;  %3530 = vmatpush.bf16.msrb.mxu3 %v5836_v48 }
 0x1bd   :  { %3189 = vmatmul.bf16.vlgmr.msrb.gmra.mxu1 %v6174_v38  ;;  %v5824_v38 = vld [vmem:[#allocation7 + $0x80] sm:$0xff] }
 0x1be   :  { %3501 = vmatpush.bf16.msra.mxu1 %v5823_v0 }
 0x1bf   :  { %3518 = vmatpush.bf16.msrb.mxu2 %v5827_v19 }
 0x1c0   :  { %3531 = vmatpush.bf16.msrb.mxu3 %v5835_v7 }
 0x1c1   :  { %v2995_v39 = vpop.f32.mrf.mxu2  ;;  %v3023_v10 = vpop.f32.mrf.mxu0 }
 0x1c2   :  { %3502 = vmatpush.bf16.msra.mxu1 %v5822_v14  ;;  %v2984_v30 = vpop.f32.mrf.mxu1  ;;  %v3008_v9 = vpop.f32.mrf.mxu3  ;;  %v2996_v44 = vadd.f32 %v2995_v39, %v2983_v34  ;;  %v5833_v14 = vld [vmem:[#allocation7 + $0xc8] sm:$0xff] }
 0x1c3   :  { %3519 = vmatpush.bf16.msrb.mxu2 %v5826_v23 }
 0x1c4   :  { %v3009_v20 = vadd.f32 %v3008_v9, %v2996_v44  ;;  %3532 = vmatpush.bf16.msrb.mxu3 %v5834_v41 }
 0x1c6   :  { %3503 = vmatpush.bf16.msra.mxu1 %v5821_v11  ;;  %v3022_v45 = vadd.f32 %v3021_v53, %v3009_v20  ;;  %v5832_v11 = vld [vmem:[#allocation7 + $0xc0] sm:$0xff]  ;;  %v5847_v20 = vld [vmem:[%s6263_s5 + $0x38] sm:$0xff] }
 0x1c7   :  { %3520 = vmatpush.bf16.msrb.mxu2 %v5825_v25  ;;  %3610 = vmatpush.bf16.msrb.mxu0 %v5847_v20 }
 0x1c8   :  { %3533 = vmatpush.bf16.msrb.mxu3 %v5833_v14 }
 0x1c9   :  { %v2997_v16 = vpop.f32.mrf.mxu2 }
 0x1ca   :  { %3504 = vmatpush.bf16.msra.mxu1 %v5820_v61  ;;  %v3010_v43 = vpop.f32.mrf.mxu3 }
 0x1cb   :  { %3521 = vmatpush.bf16.msrb.mxu2 %v5824_v38 }
 0x1cc   :  { %3534 = vmatpush.bf16.msrb.mxu3 %v5832_v11 }
 0x1ce   :  { %3505 = vmatpush.bf16.msra.mxu1 %v5819_v28 }
 0x1d1   :  { %v3047_v12 = vpop.f32.mrf.mxu2 }
 0x1d2   :  { %3506 = vmatpush.bf16.msra.mxu1 %v5818_v37 }
 0x1d6   :  { %3507 = vmatpush.bf16.msra.mxu1 %v5817_v40 }
 0x1d9   :  { %v3073_v52 = vpop.f32.mrf.mxu0  ;;  %v3049_v55 = vpop.f32.mrf.mxu2 }
 0x1da   :  { %3508 = vmatpush.bf16.msra.mxu1 %v5816_v35  ;;  %v3034_v47 = vpop.f32.mrf.mxu1  ;;  %v5842_v55 = vld [vmem:[%s6263_s5 + $0x10] sm:$0xff] }
 0x1db   :  { %v3035_v49 = vadd.f32 %v3034_v47, %v3022_v45  ;;  %v5846_v47 = vld [vmem:[%s6263_s5 + $0x30] sm:$0xff] }
 0x1dc   :  { %3611 = vmatpush.bf16.msrb.mxu0 %v5846_v47 }
 0x1dd   :  { %3509 = vmatmul.bf16.vlgmr.msra.gmra.mxu1 %v3225_v15  ;;  %v3048_v50 = vadd.f32 %v3047_v12, %v3035_v49  ;;  %v5858_v15 = vld [vmem:[#allocation8] ss:$0 sm:$0xff] }
 0x1de   :  { %v5845_v49 = vld [vmem:[%s6263_s5 + $0x28] sm:$0xff] }
 0x1df   :  { %v3222_v54 = vmax.f32 %v3048_v50, 0.0 }
 0x1e0   :  { %3612 = vmatpush.bf16.msrb.mxu0 %v5845_v49 }
 0x1e1   :  { %v3226_v21 = vpack.c.bf16 %v3222_v54, %v3222_v54  ;;  %v3075_v32 = vpop.f32.mrf.mxu0  ;;  %v5843_v54 = vld [vmem:[%s6263_s5 + $0x18] sm:$0xff] }
 0x1e2   :  { %v3036_v4 = vpop.f32.mrf.mxu1  ;;  %v3060_v51 = vpop.f32.mrf.mxu3  ;;  %v5841_v32 = vld [vmem:[%s6263_s5 + $0x8] sm:$0xff] }
 0x1e3   :  { %3522 = vmatmul.bf16.vlgmr.msrb.gmra.mxu2 %v3226_v21  ;;  %v3061_v2 = vadd.f32 %v3060_v51, %v507_v8 }
 0x1e5   :  { %v3074_v19 = vadd.f32 %v3073_v52, %v3061_v2  ;;  %v5844_v52 = vld [vmem:[%s6263_s5 + $0x20] sm:$0xff] }
 0x1e6   :  { %3613 = vmatpush.bf16.msrb.mxu0 %v5844_v52 }
 0x1ea   :  { %v3062_v56 = vpop.f32.mrf.mxu3  ;;  %3614 = vmatpush.bf16.msrb.mxu0 %v5843_v54 }
 0x1eb   :  { %v5840_v56 = vld [vmem:[%s6263_s5] sm:$0xff] }
 0x1ee   :  { %3615 = vmatpush.bf16.msrb.mxu0 %v5842_v55 }
 0x1f1   :  { %v3099_v57 = vpop.f32.mrf.mxu2 }
 0x1f2   :  { %3616 = vmatpush.bf16.msrb.mxu0 %v5841_v32 }
 0x1f6   :  { %3617 = vmatpush.bf16.msrb.mxu0 %v5840_v56 }
 0x1f9   :  { %v3101_v26 = vpop.f32.mrf.mxu2  ;;  %v3125_v22 = vpop.f32.mrf.mxu0 }
 0x1fa   :  { %v3086_v31 = vpop.f32.mrf.mxu1 }
 0x1fb   :  { %v3087_v23 = vadd.f32 %v3086_v31, %v3074_v19 }
 0x1fd   :  { %v3100_v61 = vadd.f32 %v3099_v57, %v3087_v23 }
 0x201   :  { %v3127_v62 = vpop.f32.mrf.mxu0 }
 0x202   :  { %v3088_v58 = vpop.f32.mrf.mxu1  ;;  %v3112_v59 = vpop.f32.mrf.mxu3 }
 0x203   :  { %v3113_v29 = vadd.f32 %v3112_v59, %v3100_v61  ;;  %v5859_v58 = vld [vmem:[#allocation10] ss:$0 sm:$0xff] }
 0x205   :  { %v3126_v1 = vadd.f32 %v3125_v22, %v3113_v29 }
 0x20a   :  { %v3114_v0 = vpop.f32.mrf.mxu3 }
 0x211   :  { %v3151_v3 = vpop.f32.mrf.mxu2 }
 0x219   :  { %v3177_v17 = vpop.f32.mrf.mxu0  ;;  %v3153_v6 = vpop.f32.mrf.mxu2 }
 0x21a   :  { %v3138_v5 = vpop.f32.mrf.mxu1 }
 0x21b   :  { %v3139_v38 = vadd.f32 %v3138_v5, %v3126_v1 }
 0x21d   :  { %v3152_v36 = vadd.f32 %v3151_v3, %v3139_v38 }
 0x221   :  { %v3179_v18 = vpop.f32.mrf.mxu0 }
 0x222   :  { %v3140_v24 = vpop.f32.mrf.mxu1  ;;  %v3164_v25 = vpop.f32.mrf.mxu3 }
 0x223   :  { %v3165_v37 = vadd.f32 %v3164_v25, %v3152_v36 }
 0x225   :  { %v3178_v27 = vadd.f32 %v3177_v17, %v3165_v37 }
 0x22a   :  { %v3166_v28 = vpop.f32.mrf.mxu3 }
 0x231   :  { %v3203_v53 = vpop.f32.mrf.mxu2 }
 0x232   :  { %v3216_v30 = vpop.f32.mrf.mxu3 }
 0x239   :  { %v3205_v40 = vpop.f32.mrf.mxu2  ;;  %v3497_v10 = vpop.f32.mrf.mxu0 }
 0x23a   :  { %v3190_v39 = vpop.f32.mrf.mxu1  ;;  %v3218_v35 = vpop.f32.mrf.mxu3  ;;  %v3498_v44 = vadd.f32 %v5858_v15, %v3497_v10 }
 0x23b   :  { %v3191_v9 = vadd.f32 %v3190_v39, %v3178_v27 }
 0x23d   :  { %v3204_v42 = vadd.f32 %v3203_v53, %v3191_v9 }
 0x23f   :  { %v3217_v13 = vadd.f32 %v3216_v30, %v3204_v42 }
 0x241   :  { %v3223_v46 = vmax.f32 %v3217_v13, 0.0  ;;  %v3499_v34 = vpop.f32.mrf.mxu0 }
 0x242   :  { %v3192_v16 = vpop.f32.mrf.mxu1 }
 0x243   :  { %v3227_v43 = vpack.c.bf16 %v3223_v46, %v3223_v46 }
 0x245   :  { %3535 = vmatmul.bf16.vlgmr.msrb.gmra.mxu3 %v3227_v43 }
 0x25a   :  { %v3510_v12 = vpop.f32.mrf.mxu1 }
 0x25b   :  { %v3511_v45 = vadd.f32 %v3510_v12, %v3498_v44 }
 0x262   :  { %v3512_v50 = vpop.f32.mrf.mxu1 }
 0x266   :  { %v3523_v21 = vpop.f32.mrf.mxu2 }
 0x267   :  { %v3524_v4 = vadd.f32 %v3523_v21, %v3511_v45 }
 0x26e   :  { %v3525_v51 = vpop.f32.mrf.mxu2 }
 0x2c8   :  { %v3536_v57 = vpop.f32.mrf.mxu3 }
 0x2c9   :  { %v3537_v31 = vadd.f32 %v3536_v57, %v3524_v4 }
 0x2cb   :  { %v3540_v26 = vmax.f32 %v3537_v31, 0.0 }
 0x2cd   :  { %v3541_v22 = vpack.c.bf16 %v3540_v26, %v3540_v26 }
 0x2cf   :  { %3618 = vmatmul.bf16.vlgmr.msrb.gmra.mxu0 %v3541_v22 }
 0x2d0   :  { %v3538_v33 = vpop.f32.mrf.mxu3 }
 0x34c   :  { %v3619_v59 = vpop.f32.mrf.mxu0 }
 0x34d   :  { %v3620_v60 = vadd.f32 %v5859_v58, %v3619_v59 }
 0x34f   :  { %3624 = vst.msk [vmem:[#allocation11] sm:$0x3] %vm3623_vm1, %v3620_v60 }
 0x350   :  { %3635 = dma.vmem_to_hbm [thread:$0]  %s3631_s20, 32, %s3633_s1, [#allocation4]  }
 0x354   :  { %v3621_v62 = vpop.f32.mrf.mxu0 }
 0x355   :  { %6016 = dma.done.wait [#allocation4], 32  }
 0x356   :  { %6017 = vsyncadd [#allocation4], 4294967264 }
 0x357   :  { %3640 = vsyncpa [#allocation3], 1 }
 0x358   :  { %3641 = vsyncpa [#allocation6], 1 }
 0x359   :  { %3642 = vsyncpa [#allocation9], 1 }
 0x35a   :  { %3643 = vsyncpa [#allocation4], 1 }

// kernel: cnn_forward.2
= control target key start
LH: loop header
LB: loop body
LE: loop exit
PB: predicated region body
PF: predicated region fallthrough
CT: control target
= control target key end

     0   :  { %11 = vsyncpa [#allocation4], 0  ;;  %s8078_s0 = inlined_call_operand.vmem [shape: bf16[800,9], index: 0, kind: input, shape index: {}]   ;;  %s8079_s1 = inlined_call_operand.hbm [shape: bf16[9,64], index: 1, kind: input, shape index: {}]   ;;  %s8080_s2 = inlined_call_operand.hbm [shape: f32[1,64], index: 2, kind: input, shape index: {}]   ;;  %s8081_s3 = inlined_call_operand.hbm [shape: bf16[896,200], index: 3, kind: input, shape index: {}]   ;;  %s8082_s4 = inlined_call_operand.hbm [shape: bf16[9,64,64], index: 4, kind: input, shape index: {}]   ;;  %s8083_s5 = inlined_call_operand.hbm [shape: f32[1,64], index: 5, kind: input, shape index: {}]   ;;  %s8084_s6 = inlined_call_operand.vmem [shape: bf16[50,64], index: 6, kind: output, shape index: {}]  }
   0x1   :  { %12 = vsyncpa [#allocation6], 0  ;;  %s34_s23 = sshll.u32 %s8080_s2, 4  ;;  %s35_s23 = int_to_ptr.hbm [resolvable:$true] %s34_s23 }
   0x2   :  { %13 = vsyncpa [#allocation9], 0  ;;  %s6595_s24 = smov [#allocation5]   ;;  %s57_s28 = sshll.u32 %s8082_s4, 4  ;;  %s58_s28 = int_to_ptr.hbm [resolvable:$true] %s57_s28 }
   0x3   :  { %s36_s25 = sshll.u32 %s6595_s24, 4  ;;  %s6596_s29 = smov [#allocation8]   ;;  %s37_s25 = int_to_ptr.vmem [resolvable:$true] %s36_s25 }
   0x4   :  { %39 = dma.hbm_to_vmem [thread:$0]  %s35_s23, 16, %s37_s25, [#allocation6]  }
   0x5   :  { %s59_s30 = sshll.u32 %s6596_s29, 4  ;;  %s20_s9 = sshll.u32 %s8079_s1, 4  ;;  %s60_s30 = int_to_ptr.vmem [resolvable:$true] %s59_s30  ;;  %s21_s9 = int_to_ptr.hbm [resolvable:$true] %s20_s9 }
   0x6   :  { %s6597_s2 = smov 64   ;;  %s6598_s10 = smov 4  }
   0x7   :  { %65 = dma.hbm_to_vmem [thread:$0]  %s58_s28, 4608, %s60_s30, [#allocation9], %s6597_s2, %s6597_s2, %s6598_s10  }
   0x8   :  { %s44_s13 = sshll.u32 %s8081_s3, 4  ;;  %s6599_s14 = smov [#allocation3]   ;;  %s45_s13 = int_to_ptr.hbm [resolvable:$true] %s44_s13 }
   0x9   :  { %s22_s15 = sshll.u32 %s6599_s14, 4  ;;  %s6600_s4 = smov [#allocation7]   ;;  %s23_s15 = int_to_ptr.vmem [resolvable:$true] %s22_s15 }
   0xa   :  { %28 = dma.hbm_to_vmem [thread:$0]  %s21_s9, 128, %s23_s15, [#allocation4], %s6597_s2, %s6597_s2, %s6598_s10  }
   0xb   :  { %s46_s16 = sshll.u32 %s6600_s4, 4  ;;  %s6601_s17 = smov 128   ;;  %s47_s16 = int_to_ptr.vmem [resolvable:$true] %s46_s16 }
   0xc   :  { %s6602_s18 = smov 8   ;;  %s71_s20 = sshll.u32 %s8083_s5, 4  ;;  %s72_s20 = int_to_ptr.hbm [resolvable:$true] %s71_s20 }
   0xd   :  { %52 = dma.hbm_to_vmem [thread:$0]  %s45_s13, 14336, %s47_s16, [#allocation6], %s6601_s17, %s6601_s17, %s6602_s18  }
   0xe   :  { %s6603_s21 = smov [#allocation10]  }
   0xf   :  { %s73_s22 = sshll.u32 %s6603_s21, 4  ;;  %s74_s22 = int_to_ptr.vmem [resolvable:$true] %s73_s22 }
  0x10   :  { %76 = dma.hbm_to_vmem [thread:$0]  %s72_s20, 16, %s74_s22, [#allocation9]  }
  0x11   :  { %6589 = dma.done.wait [#allocation4], 128  }
  0x12   :  { %6590 = vsyncadd [#allocation4], 4294967168 }
  0x13   :  { %6591 = dma.done.wait [#allocation6], 14352  }
  0x14   :  { %6592 = vsyncadd [#allocation6], 4294952944 }
  0x15   :  { %6593 = dma.done.wait [#allocation9], 4624  }
  0x16   :  { %6594 = vsyncadd [#allocation9], 4294962672  ;;  %vm606_vm0 = vcmask 1043456   ;;  %vm607_vm1 = vcmask 1044480   ;;  %v6604_v0 = vmov 65535   ;;  %v6102_v7 = vld [vmem:[%s8078_s0] sm:$0xff] }
  0x17   :  { %v608_v1 = vsel %vm606_vm0, 4294967295, %v6604_v0  ;;  %v4972_v2 = vld [vmem:[#allocation3] sm:$0xf]  ;;  %v6152_v3 = vld [vmem:[#allocation3] sm:$0x10]  ;;  %vm455_vm2 = vcmask 72704  }
  0x18   :  { %v609_v4 = vsel %vm607_vm1, %v608_v1, 0  ;;  %v4973_v5 = vor.u32 %v6152_v3, %v4972_v2  ;;  %v6103_v8 = vld [vmem:[%s8078_s0 + $0x8] sm:$0xff]  ;;  %v6104_v9 = vld [vmem:[%s8078_s0 + $0x10] sm:$0xff]  ;;  %v6105_v10 = vld [vmem:[%s8078_s0 + $0x18] sm:$0xff]  ;;  %vm1630_vm3 = vcmask 588800   ;;  %vm2492_vm4 = vcmask 519168  }
  0x19   :  { %v6106_v11 = vld [vmem:[%s8078_s0 + $0x20] sm:$0xff]  ;;  %v6107_v12 = vld [vmem:[%s8078_s0 + $0x28] sm:$0xff]  ;;  %v6108_v13 = vld [vmem:[%s8078_s0 + $0x30] sm:$0xff]  ;;  %vm2702_vm5 = vcmask 523264   ;;  %vm4761_vm6 = vcmask 516096  }
  0x1a   :  { %v611_v6 = vand.u32 %v4973_v5, %v609_v4  ;;  %v6109_v14 = vld [vmem:[%s8078_s0 + $0x38] sm:$0xff]  ;;  %v6110_v15 = vld [vmem:[%s8078_s0 + $0x40] sm:$0xff]  ;;  %v6111_v18 = vld [vmem:[%s8078_s0 + $0x48] sm:$0xff] }
  0x1b   :  { %v6112_v21 = vld [vmem:[%s8078_s0 + $0x50] sm:$0xff]  ;;  %v6113_v24 = vld [vmem:[%s8078_s0 + $0x58] sm:$0xff]  ;;  %v6114_v27 = vld [vmem:[%s8078_s0 + $0x60] sm:$0xff] }
  0x1c   :  { %620 = vmatpush.bf16.msra.mxu0 %v611_v6  ;;  %6417 = vmatpush.bf16.msra.mxu2 %v611_v6  ;;  %v6115_v30 = vld [vmem:[%s8078_s0 + $0x68] sm:$0xff]  ;;  %v6116_v33 = vld [vmem:[%s8078_s0 + $0x70] sm:$0xff]  ;;  %v6117_v36 = vld [vmem:[%s8078_s0 + $0x78] sm:$0xff] }
  0x1d   :  { %v6118_v39 = vld [vmem:[%s8078_s0 + $0x80] sm:$0xff]  ;;  %v6119_v42 = vld [vmem:[%s8078_s0 + $0x88] sm:$0xff]  ;;  %v6120_v45 = vld [vmem:[%s8078_s0 + $0x90] sm:$0xff] }
  0x1e   :  { %v6121_v48 = vld [vmem:[%s8078_s0 + $0x98] sm:$0xff]  ;;  %v6122_v51 = vld [vmem:[%s8078_s0 + $0xa0] sm:$0xff]  ;;  %v6123_v54 = vld [vmem:[%s8078_s0 + $0xa8] sm:$0xff] }
  0x1f   :  { %4974 = vmatmul.msk.bf16.vlgmr.msra.gmra.mxu0 %vm455_vm2, %v6102_v7  ;;  %v6124_v57 = vld [vmem:[%s8078_s0 + $0xb0] sm:$0xff]  ;;  %v6125_v60 = vld [vmem:[%s8078_s0 + $0xb8] sm:$0xff]  ;;  %v6126_v63 = vld [vmem:[%s8078_s0 + $0xc0] sm:$0xff] }
  0x20   :  { %v6127_v2 = vld [vmem:[%s8078_s0 + $0xc8] sm:$0xff]  ;;  %v6128_v5 = vld [vmem:[%s8078_s0 + $0xd0] sm:$0xff] }
  0x2f   :  { %4975 = vmatmul.msk.bf16.gmra.mxu0 %vm455_vm2, %v6103_v8  ;;  %v6129_v8 = vld [vmem:[%s8078_s0 + $0xd8] sm:$0xff] }
  0x3f   :  { %4976 = vmatmul.msk.bf16.gmra.mxu0 %vm455_vm2, %v6104_v9 }
  0x4f   :  { %4977 = vmatmul.msk.bf16.gmra.mxu0 %vm455_vm2, %v6105_v10 }
  0x5f   :  { %4978 = vmatmul.msk.bf16.gmra.mxu0 %vm455_vm2, %v6106_v11  ;;  %v6130_v11 = vld [vmem:[%s8078_s0 + $0xe0] sm:$0xff] }
  0x6f   :  { %4979 = vmatmul.msk.bf16.gmra.mxu0 %vm455_vm2, %v6107_v12 }
  0x7f   :  { %4980 = vmatmul.msk.bf16.gmra.mxu0 %vm455_vm2, %v6108_v13 }
  0x8f   :  { %4981 = vmatmul.msk.bf16.gmra.mxu0 %vm455_vm2, %v6109_v14  ;;  %v6131_v14 = vld [vmem:[%s8078_s0 + $0xe8] sm:$0xff] }
  0x9c   :  { %v6691_v16 = vpop.f32.mrf.mxu0 }
  0x9f   :  { %4982 = vmatmul.msk.bf16.gmra.mxu0 %vm455_vm2, %v6110_v15 }
  0xa4   :  { %v6694_v17 = vpop.f32.mrf.mxu0 }
  0xac   :  { %v6699_v19 = vpop.f32.mrf.mxu0 }
  0xaf   :  { %4983 = vmatmul.msk.bf16.gmra.mxu0 %vm455_vm2, %v6111_v18 }
  0xb4   :  { %v6702_v20 = vpop.f32.mrf.mxu0 }
  0xbc   :  { %v6707_v22 = vpop.f32.mrf.mxu0 }
  0xbf   :  { %4984 = vmatmul.msk.bf16.gmra.mxu0 %vm455_vm2, %v6112_v21  ;;  %v6132_v21 = vld [vmem:[%s8078_s0 + $0xf0] sm:$0xff] }
  0xc4   :  { %v6710_v23 = vpop.f32.mrf.mxu0 }
  0xcc   :  { %v6715_v25 = vpop.f32.mrf.mxu0 }
  0xcf   :  { %4985 = vmatmul.msk.bf16.gmra.mxu0 %vm455_vm2, %v6113_v24 }
  0xd4   :  { %v6718_v26 = vpop.f32.mrf.mxu0 }
  0xdc   :  { %v6723_v28 = vpop.f32.mrf.mxu0 }
  0xdf   :  { %4986 = vmatmul.msk.bf16.gmra.mxu0 %vm455_vm2, %v6114_v27 }
  0xe4   :  { %v6726_v29 = vpop.f32.mrf.mxu0 }
  0xec   :  { %v6731_v31 = vpop.f32.mrf.mxu0 }
  0xef   :  { %4987 = vmatmul.msk.bf16.gmra.mxu0 %vm455_vm2, %v6115_v30  ;;  %v6133_v30 = vld [vmem:[%s8078_s0 + $0xf8] sm:$0xff] }
  0xf4   :  { %v6734_v32 = vpop.f32.mrf.mxu0 }
  0xfc   :  { %v6739_v34 = vpop.f32.mrf.mxu0 }
  0xff   :  { %4988 = vmatmul.msk.bf16.gmra.mxu0 %vm455_vm2, %v6116_v33 }
 0x104   :  { %v6742_v35 = vpop.f32.mrf.mxu0 }
 0x10c   :  { %v6747_v37 = vpop.f32.mrf.mxu0 }
 0x10d   :  { %8089 = vst [vmem:[#allocation14_spill] sm:$0xff] %v6747_v37 }
 0x10f   :  { %4989 = vmatmul.msk.bf16.gmra.mxu0 %vm455_vm2, %v6117_v36 }
 0x114   :  { %v6750_v38 = vpop.f32.mrf.mxu0 }
 0x115   :  { %8090 = vst [vmem:[#allocation15_spill] sm:$0xff] %v6750_v38 }
 0x11c   :  { %v6755_v40 = vpop.f32.mrf.mxu0 }
 0x11d   :  { %8091 = vst [vmem:[#allocation16_spill] sm:$0xff] %v6755_v40  ;;  %v6145_v40 = vld [vmem:[%s8078_s0 + $0x158] sm:$0xff] }
 0x11f   :  { %4990 = vmatmul.msk.bf16.gmra.mxu0 %vm455_vm2, %v6118_v39  ;;  %v6134_v39 = vld [vmem:[%s8078_s0 + $0x100] sm:$0xff] }
 0x124   :  { %v6758_v41 = vpop.f32.mrf.mxu0 }
 0x125   :  { %8092 = vst [vmem:[#allocation17_spill] sm:$0xff] %v6758_v41  ;;  %v6144_v41 = vld [vmem:[%s8078_s0 + $0x150] sm:$0xff] }
 0x12c   :  { %v6763_v43 = vpop.f32.mrf.mxu0 }
 0x12d   :  { %8093 = vst [vmem:[#allocation18_spill] sm:$0xff] %v6763_v43  ;;  %v6143_v43 = vld [vmem:[%s8078_s0 + $0x148] sm:$0xff] }
 0x12f   :  { %4991 = vmatmul.msk.bf16.gmra.mxu0 %vm455_vm2, %v6119_v42 }
 0x134   :  { %v6766_v44 = vpop.f32.mrf.mxu0 }
 0x135   :  { %8094 = vst [vmem:[#allocation19_spill] sm:$0xff] %v6766_v44  ;;  %v6142_v44 = vld [vmem:[%s8078_s0 + $0x140] sm:$0xff] }
 0x13c   :  { %v6771_v46 = vpop.f32.mrf.mxu0 }
 0x13d   :  { %8095 = vst [vmem:[#allocation20_spill] sm:$0xff] %v6771_v46  ;;  %v6141_v46 = vld [vmem:[%s8078_s0 + $0x138] sm:$0xff] }
 0x13f   :  { %4992 = vmatmul.msk.bf16.gmra.mxu0 %vm455_vm2, %v6120_v45 }
 0x144   :  { %v6774_v47 = vpop.f32.mrf.mxu0 }
 0x14c   :  { %v6779_v49 = vpop.f32.mrf.mxu0 }
 0x14f   :  { %4993 = vmatmul.msk.bf16.gmra.mxu0 %vm455_vm2, %v6121_v48  ;;  %v6135_v48 = vld [vmem:[%s8078_s0 + $0x108] sm:$0xff] }
 0x154   :  { %v6782_v50 = vpop.f32.mrf.mxu0 }
 0x15c   :  { %v6787_v52 = vpop.f32.mrf.mxu0 }
 0x15f   :  { %4994 = vmatmul.msk.bf16.gmra.mxu0 %vm455_vm2, %v6122_v51 }
 0x164   :  { %v6790_v53 = vpop.f32.mrf.mxu0 }
 0x16c   :  { %v6795_v55 = vpop.f32.mrf.mxu0 }
 0x16f   :  { %4995 = vmatmul.msk.bf16.gmra.mxu0 %vm455_vm2, %v6123_v54  ;;  %v6150_v54 = vld [vmem:[%s8078_s0 + $0x180] sm:$0xff] }
 0x170   :  { %5022 = vmatmul.msk.bf16.vlgmr.msra.gmra.mxu2 %vm455_vm2, %v6150_v54 }
 0x174   :  { %v6798_v56 = vpop.f32.mrf.mxu0 }
 0x17c   :  { %v6803_v58 = vpop.f32.mrf.mxu0 }
 0x17f   :  { %4996 = vmatmul.msk.bf16.gmra.mxu0 %vm455_vm2, %v6124_v57 }
 0x184   :  { %v6806_v59 = vpop.f32.mrf.mxu0 }
 0x18c   :  { %v6811_v61 = vpop.f32.mrf.mxu0 }
 0x18f   :  { %4997 = vmatmul.msk.bf16.gmra.mxu0 %vm455_vm2, %v6125_v60  ;;  %v6136_v60 = vld [vmem:[%s8078_s0 + $0x110] sm:$0xff] }
 0x194   :  { %v6814_v62 = vpop.f32.mrf.mxu0 }
 0x19c   :  { %v6819_v0 = vpop.f32.mrf.mxu0 }
 0x19f   :  { %4998 = vmatmul.msk.bf16.gmra.mxu0 %vm455_vm2, %v6126_v63 }
 0x1a4   :  { %v6822_v1 = vpop.f32.mrf.mxu0 }
 0x1ac   :  { %v6827_v3 = vpop.f32.mrf.mxu0 }
 0x1af   :  { %4999 = vmatmul.msk.bf16.gmra.mxu0 %vm455_vm2, %v6127_v2  ;;  %v6151_v2 = vld [vmem:[%s8078_s0 + $0x188] sm:$0xff] }
 0x1b0   :  { %5023 = vmatmul.msk.bf16.gmra.mxu2 %vm455_vm2, %v6151_v2  ;;  %v6140_v2 = vld [vmem:[%s8078_s0 + $0x130] sm:$0xff] }
 0x1b4   :  { %v6830_v4 = vpop.f32.mrf.mxu0 }
 0x1bc   :  { %v6835_v6 = vpop.f32.mrf.mxu0 }
 0x1bf   :  { %5000 = vmatmul.msk.bf16.gmra.mxu0 %vm455_vm2, %v6128_v5 }
 0x1c4   :  { %v6838_v7 = vpop.f32.mrf.mxu0 }
 0x1cc   :  { %v6843_v9 = vpop.f32.mrf.mxu0 }
 0x1cf   :  { %5001 = vmatmul.msk.bf16.gmra.mxu0 %vm455_vm2, %v6129_v8  ;;  %v6137_v8 = vld [vmem:[%s8078_s0 + $0x118] sm:$0xff] }
 0x1d4   :  { %v6846_v10 = vpop.f32.mrf.mxu0 }
 0x1d5   :  { %8096 = vst [vmem:[#allocation21_spill] sm:$0xff] %v6846_v10 }
 0x1dc   :  { %v6851_v12 = vpop.f32.mrf.mxu0 }
 0x1dd   :  { %8097 = vst [vmem:[#allocation22_spill] sm:$0xff] %v6851_v12 }
 0x1df   :  { %5002 = vmatmul.msk.bf16.gmra.mxu0 %vm455_vm2, %v6130_v11 }
 0x1e4   :  { %v6854_v13 = vpop.f32.mrf.mxu0 }
 0x1e5   :  { %8098 = vst [vmem:[#allocation23_spill] sm:$0xff] %v6854_v13 }
 0x1ec   :  { %v6859_v15 = vpop.f32.mrf.mxu0 }
 0x1ed   :  { %8099 = vst [vmem:[#allocation24_spill] sm:$0xff] %v6859_v15 }
 0x1ef   :  { %5003 = vmatmul.msk.bf16.gmra.mxu0 %vm455_vm2, %v6131_v14 }
 0x1f4   :  { %v6862_v18 = vpop.f32.mrf.mxu0 }
 0x1f5   :  { %8100 = vst [vmem:[#allocation25_spill] sm:$0xff] %v6862_v18 }
 0x1fc   :  { %v6867_v24 = vpop.f32.mrf.mxu0 }
 0x1fd   :  { %8101 = vst [vmem:[#allocation26_spill] sm:$0xff] %v6867_v24 }
 0x1ff   :  { %5004 = vmatmul.msk.bf16.gmra.mxu0 %vm455_vm2, %v6132_v21  ;;  %v6138_v21 = vld [vmem:[%s8078_s0 + $0x120] sm:$0xff] }
 0x204   :  { %v6870_v27 = vpop.f32.mrf.mxu0 }
 0x205   :  { %8102 = vst [vmem:[#allocation27_spill] sm:$0xff] %v6870_v27 }
 0x20c   :  { %v737_v33 = vpop.f32.mrf.mxu0 }
 0x20f   :  { %5005 = vmatmul.msk.bf16.gmra.mxu0 %vm455_vm2, %v6133_v30 }
 0x214   :  { %v6876_v36 = vpop.f32.mrf.mxu0 }
 0x21c   :  { %v6881_v42 = vpop.f32.mrf.mxu0 }
 0x21f   :  { %5006 = vmatmul.msk.bf16.gmra.mxu0 %vm455_vm2, %v6134_v39 }
 0x224   :  { %v6884_v45 = vpop.f32.mrf.mxu0 }
 0x22c   :  { %v6889_v51 = vpop.f32.mrf.mxu0 }
 0x22f   :  { %5007 = vmatmul.msk.bf16.gmra.mxu0 %vm455_vm2, %v6135_v48  ;;  %v6139_v48 = vld [vmem:[%s8078_s0 + $0x128] sm:$0xff] }
 0x234   :  { %v6896_v57 = vpop.f32.mrf.mxu0 }
 0x23c   :  { %v6901_v63 = vpop.f32.mrf.mxu0 }
 0x23f   :  { %5008 = vmatmul.msk.bf16.gmra.mxu0 %vm455_vm2, %v6136_v60 }
 0x244   :  { %v6908_v5 = vpop.f32.mrf.mxu0 }
 0x24c   :  { %v6913_v11 = vpop.f32.mrf.mxu0 }
 0x24f   :  { %5009 = vmatmul.msk.bf16.gmra.mxu0 %vm455_vm2, %v6137_v8 }
 0x254   :  { %v6916_v14 = vpop.f32.mrf.mxu0 }
 0x25c   :  { %v6921_v30 = vpop.f32.mrf.mxu0 }
 0x25f   :  { %5010 = vmatmul.msk.bf16.gmra.mxu0 %vm455_vm2, %v6138_v21 }
 0x264   :  { %v6924_v39 = vpop.f32.mrf.mxu0 }
 0x26c   :  { %v6929_v54 = vpop.f32.mrf.mxu0 }
 0x26f   :  { %5011 = vmatmul.msk.bf16.gmra.mxu0 %vm455_vm2, %v6139_v48 }
 0x274   :  { %v6932_v60 = vpop.f32.mrf.mxu0 }
 0x27c   :  { %v6937_v8 = vpop.f32.mrf.mxu0 }
 0x27f   :  { %5012 = vmatmul.msk.bf16.gmra.mxu0 %vm455_vm2, %v6140_v2 }
 0x284   :  { %v6940_v21 = vpop.f32.mrf.mxu0 }
 0x28c   :  { %v6945_v27 = vpop.f32.mrf.mxu0 }
 0x28f   :  { %5013 = vmatmul.msk.bf16.gmra.mxu0 %vm455_vm2, %v6141_v46 }
 0x294   :  { %v6948_v48 = vpop.f32.mrf.mxu0 }
 0x29c   :  { %v6953_v24 = vpop.f32.mrf.mxu0 }
 0x29f   :  { %5014 = vmatmul.msk.bf16.gmra.mxu0 %vm455_vm2, %v6142_v44 }
 0x2a4   :  { %v6956_v2 = vpop.f32.mrf.mxu0 }
 0x2a5   :  { %8103 = vst [vmem:[#allocation28_spill] sm:$0xff] %v6956_v2 }
 0x2ac   :  { %v6961_v18 = vpop.f32.mrf.mxu0 }
 0x2ad   :  { %8104 = vst [vmem:[#allocation29_spill] sm:$0xff] %v6961_v18  ;;  %v862_v18 = vpop.f32.mrf.mxu2 }
 0x2af   :  { %5015 = vmatmul.msk.bf16.gmra.mxu0 %vm455_vm2, %v6143_v43 }
 0x2b4   :  { %v6964_v46 = vpop.f32.mrf.mxu0 }
 0x2b5   :  { %8105 = vst [vmem:[#allocation30_spill] sm:$0xff] %v6964_v46  ;;  %v893_v46 = vmax.f32 %v6774_v47, %v737_v33  ;;  %v864_v38 = vpop.f32.mrf.mxu2  ;;  %v895_v47 = vmax.f32 %v6782_v50, %v6881_v42  ;;  %v6991_v33 = vld [vmem:[#allocation5] ss:$0 sm:$0xff] }
 0x2bc   :  { %v6969_v15 = vpop.f32.mrf.mxu0 }
 0x2bd   :  { %8106 = vst [vmem:[#allocation31_spill] sm:$0xff] %v6969_v15  ;;  %v867_v37 = vpop.f32.mrf.mxu2 }
 0x2bf   :  { %5016 = vmatmul.msk.bf16.gmra.mxu0 %vm455_vm2, %v6144_v41  ;;  %v6146_v41 = vld [vmem:[%s8078_s0 + $0x160] sm:$0xff] }
 0x2c4   :  { %v6972_v44 = vpop.f32.mrf.mxu0 }
 0x2c5   :  { %8107 = vst [vmem:[#allocation32_spill] sm:$0xff] %v6972_v44 }
 0x2cc   :  { %v6977_v13 = vpop.f32.mrf.mxu0 }
 0x2cd   :  { %8108 = vst [vmem:[#allocation33_spill] sm:$0xff] %v6977_v13  ;;  %v894_v13 = vmax.f32 %v6779_v49, %v6876_v36 }
 0x2cf   :  { %5017 = vmatmul.msk.bf16.gmra.mxu0 %vm455_vm2, %v6145_v40 }
 0x2d4   :  { %v799_v43 = vpop.f32.mrf.mxu0 }
 0x2d5   :  { %v918_v2 = vmax.f32 %v799_v43, %v862_v18 }
 0x2d7   :  { %v6981_v12 = vmax.f32 %v893_v46, %v918_v2 }
 0x2dc   :  { %v802_v44 = vpop.f32.mrf.mxu0 }
 0x2dd   :  { %v919_v15 = vmax.f32 %v802_v44, %v864_v38  ;;  %v869_v38 = vpop.f32.mrf.mxu2  ;;  %v6147_v44 = vld [vmem:[%s8078_s0 + $0x168] sm:$0xff] }
 0x2df   :  { %5018 = vmatmul.msk.bf16.gmra.mxu0 %vm455_vm2, %v6146_v41  ;;  %v944_v40 = vmax.f32 %v894_v13, %v919_v15  ;;  %v896_v15 = vmax.f32 %v6787_v52, %v6884_v45  ;;  %v6148_v52 = vld [vmem:[%s8078_s0 + $0x170] sm:$0xff] }
 0x2e1   :  { %v973_v46 = vadd.f32 %v6991_v33, %v944_v40 }
 0x2e3   :  { %v998_v41 = vmax.f32 %v973_v46, 0.0  ;;  %v872_v46 = vmax.f32 %v6691_v16, %v6790_v53 }
 0x2e4   :  { %v804_v10 = vpop.f32.mrf.mxu0 }
 0x2e5   :  { %v920_v18 = vmax.f32 %v804_v10, %v867_v37 }
 0x2e7   :  { %v945_v2 = vmax.f32 %v895_v47, %v920_v18 }
 0x2e9   :  { %v974_v43 = vadd.f32 %v6991_v33, %v945_v2 }
 0x2eb   :  { %v999_v49 = vmax.f32 %v974_v43, 0.0 }
 0x2ec   :  { %v807_v13 = vpop.f32.mrf.mxu0 }
 0x2ed   :  { %v921_v50 = vmax.f32 %v807_v13, %v869_v38  ;;  %v1012_v37 = vpack.c.bf16 %v999_v49, %v998_v41  ;;  %v873_v38 = vmax.f32 %v6694_v17, %v6795_v55  ;;  %v6149_v55 = vld [vmem:[%s8078_s0 + $0x178] sm:$0xff] }
 0x2ef   :  { %v946_v10 = vmax.f32 %v896_v15, %v921_v50  ;;  %5019 = vmatmul.msk.bf16.gmra.mxu0 %vm455_vm2, %v6147_v44 }
 0x2f1   :  { %v975_v36 = vadd.f32 %v6991_v33, %v946_v10  ;;  %v875_v10 = vmax.f32 %v6702_v20, %v6803_v58 }
 0x2f3   :  { %v1000_v42 = vmax.f32 %v975_v36, 0.0 }
 0x2f4   :  { %v809_v40 = vpop.f32.mrf.mxu0 }
 0x2f5   :  { %v1013_v47 = vpack.c.bf16 %v1000_v42, %v1000_v42  ;;  %v897_v18 = vmax.f32 %v6889_v51, %v809_v40 }
 0x2f7   :  { %v1800_v2 = vsel %vm606_vm0, %v1013_v47, 0  ;;  %v922_v43 = vmax.f32 %v872_v46, %v897_v18  ;;  %v876_v46 = vmax.f32 %v6707_v22, %v6806_v59  ;;  %v878_v22 = vmax.f32 %v6715_v25, %v6814_v62 }
 0x2f8   :  { %2094 = vmatpush.bf16.msrb.mxu2 %v1800_v2  ;;  %v880_v25 = vmax.f32 %v6723_v28, %v6822_v1  ;;  %v882_v28 = vmax.f32 %v6731_v31, %v6830_v4  ;;  %v884_v31 = vmax.f32 %v6739_v34, %v6838_v7  ;;  %v8110_v34 = vld [vmem:[#allocation14_spill] sm:$0xff] }
 0x2f9   :  { %v951_v51 = vadd.f32 %v6991_v33, %v922_v43 }
 0x2fb   :  { %v976_v16 = vmax.f32 %v951_v51, 0.0 }
 0x2fc   :  { %v812_v45 = vpop.f32.mrf.mxu0  ;;  %2095 = vmatpush.bf16.msrb.mxu2 %v1012_v37  ;;  %v874_v37 = vmax.f32 %v6699_v19, %v6798_v56 }
 0x2fd   :  { %v898_v44 = vmax.f32 %v6896_v57, %v812_v45 }
 0x2ff   :  { %v923_v41 = vmax.f32 %v873_v38, %v898_v44  ;;  %5020 = vmatmul.msk.bf16.gmra.mxu0 %vm455_vm2, %v6148_v52 }
 0x301   :  { %v952_v49 = vadd.f32 %v6991_v33, %v923_v41 }
 0x303   :  { %v977_v53 = vmax.f32 %v952_v49, 0.0 }
 0x304   :  { %v814_v13 = vpop.f32.mrf.mxu0 }
 0x305   :  { %v7015_v15 = vpack.c.bf16 %v977_v53, %v976_v16  ;;  %v899_v50 = vmax.f32 %v6901_v63, %v814_v13 }
 0x307   :  { %v924_v17 = vmax.f32 %v874_v37, %v899_v50 }
 0x309   :  { %v953_v40 = vadd.f32 %v6991_v33, %v924_v17 }
 0x30b   :  { %v978_v47 = vmax.f32 %v953_v40, 0.0 }
 0x30c   :  { %v817_v57 = vpop.f32.mrf.mxu0 }
 0x30d   :  { %v900_v36 = vmax.f32 %v6908_v5, %v817_v57  ;;  %v877_v5 = vmax.f32 %v6710_v23, %v6811_v61  ;;  %v879_v23 = vmax.f32 %v6718_v26, %v6819_v0  ;;  %v881_v26 = vmax.f32 %v6726_v29, %v6827_v3 }
 0x30e   :  { %v883_v29 = vmax.f32 %v6734_v32, %v6835_v6  ;;  %v885_v32 = vmax.f32 %v6742_v35, %v6843_v9  ;;  %v8112_v35 = vld [vmem:[#allocation15_spill] sm:$0xff] }
 0x30f   :  { %v925_v42 = vmax.f32 %v875_v10, %v900_v36  ;;  %5021 = vmatmul.msk.bf16.gmra.mxu0 %vm455_vm2, %v6149_v55 }
 0x311   :  { %v954_v63 = vadd.f32 %v6991_v33, %v925_v42 }
 0x313   :  { %v979_v19 = vmax.f32 %v954_v63, 0.0 }
 0x314   :  { %v819_v56 = vpop.f32.mrf.mxu0 }
 0x315   :  { %v7029_v18 = vpack.c.bf16 %v979_v19, %v978_v47  ;;  %v901_v2 = vmax.f32 %v6913_v11, %v819_v56 }
 0x317   :  { %v926_v20 = vmax.f32 %v876_v46, %v901_v2 }
 0x319   :  { %v955_v45 = vadd.f32 %v6991_v33, %v926_v20 }
 0x31b   :  { %v980_v44 = vmax.f32 %v955_v45, 0.0 }
 0x31c   :  { %v822_v58 = vpop.f32.mrf.mxu0 }
 0x31d   :  { %v902_v43 = vmax.f32 %v6916_v14, %v822_v58 }
 0x31f   :  { %v927_v52 = vmax.f32 %v877_v5, %v902_v43 }
 0x321   :  { %v956_v38 = vadd.f32 %v6991_v33, %v927_v52 }
 0x323   :  { %v981_v41 = vmax.f32 %v956_v38, 0.0 }
 0x324   :  { %v824_v51 = vpop.f32.mrf.mxu0 }
 0x325   :  { %v7039_v49 = vpack.c.bf16 %v981_v41, %v980_v44  ;;  %v903_v11 = vmax.f32 %v6921_v30, %v824_v51 }
 0x327   :  { %v928_v59 = vmax.f32 %v878_v22, %v903_v11  ;;  %v8109_v11 = vld [vmem:[#allocation21_spill] sm:$0xff] }
 0x328   :  { %v886_v7 = vmax.f32 %v8110_v34, %v8109_v11  ;;  %v8128_v11 = vld [vmem:[#allocation33_spill] sm:$0xff] }
 0x329   :  { %v957_v53 = vadd.f32 %v6991_v33, %v928_v59 }
 0x32b   :  { %v982_v50 = vmax.f32 %v957_v53, 0.0 }
 0x32c   :  { %v827_v16 = vpop.f32.mrf.mxu0 }
 0x32d   :  { %v904_v61 = vmax.f32 %v6924_v39, %v827_v16  ;;  %v8111_v16 = vld [vmem:[#allocation22_spill] sm:$0xff] }
 0x32e   :  { %v887_v9 = vmax.f32 %v8112_v35, %v8111_v16 }
 0x32f   :  { %v929_v14 = vmax.f32 %v879_v23, %v904_v61 }
 0x331   :  { %v958_v13 = vadd.f32 %v6991_v33, %v929_v14 }
 0x333   :  { %v983_v37 = vmax.f32 %v958_v13, 0.0 }
 0x334   :  { %v829_v17 = vpop.f32.mrf.mxu0 }
 0x335   :  { %v7049_v55 = vpack.c.bf16 %v983_v37, %v982_v50  ;;  %v905_v30 = vmax.f32 %v6929_v54, %v829_v17 }
 0x337   :  { %v930_v62 = vmax.f32 %v880_v25, %v905_v30  ;;  %v8115_v25 = vld [vmem:[#allocation23_spill] sm:$0xff] }
 0x339   :  { %v959_v10 = vadd.f32 %v6991_v33, %v930_v62  ;;  %v8116_v62 = vld [vmem:[#allocation16_spill] sm:$0xff] }
 0x33b   :  { %v984_v42 = vmax.f32 %v959_v10, 0.0  ;;  %v8118_v10 = vld [vmem:[#allocation17_spill] sm:$0xff] }
 0x33c   :  { %v832_v57 = vpop.f32.mrf.mxu0 }
 0x33d   :  { %v906_v0 = vmax.f32 %v6932_v60, %v832_v57  ;;  %v888_v57 = vmax.f32 %v8116_v62, %v8115_v25  ;;  %v6157_v62 = vld [vmem:[#allocation7 + $0x24] sm:$0xf] }
 0x33f   :  { %v931_v39 = vmax.f32 %v881_v26, %v906_v0 }
 0x341   :  { %v960_v36 = vadd.f32 %v6991_v33, %v931_v39  ;;  %v8117_v39 = vld [vmem:[#allocation24_spill] sm:$0xff] }
 0x343   :  { %v985_v40 = vmax.f32 %v960_v36, 0.0  ;;  %v889_v36 = vmax.f32 %v8118_v10, %v8117_v39  ;;  %v6162_v39 = vld [vmem:[#allocation7 + $0x44] sm:$0xf0] }
 0x344   :  { %v834_v63 = vpop.f32.mrf.mxu0 }
 0x345   :  { %v1005_v47 = vpack.c.bf16 %v985_v40, %v984_v42  ;;  %v907_v54 = vmax.f32 %v6937_v8, %v834_v63  ;;  %v8119_v42 = vld [vmem:[#allocation30_spill] sm:$0xff] }
 0x347   :  { %v932_v1 = vmax.f32 %v882_v28, %v907_v54 }
 0x349   :  { %v961_v56 = vadd.f32 %v6991_v33, %v932_v1 }
 0x34b   :  { %v986_v46 = vmax.f32 %v961_v56, 0.0 }
 0x34c   :  { %v837_v19 = vpop.f32.mrf.mxu0 }
 0x34d   :  { %v908_v3 = vmax.f32 %v6940_v21, %v837_v19 }
 0x34f   :  { %v933_v60 = vmax.f32 %v883_v29, %v908_v3 }
 0x351   :  { %v962_v2 = vadd.f32 %v6991_v33, %v933_v60  ;;  %v8120_v60 = vld [vmem:[#allocation31_spill] sm:$0xff] }
 0x353   :  { %v987_v20 = vmax.f32 %v962_v2, 0.0  ;;  %v8121_v2 = vld [vmem:[#allocation25_spill] sm:$0xff] }
 0x354   :  { %v839_v58 = vpop.f32.mrf.mxu0 }
 0x355   :  { %v1006_v5 = vpack.c.bf16 %v987_v20, %v986_v46  ;;  %v909_v8 = vmax.f32 %v6945_v27, %v839_v58  ;;  %v8122_v46 = vld [vmem:[#allocation18_spill] sm:$0xff] }
 0x356   :  { %v890_v20 = vmax.f32 %v8122_v46, %v8121_v2  ;;  %v6163_v2 = vld [vmem:[#allocation7 + $0x54] sm:$0xf]  ;;  %v5068_v46 = vld [vmem:[#allocation7 + $0x58] sm:$0xf0] }
 0x357   :  { %v934_v4 = vmax.f32 %v884_v31, %v909_v8  ;;  %v8123_v8 = vld [vmem:[#allocation26_spill] sm:$0xff]  ;;  %v8124_v31 = vld [vmem:[#allocation19_spill] sm:$0xff] }
 0x359   :  { %v963_v52 = vadd.f32 %v6991_v33, %v934_v4  ;;  %v891_v4 = vmax.f32 %v8124_v31, %v8123_v8  ;;  %v6165_v31 = vld [vmem:[#allocation7 + $0x64] sm:$0xf] }
 0x35b   :  { %v988_v38 = vmax.f32 %v963_v52, 0.0 }
 0x35c   :  { %v842_v43 = vpop.f32.mrf.mxu0 }
 0x35d   :  { %v910_v6 = vmax.f32 %v6948_v48, %v842_v43  ;;  %v8113_v48 = vld [vmem:[#allocation28_spill] sm:$0xff] }
 0x35e   :  { %v8125_v43 = vld [vmem:[#allocation32_spill] sm:$0xff] }
 0x35f   :  { %v935_v21 = vmax.f32 %v885_v32, %v910_v6  ;;  %v5026_v6 = vld [vmem:[#allocation7] sm:$0xf] }
 0x361   :  { %v964_v45 = vadd.f32 %v6991_v33, %v935_v21  ;;  %v6154_v21 = vld [vmem:[#allocation7 + $0x4] sm:$0xf0] }
 0x363   :  { %v989_v44 = vmax.f32 %v964_v45, 0.0  ;;  %v5027_v45 = vor.u32 %v6154_v21, %v5026_v6 }
 0x364   :  { %v844_v41 = vpop.f32.mrf.mxu0 }
 0x365   :  { %v1007_v51 = vpack.c.bf16 %v989_v44, %v988_v38  ;;  %v911_v27 = vmax.f32 %v6953_v24, %v844_v41  ;;  %v8114_v24 = vld [vmem:[#allocation29_spill] sm:$0xff]  ;;  %v8126_v41 = vld [vmem:[#allocation27_spill] sm:$0xff] }
 0x367   :  { %v936_v22 = vmax.f32 %v886_v7, %v911_v27 }
 0x369   :  { %v965_v14 = vadd.f32 %v6991_v33, %v936_v22  ;;  %v972_v22 = vadd.f32 %v6991_v33, %v6981_v12  ;;  %v6158_v12 = vld [vmem:[#allocation7 + $0x24] sm:$0xf0] }
 0x36b   :  { %v990_v13 = vmax.f32 %v965_v14, 0.0  ;;  %v997_v35 = vmax.f32 %v972_v22, 0.0  ;;  %v5028_v14 = vld [vmem:[#allocation7 + $0x8] sm:$0xf0] }
 0x36c   :  { %v847_v59 = vpop.f32.mrf.mxu0 }
 0x36d   :  { %v912_v23 = vmax.f32 %v8113_v48, %v847_v59  ;;  %v6156_v48 = vld [vmem:[#allocation7 + $0x14] sm:$0xf0] }
 0x36f   :  { %v937_v61 = vmax.f32 %v887_v9, %v912_v23 }
 0x371   :  { %v966_v53 = vadd.f32 %v6991_v33, %v937_v61  ;;  %v6153_v61 = vld [vmem:[#allocation7 + $0x4] sm:$0xf] }
 0x373   :  { %v991_v50 = vmax.f32 %v966_v53, 0.0  ;;  %v5031_v53 = vor.u32 %v6153_v61, %v5028_v14 }
 0x374   :  { %v849_v37 = vpop.f32.mrf.mxu0 }
 0x375   :  { %v1008_v17 = vpack.c.bf16 %v991_v50, %v990_v13  ;;  %v913_v30 = vmax.f32 %v8114_v24, %v849_v37  ;;  %v5042_v13 = vld [vmem:[#allocation7 + $0x20] sm:$0xf]  ;;  %v5036_v37 = vld [vmem:[#allocation7 + $0x18] sm:$0xf0]  ;;  %v5050_v24 = vld [vmem:[#allocation7 + $0x30] sm:$0xf] }
 0x376   :  { %v5043_v50 = vor.u32 %v6158_v12, %v5042_v13 }
 0x377   :  { %1802 = vmatpush.bf16.msra.mxu1 %v1008_v17  ;;  %v938_v26 = vmax.f32 %v888_v57, %v913_v30  ;;  %v6160_v30 = vld [vmem:[#allocation7 + $0x34] sm:$0xf0]  ;;  %v5044_v57 = vld [vmem:[#allocation7 + $0x28] sm:$0xf0] }
 0x378   :  { %v5051_v25 = vor.u32 %v6160_v30, %v5050_v24 }
 0x379   :  { %v967_v54 = vadd.f32 %v6991_v33, %v938_v26  ;;  %v5047_v26 = vor.u32 %v6157_v62, %v5044_v57  ;;  %v6173_v62 = vld [vmem:[#allocation7 + $0xa4] sm:$0xf]  ;;  %v5108_v57 = vld [vmem:[#allocation7 + $0xa8] sm:$0xf0] }
 0x37b   :  { %1803 = vmatpush.bf16.msra.mxu1 %v1007_v51  ;;  %v992_v1 = vmax.f32 %v967_v54, 0.0  ;;  %v8127_v51 = vld [vmem:[#allocation20_spill] sm:$0xff] }
 0x37c   :  { %v852_v0 = vpop.f32.mrf.mxu0  ;;  %v892_v27 = vmax.f32 %v8127_v51, %v8126_v41  ;;  %v6164_v54 = vld [vmem:[#allocation7 + $0x54] sm:$0xf0] }
 0x37d   :  { %v914_v40 = vmax.f32 %v8119_v42, %v852_v0  ;;  %v5058_v0 = vld [vmem:[#allocation7 + $0x40] sm:$0xf]  ;;  %v5052_v42 = vld [vmem:[#allocation7 + $0x38] sm:$0xf0] }
 0x37e   :  { %v5059_v10 = vor.u32 %v6162_v39, %v5058_v0  ;;  %v5111_v39 = vor.u32 %v6173_v62, %v5108_v57 }
 0x37f   :  { %v939_v63 = vmax.f32 %v889_v36, %v914_v40  ;;  %1804 = vmatpush.bf16.msra.mxu1 %v1006_v5  ;;  %v6159_v36 = vld [vmem:[#allocation7 + $0x34] sm:$0xf] }
 0x380   :  { %v5055_v40 = vor.u32 %v6159_v36, %v5052_v42  ;;  %v6278_v36 = vld [vmem:[#allocation8 + $0x38] sm:$0xff] }
 0x381   :  { %v968_v28 = vadd.f32 %v6991_v33, %v939_v63  ;;  %v5066_v63 = vld [vmem:[#allocation7 + $0x50] sm:$0xf]  ;;  %2728 = vmatpush.bf16.msrb.mxu0 %v6278_v36  ;;  %6419 = vmatpush.bf16.msra.mxu3 %v6278_v36 }
 0x383   :  { %1805 = vmatpush.bf16.msra.mxu1 %v1005_v47  ;;  %v993_v19 = vmax.f32 %v968_v28, 0.0  ;;  %v5067_v28 = vor.u32 %v6164_v54, %v5066_v63  ;;  %v6277_v54 = vld [vmem:[#allocation8 + $0x30] sm:$0xff] }
 0x384   :  { %v854_v29 = vpop.f32.mrf.mxu0 }
 0x385   :  { %v1009_v3 = vpack.c.bf16 %v993_v19, %v992_v1  ;;  %v915_v56 = vmax.f32 %v8120_v60, %v854_v29  ;;  %v6161_v1 = vld [vmem:[#allocation7 + $0x44] sm:$0xf]  ;;  %v5060_v19 = vld [vmem:[#allocation7 + $0x48] sm:$0xf0]  ;;  %v6166_v60 = vld [vmem:[#allocation7 + $0x64] sm:$0xf0]  ;;  %2729 = vmatpush.bf16.msrb.mxu0 %v6277_v54  ;;  %6421 = vmatpush.bf16.msra.mxu3 %v6277_v54 }
 0x386   :  { %v5063_v29 = vor.u32 %v6161_v1, %v5060_v19  ;;  %v6178_v1 = vld [vmem:[#allocation7 + $0xc4] sm:$0xf0] }
 0x387   :  { %1806 = vmatpush.bf16.msra.mxu1 %v7049_v55  ;;  %v940_v58 = vmax.f32 %v890_v20, %v915_v56  ;;  %v5071_v20 = vor.u32 %v6163_v2, %v5068_v46  ;;  %v5116_v2 = vld [vmem:[#allocation7 + $0xb8] sm:$0xf0] }
 0x389   :  { %v969_v52 = vadd.f32 %v6991_v33, %v940_v58  ;;  %v5082_v58 = vld [vmem:[#allocation7 + $0x70] sm:$0xf] }
 0x38b   :  { %1807 = vmatpush.bf16.msra.mxu1 %v7039_v49  ;;  %v994_v38 = vmax.f32 %v969_v52, 0.0  ;;  %v6167_v52 = vld [vmem:[#allocation7 + $0x74] sm:$0xf] }
 0x38c   :  { %v857_v5 = vpop.f32.mrf.mxu0 }
 0x38d   :  { %v916_v47 = vmax.f32 %v8125_v43, %v857_v5  ;;  %v6168_v5 = vld [vmem:[#allocation7 + $0x74] sm:$0xf0] }
 0x38e   :  { %v5083_v8 = vor.u32 %v6168_v5, %v5082_v58  ;;  %v6275_v5 = vld [vmem:[#allocation8 + $0x20] sm:$0xff] }
 0x38f   :  { %v941_v32 = vmax.f32 %v891_v4, %v916_v47  ;;  %1808 = vmatpush.bf16.msra.mxu1 %v7029_v18  ;;  %v5076_v4 = vld [vmem:[#allocation7 + $0x68] sm:$0xf0]  ;;  %v5090_v47 = vld [vmem:[#allocation7 + $0x80] sm:$0xf] }
 0x390   :  { %v5079_v43 = vor.u32 %v6165_v31, %v5076_v4 }
 0x391   :  { %v970_v55 = vadd.f32 %v6991_v33, %v941_v32  ;;  %v6170_v32 = vld [vmem:[#allocation7 + $0x84] sm:$0xf0] }
 0x392   :  { %v5091_v6 = vor.u32 %v6170_v32, %v5090_v47  ;;  %v5130_v47 = vld [vmem:[#allocation7 + $0xd0] sm:$0xf]  ;;  %v6180_v32 = vld [vmem:[#allocation7 + $0xd4] sm:$0xf0] }
 0x393   :  { %1809 = vmatpush.bf16.msra.mxu1 %v7015_v15  ;;  %v995_v49 = vmax.f32 %v970_v55, 0.0  ;;  %v5034_v15 = vld [vmem:[#allocation7 + $0x10] sm:$0xf]  ;;  %v5084_v55 = vld [vmem:[#allocation7 + $0x78] sm:$0xf0] }
 0x394   :  { %v859_v44 = vpop.f32.mrf.mxu0  ;;  %v5035_v23 = vor.u32 %v6156_v48, %v5034_v15  ;;  %v6171_v48 = vld [vmem:[#allocation7 + $0x94] sm:$0xf] }
 0x395   :  { %v917_v34 = vmax.f32 %v8128_v11, %v859_v44  ;;  %v1010_v7 = vpack.c.bf16 %v995_v49, %v994_v38  ;;  %v5098_v49 = vld [vmem:[#allocation7 + $0x90] sm:$0xf]  ;;  %v6172_v44 = vld [vmem:[#allocation7 + $0x94] sm:$0xf0]  ;;  %v5092_v11 = vld [vmem:[#allocation7 + $0x88] sm:$0xf0] }
 0x396   :  { %1810 = vmatmul.bf16.vlgmr.msra.gmra.mxu1 %v5027_v45  ;;  %v5087_v45 = vor.u32 %v6167_v52, %v5084_v55  ;;  %v5099_v41 = vor.u32 %v6172_v44, %v5098_v49  ;;  %v6177_v55 = vld [vmem:[#allocation7 + $0xc4] sm:$0xf] }
 0x397   :  { %v942_v18 = vmax.f32 %v892_v27, %v917_v34  ;;  %v6169_v27 = vld [vmem:[#allocation7 + $0x84] sm:$0xf]  ;;  %6418 = vmatpush.bf16.msrb.mxu1 %v6278_v36 }
 0x398   :  { %v5095_v34 = vor.u32 %v6169_v27, %v5092_v11 }
 0x399   :  { %v971_v59 = vadd.f32 %v6991_v33, %v942_v18  ;;  %v6155_v33 = vld [vmem:[#allocation7 + $0x14] sm:$0xf] }
 0x39a   :  { %v5039_v17 = vor.u32 %v6155_v33, %v5036_v37  ;;  %v5114_v37 = vld [vmem:[#allocation7 + $0xb0] sm:$0xf] }
 0x39b   :  { %v996_v16 = vmax.f32 %v971_v59, 0.0  ;;  %v5106_v59 = vld [vmem:[#allocation7 + $0xa0] sm:$0xf]  ;;  %6420 = vmatpush.bf16.msrb.mxu1 %v6277_v54 }
 0x39d   :  { %v1011_v9 = vpack.c.bf16 %v997_v35, %v996_v16  ;;  %v6174_v16 = vld [vmem:[#allocation7 + $0xa4] sm:$0xf0] }
 0x39f   :  { %2096 = vmatpush.bf16.msrb.mxu2 %v1011_v9  ;;  %v5107_v9 = vor.u32 %v6174_v16, %v5106_v59  ;;  %v6179_v16 = vld [vmem:[#allocation7 + $0xd4] sm:$0xf] }
 0x3a3   :  { %2097 = vmatpush.bf16.msrb.mxu2 %v1010_v7 }
 0x3a6   :  { %1815 = vmatmul.bf16.gmra.mxu1 %v5035_v23  ;;  %v5100_v23 = vld [vmem:[#allocation7 + $0x98] sm:$0xf0] }
 0x3a7   :  { %2098 = vmatpush.bf16.msrb.mxu2 %v1009_v3  ;;  %v5074_v3 = vld [vmem:[#allocation7 + $0x60] sm:$0xf] }
 0x3a8   :  { %v5075_v56 = vor.u32 %v6166_v60, %v5074_v3  ;;  %v6276_v3 = vld [vmem:[#allocation8 + $0x28] sm:$0xff] }
 0x3a9   :  { %2730 = vmatpush.bf16.msrb.mxu0 %v6276_v3  ;;  %6423 = vmatpush.bf16.msra.mxu3 %v6276_v3 }
 0x3aa   :  { %5472 = vmatmul.msk.bf16.vlgmr.msrb.gmra.mxu2 %vm1630_vm3, %v5031_v53  ;;  %v5103_v53 = vor.u32 %v6171_v48, %v5100_v23  ;;  %6422 = vmatpush.bf16.msrb.mxu1 %v6276_v3 }
 0x3ad   :  { %2731 = vmatpush.bf16.msrb.mxu0 %v6275_v5  ;;  %6425 = vmatpush.bf16.msra.mxu3 %v6275_v5 }
 0x3ae   :  { %6424 = vmatpush.bf16.msrb.mxu1 %v6275_v5  ;;  %v5162_v5 = vld [vmem:[#allocation7 + $0x110] sm:$0xf] }
 0x3b6   :  { %1820 = vmatmul.bf16.gmra.mxu1 %v5043_v50 }
 0x3ba   :  { %5473 = vmatmul.msk.bf16.gmra.mxu2 %vm1630_vm3, %v5039_v17  ;;  %v6176_v17 = vld [vmem:[#allocation7 + $0xb4] sm:$0xf0] }
 0x3bb   :  { %v5115_v30 = vor.u32 %v6176_v17, %v5114_v37 }
 0x3c6   :  { %1825 = vmatmul.bf16.gmra.mxu1 %v5051_v25 }
 0x3ca   :  { %5474 = vmatmul.msk.bf16.gmra.mxu2 %vm1630_vm3, %v5047_v26 }
 0x3d6   :  { %1830 = vmatmul.bf16.gmra.mxu1 %v5059_v10 }
 0x3da   :  { %5475 = vmatmul.msk.bf16.gmra.mxu2 %vm1630_vm3, %v5055_v40 }
 0x3e6   :  { %1835 = vmatmul.bf16.gmra.mxu1 %v5067_v28  ;;  %v5122_v28 = vld [vmem:[#allocation7 + $0xc0] sm:$0xf] }
 0x3ea   :  { %5476 = vmatmul.msk.bf16.gmra.mxu2 %vm1630_vm3, %v5063_v29  ;;  %v5123_v29 = vor.u32 %v6178_v1, %v5122_v28  ;;  %v6183_v1 = vld [vmem:[#allocation7 + $0xf4] sm:$0xf] }
 0x3f6   :  { %1840 = vmatmul.bf16.gmra.mxu1 %v5075_v56  ;;  %v6175_v56 = vld [vmem:[#allocation7 + $0xb4] sm:$0xf] }
 0x3f7   :  { %v5119_v58 = vor.u32 %v6175_v56, %v5116_v2 }
 0x3fa   :  { %5477 = vmatmul.msk.bf16.gmra.mxu2 %vm1630_vm3, %v5071_v20 }
 0x406   :  { %1845 = vmatmul.bf16.gmra.mxu1 %v5083_v8 }
 0x40a   :  { %5478 = vmatmul.msk.bf16.gmra.mxu2 %vm1630_vm3, %v5079_v43 }
 0x413   :  { %v1811_v21 = vpop.f32.mrf.mxu1 }
 0x416   :  { %1850 = vmatmul.bf16.gmra.mxu1 %v5091_v6 }
 0x41a   :  { %5479 = vmatmul.msk.bf16.gmra.mxu2 %vm1630_vm3, %v5087_v45  ;;  %v5124_v45 = vld [vmem:[#allocation7 + $0xc8] sm:$0xf0] }
 0x41b   :  { %v1813_v38 = vpop.f32.mrf.mxu1  ;;  %v5127_v44 = vor.u32 %v6177_v55, %v5124_v45 }
 0x423   :  { %v1816_v51 = vpop.f32.mrf.mxu1 }
 0x426   :  { %1855 = vmatmul.bf16.gmra.mxu1 %v5099_v41 }
 0x42a   :  { %5480 = vmatmul.msk.bf16.gmra.mxu2 %vm1630_vm3, %v5095_v34  ;;  %v5138_v34 = vld [vmem:[#allocation7 + $0xe0] sm:$0xf] }
 0x42b   :  { %v1818_v7 = vpop.f32.mrf.mxu1 }
 0x42d   :  { %v2100_v18 = vpop.f32.mrf.mxu2 }
 0x42e   :  { %v2101_v22 = vadd.f32 %v2100_v18, %v1811_v21  ;;  %v5131_v21 = vor.u32 %v6180_v32, %v5130_v47  ;;  %v6185_v47 = vld [vmem:[#allocation7 + $0x104] sm:$0xf]  ;;  %v5156_v32 = vld [vmem:[#allocation7 + $0x108] sm:$0xf0] }
 0x430   :  { %v2380_v35 = vpack.c.bf16 %v2101_v22, %v2101_v22 }
 0x432   :  { %2493 = vst.msk [vmem:[#allocation2] sm:$0xf] %vm2492_vm4, %v2380_v35  ;;  %v5132_v35 = vld [vmem:[#allocation7 + $0xd8] sm:$0xf0] }
 0x433   :  { %v1821_v15 = vpop.f32.mrf.mxu1  ;;  %v5135_v48 = vor.u32 %v6179_v16, %v5132_v35 }
 0x435   :  { %v2102_v61 = vpop.f32.mrf.mxu2 }
 0x436   :  { %v2103_v14 = vadd.f32 %v2102_v61, %v1813_v38  ;;  %1860 = vmatmul.bf16.gmra.mxu1 %v5107_v9 }
 0x438   :  { %v2381_v13 = vpack.c.bf16 %v2103_v14, %v2103_v14 }
 0x43a   :  { %2494 = vst.msk [vmem:[#allocation2 + $0x4] sm:$0xf] %vm2492_vm4, %v2381_v13  ;;  %5481 = vmatmul.msk.bf16.gmra.mxu2 %vm1630_vm3, %v5103_v53 }
 0x43b   :  { %v1823_v12 = vpop.f32.mrf.mxu1 }
 0x43d   :  { %v2105_v50 = vpop.f32.mrf.mxu2 }
 0x43e   :  { %v2106_v33 = vadd.f32 %v2105_v50, %v1816_v51  ;;  %v6184_v50 = vld [vmem:[#allocation7 + $0xf4] sm:$0xf0] }
 0x440   :  { %v2382_v24 = vpack.c.bf16 %v2106_v33, %v2106_v33 }
 0x442   :  { %2495 = vst.msk [vmem:[#allocation2 + $0x8] sm:$0xf] %vm2492_vm4, %v2382_v24  ;;  %v6181_v24 = vld [vmem:[#allocation7 + $0xe4] sm:$0xf] }
 0x443   :  { %v1826_v25 = vpop.f32.mrf.mxu1 }
 0x445   :  { %v2107_v26 = vpop.f32.mrf.mxu2 }
 0x446   :  { %v2108_v0 = vadd.f32 %v2107_v26, %v1818_v7  ;;  %1865 = vmatmul.bf16.gmra.mxu1 %v5115_v30  ;;  %v6182_v7 = vld [vmem:[#allocation7 + $0xe4] sm:$0xf0]  ;;  %v5140_v30 = vld [vmem:[#allocation7 + $0xe8] sm:$0xf0] }
 0x447   :  { %v5139_v22 = vor.u32 %v6182_v7, %v5138_v34  ;;  %v5143_v57 = vor.u32 %v6181_v24, %v5140_v30  ;;  %v6187_v7 = vld [vmem:[#allocation7 + $0x114] sm:$0xf] }
 0x448   :  { %v2383_v10 = vpack.c.bf16 %v2108_v0, %v2108_v0 }
 0x44a   :  { %2496 = vst.msk [vmem:[#allocation2 + $0xc] sm:$0xf] %vm2492_vm4, %v2383_v10  ;;  %5482 = vmatmul.msk.bf16.gmra.mxu2 %vm1630_vm3, %v5111_v39 }
 0x44b   :  { %v1828_v42 = vpop.f32.mrf.mxu1 }
 0x44d   :  { %v2110_v40 = vpop.f32.mrf.mxu2 }
 0x44e   :  { %v2111_v63 = vadd.f32 %v2110_v40, %v1821_v15  ;;  %v6186_v40 = vld [vmem:[#allocation7 + $0x104] sm:$0xf0] }
 0x450   :  { %v2384_v19 = vpack.c.bf16 %v2111_v63, %v2111_v63 }
 0x452   :  { %2497 = vst.msk [vmem:[#allocation2 + $0x10] sm:$0xf] %vm2492_vm4, %v2384_v19  ;;  %v5148_v19 = vld [vmem:[#allocation7 + $0xf8] sm:$0xf0] }
 0x453   :  { %v1831_v60 = vpop.f32.mrf.mxu1 }
 0x455   :  { %v2112_v46 = vpop.f32.mrf.mxu2 }
 0x456   :  { %v2113_v20 = vadd.f32 %v2112_v46, %v1823_v12  ;;  %1870 = vmatmul.bf16.gmra.mxu1 %v5123_v29  ;;  %v5146_v12 = vld [vmem:[#allocation7 + $0xf0] sm:$0xf] }
 0x457   :  { %v5147_v37 = vor.u32 %v6184_v50, %v5146_v12  ;;  %v6269_v50 = vld [vmem:[#allocation8 + $0x8] sm:$0xff] }
 0x458   :  { %v2385_v8 = vpack.c.bf16 %v2113_v20, %v2113_v20 }
 0x45a   :  { %2498 = vst.msk [vmem:[#allocation2 + $0x14] sm:$0xf] %vm2492_vm4, %v2385_v8  ;;  %5483 = vmatmul.msk.bf16.gmra.mxu2 %vm1630_vm3, %v5119_v58  ;;  %v6188_v8 = vld [vmem:[#allocation7 + $0x114] sm:$0xf0] }
 0x45b   :  { %v1833_v31 = vpop.f32.mrf.mxu1 }
 0x45d   :  { %v2115_v4 = vpop.f32.mrf.mxu2 }
 0x45e   :  { %v2116_v43 = vadd.f32 %v2115_v4, %v1826_v25  ;;  %v5163_v4 = vor.u32 %v6188_v8, %v5162_v5  ;;  %v5194_v5 = vld [vmem:[#allocation7 + $0x150] sm:$0xf]  ;;  %v6196_v8 = vld [vmem:[#allocation7 + $0x154] sm:$0xf0] }
 0x460   :  { %v2386_v6 = vpack.c.bf16 %v2116_v43, %v2116_v43 }
 0x462   :  { %2499 = vst.msk [vmem:[#allocation2 + $0x18] sm:$0xf] %vm2492_vm4, %v2386_v6 }
 0x463   :  { %v1836_v52 = vpop.f32.mrf.mxu1 }
 0x465   :  { %v2117_v38 = vpop.f32.mrf.mxu2 }
 0x466   :  { %v2118_v49 = vadd.f32 %v2117_v38, %v1828_v42  ;;  %1875 = vmatmul.bf16.gmra.mxu1 %v5131_v21  ;;  %v5154_v42 = vld [vmem:[#allocation7 + $0x100] sm:$0xf] }
 0x467   :  { %v5155_v54 = vor.u32 %v6186_v40, %v5154_v42  ;;  %v6194_v42 = vld [vmem:[#allocation7 + $0x144] sm:$0xf0] }
 0x468   :  { %v2387_v41 = vpack.c.bf16 %v2118_v49, %v2118_v49 }
 0x46a   :  { %2500 = vst.msk [vmem:[#allocation2 + $0x1c] sm:$0xf] %vm2492_vm4, %v2387_v41  ;;  %5484 = vmatmul.msk.bf16.gmra.mxu2 %vm1630_vm3, %v5127_v44  ;;  %v5170_v41 = vld [vmem:[#allocation7 + $0x120] sm:$0xf] }
 0x46b   :  { %v1838_v51 = vpop.f32.mrf.mxu1 }
 0x46d   :  { %v2120_v27 = vpop.f32.mrf.mxu2 }
 0x46e   :  { %v2121_v11 = vadd.f32 %v2120_v27, %v1831_v60  ;;  %v5151_v60 = vor.u32 %v6183_v1, %v5148_v19  ;;  %v6191_v1 = vld [vmem:[#allocation7 + $0x134] sm:$0xf]  ;;  %v5180_v19 = vld [vmem:[#allocation7 + $0x138] sm:$0xf0] }
 0x470   :  { %v2388_v18 = vpack.c.bf16 %v2121_v11, %v2121_v11 }
 0x472   :  { %2501 = vst.msk [vmem:[#allocation2 + $0x20] sm:$0xf] %vm2492_vm4, %v2388_v18  ;;  %v5164_v18 = vld [vmem:[#allocation7 + $0x118] sm:$0xf0] }
 0x473   :  { %v1841_v59 = vpop.f32.mrf.mxu1  ;;  %v5167_v35 = vor.u32 %v6187_v7, %v5164_v18  ;;  %v6195_v18 = vld [vmem:[#allocation7 + $0x154] sm:$0xf] }
 0x475   :  { %v2122_v9 = vpop.f32.mrf.mxu2 }
 0x476   :  { %v2123_v15 = vadd.f32 %v2122_v9, %v1833_v31  ;;  %1880 = vmatmul.bf16.gmra.mxu1 %v5139_v22  ;;  %v6271_v22 = vld [vmem:[#allocation8 + $0x18] sm:$0xff] }
 0x477   :  { %2838 = vmatpush.bf16.msrb.mxu3 %v6271_v22  ;;  %v5196_v22 = vld [vmem:[#allocation7 + $0x158] sm:$0xf0] }
 0x478   :  { %v2389_v23 = vpack.c.bf16 %v2123_v15, %v2123_v15 }
 0x479   :  { %v6428_v61 = vld [vmem:[#allocation2 + $0x1c] sm:$0xff]  }
 0x47a   :  { %2502 = vst.msk [vmem:[#allocation2 + $0x24] sm:$0xf] %vm2492_vm4, %v2389_v23  ;;  %5485 = vmatmul.msk.bf16.gmra.mxu2 %vm1630_vm3, %v5135_v48  ;;  %5556 = vmatmul.msk.bf16.vlgmr.msrb.gmra.mxu0 %vm2702_vm5, %v6428_v61  ;;  %v6270_v48 = vld [vmem:[#allocation8 + $0x10] sm:$0xff] }
 0x47b   :  { %v1843_v14 = vpop.f32.mrf.mxu1  ;;  %2839 = vmatpush.bf16.msrb.mxu3 %v6270_v48 }
 0x47d   :  { %v2125_v53 = vpop.f32.mrf.mxu2 }
 0x47e   :  { %v2126_v13 = vadd.f32 %v2125_v53, %v1836_v52  ;;  %v5159_v52 = vor.u32 %v6185_v47, %v5156_v32  ;;  %v6192_v53 = vld [vmem:[#allocation7 + $0x134] sm:$0xf0]  ;;  %v6193_v47 = vld [vmem:[#allocation7 + $0x144] sm:$0xf]  ;;  %v5188_v32 = vld [vmem:[#allocation7 + $0x148] sm:$0xf0] }
 0x47f   :  { %2840 = vmatpush.bf16.msrb.mxu3 %v6269_v50 }
 0x480   :  { %v2390_v33 = vpack.c.bf16 %v2126_v13, %v2126_v13 }
 0x482   :  { %2503 = vst.msk [vmem:[#allocation2 + $0x28] sm:$0xf] %vm2492_vm4, %v2390_v33 }
 0x483   :  { %v1846_v17 = vpop.f32.mrf.mxu1 }
 0x485   :  { %v2127_v25 = vpop.f32.mrf.mxu2 }
 0x486   :  { %v2128_v62 = vadd.f32 %v2127_v25, %v1838_v51  ;;  %1885 = vmatmul.bf16.gmra.mxu1 %v5147_v37  ;;  %v6190_v51 = vld [vmem:[#allocation7 + $0x124] sm:$0xf0]  ;;  %v6189_v37 = vld [vmem:[#allocation7 + $0x124] sm:$0xf] }
 0x487   :  { %v5171_v11 = vor.u32 %v6190_v51, %v5170_v41  ;;  %v5202_v41 = vld [vmem:[#allocation7 + $0x160] sm:$0xf]  ;;  %v6198_v51 = vld [vmem:[#allocation7 + $0x164] sm:$0xf0] }
 0x488   :  { %v2391_v26 = vpack.c.bf16 %v2128_v62, %v2128_v62  ;;  %v6268_v62 = vld [vmem:[#allocation8] sm:$0xff] }
 0x489   :  { %v6430_v0 = vld [vmem:[#allocation2 + $0x24] sm:$0xff]   ;;  %2841 = vmatpush.bf16.msrb.mxu3 %v6268_v62  ;;  %v6267_v62 = vld [vmem:[#allocation2 + $0x10] sm:$0xff] }
 0x48a   :  { %2504 = vst.msk [vmem:[#allocation2 + $0x2c] sm:$0xf] %vm2492_vm4, %v2391_v26  ;;  %5486 = vmatmul.msk.bf16.gmra.mxu2 %vm1630_vm3, %v5143_v57  ;;  %5557 = vmatmul.msk.bf16.gmra.mxu0 %vm2702_vm5, %v6430_v0 }
 0x48b   :  { %v1848_v39 = vpop.f32.mrf.mxu1 }
 0x48d   :  { %v2130_v10 = vpop.f32.mrf.mxu2 }
 0x48e   :  { %v2131_v36 = vadd.f32 %v2130_v10, %v1841_v59 }
 0x490   :  { %v2392_v63 = vpack.c.bf16 %v2131_v36, %v2131_v36  ;;  %v5186_v36 = vld [vmem:[#allocation7 + $0x140] sm:$0xf] }
 0x492   :  { %2505 = vst.msk [vmem:[#allocation2 + $0x30] sm:$0xf] %vm2492_vm4, %v2392_v63  ;;  %v5187_v63 = vor.u32 %v6194_v42, %v5186_v36  ;;  %v6202_v36 = vld [vmem:[#allocation7 + $0x184] sm:$0xf0] }
 0x493   :  { %v1851_v28 = vpop.f32.mrf.mxu1 }
 0x495   :  { %v2132_v29 = vpop.f32.mrf.mxu2 }
 0x496   :  { %v2133_v3 = vadd.f32 %v2132_v29, %v1843_v14  ;;  %1890 = vmatmul.bf16.gmra.mxu1 %v5155_v54  ;;  %v5178_v14 = vld [vmem:[#allocation7 + $0x130] sm:$0xf]  ;;  %v6289_v54 = vld [vmem:[#allocation8 + $0x58] sm:$0xff] }
 0x497   :  { %v5179_v12 = vor.u32 %v6192_v53, %v5178_v14  ;;  %4097 = vmatpush.bf16.msra.mxu2 %v6289_v54  ;;  %v5210_v14 = vld [vmem:[#allocation7 + $0x170] sm:$0xf]  ;;  %v6200_v53 = vld [vmem:[#allocation7 + $0x174] sm:$0xf0] }
 0x498   :  { %v2393_v56 = vpack.c.bf16 %v2133_v3, %v2133_v3 }
 0x499   :  { %v6432_v2 = vld [vmem:[#allocation2 + $0x2c] sm:$0xff]  }
 0x49a   :  { %2506 = vst.msk [vmem:[#allocation2 + $0x34] sm:$0xf] %vm2492_vm4, %v2393_v56  ;;  %5487 = vmatmul.msk.bf16.gmra.mxu2 %vm1630_vm3, %v5151_v60  ;;  %5558 = vmatmul.msk.bf16.gmra.mxu0 %vm2702_vm5, %v6432_v2  ;;  %v5183_v60 = vor.u32 %v6191_v1, %v5180_v19 }
 0x49b   :  { %v1853_v46 = vpop.f32.mrf.mxu1 }
 0x49d   :  { %v2135_v20 = vpop.f32.mrf.mxu2 }
 0x49e   :  { %v2136_v58 = vadd.f32 %v2135_v20, %v1846_v17  ;;  %v5172_v17 = vld [vmem:[#allocation7 + $0x128] sm:$0xf0] }
 0x49f   :  { %v5175_v25 = vor.u32 %v6189_v37, %v5172_v17  ;;  %v5204_v37 = vld [vmem:[#allocation7 + $0x168] sm:$0xf0] }
 0x4a0   :  { %v2394_v31 = vpack.c.bf16 %v2136_v58, %v2136_v58 }
 0x4a2   :  { %2507 = vst.msk [vmem:[#allocation2 + $0x38] sm:$0xf] %vm2492_vm4, %v2394_v31 }
 0x4a3   :  { %v1856_v43 = vpop.f32.mrf.mxu1 }
 0x4a5   :  { %v2137_v6 = vpop.f32.mrf.mxu2 }
 0x4a6   :  { %v2138_v21 = vadd.f32 %v2137_v6, %v1848_v39  ;;  %1895 = vmatmul.bf16.gmra.mxu1 %v5163_v4  ;;  %v5195_v4 = vor.u32 %v6196_v8, %v5194_v5 }
 0x4a8   :  { %v2395_v55 = vpack.c.bf16 %v2138_v21, %v2138_v21 }
 0x4a9   :  { %v6433_v45 = vld [vmem:[#allocation2 + $0x34] sm:$0xff] }
 0x4aa   :  { %2508 = vst.msk [vmem:[#allocation2 + $0x3c] sm:$0xf] %vm2492_vm4, %v2395_v55  ;;  %5488 = vmatmul.msk.bf16.gmra.mxu2 %vm1630_vm3, %v5159_v52  ;;  %5559 = vmatmul.msk.bf16.gmra.mxu0 %vm2702_vm5, %v6433_v45  ;;  %v5191_v52 = vor.u32 %v6193_v47, %v5188_v32  ;;  %v6265_v45 = vld [vmem:[#allocation2] sm:$0xff] }
 0x4ab   :  { %v1858_v38 = vpop.f32.mrf.mxu1 }
 0x4ad   :  { %v2140_v49 = vpop.f32.mrf.mxu2 }
 0x4ae   :  { %v2141_v44 = vadd.f32 %v2140_v49, %v1851_v28 }
 0x4b0   :  { %v2396_v27 = vpack.c.bf16 %v2141_v44, %v2141_v44 }
 0x4b2   :  { %2509 = vst.msk [vmem:[#allocation2 + $0x40] sm:$0xf] %vm2492_vm4, %v2396_v27 }
 0x4b3   :  { %v1861_v34 = vpop.f32.mrf.mxu1 }
 0x4b5   :  { %v2142_v59 = vpop.f32.mrf.mxu2 }
 0x4b6   :  { %v2143_v16 = vadd.f32 %v2142_v59, %v1853_v46  ;;  %1900 = vmatmul.bf16.gmra.mxu1 %v5171_v11  ;;  %v5203_v11 = vor.u32 %v6198_v51, %v5202_v41  ;;  %v6206_v41 = vld [vmem:[#allocation7 + $0x1a4] sm:$0xf0] }
 0x4b8   :  { %v2397_v9 = vpack.c.bf16 %v2143_v16, %v2143_v16 }
 0x4ba   :  { %2510 = vst.msk [vmem:[#allocation2 + $0x44] sm:$0xf] %vm2492_vm4, %v2397_v9  ;;  %5489 = vmatmul.msk.bf16.gmra.mxu2 %vm1630_vm3, %v5167_v35  ;;  %v5199_v35 = vor.u32 %v6195_v18, %v5196_v22 }
 0x4bb   :  { %v1863_v15 = vpop.f32.mrf.mxu1 }
 0x4bd   :  { %v2145_v23 = vpop.f32.mrf.mxu2 }
 0x4be   :  { %v2146_v61 = vadd.f32 %v2145_v23, %v1856_v43 }
 0x4c0   :  { %v2398_v13 = vpack.c.bf16 %v2146_v61, %v2146_v61 }
 0x4c2   :  { %2511 = vst.msk [vmem:[#allocation2 + $0x48] sm:$0xf] %vm2492_vm4, %v2398_v13 }
 0x4c3   :  { %v1866_v33 = vpop.f32.mrf.mxu1 }
 0x4c5   :  { %v2147_v24 = vpop.f32.mrf.mxu2 }
 0x4c6   :  { %v2148_v30 = vadd.f32 %v2147_v24, %v1858_v38  ;;  %1905 = vmatmul.bf16.gmra.mxu1 %v5179_v12  ;;  %v5211_v12 = vor.u32 %v6200_v53, %v5210_v14 }
 0x4c8   :  { %v2399_v57 = vpack.c.bf16 %v2148_v30, %v2148_v30 }
 0x4c9   :  { %v6273_v26 = vld [vmem:[#allocation2 + $0x44] sm:$0xff] }
 0x4ca   :  { %2512 = vst.msk [vmem:[#allocation2 + $0x4c] sm:$0xf] %vm2492_vm4, %v2399_v57  ;;  %5490 = vmatmul.msk.bf16.gmra.mxu2 %vm1630_vm3, %v5175_v25  ;;  %5561 = vmatmul.msk.bf16.vlgmr.msra.gmra.mxu3 %vm2702_vm5, %v6273_v26  ;;  %v6287_v26 = vld [vmem:[#allocation8 + $0x48] sm:$0xff] }
 0x4cb   :  { %v1868_v0 = vpop.f32.mrf.mxu1  ;;  %2985 = vmatpush.bf16.msra.mxu3 %v6289_v54  ;;  %v6199_v54 = vld [vmem:[#allocation7 + $0x174] sm:$0xf] }
 0x4cd   :  { %v2150_v39 = vpop.f32.mrf.mxu2 }
 0x4ce   :  { %v2151_v10 = vadd.f32 %v2150_v39, %v1861_v34  ;;  %v6288_v34 = vld [vmem:[#allocation8 + $0x50] sm:$0xff] }
 0x4cf   :  { %2986 = vmatpush.bf16.msra.mxu3 %v6288_v34  ;;  %4098 = vmatpush.bf16.msra.mxu2 %v6288_v34  ;;  %v6203_v34 = vld [vmem:[#allocation7 + $0x194] sm:$0xf] }
 0x4d0   :  { %v2400_v40 = vpack.c.bf16 %v2151_v10, %v2151_v10  ;;  %v5218_v10 = vld [vmem:[#allocation7 + $0x180] sm:$0xf] }
 0x4d2   :  { %2513 = vst.msk [vmem:[#allocation2 + $0x50] sm:$0xf] %vm2492_vm4, %v2400_v40  ;;  %v5219_v40 = vor.u32 %v6202_v36, %v5218_v10  ;;  %v6210_v10 = vld [vmem:[#allocation7 + $0x1c4] sm:$0xf0] }
 0x4d3   :  { %v1871_v28 = vpop.f32.mrf.mxu1  ;;  %2987 = vmatpush.bf16.msra.mxu3 %v6287_v26  ;;  %4099 = vmatpush.bf16.msra.mxu2 %v6287_v26 }
 0x4d5   :  { %v2152_v29 = vpop.f32.mrf.mxu2 }
 0x4d6   :  { %v2153_v3 = vadd.f32 %v2152_v29, %v1863_v15  ;;  %1910 = vmatmul.bf16.gmra.mxu1 %v5187_v63  ;;  %v6266_v15 = vld [vmem:[#allocation2 + $0x8] sm:$0xff] }
 0x4d8   :  { %v2401_v56 = vpack.c.bf16 %v2153_v3, %v2153_v3 }
 0x4d9   :  { %v6274_v2 = vld [vmem:[#allocation2 + $0x4c] sm:$0xff] }
 0x4da   :  { %2514 = vst.msk [vmem:[#allocation2 + $0x54] sm:$0xf] %vm2492_vm4, %v2401_v56  ;;  %5491 = vmatmul.msk.bf16.gmra.mxu2 %vm1630_vm3, %v5183_v60  ;;  %5562 = vmatmul.msk.bf16.gmra.mxu3 %vm2702_vm5, %v6274_v2  ;;  %v6393_v60 = vld [vmem:[#allocation2 + $0x18] sm:$0xff]  }
 0x4db   :  { %v1873_v46 = vpop.f32.mrf.mxu1 }
 0x4dd   :  { %v2155_v20 = vpop.f32.mrf.mxu2 }
 0x4de   :  { %v2156_v58 = vadd.f32 %v2155_v20, %v1866_v33  ;;  %v6197_v33 = vld [vmem:[#allocation7 + $0x164] sm:$0xf]  ;;  %v5226_v20 = vld [vmem:[#allocation7 + $0x190] sm:$0xf] }
 0x4df   :  { %v5207_v30 = vor.u32 %v6197_v33, %v5204_v37  ;;  %v6300_v33 = vld [vmem:[#allocation8 + $0x78] sm:$0xff] }
 0x4e0   :  { %v2402_v31 = vpack.c.bf16 %v2156_v58, %v2156_v58  ;;  %v6204_v58 = vld [vmem:[#allocation7 + $0x194] sm:$0xf0]  ;;  %4155 = vmatpush.bf16.msra.mxu1 %v6300_v33 }
 0x4e1   :  { %v5227_v8 = vor.u32 %v6204_v58, %v5226_v20  ;;  %v5258_v58 = vld [vmem:[#allocation7 + $0x1d0] sm:$0xf] }
 0x4e2   :  { %2515 = vst.msk [vmem:[#allocation2 + $0x58] sm:$0xf] %vm2492_vm4, %v2402_v31 }
 0x4e3   :  { %v1876_v43 = vpop.f32.mrf.mxu1 }
 0x4e5   :  { %v2157_v6 = vpop.f32.mrf.mxu2 }
 0x4e6   :  { %v2158_v21 = vadd.f32 %v2157_v6, %v1868_v0  ;;  %1915 = vmatmul.bf16.gmra.mxu1 %v5195_v4  ;;  %v6201_v4 = vld [vmem:[#allocation7 + $0x184] sm:$0xf] }
 0x4e8   :  { %v2403_v55 = vpack.c.bf16 %v2158_v21, %v2158_v21 }
 0x4ea   :  { %2516 = vst.msk [vmem:[#allocation2 + $0x5c] sm:$0xf] %vm2492_vm4, %v2403_v55  ;;  %5492 = vmatmul.msk.bf16.gmra.mxu2 %vm1630_vm3, %v5191_v52  ;;  %5591 = vmatmul.msk.bf16.vlgmr.msrb.gmra.mxu3 %vm2702_vm5, %v6265_v45  ;;  %v6394_v52 = vld [vmem:[#allocation2 + $0x20] sm:$0xff]   ;;  %v6286_v55 = vld [vmem:[#allocation8 + $0x40] sm:$0xff] }
 0x4eb   :  { %v1878_v38 = vpop.f32.mrf.mxu1  ;;  %2988 = vmatpush.bf16.msra.mxu3 %v6286_v55  ;;  %4100 = vmatpush.bf16.msra.mxu2 %v6286_v55 }
 0x4ed   :  { %v2160_v49 = vpop.f32.mrf.mxu2 }
 0x4ee   :  { %v2161_v44 = vadd.f32 %v2160_v49, %v1871_v28  ;;  %v5212_v28 = vld [vmem:[#allocation7 + $0x178] sm:$0xf0] }
 0x4ef   :  { %v5215_v29 = vor.u32 %v6199_v54, %v5212_v28  ;;  %3146 = vmatpush.bf16.msrb.mxu3 %v6300_v33  ;;  %v5244_v54 = vld [vmem:[#allocation7 + $0x1b8] sm:$0xf0]  ;;  %v6216_v33 = vld [vmem:[#allocation7 + $0x1f4] sm:$0xf0] }
 0x4f0   :  { %v2404_v27 = vpack.c.bf16 %v2161_v44, %v2161_v44  ;;  %v5234_v44 = vld [vmem:[#allocation7 + $0x1a0] sm:$0xf] }
 0x4f2   :  { %2517 = vst.msk [vmem:[#allocation2 + $0x60] sm:$0xf] %vm2492_vm4, %v2404_v27  ;;  %v5235_v27 = vor.u32 %v6206_v41, %v5234_v44 }
 0x4f3   :  { %v1881_v7 = vpop.f32.mrf.mxu1 }
 0x4f5   :  { %v2162_v59 = vpop.f32.mrf.mxu2 }
 0x4f6   :  { %v2163_v16 = vadd.f32 %v2162_v59, %v1873_v46  ;;  %1920 = vmatmul.bf16.gmra.mxu1 %v5203_v11 }
 0x4f8   :  { %v2405_v9 = vpack.c.bf16 %v2163_v16, %v2163_v16 }
 0x4fa   :  { %2518 = vst.msk [vmem:[#allocation2 + $0x64] sm:$0xf] %vm2492_vm4, %v2405_v9  ;;  %5493 = vmatmul.msk.bf16.gmra.mxu2 %vm1630_vm3, %v5199_v35  ;;  %5592 = vmatmul.msk.bf16.gmra.mxu3 %vm2702_vm5, %v6266_v15  ;;  %v6395_v35 = vld [vmem:[#allocation2 + $0x28] sm:$0xff]  }
 0x4fb   :  { %v1883_v48 = vpop.f32.mrf.mxu1 }
 0x4fd   :  { %v2165_v23 = vpop.f32.mrf.mxu2 }
 0x4fe   :  { %v2166_v61 = vadd.f32 %v2165_v23, %v1876_v43  ;;  %v5220_v43 = vld [vmem:[#allocation7 + $0x188] sm:$0xf0]  ;;  %v5242_v23 = vld [vmem:[#allocation7 + $0x1b0] sm:$0xf] }
 0x4ff   :  { %v5223_v6 = vor.u32 %v6201_v4, %v5220_v43  ;;  %v6299_v4 = vld [vmem:[#allocation8 + $0x70] sm:$0xff] }
 0x500   :  { %v2406_v13 = vpack.c.bf16 %v2166_v61, %v2166_v61  ;;  %v6208_v61 = vld [vmem:[#allocation7 + $0x1b4] sm:$0xf0]  ;;  %3147 = vmatpush.bf16.msrb.mxu3 %v6299_v4  ;;  %4156 = vmatpush.bf16.msra.mxu1 %v6299_v4  ;;  %v6283_v4 = vld [vmem:[#allocation2 + $0x58] sm:$0xff] }
 0x501   :  { %v5243_v53 = vor.u32 %v6208_v61, %v5242_v23  ;;  %v6281_v23 = vld [vmem:[#allocation2 + $0x48] sm:$0xff] }
 0x502   :  { %2519 = vst.msk [vmem:[#allocation2 + $0x68] sm:$0xf] %vm2492_vm4, %v2406_v13 }
 0x503   :  { %v1886_v50 = vpop.f32.mrf.mxu1 }
 0x505   :  { %v2167_v17 = vpop.f32.mrf.mxu2 }
 0x506   :  { %v2168_v24 = vadd.f32 %v2167_v17, %v1878_v38  ;;  %1925 = vmatmul.bf16.gmra.mxu1 %v5211_v12  ;;  %v6205_v12 = vld [vmem:[#allocation7 + $0x1a4] sm:$0xf] }
 0x508   :  { %v2407_v25 = vpack.c.bf16 %v2168_v24, %v2168_v24 }
 0x50a   :  { %2520 = vst.msk [vmem:[#allocation2 + $0x6c] sm:$0xf] %vm2492_vm4, %v2407_v25  ;;  %5494 = vmatmul.msk.bf16.gmra.mxu2 %vm1630_vm3, %v5207_v30  ;;  %5593 = vmatmul.msk.bf16.gmra.mxu3 %vm2702_vm5, %v6267_v62  ;;  %v6396_v25 = vld [vmem:[#allocation2 + $0x30] sm:$0xff]  }
 0x50b   :  { %v1888_v57 = vpop.f32.mrf.mxu1 }
 0x50d   :  { %v2170_v0 = vpop.f32.mrf.mxu2 }
 0x50e   :  { %v2171_v39 = vadd.f32 %v2170_v0, %v1881_v7  ;;  %v5228_v7 = vld [vmem:[#allocation7 + $0x198] sm:$0xf0] }
 0x50f   :  { %v5231_v59 = vor.u32 %v6203_v34, %v5228_v7 }
 0x510   :  { %v2408_v42 = vpack.c.bf16 %v2171_v39, %v2171_v39  ;;  %v5250_v39 = vld [vmem:[#allocation7 + $0x1c0] sm:$0xf] }
 0x512   :  { %2521 = vst.msk [vmem:[#allocation2 + $0x70] sm:$0xf] %vm2492_vm4, %v2408_v42  ;;  %v5251_v42 = vor.u32 %v6210_v10, %v5250_v39 }
 0x513   :  { %v1891_v63 = vpop.f32.mrf.mxu1 }
 0x515   :  { %v2172_v1 = vpop.f32.mrf.mxu2 }
 0x516   :  { %v2173_v19 = vadd.f32 %v2172_v1, %v1883_v48  ;;  %1930 = vmatmul.bf16.gmra.mxu1 %v5219_v40 }
 0x518   :  { %v2409_v3 = vpack.c.bf16 %v2173_v19, %v2173_v19 }
 0x51a   :  { %2522 = vst.msk [vmem:[#allocation2 + $0x74] sm:$0xf] %vm2492_vm4, %v2409_v3  ;;  %5495 = vmatmul.msk.bf16.gmra.mxu2 %vm1630_vm3, %v5215_v29  ;;  %5594 = vmatmul.msk.bf16.gmra.mxu3 %vm2702_vm5, %v6393_v60  ;;  %v6279_v60 = vld [vmem:[#allocation2 + $0x38] sm:$0xff] }
 0x51b   :  { %v1893_v56 = vpop.f32.mrf.mxu1 }
 0x51d   :  { %v2175_v2 = vpop.f32.mrf.mxu2 }
 0x51e   :  { %v2176_v46 = vadd.f32 %v2175_v2, %v1886_v50  ;;  %v5236_v50 = vld [vmem:[#allocation7 + $0x1a8] sm:$0xf0] }
 0x51f   :  { %v5239_v24 = vor.u32 %v6205_v12, %v5236_v50  ;;  %v5274_v50 = vld [vmem:[#allocation7 + $0x1f0] sm:$0xf] }
 0x520   :  { %v2410_v5 = vpack.c.bf16 %v2176_v46, %v2176_v46 }
 0x522   :  { %2523 = vst.msk [vmem:[#allocation2 + $0x78] sm:$0xf] %vm2492_vm4, %v2410_v5  ;;  %v6212_v5 = vld [vmem:[#allocation7 + $0x1d4] sm:$0xf0] }
 0x523   :  { %v1896_v31 = vpop.f32.mrf.mxu1 }
 0x525   :  { %v2177_v47 = vpop.f32.mrf.mxu2 }
 0x526   :  { %v2178_v32 = vadd.f32 %v2177_v47, %v1888_v57  ;;  %1935 = vmatmul.bf16.gmra.mxu1 %v5227_v8  ;;  %v6209_v47 = vld [vmem:[#allocation7 + $0x1c4] sm:$0xf] }
 0x528   :  { %v2411_v21 = vpack.c.bf16 %v2178_v32, %v2178_v32  ;;  %v5252_v32 = vld [vmem:[#allocation7 + $0x1c8] sm:$0xf0] }
 0x529   :  { %v5255_v55 = vor.u32 %v6209_v47, %v5252_v32 }
 0x52a   :  { %2524 = vst.msk [vmem:[#allocation2 + $0x7c] sm:$0xf] %vm2492_vm4, %v2411_v21  ;;  %5496 = vmatmul.msk.bf16.gmra.mxu2 %vm1630_vm3, %v5223_v6  ;;  %5595 = vmatmul.msk.bf16.gmra.mxu3 %vm2702_vm5, %v6394_v52 }
 0x52b   :  { %v1898_v45 = vpop.f32.mrf.mxu1 }
 0x52d   :  { %v2180_v38 = vpop.f32.mrf.mxu2 }
 0x52e   :  { %v2181_v49 = vadd.f32 %v2180_v38, %v1891_v63  ;;  %v6207_v63 = vld [vmem:[#allocation7 + $0x1b4] sm:$0xf] }
 0x52f   :  { %v5247_v29 = vor.u32 %v6207_v63, %v5244_v54  ;;  %v6280_v38 = vld [vmem:[#allocation2 + $0x40] sm:$0xff] }
 0x530   :  { %v2412_v51 = vpack.c.bf16 %v2181_v49, %v2181_v49 }
 0x532   :  { %2525 = vst.msk [vmem:[#allocation2 + $0x80] sm:$0xf] %vm2492_vm4, %v2412_v51 }
 0x533   :  { %v1901_v11 = vpop.f32.mrf.mxu1 }
 0x535   :  { %v2182_v18 = vpop.f32.mrf.mxu2 }
 0x536   :  { %v2183_v22 = vadd.f32 %v2182_v18, %v1893_v56  ;;  %1940 = vmatmul.bf16.gmra.mxu1 %v5235_v27  ;;  %v5266_v27 = vld [vmem:[#allocation7 + $0x1e0] sm:$0xf] }
 0x538   :  { %v2413_v16 = vpack.c.bf16 %v2183_v22, %v2183_v22  ;;  %v6211_v22 = vld [vmem:[#allocation7 + $0x1d4] sm:$0xf] }
 0x53a   :  { %2526 = vst.msk [vmem:[#allocation2 + $0x84] sm:$0xf] %vm2492_vm4, %v2413_v16  ;;  %5497 = vmatmul.msk.bf16.gmra.mxu2 %vm1630_vm3, %v5231_v59  ;;  %5596 = vmatmul.msk.bf16.gmra.mxu3 %vm2702_vm5, %v6395_v35  ;;  %v5260_v59 = vld [vmem:[#allocation7 + $0x1d8] sm:$0xf0] }
 0x53b   :  { %v1903_v9 = vpop.f32.mrf.mxu1 }
 0x53d   :  { %v2185_v15 = vpop.f32.mrf.mxu2 }
 0x53e   :  { %v2186_v48 = vadd.f32 %v2185_v15, %v1896_v31  ;;  %v5259_v31 = vor.u32 %v6212_v5, %v5258_v58  ;;  %v5263_v15 = vor.u32 %v6211_v22, %v5260_v59  ;;  %v6284_v59 = vld [vmem:[#allocation2 + $0x60] sm:$0xff] }
 0x540   :  { %v2414_v14 = vpack.c.bf16 %v2186_v48, %v2186_v48 }
 0x542   :  { %2527 = vst.msk [vmem:[#allocation2 + $0x88] sm:$0xf] %vm2492_vm4, %v2414_v14  ;;  %v6298_v14 = vld [vmem:[#allocation8 + $0x68] sm:$0xff] }
 0x543   :  { %v1906_v13 = vpop.f32.mrf.mxu1  ;;  %3148 = vmatpush.bf16.msrb.mxu3 %v6298_v14  ;;  %4157 = vmatpush.bf16.msra.mxu1 %v6298_v14 }
 0x545   :  { %v2187_v37 = vpop.f32.mrf.mxu2 }
 0x546   :  { %v2188_v17 = vadd.f32 %v2187_v37, %v1898_v45  ;;  %1945 = vmatmul.bf16.gmra.mxu1 %v5243_v53 }
 0x548   :  { %v2415_v30 = vpack.c.bf16 %v2188_v17, %v2188_v17  ;;  %v5275_v17 = vor.u32 %v6216_v33, %v5274_v50  ;;  %v6219_v50 = vld [vmem:[#allocation7 + $0x214] sm:$0xf]  ;;  %v5292_v33 = vld [vmem:[#allocation7 + $0x218] sm:$0xf0] }
 0x54a   :  { %2528 = vst.msk [vmem:[#allocation2 + $0x8c] sm:$0xf] %vm2492_vm4, %v2415_v30  ;;  %5498 = vmatmul.msk.bf16.gmra.mxu2 %vm1630_vm3, %v5239_v24  ;;  %5597 = vmatmul.msk.bf16.gmra.mxu3 %vm2702_vm5, %v6396_v25  ;;  %v6213_v30 = vld [vmem:[#allocation7 + $0x1e4] sm:$0xf]  ;;  %v5268_v25 = vld [vmem:[#allocation7 + $0x1e8] sm:$0xf0] }
 0x54b   :  { %v1908_v62 = vpop.f32.mrf.mxu1  ;;  %v5271_v39 = vor.u32 %v6213_v30, %v5268_v25  ;;  %v5295_v25 = vor.u32 %v6219_v50, %v5292_v33  ;;  %v5322_v33 = vld [vmem:[#allocation7 + $0x250] sm:$0xf] }
 0x54d   :  { %v2190_v57 = vpop.f32.mrf.mxu2  ;;  %v7185_v0 = vpop.f32.mrf.mxu3 }
 0x54e   :  { %v2191_v26 = vadd.f32 %v2190_v57, %v1901_v11  ;;  %v6214_v11 = vld [vmem:[#allocation7 + $0x1e4] sm:$0xf0] }
 0x54f   :  { %v5267_v7 = vor.u32 %v6214_v11, %v5266_v27  ;;  %v5284_v27 = vld [vmem:[#allocation7 + $0x208] sm:$0xf0] }
 0x550   :  { %v2416_v36 = vpack.c.bf16 %v2191_v26, %v2191_v26 }
 0x552   :  { %2529 = vst.msk [vmem:[#allocation2 + $0x90] sm:$0xf] %vm2492_vm4, %v2416_v36  ;;  %v6282_v36 = vld [vmem:[#allocation2 + $0x50] sm:$0xff] }
 0x553   :  { %v1911_v40 = vpop.f32.mrf.mxu1 }
 0x555   :  { %v2192_v28 = vpop.f32.mrf.mxu2  ;;  %v7188_v19 = vpop.f32.mrf.mxu3 }
 0x556   :  { %v2193_v1 = vadd.f32 %v2192_v28, %v1903_v9  ;;  %1950 = vmatmul.bf16.gmra.mxu1 %v5251_v42  ;;  %v5282_v28 = vld [vmem:[#allocation7 + $0x200] sm:$0xf] }
 0x558   :  { %v2417_v3 = vpack.c.bf16 %v2193_v1, %v2193_v1  ;;  %v6218_v1 = vld [vmem:[#allocation7 + $0x204] sm:$0xf0] }
 0x55a   :  { %2530 = vst.msk [vmem:[#allocation2 + $0x94] sm:$0xf] %vm2492_vm4, %v2417_v3  ;;  %5499 = vmatmul.msk.bf16.gmra.mxu2 %vm1630_vm3, %v5247_v29  ;;  %5642 = vmatmul.msk.bf16.vlgmr.msra.gmra.mxu3 %vm2702_vm5, %v6279_v60  ;;  %v5283_v3 = vor.u32 %v6218_v1, %v5282_v28 }
 0x55b   :  { %v1913_v56 = vpop.f32.mrf.mxu1 }
 0x55d   :  { %v2195_v2 = vpop.f32.mrf.mxu2  ;;  %v7193_v20 = vpop.f32.mrf.mxu3 }
 0x55e   :  { %v2196_v46 = vadd.f32 %v2195_v2, %v1906_v13  ;;  %v5276_v2 = vld [vmem:[#allocation7 + $0x1f8] sm:$0xf0] }
 0x560   :  { %v2418_v8 = vpack.c.bf16 %v2196_v46, %v2196_v46 }
 0x562   :  { %2531 = vst.msk [vmem:[#allocation2 + $0x98] sm:$0xf] %vm2492_vm4, %v2418_v8 }
 0x563   :  { %v1916_v43 = vpop.f32.mrf.mxu1 }
 0x565   :  { %v2197_v6 = vpop.f32.mrf.mxu2  ;;  %v7196_v52 = vpop.f32.mrf.mxu3 }
 0x566   :  { %v2198_v21 = vadd.f32 %v2197_v6, %v1908_v62  ;;  %1955 = vmatmul.bf16.gmra.mxu1 %v5259_v31 }
 0x568   :  { %v2419_v45 = vpack.c.bf16 %v2198_v21, %v2198_v21 }
 0x56a   :  { %2532 = vst.msk [vmem:[#allocation2 + $0x9c] sm:$0xf] %vm2492_vm4, %v2419_v45  ;;  %5500 = vmatmul.msk.bf16.gmra.mxu2 %vm1630_vm3, %v5255_v55  ;;  %5643 = vmatmul.msk.bf16.gmra.mxu3 %vm2702_vm5, %v6280_v38  ;;  %v5290_v55 = vld [vmem:[#allocation7 + $0x210] sm:$0xf]  ;;  %v6220_v45 = vld [vmem:[#allocation7 + $0x214] sm:$0xf0] }
 0x56b   :  { %v1918_v49 = vpop.f32.mrf.mxu1 }
 0x56d   :  { %v2200_v44 = vpop.f32.mrf.mxu2  ;;  %v7201_v51 = vpop.f32.mrf.mxu3 }
 0x56e   :  { %v2201_v41 = vadd.f32 %v2200_v44, %v1911_v40 }
 0x570   :  { %v2420_v34 = vpack.c.bf16 %v2201_v41, %v2201_v41  ;;  %v6217_v41 = vld [vmem:[#allocation7 + $0x204] sm:$0xf] }
 0x572   :  { %2533 = vst.msk [vmem:[#allocation2 + $0xa0] sm:$0xf] %vm2492_vm4, %v2420_v34 }
 0x573   :  { %v1921_v18 = vpop.f32.mrf.mxu1 }
 0x575   :  { %v2202_v16 = vpop.f32.mrf.mxu2  ;;  %v7204_v9 = vpop.f32.mrf.mxu3 }
 0x576   :  { %v2203_v35 = vadd.f32 %v2202_v16, %v1913_v56  ;;  %1960 = vmatmul.bf16.gmra.mxu1 %v5267_v7  ;;  %v6215_v56 = vld [vmem:[#allocation7 + $0x1f4] sm:$0xf] }
 0x577   :  { %v5279_v8 = vor.u32 %v6215_v56, %v5276_v2 }
 0x578   :  { %v2421_v48 = vpack.c.bf16 %v2203_v35, %v2203_v35 }
 0x57a   :  { %2534 = vst.msk [vmem:[#allocation2 + $0xa4] sm:$0xf] %vm2492_vm4, %v2421_v48  ;;  %5501 = vmatmul.msk.bf16.gmra.mxu2 %vm1630_vm3, %v5263_v15  ;;  %5644 = vmatmul.msk.bf16.gmra.mxu3 %vm2702_vm5, %v6281_v23  ;;  %v5298_v23 = vld [vmem:[#allocation7 + $0x220] sm:$0xf] }
 0x57b   :  { %v1923_v61 = vpop.f32.mrf.mxu1 }
 0x57d   :  { %v2205_v53 = vpop.f32.mrf.mxu2  ;;  %v7209_v12 = vpop.f32.mrf.mxu3 }
 0x57e   :  { %v2206_v13 = vadd.f32 %v2205_v53, %v1916_v43  ;;  %v6297_v43 = vld [vmem:[#allocation8 + $0x60] sm:$0xff] }
 0x57f   :  { %3149 = vmatpush.bf16.msrb.mxu3 %v6297_v43  ;;  %4158 = vmatpush.bf16.msra.mxu1 %v6297_v43 }
 0x580   :  { %v2422_v37 = vpack.c.bf16 %v2206_v13, %v2206_v13 }
 0x582   :  { %2535 = vst.msk [vmem:[#allocation2 + $0xa8] sm:$0xf] %vm2492_vm4, %v2422_v37  ;;  %v6311_v37 = vld [vmem:[#allocation8 + $0x98] sm:$0xff] }
 0x583   :  { %v1926_v24 = vpop.f32.mrf.mxu1  ;;  %3307 = vmatpush.bf16.msra.mxu3 %v6311_v37  ;;  %v6228_v37 = vld [vmem:[#allocation7 + $0x254] sm:$0xf0] }
 0x585   :  { %v2207_v62 = vpop.f32.mrf.mxu2  ;;  %v7212_v26 = vpop.f32.mrf.mxu3 }
 0x586   :  { %v2208_v57 = vadd.f32 %v2207_v62, %v1918_v49  ;;  %1965 = vmatmul.bf16.gmra.mxu1 %v5275_v17  ;;  %v5291_v49 = vor.u32 %v6220_v45, %v5290_v55  ;;  %v5314_v55 = vld [vmem:[#allocation7 + $0x240] sm:$0xf]  ;;  %v6226_v45 = vld [vmem:[#allocation7 + $0x244] sm:$0xf0] }
 0x588   :  { %v2423_v10 = vpack.c.bf16 %v2208_v57, %v2208_v57  ;;  %v6285_v57 = vld [vmem:[#allocation2 + $0x68] sm:$0xff] }
 0x58a   :  { %2536 = vst.msk [vmem:[#allocation2 + $0xac] sm:$0xf] %vm2492_vm4, %v2423_v10  ;;  %5502 = vmatmul.msk.bf16.gmra.mxu2 %vm1630_vm3, %v5271_v39  ;;  %5645 = vmatmul.msk.bf16.gmra.mxu3 %vm2702_vm5, %v6282_v36 }
 0x58b   :  { %v1928_v42 = vpop.f32.mrf.mxu1 }
 0x58d   :  { %v2210_v40 = vpop.f32.mrf.mxu2  ;;  %v7217_v54 = vpop.f32.mrf.mxu3 }
 0x58e   :  { %v2211_v63 = vadd.f32 %v2210_v40, %v1921_v18  ;;  %v5287_v18 = vor.u32 %v6217_v41, %v5284_v27  ;;  %v5306_v40 = vld [vmem:[#allocation7 + $0x230] sm:$0xf]  ;;  %v6223_v27 = vld [vmem:[#allocation7 + $0x234] sm:$0xf] }
 0x590   :  { %v2424_v29 = vpack.c.bf16 %v2211_v63, %v2211_v63  ;;  %v6224_v63 = vld [vmem:[#allocation7 + $0x234] sm:$0xf0] }
 0x591   :  { %v5307_v1 = vor.u32 %v6224_v63, %v5306_v40 }
 0x592   :  { %2537 = vst.msk [vmem:[#allocation2 + $0xb0] sm:$0xf] %vm2492_vm4, %v2424_v29 }
 0x593   :  { %v1931_v60 = vpop.f32.mrf.mxu1 }
 0x595   :  { %v2212_v46 = vpop.f32.mrf.mxu2  ;;  %v7220_v5 = vpop.f32.mrf.mxu3 }
 0x596   :  { %v2213_v58 = vadd.f32 %v2212_v46, %v1923_v61  ;;  %1970 = vmatmul.bf16.gmra.mxu1 %v5283_v3  ;;  %v6222_v61 = vld [vmem:[#allocation7 + $0x224] sm:$0xf0]  ;;  %v6221_v3 = vld [vmem:[#allocation7 + $0x224] sm:$0xf] }
 0x597   :  { %v5299_v53 = vor.u32 %v6222_v61, %v5298_v23 }
 0x598   :  { %v2425_v31 = vpack.c.bf16 %v2213_v58, %v2213_v58 }
 0x59a   :  { %2538 = vst.msk [vmem:[#allocation2 + $0xb4] sm:$0xf] %vm2492_vm4, %v2425_v31  ;;  %5503 = vmatmul.msk.bf16.gmra.mxu2 %vm1630_vm3, %v5279_v8  ;;  %5646 = vmatmul.msk.bf16.gmra.mxu3 %vm2702_vm5, %v6283_v4  ;;  %v7246_v31 = vld [vmem:[#allocation2 + $0x70] sm:$0xff] }
 0x59b   :  { %v1933_v47 = vpop.f32.mrf.mxu1 }
 0x59d   :  { %v2215_v32 = vpop.f32.mrf.mxu2  ;;  %v7225_v21 = vpop.f32.mrf.mxu3 }
 0x59e   :  { %v2216_v6 = vadd.f32 %v2215_v32, %v1926_v24 }
 0x5a0   :  { %v2426_v38 = vpack.c.bf16 %v2216_v6, %v2216_v6 }
 0x5a2   :  { %2539 = vst.msk [vmem:[#allocation2 + $0xb8] sm:$0xf] %vm2492_vm4, %v2426_v38 }
 0x5a3   :  { %v1936_v44 = vpop.f32.mrf.mxu1 }
 0x5a5   :  { %v2217_v11 = vpop.f32.mrf.mxu2  ;;  %v7228_v7 = vpop.f32.mrf.mxu3 }
 0x5a6   :  { %v2218_v34 = vadd.f32 %v2217_v11, %v1928_v42  ;;  %1975 = vmatmul.bf16.gmra.mxu1 %v5291_v49  ;;  %v5315_v49 = vor.u32 %v6226_v45, %v5314_v55  ;;  %v5308_v11 = vld [vmem:[#allocation7 + $0x238] sm:$0xf0] }
 0x5a8   :  { %v2427_v22 = vpack.c.bf16 %v2218_v34, %v2218_v34 }
 0x5aa   :  { %2540 = vst.msk [vmem:[#allocation2 + $0xbc] sm:$0xf] %vm2492_vm4, %v2427_v22  ;;  %5504 = vmatmul.msk.bf16.gmra.mxu2 %vm1630_vm3, %v5287_v18  ;;  %5647 = vmatmul.msk.bf16.gmra.mxu3 %vm2702_vm5, %v6284_v59  ;;  %v5311_v59 = vor.u32 %v6223_v27, %v5308_v11 }
 0x5ab   :  { %v1938_v16 = vpop.f32.mrf.mxu1 }
 0x5ad   :  { %v2220_v35 = vpop.f32.mrf.mxu2  ;;  %v7233_v48 = vpop.f32.mrf.mxu3 }
 0x5ae   :  { %v2221_v15 = vadd.f32 %v2220_v35, %v1931_v60  ;;  %v5300_v60 = vld [vmem:[#allocation7 + $0x228] sm:$0xf0] }
 0x5af   :  { %v5303_v58 = vor.u32 %v6221_v3, %v5300_v60  ;;  %v6309_v60 = vld [vmem:[#allocation8 + $0x88] sm:$0xff] }
 0x5b0   :  { %v2428_v14 = vpack.c.bf16 %v2221_v15, %v2221_v15  ;;  %v7257_v15 = vld [vmem:[#allocation2 + $0x78] sm:$0xff] }
 0x5b2   :  { %2541 = vst.msk [vmem:[#allocation2 + $0xc0] sm:$0xf] %vm2492_vm4, %v2428_v14 }
 0x5b3   :  { %v1941_v13 = vpop.f32.mrf.mxu1 }
 0x5b5   :  { %v2222_v17 = vpop.f32.mrf.mxu2  ;;  %v7236_v30 = vpop.f32.mrf.mxu3 }
 0x5b6   :  { %v2223_v24 = vadd.f32 %v2222_v17, %v1933_v47  ;;  %1980 = vmatmul.bf16.gmra.mxu1 %v5299_v53  ;;  %v2733_v47 = vpop.f32.mrf.mxu0 }
 0x5b7   :  { %v2844_v61 = vadd.f32 %v7201_v51, %v2733_v47  ;;  %v6230_v47 = vld [vmem:[#allocation7 + $0x264] sm:$0xf0] }
 0x5b8   :  { %v2429_v62 = vpack.c.bf16 %v2223_v24, %v2223_v24 }
 0x5ba   :  { %2542 = vst.msk [vmem:[#allocation2 + $0xc4] sm:$0xf] %vm2492_vm4, %v2429_v62  ;;  %5505 = vmatmul.msk.bf16.gmra.mxu2 %vm1630_vm3, %v5295_v25  ;;  %5648 = vmatmul.msk.bf16.gmra.mxu3 %vm2702_vm5, %v6285_v57  ;;  %v5323_v25 = vor.u32 %v6228_v37, %v5322_v33  ;;  %v6225_v57 = vld [vmem:[#allocation7 + $0x244] sm:$0xf]  ;;  %v6232_v33 = vld [vmem:[#allocation7 + $0x274] sm:$0xf0] }
 0x5bb   :  { %v1943_v39 = vpop.f32.mrf.mxu1 }
 0x5bd   :  { %v2225_v10 = vpop.f32.mrf.mxu2  ;;  %v7241_v42 = vpop.f32.mrf.mxu3 }
 0x5be   :  { %v2226_v36 = vadd.f32 %v2225_v10, %v1936_v44  ;;  %v6310_v44 = vld [vmem:[#allocation8 + $0x90] sm:$0xff] }
 0x5bf   :  { %3308 = vmatpush.bf16.msra.mxu3 %v6310_v44 }
 0x5c0   :  { %v2430_v28 = vpack.c.bf16 %v2226_v36, %v2226_v36 }
 0x5c2   :  { %2543 = vst.msk [vmem:[#allocation2 + $0xc8] sm:$0xf] %vm2492_vm4, %v2430_v28 }
 0x5c3   :  { %v1946_v29 = vpop.f32.mrf.mxu1  ;;  %3309 = vmatpush.bf16.msra.mxu3 %v6309_v60 }
 0x5c5   :  { %v2227_v56 = vpop.f32.mrf.mxu2  ;;  %v7244_v46 = vpop.f32.mrf.mxu3 }
 0x5c6   :  { %v2228_v2 = vadd.f32 %v2227_v56, %v1938_v16  ;;  %1985 = vmatmul.bf16.gmra.mxu1 %v5307_v1  ;;  %v2735_v16 = vpop.f32.mrf.mxu0 }
 0x5c7   :  { %v2846_v10 = vadd.f32 %v7204_v9, %v2735_v16  ;;  %v7283_v16 = vld [vmem:[#allocation2 + $0x88] sm:$0xff] }
 0x5c8   :  { %v2431_v8 = vpack.c.bf16 %v2228_v2, %v2228_v2 }
 0x5ca   :  { %2544 = vst.msk [vmem:[#allocation2 + $0xcc] sm:$0xf] %vm2492_vm4, %v2431_v8  ;;  %5506 = vmatmul.msk.bf16.gmra.mxu2 %vm1630_vm3, %v5303_v58  ;;  %5693 = vmatmul.msk.bf16.vlgmr.msrb.gmra.mxu3 %vm2702_vm5, %v7246_v31 }
 0x5cb   :  { %v1948_v4 = vpop.f32.mrf.mxu1 }
 0x5cd   :  { %v2230_v43 = vpop.f32.mrf.mxu2  ;;  %v7252_v6 = vpop.f32.mrf.mxu3 }
 0x5ce   :  { %v2231_v32 = vadd.f32 %v2230_v43, %v1941_v13  ;;  %v2738_v24 = vpop.f32.mrf.mxu0  ;;  %v5330_v43 = vld [vmem:[#allocation7 + $0x260] sm:$0xf] }
 0x5cf   :  { %v2849_v56 = vadd.f32 %v7209_v12, %v2738_v24  ;;  %v5331_v55 = vor.u32 %v6230_v47, %v5330_v43  ;;  %v5346_v43 = vld [vmem:[#allocation7 + $0x280] sm:$0xf]  ;;  %v6234_v47 = vld [vmem:[#allocation7 + $0x284] sm:$0xf0] }
 0x5d0   :  { %v2432_v38 = vpack.c.bf16 %v2231_v32, %v2231_v32 }
 0x5d2   :  { %2545 = vst.msk [vmem:[#allocation2 + $0xd0] sm:$0xf] %vm2492_vm4, %v2432_v38  ;;  %v6227_v38 = vld [vmem:[#allocation7 + $0x254] sm:$0xf] }
 0x5d3   :  { %v1951_v41 = vpop.f32.mrf.mxu1 }
 0x5d5   :  { %v2232_v34 = vpop.f32.mrf.mxu2  ;;  %v7255_v22 = vpop.f32.mrf.mxu3 }
 0x5d6   :  { %v2233_v18 = vadd.f32 %v2232_v34, %v1943_v39  ;;  %1990 = vmatmul.bf16.gmra.mxu1 %v5315_v49  ;;  %v5316_v39 = vld [vmem:[#allocation7 + $0x248] sm:$0xf0]  ;;  %v2740_v9 = vpop.f32.mrf.mxu0  ;;  %v5324_v49 = vld [vmem:[#allocation7 + $0x258] sm:$0xf0] }
 0x5d7   :  { %v5319_v63 = vor.u32 %v6225_v57, %v5316_v39  ;;  %v2851_v44 = vadd.f32 %v7212_v26, %v2740_v9  ;;  %v6229_v57 = vld [vmem:[#allocation7 + $0x264] sm:$0xf]  ;;  %v5332_v39 = vld [vmem:[#allocation7 + $0x268] sm:$0xf0] }
 0x5d8   :  { %v2433_v35 = vpack.c.bf16 %v2233_v18, %v2233_v18  ;;  %v6308_v9 = vld [vmem:[#allocation8 + $0x80] sm:$0xff] }
 0x5d9   :  { %3310 = vmatpush.bf16.msra.mxu3 %v6308_v9 }
 0x5da   :  { %2546 = vst.msk [vmem:[#allocation2 + $0xd4] sm:$0xf] %vm2492_vm4, %v2433_v35  ;;  %5507 = vmatmul.msk.bf16.gmra.mxu2 %vm1630_vm3, %v5311_v59  ;;  %5694 = vmatmul.msk.bf16.gmra.mxu3 %vm2702_vm5, %v7257_v15 }
 0x5db   :  { %v1953_v23 = vpop.f32.mrf.mxu1 }
 0x5dd   :  { %v2235_v14 = vpop.f32.mrf.mxu2  ;;  %v2990_v13 = vpop.f32.mrf.mxu3 }
 0x5de   :  { %v2236_v53 = vadd.f32 %v2235_v14, %v1946_v29  ;;  %v7264_v50 = vadd.f32 %v2990_v13, %v2844_v61  ;;  %v7270_v29 = vld [vmem:[#allocation2 + $0x80] sm:$0xff]  ;;  %v2743_v11 = vpop.f32.mrf.mxu0  ;;  %v5338_v13 = vld [vmem:[#allocation7 + $0x270] sm:$0xf] }
 0x5df   :  { %v2854_v26 = vadd.f32 %v7217_v54, %v2743_v11  ;;  %v5339_v24 = vor.u32 %v6232_v33, %v5338_v13  ;;  %v6236_v13 = vld [vmem:[#allocation7 + $0x294] sm:$0xf0] }
 0x5e0   :  { %v2434_v17 = vpack.c.bf16 %v2236_v53, %v2236_v53 }
 0x5e2   :  { %2547 = vst.msk [vmem:[#allocation2 + $0xd8] sm:$0xf] %vm2492_vm4, %v2434_v17 }
 0x5e3   :  { %v1956_v62 = vpop.f32.mrf.mxu1 }
 0x5e5   :  { %v2237_v36 = vpop.f32.mrf.mxu2  ;;  %v2992_v51 = vpop.f32.mrf.mxu3 }
 0x5e6   :  { %v2238_v40 = vadd.f32 %v2237_v36, %v1948_v4  ;;  %1995 = vmatmul.bf16.gmra.mxu1 %v5323_v25  ;;  %v7268_v28 = vadd.f32 %v2992_v51, %v2846_v10  ;;  %v2745_v37 = vpop.f32.mrf.mxu0 }
 0x5e7   :  { %v2856_v10 = vadd.f32 %v7220_v5, %v2745_v37 }
 0x5e8   :  { %v2435_v1 = vpack.c.bf16 %v2238_v40, %v2238_v40 }
 0x5ea   :  { %2548 = vst.msk [vmem:[#allocation2 + $0xdc] sm:$0xf] %vm2492_vm4, %v2435_v1  ;;  %5508 = vmatmul.msk.bf16.gmra.mxu2 %vm1630_vm3, %v5319_v63  ;;  %5695 = vmatmul.msk.bf16.gmra.mxu3 %vm2702_vm5, %v7270_v29  ;;  %v7296_v1 = vld [vmem:[#allocation2 + $0x90] sm:$0xff] }
 0x5eb   :  { %v1958_v3 = vpop.f32.mrf.mxu1 }
 0x5ed   :  { %v2240_v2 = vpop.f32.mrf.mxu2  ;;  %v2995_v8 = vpop.f32.mrf.mxu3 }
 0x5ee   :  { %v2241_v58 = vadd.f32 %v2240_v2, %v1951_v41  ;;  %v7277_v4 = vadd.f32 %v2995_v8, %v2849_v56  ;;  %v5327_v41 = vor.u32 %v6227_v38, %v5324_v49  ;;  %v2748_v60 = vpop.f32.mrf.mxu0  ;;  %v6231_v49 = vld [vmem:[#allocation7 + $0x274] sm:$0xf] }
 0x5ef   :  { %v2859_v5 = vadd.f32 %v7225_v21, %v2748_v60  ;;  %v2869_v60 = vadd.f32 %v7241_v42, %v7185_v0 }
 0x5f0   :  { %v2436_v32 = vpack.c.bf16 %v2241_v58, %v2241_v58 }
 0x5f2   :  { %2549 = vst.msk [vmem:[#allocation2 + $0xe0] sm:$0xf] %vm2492_vm4, %v2436_v32 }
 0x5f3   :  { %v1961_v45 = vpop.f32.mrf.mxu1 }
 0x5f5   :  { %v2242_v27 = vpop.f32.mrf.mxu2  ;;  %v2997_v34 = vpop.f32.mrf.mxu3 }
 0x5f6   :  { %v2243_v12 = vadd.f32 %v2242_v27, %v1953_v23  ;;  %2000 = vmatmul.bf16.gmra.mxu1 %v5331_v55  ;;  %v7281_v18 = vadd.f32 %v2997_v34, %v2851_v44  ;;  %v5347_v55 = vor.u32 %v6234_v47, %v5346_v43  ;;  %v5340_v44 = vld [vmem:[#allocation7 + $0x278] sm:$0xf0]  ;;  %v2750_v27 = vpop.f32.mrf.mxu0 }
 0x5f7   :  { %v2861_v11 = vadd.f32 %v7228_v7, %v2750_v27 }
 0x5f8   :  { %v2437_v59 = vpack.c.bf16 %v2243_v12, %v2243_v12 }
 0x5fa   :  { %2550 = vst.msk [vmem:[#allocation2 + $0xe4] sm:$0xf] %vm2492_vm4, %v2437_v59  ;;  %5509 = vmatmul.msk.bf16.gmra.mxu2 %vm1630_vm3, %v5327_v41  ;;  %5696 = vmatmul.msk.bf16.gmra.mxu3 %vm2702_vm5, %v7283_v16 }
 0x5fb   :  { %v1963_v35 = vpop.f32.mrf.mxu1 }
 0x5fd   :  { %v2245_v61 = vpop.f32.mrf.mxu2  ;;  %v3000_v14 = vpop.f32.mrf.mxu3 }
 0x5fe   :  { %v2246_v23 = vadd.f32 %v2245_v61, %v1956_v62  ;;  %v7290_v53 = vadd.f32 %v3000_v14, %v2854_v26  ;;  %v5335_v62 = vor.u32 %v6229_v57, %v5332_v39  ;;  %v7309_v26 = vld [vmem:[#allocation2 + $0x98] sm:$0xff]  ;;  %v7318_v39 = vld [vmem:[#allocation8 + $0xb8] sm:$0xff] }
 0x5ff   :  { %v5348_v57 = vld [vmem:[#allocation7 + $0x288] sm:$0xf0]  ;;  %3468 = vmatpush.bf16.msrb.mxu3 %v7318_v39 }
 0x600   :  { %v2438_v17 = vpack.c.bf16 %v2246_v23, %v2246_v23 }
 0x602   :  { %2551 = vst.msk [vmem:[#allocation2 + $0xe8] sm:$0xf] %vm2492_vm4, %v2438_v17 }
 0x603   :  { %v1966_v25 = vpop.f32.mrf.mxu1 }
 0x605   :  { %v2247_v36 = vpop.f32.mrf.mxu2  ;;  %v3002_v54 = vpop.f32.mrf.mxu3 }
 0x606   :  { %v2248_v40 = vadd.f32 %v2247_v36, %v1958_v3  ;;  %2005 = vmatmul.bf16.gmra.mxu1 %v5339_v24  ;;  %v7294_v51 = vadd.f32 %v3002_v54, %v2856_v10  ;;  %v6233_v24 = vld [vmem:[#allocation7 + $0x284] sm:$0xf] }
 0x608   :  { %v2439_v63 = vpack.c.bf16 %v2248_v40, %v2248_v40 }
 0x60a   :  { %2552 = vst.msk [vmem:[#allocation2 + $0xec] sm:$0xf] %vm2492_vm4, %v2439_v63  ;;  %5510 = vmatmul.msk.bf16.gmra.mxu2 %vm1630_vm3, %v5335_v62  ;;  %5697 = vmatmul.msk.bf16.gmra.mxu3 %vm2702_vm5, %v7296_v1  ;;  %v7323_v62 = vld [vmem:[#allocation2 + $0xa0] sm:$0xff] }
 0x60b   :  { %v1968_v56 = vpop.f32.mrf.mxu1 }
 0x60d   :  { %v2250_v3 = vpop.f32.mrf.mxu2  ;;  %v3005_v58 = vpop.f32.mrf.mxu3 }
 0x60e   :  { %v2251_v2 = vadd.f32 %v2250_v3, %v1961_v45  ;;  %v7303_v8 = vadd.f32 %v3005_v58, %v2859_v5  ;;  %v5343_v45 = vor.u32 %v6231_v49, %v5340_v44  ;;  %v6238_v58 = vld [vmem:[#allocation7 + $0x2a4] sm:$0xf0]  ;;  %v5356_v49 = vld [vmem:[#allocation7 + $0x298] sm:$0xf0]  ;;  %v2871_v44 = vadd.f32 %v7244_v46, %v7188_v19 }
 0x610   :  { %v2440_v32 = vpack.c.bf16 %v2251_v2, %v2251_v2  ;;  %v5362_v2 = vld [vmem:[#allocation7 + $0x2a0] sm:$0xf] }
 0x611   :  { %v5363_v47 = vor.u32 %v6238_v58, %v5362_v2  ;;  %v6352_v58 = vld [vmem:[#allocation8 + $0x100] sm:$0xff] }
 0x612   :  { %2553 = vst.msk [vmem:[#allocation2 + $0xf0] sm:$0xf] %vm2492_vm4, %v2440_v32 }
 0x613   :  { %v1971_v38 = vpop.f32.mrf.mxu1 }
 0x615   :  { %v2252_v12 = vpop.f32.mrf.mxu2  ;;  %v3007_v21 = vpop.f32.mrf.mxu3 }
 0x616   :  { %v2253_v34 = vadd.f32 %v2252_v12, %v1963_v35  ;;  %2010 = vmatmul.bf16.gmra.mxu1 %v5347_v55  ;;  %v7307_v41 = vadd.f32 %v3007_v21, %v2861_v11  ;;  %v5354_v35 = vld [vmem:[#allocation7 + $0x290] sm:$0xf]  ;;  %v6235_v55 = vld [vmem:[#allocation7 + $0x294] sm:$0xf] }
 0x617   :  { %v5355_v37 = vor.u32 %v6236_v13, %v5354_v35  ;;  %v5359_v42 = vor.u32 %v6235_v55, %v5356_v49  ;;  %v6242_v55 = vld [vmem:[#allocation7 + $0x2c4] sm:$0xf0] }
 0x618   :  { %v2441_v59 = vpack.c.bf16 %v2253_v34, %v2253_v34  ;;  %v6301_v34 = vld [vmem:[#allocation2 + $0x8c] sm:$0xff] }
 0x61a   :  { %2554 = vst.msk [vmem:[#allocation2 + $0xf4] sm:$0xf] %vm2492_vm4, %v2441_v59  ;;  %5511 = vmatmul.msk.bf16.gmra.mxu2 %vm1630_vm3, %v5343_v45  ;;  %5698 = vmatmul.msk.bf16.gmra.mxu3 %vm2702_vm5, %v7309_v26  ;;  %v2874_v45 = vadd.f32 %v7252_v6, %v7193_v20  ;;  %v2876_v20 = vadd.f32 %v7255_v22, %v7196_v52 }
 0x61b   :  { %v1973_v61 = vpop.f32.mrf.mxu1 }
 0x61d   :  { %v2255_v23 = vpop.f32.mrf.mxu2  ;;  %v7315_v14 = vpop.f32.mrf.mxu3 }
 0x61e   :  { %v2256_v7 = vadd.f32 %v2255_v23, %v1966_v25  ;;  %v5351_v25 = vor.u32 %v6233_v24, %v5348_v57  ;;  %v5370_v23 = vld [vmem:[#allocation7 + $0x2b0] sm:$0xf]  ;;  %v6237_v57 = vld [vmem:[#allocation7 + $0x2a4] sm:$0xf] }
 0x620   :  { %v2442_v33 = vpack.c.bf16 %v2256_v7, %v2256_v7  ;;  %v6240_v7 = vld [vmem:[#allocation7 + $0x2b4] sm:$0xf0] }
 0x621   :  { %v5371_v13 = vor.u32 %v6240_v7, %v5370_v23  ;;  %v6448_v23 = vld [vmem:[#allocation8 + $0x8] sm:$0xff] }
 0x622   :  { %2555 = vst.msk [vmem:[#allocation2 + $0xf8] sm:$0xf] %vm2492_vm4, %v2442_v33  ;;  %v7346_v33 = vld [vmem:[#allocation8 + $0xb0] sm:$0xff] }
 0x623   :  { %v1976_v17 = vpop.f32.mrf.mxu1  ;;  %3469 = vmatpush.bf16.msrb.mxu3 %v7346_v33 }
 0x625   :  { %v2257_v10 = vpop.f32.mrf.mxu2  ;;  %v7321_v40 = vpop.f32.mrf.mxu3 }
 0x626   :  { %v2258_v36 = vadd.f32 %v2257_v10, %v1968_v56  ;;  %2015 = vmatmul.bf16.gmra.mxu1 %v5355_v37  ;;  %v6355_v37 = vld [vmem:[#allocation8 + $0x118] sm:$0xff]  ;;  %v5364_v10 = vld [vmem:[#allocation7 + $0x2a8] sm:$0xf0] }
 0x627   :  { %3951 = vmatpush.bf16.msra.mxu0 %v6355_v37 }
 0x628   :  { %v2443_v54 = vpack.c.bf16 %v2258_v36, %v2258_v36 }
 0x62a   :  { %2556 = vst.msk [vmem:[#allocation2 + $0xfc] sm:$0xf] %vm2492_vm4, %v2443_v54  ;;  %5512 = vmatmul.msk.bf16.gmra.mxu2 %vm1630_vm3, %v5351_v25  ;;  %5699 = vmatmul.msk.bf16.gmra.mxu3 %vm2702_vm5, %v7323_v62  ;;  %v5367_v25 = vor.u32 %v6237_v57, %v5364_v10  ;;  %v6354_v54 = vld [vmem:[#allocation8 + $0x110] sm:$0xff] }
 0x62b   :  { %v1978_v63 = vpop.f32.mrf.mxu1  ;;  %3952 = vmatpush.bf16.msra.mxu0 %v6354_v54  ;;  %v5386_v10 = vld [vmem:[#allocation7 + $0x2d0] sm:$0xf]  ;;  %v5380_v54 = vld [vmem:[#allocation7 + $0x2c8] sm:$0xf0] }
 0x62d   :  { %v2260_v9 = vpop.f32.mrf.mxu2  ;;  %v3015_v5 = vpop.f32.mrf.mxu3 }
 0x62e   :  { %v2261_v56 = vadd.f32 %v2260_v9, %v1971_v38  ;;  %v7331_v3 = vadd.f32 %v3015_v5, %v2869_v60  ;;  %v6353_v5 = vld [vmem:[#allocation8 + $0x108] sm:$0xff] }
 0x62f   :  { %3953 = vmatpush.bf16.msra.mxu0 %v6353_v5 }
 0x630   :  { %v2444_v43 = vpack.c.bf16 %v2261_v56, %v2261_v56  ;;  %v6302_v56 = vld [vmem:[#allocation2 + $0x94] sm:$0xff] }
 0x632   :  { %2557 = vst.msk [vmem:[#allocation2 + $0x100] sm:$0xf] %vm2492_vm4, %v2444_v43 }
 0x633   :  { %v1981_v32 = vpop.f32.mrf.mxu1  ;;  %3954 = vmatpush.bf16.msra.mxu0 %v6352_v58 }
 0x635   :  { %v2262_v27 = vpop.f32.mrf.mxu2  ;;  %v3017_v0 = vpop.f32.mrf.mxu3 }
 0x636   :  { %v2263_v11 = vadd.f32 %v2262_v27, %v1973_v61  ;;  %2020 = vmatmul.bf16.gmra.mxu1 %v5363_v47  ;;  %v7336_v38 = vadd.f32 %v3017_v0, %v2871_v44  ;;  %v5378_v47 = vld [vmem:[#allocation7 + $0x2c0] sm:$0xf]  ;;  %v6446_v44 = vld [vmem:[#allocation8 + $0x18] sm:$0xff]  ;;  %v6239_v0 = vld [vmem:[#allocation7 + $0x2b4] sm:$0xf] }
 0x637   :  { %4053 = vmatpush.bf16.msrb.mxu0 %v6446_v44  ;;  %v5379_v27 = vor.u32 %v6242_v55, %v5378_v47  ;;  %v6246_v44 = vld [vmem:[#allocation7 + $0x2e4] sm:$0xf0] }
 0x638   :  { %v2445_v12 = vpack.c.bf16 %v2263_v11, %v2263_v11 }
 0x63a   :  { %2558 = vst.msk [vmem:[#allocation2 + $0x104] sm:$0xf] %vm2492_vm4, %v2445_v12  ;;  %5513 = vmatmul.msk.bf16.gmra.mxu2 %vm1630_vm3, %v5359_v42  ;;  %5744 = vmatmul.msk.bf16.vlgmr.msra.gmra.mxu3 %vm2702_vm5, %v6301_v34  ;;  %v5372_v42 = vld [vmem:[#allocation7 + $0x2b8] sm:$0xf0]  ;;  %v6447_v34 = vld [vmem:[#allocation8 + $0x10] sm:$0xff] }
 0x63b   :  { %v1983_v21 = vpop.f32.mrf.mxu1  ;;  %4054 = vmatpush.bf16.msrb.mxu0 %v6447_v34  ;;  %v5388_v34 = vld [vmem:[#allocation7 + $0x2d8] sm:$0xf0] }
 0x63d   :  { %v2265_v19 = vpop.f32.mrf.mxu2  ;;  %v3020_v59 = vpop.f32.mrf.mxu3 }
 0x63e   :  { %v2266_v46 = vadd.f32 %v2265_v19, %v1976_v17  ;;  %v7343_v61 = vadd.f32 %v3020_v59, %v2874_v45  ;;  %v6303_v59 = vld [vmem:[#allocation2 + $0x9c] sm:$0xff] }
 0x63f   :  { %4055 = vmatpush.bf16.msrb.mxu0 %v6448_v23  ;;  %v6319_v23 = vld [vmem:[#allocation8 + $0xa0] sm:$0xff] }
 0x640   :  { %v2446_v35 = vpack.c.bf16 %v2266_v46, %v2266_v46 }
 0x642   :  { %2559 = vst.msk [vmem:[#allocation2 + $0x108] sm:$0xf] %vm2492_vm4, %v2446_v35  ;;  %v6320_v35 = vld [vmem:[#allocation8 + $0xa8] sm:$0xff] }
 0x643   :  { %v1986_v24 = vpop.f32.mrf.mxu1  ;;  %3470 = vmatpush.bf16.msrb.mxu3 %v6320_v35 }
 0x645   :  { %v2267_v6 = vpop.f32.mrf.mxu2  ;;  %v3022_v36 = vpop.f32.mrf.mxu3 }
 0x646   :  { %v2268_v17 = vadd.f32 %v2267_v6, %v1978_v63  ;;  %2025 = vmatmul.bf16.gmra.mxu1 %v5371_v13  ;;  %v7351_v60 = vadd.f32 %v3022_v36, %v2876_v20  ;;  %v6244_v20 = vld [vmem:[#allocation7 + $0x2d4] sm:$0xf0] }
 0x647   :  { %3471 = vmatpush.bf16.msrb.mxu3 %v6319_v23 }
 0x648   :  { %v2447_v9 = vpack.c.bf16 %v2268_v17, %v2268_v17  ;;  %v5387_v17 = vor.u32 %v6244_v20, %v5386_v10 }
 0x64a   :  { %2560 = vst.msk [vmem:[#allocation2 + $0x10c] sm:$0xf] %vm2492_vm4, %v2447_v9  ;;  %5514 = vmatmul.msk.bf16.gmra.mxu2 %vm1630_vm3, %v5367_v25  ;;  %5745 = vmatmul.msk.bf16.gmra.mxu3 %vm2702_vm5, %v6302_v56  ;;  %v6241_v25 = vld [vmem:[#allocation7 + $0x2c4] sm:$0xf] }
 0x64b   :  { %v1988_v2 = vpop.f32.mrf.mxu1 }
 0x64d   :  { %v2270_v52 = vpop.f32.mrf.mxu2  ;;  %v3151_v63 = vpop.f32.mrf.mxu3 }
 0x64e   :  { %v2271_v22 = vadd.f32 %v2270_v52, %v1981_v32  ;;  %v7357_v43 = vadd.f32 %v3151_v63, %v7264_v50  ;;  %v5375_v50 = vor.u32 %v6239_v0, %v5372_v42  ;;  %v5383_v52 = vor.u32 %v6241_v25, %v5380_v54 }
 0x650   :  { %v2448_v49 = vpack.c.bf16 %v2271_v22, %v2271_v22 }
 0x652   :  { %2561 = vst.msk [vmem:[#allocation2 + $0x110] sm:$0xf] %vm2492_vm4, %v2448_v49  ;;  %v5394_v49 = vld [vmem:[#allocation7 + $0x2e0] sm:$0xf] }
 0x653   :  { %v1991_v11 = vpop.f32.mrf.mxu1  ;;  %v5395_v0 = vor.u32 %v6246_v44, %v5394_v49 }
 0x655   :  { %v2272_v12 = vpop.f32.mrf.mxu2  ;;  %v3153_v45 = vpop.f32.mrf.mxu3 }
 0x656   :  { %v2273_v32 = vadd.f32 %v2272_v12, %v1983_v21  ;;  %2030 = vmatmul.bf16.gmra.mxu1 %v5379_v27  ;;  %v7361_v19 = vadd.f32 %v3153_v45, %v7268_v28  ;;  %v6449_v21 = vld [vmem:[#allocation8] sm:$0xff]  ;;  %v6243_v12 = vld [vmem:[#allocation7 + $0x2d4] sm:$0xf] }
 0x657   :  { %4056 = vmatpush.bf16.msrb.mxu0 %v6449_v21  ;;  %v5391_v45 = vor.u32 %v6243_v12, %v5388_v34  ;;  %v6333_v12 = vld [vmem:[#allocation8 + $0xd8] sm:$0xff] }
 0x658   :  { %v2449_v46 = vpack.c.bf16 %v2273_v32, %v2273_v32  ;;  %3629 = vmatpush.bf16.msra.mxu3 %v6333_v12  ;;  %4399 = vmatpush.bf16.msrb.mxu2 %v6333_v12 }
 0x65a   :  { %2562 = vst.msk [vmem:[#allocation2 + $0x114] sm:$0xf] %vm2492_vm4, %v2449_v46  ;;  %5515 = vmatmul.msk.bf16.gmra.mxu2 %vm1630_vm3, %v5375_v50  ;;  %5746 = vmatmul.msk.bf16.gmra.mxu3 %vm2702_vm5, %v6303_v59  ;;  %v6305_v59 = vld [vmem:[#allocation2 + $0xac] sm:$0xff] }
 0x65b   :  { %v1993_v7 = vpop.f32.mrf.mxu1 }
 0x65d   :  { %v2275_v13 = vpop.f32.mrf.mxu2  ;;  %v3156_v57 = vpop.f32.mrf.mxu3 }
 0x65e   :  { %v2276_v37 = vadd.f32 %v2275_v13, %v1986_v24  ;;  %v7367_v28 = vadd.f32 %v3156_v57, %v7277_v4  ;;  %v6304_v4 = vld [vmem:[#allocation2 + $0xa4] sm:$0xff] }
 0x65f   :  { %v6248_v57 = vld [vmem:[#allocation7 + $0x2f4] sm:$0xf0] }
 0x660   :  { %v2450_v6 = vpack.c.bf16 %v2276_v37, %v2276_v37  ;;  %v5402_v37 = vld [vmem:[#allocation7 + $0x2f0] sm:$0xf] }
 0x661   :  { %v5403_v20 = vor.u32 %v6248_v57, %v5402_v37 }
 0x662   :  { %2563 = vst.msk [vmem:[#allocation2 + $0x118] sm:$0xf] %vm2492_vm4, %v2450_v6 }
 0x663   :  { %v1996_v36 = vpop.f32.mrf.mxu1 }
 0x665   :  { %v2277_v9 = vpop.f32.mrf.mxu2  ;;  %v3158_v5 = vpop.f32.mrf.mxu3 }
 0x666   :  { %v2278_v56 = vadd.f32 %v2277_v9, %v1988_v2  ;;  %2035 = vmatmul.bf16.gmra.mxu1 %v5387_v17  ;;  %v7371_v24 = vadd.f32 %v3158_v5, %v7281_v18  ;;  %v5396_v17 = vld [vmem:[#allocation7 + $0x2e8] sm:$0xf0] }
 0x667   :  { %v6306_v5 = vld [vmem:[#allocation2 + $0xb4] sm:$0xff] }
 0x668   :  { %v2451_v22 = vpack.c.bf16 %v2278_v56, %v2278_v56 }
 0x66a   :  { %2564 = vst.msk [vmem:[#allocation2 + $0x11c] sm:$0xf] %vm2492_vm4, %v2451_v22  ;;  %5516 = vmatmul.msk.bf16.gmra.mxu2 %vm1630_vm3, %v5383_v52  ;;  %5747 = vmatmul.msk.bf16.gmra.mxu3 %vm2702_vm5, %v6304_v4 }
 0x66b   :  { %v1998_v63 = vpop.f32.mrf.mxu1 }
 0x66d   :  { %v2280_v58 = vpop.f32.mrf.mxu2  ;;  %v3161_v55 = vpop.f32.mrf.mxu3 }
 0x66e   :  { %v2281_v47 = vadd.f32 %v2280_v58, %v1991_v11  ;;  %v7377_v2 = vadd.f32 %v3161_v55, %v7290_v53 }
 0x670   :  { %v2452_v27 = vpack.c.bf16 %v2281_v47, %v2281_v47  ;;  %v6250_v47 = vld [vmem:[#allocation7 + $0x304] sm:$0xf0] }
 0x671   :  { %v7379_v18 = vld [vmem:[#allocation2 + $0x118] sm:$0xff] }
 0x672   :  { %2565 = vst.msk [vmem:[#allocation2 + $0x120] sm:$0xf] %vm2492_vm4, %v2452_v27  ;;  %5948 = vmatmul.msk.bf16.vlgmr.msra.gmra.mxu0 %vm2702_vm5, %v7379_v18  ;;  %v6247_v27 = vld [vmem:[#allocation7 + $0x2f4] sm:$0xf] }
 0x673   :  { %v2001_v42 = vpop.f32.mrf.mxu1  ;;  %4271 = vmatpush.bf16.msra.mxu0 %v7318_v39 }
 0x675   :  { %v2282_v11 = vpop.f32.mrf.mxu2  ;;  %v3163_v53 = vpop.f32.mrf.mxu3 }
 0x676   :  { %v2283_v32 = vadd.f32 %v2282_v11, %v1993_v7  ;;  %2040 = vmatmul.bf16.gmra.mxu1 %v5395_v0  ;;  %v7386_v50 = vadd.f32 %v3163_v53, %v7294_v51  ;;  %v5404_v0 = vld [vmem:[#allocation7 + $0x2f8] sm:$0xf0] }
 0x677   :  { %4272 = vmatpush.bf16.msra.mxu0 %v7346_v33 }
 0x678   :  { %v2453_v46 = vpack.c.bf16 %v2283_v32, %v2283_v32  ;;  %v5407_v32 = vor.u32 %v6247_v27, %v5404_v0  ;;  %v6332_v0 = vld [vmem:[#allocation8 + $0xd0] sm:$0xff] }
 0x679   :  { %3630 = vmatpush.bf16.msra.mxu3 %v6332_v0  ;;  %4400 = vmatpush.bf16.msrb.mxu2 %v6332_v0 }
 0x67a   :  { %2566 = vst.msk [vmem:[#allocation2 + $0x124] sm:$0xf] %vm2492_vm4, %v2453_v46  ;;  %5517 = vmatmul.msk.bf16.gmra.mxu2 %vm1630_vm3, %v5391_v45  ;;  %5748 = vmatmul.msk.bf16.gmra.mxu3 %vm2702_vm5, %v6305_v59  ;;  %v6307_v45 = vld [vmem:[#allocation2 + $0xbc] sm:$0xff] }
 0x67b   :  { %v2003_v13 = vpop.f32.mrf.mxu1  ;;  %4273 = vmatpush.bf16.msra.mxu0 %v6320_v35  ;;  %v6245_v35 = vld [vmem:[#allocation7 + $0x2e4] sm:$0xf] }
 0x67c   :  { %v5399_v54 = vor.u32 %v6245_v35, %v5396_v17  ;;  %v6249_v35 = vld [vmem:[#allocation7 + $0x304] sm:$0xf]  ;;  %v5412_v17 = vld [vmem:[#allocation7 + $0x308] sm:$0xf0] }
 0x67d   :  { %v2285_v39 = vpop.f32.mrf.mxu2  ;;  %v3166_v21 = vpop.f32.mrf.mxu3 }
 0x67e   :  { %v2286_v7 = vadd.f32 %v2285_v39, %v1996_v36  ;;  %v7393_v51 = vadd.f32 %v3166_v21, %v7303_v8  ;;  %v6252_v21 = vld [vmem:[#allocation7 + $0x314] sm:$0xf0] }
 0x67f   :  { %4274 = vmatpush.bf16.msra.mxu0 %v6319_v23 }
 0x680   :  { %v2454_v33 = vpack.c.bf16 %v2286_v7, %v2286_v7 }
 0x681   :  { %v7395_v10 = vld [vmem:[#allocation2 + $0x120] sm:$0xff] }
 0x682   :  { %2567 = vst.msk [vmem:[#allocation2 + $0x128] sm:$0xf] %vm2492_vm4, %v2454_v33  ;;  %5949 = vmatmul.msk.bf16.gmra.mxu0 %vm2702_vm5, %v7395_v10 }
 0x683   :  { %v2006_v6 = vpop.f32.mrf.mxu1 }
 0x685   :  { %v2287_v36 = vpop.f32.mrf.mxu2  ;;  %v3168_v8 = vpop.f32.mrf.mxu3 }
 0x686   :  { %v2288_v25 = vadd.f32 %v2287_v36, %v1998_v63  ;;  %2045 = vmatmul.bf16.gmra.mxu1 %v5403_v20  ;;  %v7401_v9 = vadd.f32 %v3168_v8, %v7307_v41  ;;  %v5410_v63 = vld [vmem:[#allocation7 + $0x300] sm:$0xf] }
 0x687   :  { %v5411_v41 = vor.u32 %v6250_v47, %v5410_v63  ;;  %v5426_v47 = vld [vmem:[#allocation7 + $0x320] sm:$0xf] }
 0x688   :  { %v2455_v56 = vpack.c.bf16 %v2288_v25, %v2288_v25 }
 0x68a   :  { %2568 = vst.msk [vmem:[#allocation2 + $0x12c] sm:$0xf] %vm2492_vm4, %v2455_v56  ;;  %5518 = vmatmul.msk.bf16.gmra.mxu2 %vm1630_vm3, %v5399_v54  ;;  %5749 = vmatmul.msk.bf16.gmra.mxu3 %vm2702_vm5, %v6306_v5  ;;  %v7429_v56 = vld [vmem:[#allocation2 + $0xa8] sm:$0xff] }
 0x68b   :  { %v2008_v52 = vpop.f32.mrf.mxu1 }
 0x68d   :  { %v2290_v22 = vpop.f32.mrf.mxu2  ;;  %v7406_v58 = vpop.f32.mrf.mxu3 }
 0x68e   :  { %v2291_v4 = vadd.f32 %v2290_v22, %v2001_v42 }
 0x690   :  { %v2456_v55 = vpack.c.bf16 %v2291_v4, %v2291_v4 }
 0x691   :  { %v7408_v49 = vld [vmem:[#allocation2 + $0x128] sm:$0xff] }
 0x692   :  { %2569 = vst.msk [vmem:[#allocation2 + $0x130] sm:$0xf] %vm2492_vm4, %v2456_v55  ;;  %5950 = vmatmul.msk.bf16.gmra.mxu0 %vm2702_vm5, %v7408_v49 }
 0x693   :  { %v2011_v44 = vpop.f32.mrf.mxu1 }
 0x695   :  { %v2292_v34 = vpop.f32.mrf.mxu2  ;;  %v7413_v11 = vpop.f32.mrf.mxu3 }
 0x696   :  { %v2293_v42 = vadd.f32 %v2292_v34, %v2003_v13  ;;  %2050 = vmatmul.bf16.gmra.mxu1 %v5411_v41  ;;  %v5418_v13 = vld [vmem:[#allocation7 + $0x310] sm:$0xf]  ;;  %v6251_v34 = vld [vmem:[#allocation7 + $0x314] sm:$0xf] }
 0x697   :  { %v5419_v33 = vor.u32 %v6252_v21, %v5418_v13 }
 0x698   :  { %v2457_v53 = vpack.c.bf16 %v2293_v42, %v2293_v42  ;;  %v5420_v42 = vld [vmem:[#allocation7 + $0x318] sm:$0xf0] }
 0x69a   :  { %2570 = vst.msk [vmem:[#allocation2 + $0x134] sm:$0xf] %vm2492_vm4, %v2457_v53  ;;  %5519 = vmatmul.msk.bf16.gmra.mxu2 %vm1630_vm3, %v5407_v32  ;;  %5750 = vmatmul.msk.bf16.gmra.mxu3 %vm2702_vm5, %v6307_v45  ;;  %v5423_v53 = vor.u32 %v6251_v34, %v5420_v42  ;;  %v5442_v34 = vld [vmem:[#allocation7 + $0x340] sm:$0xf]  ;;  %v6258_v42 = vld [vmem:[#allocation7 + $0x344] sm:$0xf0] }
 0x69b   :  { %v2013_v46 = vpop.f32.mrf.mxu1 }
 0x69d   :  { %v2295_v59 = vpop.f32.mrf.mxu2  ;;  %v3176_v39 = vpop.f32.mrf.mxu3 }
 0x69e   :  { %v2296_v23 = vadd.f32 %v2295_v59, %v2006_v6  ;;  %v7419_v7 = vadd.f32 %v3176_v39, %v7331_v3  ;;  %v5415_v3 = vor.u32 %v6249_v35, %v5412_v17 }
 0x6a0   :  { %v2458_v37 = vpack.c.bf16 %v2296_v23, %v2296_v23  ;;  %v7446_v23 = vld [vmem:[#allocation2 + $0xb0] sm:$0xff] }
 0x6a1   :  { %v7421_v57 = vld [vmem:[#allocation2 + $0x130] sm:$0xff] }
 0x6a2   :  { %2571 = vst.msk [vmem:[#allocation2 + $0x138] sm:$0xf] %vm2492_vm4, %v2458_v37  ;;  %5951 = vmatmul.msk.bf16.gmra.mxu0 %vm2702_vm5, %v7421_v57 }
 0x6a3   :  { %v2016_v20 = vpop.f32.mrf.mxu1 }
 0x6a5   :  { %v2297_v36 = vpop.f32.mrf.mxu2  ;;  %v3178_v25 = vpop.f32.mrf.mxu3 }
 0x6a6   :  { %v2298_v6 = vadd.f32 %v2297_v36, %v2008_v52  ;;  %2055 = vmatmul.bf16.gmra.mxu1 %v5419_v33  ;;  %v7427_v8 = vadd.f32 %v3178_v25, %v7336_v38  ;;  %v6254_v38 = vld [vmem:[#allocation7 + $0x324] sm:$0xf0]  ;;  %v5434_v33 = vld [vmem:[#allocation7 + $0x330] sm:$0xf]  ;;  %v6253_v25 = vld [vmem:[#allocation7 + $0x324] sm:$0xf] }
 0x6a7   :  { %v5427_v27 = vor.u32 %v6254_v38, %v5426_v47  ;;  %v7463_v47 = vld [vmem:[#allocation2 + $0xb8] sm:$0xff] }
 0x6a8   :  { %v2459_v54 = vpack.c.bf16 %v2298_v6, %v2298_v6 }
 0x6aa   :  { %2572 = vst.msk [vmem:[#allocation2 + $0x13c] sm:$0xf] %vm2492_vm4, %v2459_v54  ;;  %5520 = vmatmul.msk.bf16.gmra.mxu2 %vm1630_vm3, %v5415_v3  ;;  %5795 = vmatmul.msk.bf16.vlgmr.msrb.gmra.mxu3 %vm2702_vm5, %v7429_v56  ;;  %v5428_v3 = vld [vmem:[#allocation7 + $0x328] sm:$0xf0] }
 0x6ab   :  { %v2018_v5 = vpop.f32.mrf.mxu1 }
 0x6ad   :  { %v2300_v22 = vpop.f32.mrf.mxu2  ;;  %v3181_v52 = vpop.f32.mrf.mxu3 }
 0x6ae   :  { %v2301_v4 = vadd.f32 %v2300_v22, %v2011_v44  ;;  %v7436_v63 = vadd.f32 %v3181_v52, %v7343_v61 }
 0x6b0   :  { %v2460_v55 = vpack.c.bf16 %v2301_v4, %v2301_v4 }
 0x6b1   :  { %v7438_v41 = vld [vmem:[#allocation2 + $0x138] sm:$0xff] }
 0x6b2   :  { %2573 = vst.msk [vmem:[#allocation2 + $0x140] sm:$0xf] %vm2492_vm4, %v2460_v55  ;;  %5952 = vmatmul.msk.bf16.gmra.mxu0 %vm2702_vm5, %v7438_v41  ;;  %v6331_v55 = vld [vmem:[#allocation8 + $0xc8] sm:$0xff] }
 0x6b3   :  { %v2021_v12 = vpop.f32.mrf.mxu1  ;;  %3631 = vmatpush.bf16.msra.mxu3 %v6331_v55  ;;  %4401 = vmatpush.bf16.msrb.mxu2 %v6331_v55  ;;  %v6257_v55 = vld [vmem:[#allocation7 + $0x344] sm:$0xf] }
 0x6b5   :  { %v2302_v44 = vpop.f32.mrf.mxu2  ;;  %v3183_v32 = vpop.f32.mrf.mxu3 }
 0x6b6   :  { %v2303_v61 = vadd.f32 %v2302_v44, %v2013_v46  ;;  %2060 = vmatmul.bf16.gmra.mxu1 %v5427_v27  ;;  %v7444_v45 = vadd.f32 %v3183_v32, %v7351_v60  ;;  %v6256_v60 = vld [vmem:[#allocation7 + $0x334] sm:$0xf0]  ;;  %v5443_v32 = vor.u32 %v6258_v42, %v5442_v34 }
 0x6b7   :  { %v5435_v36 = vor.u32 %v6256_v60, %v5434_v33 }
 0x6b8   :  { %v2461_v59 = vpack.c.bf16 %v2303_v61, %v2303_v61 }
 0x6ba   :  { %2574 = vst.msk [vmem:[#allocation2 + $0x144] sm:$0xf] %vm2492_vm4, %v2461_v59  ;;  %5521 = vmatmul.msk.bf16.gmra.mxu2 %vm1630_vm3, %v5423_v53  ;;  %5796 = vmatmul.msk.bf16.gmra.mxu3 %vm2702_vm5, %v7446_v23  ;;  %v6255_v59 = vld [vmem:[#allocation7 + $0x334] sm:$0xf] }
 0x6bb   :  { %v2023_v39 = vpop.f32.mrf.mxu1 }
 0x6bd   :  { %v2305_v13 = vpop.f32.mrf.mxu2  ;;  %v3312_v46 = vpop.f32.mrf.mxu3 }
 0x6be   :  { %v2306_v21 = vadd.f32 %v2305_v13, %v2016_v20  ;;  %v7453_v37 = vadd.f32 %v3312_v46, %v7357_v43  ;;  %v5431_v43 = vor.u32 %v6253_v25, %v5428_v3  ;;  %v5436_v13 = vld [vmem:[#allocation7 + $0x338] sm:$0xf0] }
 0x6c0   :  { %v2462_v35 = vpack.c.bf16 %v2306_v21, %v2306_v21 }
 0x6c1   :  { %v7455_v17 = vld [vmem:[#allocation2 + $0x140] sm:$0xff] }
 0x6c2   :  { %2575 = vst.msk [vmem:[#allocation2 + $0x148] sm:$0xf] %vm2492_vm4, %v2462_v35  ;;  %5953 = vmatmul.msk.bf16.gmra.mxu0 %vm2702_vm5, %v7455_v17  ;;  %v7480_v35 = vld [vmem:[#allocation2 + $0xc0] sm:$0xff] }
 0x6c3   :  { %v2026_v6 = vpop.f32.mrf.mxu1 }
 0x6c5   :  { %v2307_v54 = vpop.f32.mrf.mxu2  ;;  %v3314_v22 = vpop.f32.mrf.mxu3 }
 0x6c6   :  { %v2308_v20 = vadd.f32 %v2307_v54, %v2018_v5  ;;  %2065 = vmatmul.bf16.gmra.mxu1 %v5435_v36  ;;  %v7461_v4 = vadd.f32 %v3314_v22, %v7361_v19 }
 0x6c8   :  { %v2463_v52 = vpack.c.bf16 %v2308_v20, %v2308_v20  ;;  %v5450_v20 = vld [vmem:[#allocation7 + $0x350] sm:$0xf] }
 0x6ca   :  { %2576 = vst.msk [vmem:[#allocation2 + $0x14c] sm:$0xf] %vm2492_vm4, %v2463_v52  ;;  %5522 = vmatmul.msk.bf16.gmra.mxu2 %vm1630_vm3, %v5431_v43  ;;  %5797 = vmatmul.msk.bf16.gmra.mxu3 %vm2702_vm5, %v7463_v47 }
 0x6cb   :  { %v2028_v38 = vpop.f32.mrf.mxu1 }
 0x6cd   :  { %v2310_v27 = vpop.f32.mrf.mxu2  ;;  %v3317_v0 = vpop.f32.mrf.mxu3 }
 0x6ce   :  { %v2311_v5 = vadd.f32 %v2310_v27, %v2021_v12  ;;  %v7470_v19 = vadd.f32 %v3317_v0, %v7367_v28  ;;  %v5439_v28 = vor.u32 %v6255_v59, %v5436_v13  ;;  %v5444_v27 = vld [vmem:[#allocation7 + $0x348] sm:$0xf0] }
 0x6cf   :  { %v5447_v34 = vor.u32 %v6257_v55, %v5444_v27 }
 0x6d0   :  { %v2464_v44 = vpack.c.bf16 %v2311_v5, %v2311_v5 }
 0x6d1   :  { %v7472_v61 = vld [vmem:[#allocation2 + $0x148] sm:$0xff] }
 0x6d2   :  { %2577 = vst.msk [vmem:[#allocation2 + $0x150] sm:$0xf] %vm2492_vm4, %v2464_v44  ;;  %5954 = vmatmul.msk.bf16.gmra.mxu0 %vm2702_vm5, %v7472_v61  ;;  %v7495_v44 = vld [vmem:[#allocation2 + $0xc8] sm:$0xff] }
 0x6d3   :  { %v2031_v53 = vpop.f32.mrf.mxu1 }
 0x6d5   :  { %v2312_v21 = vpop.f32.mrf.mxu2  ;;  %v3319_v46 = vpop.f32.mrf.mxu3 }
 0x6d6   :  { %v2313_v12 = vadd.f32 %v2312_v21, %v2023_v39  ;;  %2070 = vmatmul.bf16.gmra.mxu1 %v5443_v32  ;;  %v7478_v33 = vadd.f32 %v3319_v46, %v7371_v24  ;;  %v6260_v24 = vld [vmem:[#allocation7 + $0x354] sm:$0xf0]  ;;  %v6330_v32 = vld [vmem:[#allocation8 + $0xc0] sm:$0xff] }
 0x6d7   :  { %v5451_v43 = vor.u32 %v6260_v24, %v5450_v20  ;;  %3632 = vmatpush.bf16.msra.mxu3 %v6330_v32  ;;  %4402 = vmatpush.bf16.msrb.mxu2 %v6330_v32  ;;  %v5458_v21 = vld [vmem:[#allocation7 + $0x360] sm:$0xf]  ;;  %v5460_v32 = vld [vmem:[#allocation7 + $0x368] sm:$0xf0] }
 0x6d8   :  { %v2465_v60 = vpack.c.bf16 %v2313_v12, %v2313_v12  ;;  %v6262_v12 = vld [vmem:[#allocation7 + $0x364] sm:$0xf0] }
 0x6da   :  { %2578 = vst.msk [vmem:[#allocation2 + $0x154] sm:$0xf] %vm2492_vm4, %v2465_v60  ;;  %5523 = vmatmul.msk.bf16.gmra.mxu2 %vm1630_vm3, %v5439_v28  ;;  %5798 = vmatmul.msk.bf16.gmra.mxu3 %vm2702_vm5, %v7480_v35  ;;  %v5459_v28 = vor.u32 %v6262_v12, %v5458_v21 }
 0x6db   :  { %v2033_v36 = vpop.f32.mrf.mxu1 }
 0x6dd   :  { %v2315_v25 = vpop.f32.mrf.mxu2  ;;  %v3322_v39 = vpop.f32.mrf.mxu3 }
 0x6de   :  { %v2316_v3 = vadd.f32 %v2315_v25, %v2026_v6  ;;  %v7487_v54 = vadd.f32 %v3322_v39, %v7377_v2  ;;  %v6259_v25 = vld [vmem:[#allocation7 + $0x354] sm:$0xf] }
 0x6e0   :  { %v2466_v22 = vpack.c.bf16 %v2316_v3, %v2316_v3  ;;  %v5452_v3 = vld [vmem:[#allocation7 + $0x358] sm:$0xf0] }
 0x6e1   :  { %v5455_v24 = vor.u32 %v6259_v25, %v5452_v3 }
 0x6e2   :  { %2579 = vst.msk [vmem:[#allocation2 + $0x158] sm:$0xf] %vm2492_vm4, %v2466_v22  ;;  %5962 = vmatmul.msk.bf16.vlgmr.msrb.gmra.mxu0 %vm2702_vm5, %v7246_v31 }
 0x6e3   :  { %v2036_v52 = vpop.f32.mrf.mxu1 }
 0x6e5   :  { %v2317_v5 = vpop.f32.mrf.mxu2  ;;  %v3324_v6 = vpop.f32.mrf.mxu3 }
 0x6e6   :  { %v2318_v0 = vadd.f32 %v2317_v5, %v2028_v38  ;;  %2075 = vmatmul.bf16.gmra.mxu1 %v5451_v43  ;;  %v7493_v2 = vadd.f32 %v3324_v6, %v7386_v50  ;;  %v7510_v43 = vld [vmem:[#allocation2 + $0xd0] sm:$0xff]  ;;  %v5466_v5 = vld [vmem:[#allocation7 + $0x370] sm:$0xf] }
 0x6e8   :  { %v2467_v42 = vpack.c.bf16 %v2318_v0, %v2318_v0  ;;  %v6264_v0 = vld [vmem:[#allocation7 + $0x374] sm:$0xf0] }
 0x6ea   :  { %2580 = vst.msk [vmem:[#allocation2 + $0x15c] sm:$0xf] %vm2492_vm4, %v2467_v42  ;;  %5524 = vmatmul.msk.bf16.gmra.mxu2 %vm1630_vm3, %v5447_v34  ;;  %5799 = vmatmul.msk.bf16.gmra.mxu3 %vm2702_vm5, %v7495_v44  ;;  %v6261_v42 = vld [vmem:[#allocation7 + $0x364] sm:$0xf] }
 0x6eb   :  { %v2038_v59 = vpop.f32.mrf.mxu1  ;;  %v5463_v21 = vor.u32 %v6261_v42, %v5460_v32  ;;  %v6323_v42 = vld [vmem:[#allocation2 + $0xe0] sm:$0xff] }
 0x6ed   :  { %v2320_v31 = vpop.f32.mrf.mxu2  ;;  %v3327_v13 = vpop.f32.mrf.mxu3 }
 0x6ee   :  { %v2321_v38 = vadd.f32 %v2320_v31, %v2031_v53  ;;  %v7502_v50 = vadd.f32 %v3327_v13, %v7393_v51  ;;  %v6344_v31 = vld [vmem:[#allocation8 + $0xf8] sm:$0xff] }
 0x6ef   :  { %3790 = vmatpush.bf16.msrb.mxu3 %v6344_v31 }
 0x6f0   :  { %v2468_v46 = vpack.c.bf16 %v2321_v38, %v2321_v38 }
 0x6f2   :  { %2581 = vst.msk [vmem:[#allocation2 + $0x160] sm:$0xf] %vm2492_vm4, %v2468_v46  ;;  %5963 = vmatmul.msk.bf16.gmra.mxu0 %vm2702_vm5, %v7257_v15  ;;  %v7523_v46 = vpop.f32.mrf.mxu0 }
 0x6f3   :  { %v2041_v60 = vpop.f32.mrf.mxu1 }
 0x6f5   :  { %v2322_v39 = vpop.f32.mrf.mxu2  ;;  %v3329_v53 = vpop.f32.mrf.mxu3 }
 0x6f6   :  { %v2323_v20 = vadd.f32 %v2322_v39, %v2033_v36  ;;  %2080 = vmatmul.bf16.gmra.mxu1 %v5459_v28  ;;  %v7508_v51 = vadd.f32 %v3329_v53, %v7401_v9  ;;  %v5467_v9 = vor.u32 %v6264_v0, %v5466_v5  ;;  %v7525_v28 = vld [vmem:[#allocation2 + $0xd8] sm:$0xff] }
 0x6f8   :  { %v2469_v22 = vpack.c.bf16 %v2323_v20, %v2323_v20 }
 0x6fa   :  { %2582 = vst.msk [vmem:[#allocation2 + $0x164] sm:$0xf] %vm2492_vm4, %v2469_v22  ;;  %5525 = vmatmul.msk.bf16.gmra.mxu2 %vm1630_vm3, %v5455_v24  ;;  %5800 = vmatmul.msk.bf16.gmra.mxu3 %vm2702_vm5, %v7510_v43  ;;  %v7535_v53 = vpop.f32.mrf.mxu0  ;;  %v6263_v22 = vld [vmem:[#allocation7 + $0x374] sm:$0xf] }
 0x6fb   :  { %v2043_v55 = vpop.f32.mrf.mxu1 }
 0x6fd   :  { %v2325_v15 = vpop.f32.mrf.mxu2  ;;  %v7516_v36 = vpop.f32.mrf.mxu3 }
 0x6fe   :  { %v2326_v27 = vadd.f32 %v2325_v15, %v2036_v52  ;;  %v5468_v15 = vld [vmem:[#allocation7 + $0x378] sm:$0xf0] }
 0x700   :  { %v2470_v6 = vpack.c.bf16 %v2326_v27, %v2326_v27  ;;  %v6272_v27 = vld [vmem:[#allocation2 + $0x3c] sm:$0xff] }
 0x702   :  { %2583 = vst.msk [vmem:[#allocation2 + $0x168] sm:$0xf] %vm2492_vm4, %v2470_v6  ;;  %5964 = vmatmul.msk.bf16.gmra.mxu0 %vm2702_vm5, %v7270_v29  ;;  %v5471_v6 = vor.u32 %v6263_v22, %v5468_v15  ;;  %v7546_v32 = vpop.f32.mrf.mxu0  ;;  %v6324_v22 = vld [vmem:[#allocation2 + $0xe8] sm:$0xff] }
 0x703   :  { %v2046_v34 = vpop.f32.mrf.mxu1 }
 0x705   :  { %v2327_v38 = vpop.f32.mrf.mxu2  ;;  %v7521_v52 = vpop.f32.mrf.mxu3 }
 0x706   :  { %v2328_v13 = vadd.f32 %v2327_v38, %v2038_v59  ;;  %2085 = vmatmul.bf16.gmra.mxu1 %v5467_v9 }
 0x708   :  { %v2471_v12 = vpack.c.bf16 %v2328_v13, %v2328_v13 }
 0x70a   :  { %2584 = vst.msk [vmem:[#allocation2 + $0x16c] sm:$0xf] %vm2492_vm4, %v2471_v12  ;;  %5526 = vmatmul.msk.bf16.gmra.mxu2 %vm1630_vm3, %v5463_v21  ;;  %5801 = vmatmul.msk.bf16.gmra.mxu3 %vm2702_vm5, %v7525_v28 }
 0x70b   :  { %v2048_v29 = vpop.f32.mrf.mxu1 }
 0x70d   :  { %v2330_v25 = vpop.f32.mrf.mxu2  ;;  %v3337_v59 = vpop.f32.mrf.mxu3 }
 0x70e   :  { %v2331_v3 = vadd.f32 %v2330_v25, %v2041_v60  ;;  %v7532_v39 = vadd.f32 %v3337_v59, %v7419_v7 }
 0x710   :  { %v2472_v20 = vpack.c.bf16 %v2331_v3, %v2331_v3 }
 0x712   :  { %2585 = vst.msk [vmem:[#allocation2 + $0x170] sm:$0xf] %vm2492_vm4, %v2472_v20  ;;  %5965 = vmatmul.msk.bf16.gmra.mxu0 %vm2702_vm5, %v7283_v16 }
 0x713   :  { %v2051_v24 = vpop.f32.mrf.mxu1 }
 0x715   :  { %v2332_v5 = vpop.f32.mrf.mxu2  ;;  %v3339_v60 = vpop.f32.mrf.mxu3 }
 0x716   :  { %v2333_v0 = vadd.f32 %v2332_v5, %v2043_v55  ;;  %5560 = vmatmul.msk.bf16.vlgmr.msrb.gmra.mxu1 %vm2702_vm5, %v6272_v27  ;;  %v7541_v7 = vadd.f32 %v3339_v60, %v7427_v8 }
 0x717   :  { %4527 = vmatpush.bf16.msrb.mxu1 %v6344_v31  ;;  %v6343_v31 = vld [vmem:[#allocation8 + $0xf0] sm:$0xff] }
 0x718   :  { %v2473_v9 = vpack.c.bf16 %v2333_v0, %v2333_v0  ;;  %3791 = vmatpush.bf16.msrb.mxu3 %v6343_v31 }
 0x71a   :  { %2586 = vst.msk [vmem:[#allocation2 + $0x174] sm:$0xf] %vm2492_vm4, %v2473_v9  ;;  %5527 = vmatmul.msk.bf16.gmra.mxu2 %vm1630_vm3, %v5471_v6  ;;  %5846 = vmatmul.msk.bf16.vlgmr.msra.gmra.mxu3 %vm2702_vm5, %v6323_v42 }
 0x71b   :  { %v2053_v16 = vpop.f32.mrf.mxu1  ;;  %4528 = vmatpush.bf16.msrb.mxu1 %v6343_v31 }
 0x71d   :  { %v2335_v55 = vpop.f32.mrf.mxu2  ;;  %v3342_v13 = vpop.f32.mrf.mxu3 }
 0x71e   :  { %v2336_v38 = vadd.f32 %v2335_v55, %v2046_v34  ;;  %v7549_v21 = vadd.f32 %v3342_v13, %v7436_v63  ;;  %v7555_v34 = vpop.f32.mrf.mxu0 }
 0x720   :  { %v2474_v8 = vpack.c.bf16 %v2336_v38, %v2336_v38 }
 0x722   :  { %2587 = vst.msk [vmem:[#allocation2 + $0x178] sm:$0xf] %vm2492_vm4, %v2474_v8  ;;  %5966 = vmatmul.msk.bf16.gmra.mxu0 %vm2702_vm5, %v7296_v1 }
 0x723   :  { %v2056_v12 = vpop.f32.mrf.mxu1 }
 0x725   :  { %v2337_v25 = vpop.f32.mrf.mxu2  ;;  %v3344_v59 = vpop.f32.mrf.mxu3 }
 0x726   :  { %v2338_v3 = vadd.f32 %v2337_v25, %v2048_v29  ;;  %5976 = vmatmul.msk.bf16.vlgmr.msra.gmra.mxu1 %vm2702_vm5, %v6323_v42  ;;  %v7558_v63 = vadd.f32 %v3344_v59, %v7444_v45  ;;  %v7567_v60 = vpop.f32.mrf.mxu0 }
 0x728   :  { %v2475_v20 = vpack.c.bf16 %v2338_v3, %v2338_v3 }
 0x72a   :  { %2588 = vst.msk [vmem:[#allocation2 + $0x17c] sm:$0xf] %vm2492_vm4, %v2475_v20  ;;  %5969 = vmatmul.msk.bf16.vlgmr.msra.gmra.mxu2 %vm2702_vm5, %v7429_v56  ;;  %5847 = vmatmul.msk.bf16.gmra.mxu3 %vm2702_vm5, %v6324_v22 }
 0x72b   :  { %v2058_v1 = vpop.f32.mrf.mxu1 }
 0x72d   :  { %v2340_v15 = vpop.f32.mrf.mxu2  ;;  %v3473_v27 = vpop.f32.mrf.mxu3 }
 0x72e   :  { %v2341_v29 = vadd.f32 %v2340_v15, %v2051_v24  ;;  %v7565_v5 = vadd.f32 %v3473_v27, %v7453_v37  ;;  %v6325_v37 = vld [vmem:[#allocation2 + $0xf0] sm:$0xff]  ;;  %v7579_v55 = vpop.f32.mrf.mxu0 }
 0x730   :  { %v2476_v0 = vpack.c.bf16 %v2341_v29, %v2341_v29 }
 0x732   :  { %2589 = vst.msk [vmem:[#allocation2 + $0x180] sm:$0xf] %vm2492_vm4, %v2476_v0  ;;  %5967 = vmatmul.msk.bf16.gmra.mxu0 %vm2702_vm5, %v7309_v26  ;;  %v6342_v26 = vld [vmem:[#allocation8 + $0xe8] sm:$0xff] }
 0x733   :  { %v2061_v45 = vpop.f32.mrf.mxu1  ;;  %3792 = vmatpush.bf16.msrb.mxu3 %v6342_v26  ;;  %4529 = vmatpush.bf16.msrb.mxu1 %v6342_v26  ;;  %v6341_v26 = vld [vmem:[#allocation8 + $0xe0] sm:$0xff] }
 0x735   :  { %v2342_v6 = vpop.f32.mrf.mxu2  ;;  %v3475_v9 = vpop.f32.mrf.mxu3 }
 0x736   :  { %v2343_v56 = vadd.f32 %v2342_v6, %v2053_v16  ;;  %5977 = vmatmul.msk.bf16.gmra.mxu1 %vm2702_vm5, %v6324_v22  ;;  %v7574_v24 = vadd.f32 %v3475_v9, %v7461_v4 }
 0x737   :  { %3793 = vmatpush.bf16.msrb.mxu3 %v6341_v26  ;;  %4530 = vmatpush.bf16.msrb.mxu1 %v6341_v26 }
 0x738   :  { %v2477_v42 = vpack.c.bf16 %v2343_v56, %v2343_v56 }
 0x73a   :  { %2590 = vst.msk [vmem:[#allocation2 + $0x184] sm:$0xf] %vm2492_vm4, %v2477_v42  ;;  %5970 = vmatmul.msk.bf16.gmra.mxu2 %vm2702_vm5, %v7446_v23  ;;  %5848 = vmatmul.msk.bf16.gmra.mxu3 %vm2702_vm5, %v6325_v37  ;;  %v7588_v23 = vpop.f32.mrf.mxu0 }
 0x73b   :  { %v2063_v38 = vpop.f32.mrf.mxu1 }
 0x73d   :  { %v2345_v16 = vpop.f32.mrf.mxu2  ;;  %v3478_v8 = vpop.f32.mrf.mxu3 }
 0x73e   :  { %v2346_v13 = vadd.f32 %v2345_v16, %v2056_v12  ;;  %v7583_v4 = vadd.f32 %v3478_v8, %v7470_v19  ;;  %v6326_v19 = vld [vmem:[#allocation2 + $0xf8] sm:$0xff] }
 0x740   :  { %v2478_v31 = vpack.c.bf16 %v2346_v13, %v2346_v13 }
 0x742   :  { %2591 = vst.msk [vmem:[#allocation2 + $0x188] sm:$0xf] %vm2492_vm4, %v2478_v31  ;;  %5968 = vmatmul.msk.bf16.gmra.mxu0 %vm2702_vm5, %v7323_v62 }
 0x743   :  { %v2066_v25 = vpop.f32.mrf.mxu1 }
 0x745   :  { %v2347_v3 = vpop.f32.mrf.mxu2  ;;  %v3480_v20 = vpop.f32.mrf.mxu3 }
 0x746   :  { %v2348_v59 = vadd.f32 %v2347_v3, %v2058_v1  ;;  %5978 = vmatmul.msk.bf16.gmra.mxu1 %vm2702_vm5, %v6325_v37  ;;  %v7592_v12 = vadd.f32 %v3480_v20, %v7478_v33  ;;  %v7598_v1 = vpop.f32.mrf.mxu0  ;;  %v6451_v3 = vld [vmem:[#allocation8 + $0x30] sm:$0xff] }
 0x748   :  { %v2479_v22 = vpack.c.bf16 %v2348_v59, %v2348_v59 }
 0x74a   :  { %2592 = vst.msk [vmem:[#allocation2 + $0x18c] sm:$0xf] %vm2492_vm4, %v2479_v22  ;;  %5971 = vmatmul.msk.bf16.gmra.mxu2 %vm2702_vm5, %v7463_v47  ;;  %5849 = vmatmul.msk.bf16.gmra.mxu3 %vm2702_vm5, %v6326_v19  ;;  %v6452_v22 = vld [vmem:[#allocation8 + $0x28] sm:$0xff] }
 0x74b   :  { %v2068_v15 = vpop.f32.mrf.mxu1 }
 0x74d   :  { %v2350_v62 = vpop.f32.mrf.mxu2  ;;  %v3483_v27 = vpop.f32.mrf.mxu3 }
 0x74e   :  { %v2351_v29 = vadd.f32 %v2350_v62, %v2061_v45  ;;  %v7601_v0 = vadd.f32 %v3483_v27, %v7487_v54  ;;  %v7610_v37 = vpop.f32.mrf.mxu0  ;;  %v6327_v54 = vld [vmem:[#allocation2 + $0x100] sm:$0xff]  ;;  %v6453_v27 = vld [vmem:[#allocation8 + $0x20] sm:$0xff] }
 0x750   :  { %v2480_v33 = vpack.c.bf16 %v2351_v29, %v2351_v29  ;;  %v6328_v29 = vld [vmem:[#allocation2 + $0x108] sm:$0xff] }
 0x752   :  { %2593 = vst.msk [vmem:[#allocation2 + $0x190] sm:$0xf] %vm2492_vm4, %v2480_v33  ;;  %5990 = vmatmul.msk.bf16.vlgmr.msra.gmra.mxu0 %vm2702_vm5, %v7379_v18 }
 0x753   :  { %v2071_v6 = vpop.f32.mrf.mxu1 }
 0x755   :  { %v2352_v56 = vpop.f32.mrf.mxu2  ;;  %v3485_v9 = vpop.f32.mrf.mxu3 }
 0x756   :  { %v2353_v47 = vadd.f32 %v2352_v56, %v2063_v38  ;;  %5979 = vmatmul.msk.bf16.gmra.mxu1 %vm2702_vm5, %v6326_v19  ;;  %v7608_v45 = vadd.f32 %v3485_v9, %v7493_v2  ;;  %v6450_v38 = vld [vmem:[#allocation8 + $0x38] sm:$0xff] }
 0x757   :  { %4009 = vmatpush.bf16.msra.mxu3 %v6450_v38  ;;  %v6329_v38 = vld [vmem:[#allocation2 + $0x110] sm:$0xff] }
 0x758   :  { %v2481_v42 = vpack.c.bf16 %v2353_v47, %v2353_v47 }
 0x75a   :  { %2594 = vst.msk [vmem:[#allocation2 + $0x194] sm:$0xf] %vm2492_vm4, %v2481_v42  ;;  %5972 = vmatmul.msk.bf16.gmra.mxu2 %vm2702_vm5, %v7480_v35  ;;  %5850 = vmatmul.msk.bf16.gmra.mxu3 %vm2702_vm5, %v6327_v54  ;;  %v7620_v35 = vpop.f32.mrf.mxu0 }
 0x75b   :  { %v2073_v16 = vpop.f32.mrf.mxu1  ;;  %4010 = vmatpush.bf16.msra.mxu3 %v6451_v3 }
 0x75d   :  { %v2355_v18 = vpop.f32.mrf.mxu2  ;;  %v3488_v13 = vpop.f32.mrf.mxu3 }
 0x75e   :  { %v2356_v2 = vadd.f32 %v2355_v18, %v2066_v25  ;;  %v7617_v8 = vadd.f32 %v3488_v13, %v7502_v50 }
 0x75f   :  { %4011 = vmatpush.bf16.msra.mxu3 %v6452_v22 }
 0x760   :  { %v2482_v31 = vpack.c.bf16 %v2356_v2, %v2356_v2 }
 0x762   :  { %2595 = vst.msk [vmem:[#allocation2 + $0x198] sm:$0xf] %vm2492_vm4, %v2482_v31  ;;  %5991 = vmatmul.msk.bf16.gmra.mxu0 %vm2702_vm5, %v7395_v10  ;;  %v7632_v33 = vpop.f32.mrf.mxu0 }
 0x763   :  { %v2076_v59 = vpop.f32.mrf.mxu1  ;;  %4012 = vmatpush.bf16.msra.mxu3 %v6453_v27 }
 0x765   :  { %v2357_v20 = vpop.f32.mrf.mxu2  ;;  %v3490_v25 = vpop.f32.mrf.mxu3 }
 0x766   :  { %v2358_v19 = vadd.f32 %v2357_v20, %v2068_v15  ;;  %5980 = vmatmul.msk.bf16.gmra.mxu1 %vm2702_vm5, %v6327_v54  ;;  %v7626_v50 = vadd.f32 %v3490_v25, %v7508_v51 }
 0x768   :  { %v2483_v62 = vpack.c.bf16 %v2358_v19, %v2358_v19 }
 0x76a   :  { %2596 = vst.msk [vmem:[#allocation2 + $0x19c] sm:$0xf] %vm2492_vm4, %v2483_v62  ;;  %5973 = vmatmul.msk.bf16.gmra.mxu2 %vm2702_vm5, %v7495_v44  ;;  %5851 = vmatmul.msk.bf16.gmra.mxu3 %vm2702_vm5, %v6328_v29  ;;  %v7642_v26 = vpop.f32.mrf.mxu0 }
 0x76b   :  { %v2078_v10 = vpop.f32.mrf.mxu1 }
 0x76d   :  { %v2360_v15 = vpop.f32.mrf.mxu2  ;;  %v7634_v47 = vpop.f32.mrf.mxu3 }
 0x76e   :  { %v2361_v56 = vadd.f32 %v2360_v15, %v2071_v6 }
 0x770   :  { %v2484_v51 = vpack.c.bf16 %v2361_v56, %v2361_v56 }
 0x772   :  { %2597 = vst.msk [vmem:[#allocation2 + $0x1a0] sm:$0xf] %vm2492_vm4, %v2484_v51  ;;  %5992 = vmatmul.msk.bf16.gmra.mxu0 %vm2702_vm5, %v7408_v49  ;;  %v7651_v3 = vpop.f32.mrf.mxu0  ;;  %v6455_v51 = vld [vmem:[#allocation8 + $0x90] sm:$0xff] }
 0x773   :  { %v2081_v9 = vpop.f32.mrf.mxu1 }
 0x775   :  { %v2362_v42 = vpop.f32.mrf.mxu2  ;;  %v7640_v44 = vpop.f32.mrf.mxu3 }
 0x776   :  { %v2363_v54 = vadd.f32 %v2362_v42, %v2073_v16  ;;  %5981 = vmatmul.msk.bf16.gmra.mxu1 %vm2702_vm5, %v6328_v29 }
 0x778   :  { %v2485_v18 = vpack.c.bf16 %v2363_v54, %v2363_v54  ;;  %v6456_v54 = vld [vmem:[#allocation8 + $0x88] sm:$0xff] }
 0x77a   :  { %2598 = vst.msk [vmem:[#allocation2 + $0x1a4] sm:$0xf] %vm2492_vm4, %v2485_v18  ;;  %5974 = vmatmul.msk.bf16.gmra.mxu2 %vm2702_vm5, %v7510_v43  ;;  %5852 = vmatmul.msk.bf16.gmra.mxu3 %vm2702_vm5, %v6329_v38  ;;  %v7665_v62 = vpop.f32.mrf.mxu0 }
 0x77b   :  { %v2083_v6 = vpop.f32.mrf.mxu1 }
 0x77d   :  { %v2365_v2 = vpop.f32.mrf.mxu2  ;;  %v3498_v13 = vpop.f32.mrf.mxu3 }
 0x77e   :  { %v2366_v49 = vadd.f32 %v2365_v2, %v2076_v59  ;;  %v7649_v16 = vadd.f32 %v3498_v13, %v7532_v39  ;;  %v7660_v39 = vld [vmem:[#allocation2 + $0xfc] sm:$0xff] }
 0x780   :  { %v2486_v31 = vpack.c.bf16 %v2366_v49, %v2366_v49 }
 0x782   :  { %2599 = vst.msk [vmem:[#allocation2 + $0x1a8] sm:$0xf] %vm2492_vm4, %v2486_v31  ;;  %5993 = vmatmul.msk.bf16.gmra.mxu0 %vm2702_vm5, %v7421_v57  ;;  %v6454_v57 = vld [vmem:[#allocation8 + $0x98] sm:$0xff]  ;;  %v7676_v18 = vpop.f32.mrf.mxu0 }
 0x783   :  { %v2086_v20 = vpop.f32.mrf.mxu1 }
 0x785   :  { %v2367_v22 = vpop.f32.mrf.mxu2  ;;  %v3500_v19 = vpop.f32.mrf.mxu3 }
 0x786   :  { %v2368_v43 = vadd.f32 %v2367_v22, %v2078_v10  ;;  %5982 = vmatmul.msk.bf16.gmra.mxu1 %vm2702_vm5, %v6329_v38  ;;  %v7658_v59 = vadd.f32 %v3500_v19, %v7541_v7  ;;  %v6457_v22 = vld [vmem:[#allocation8 + $0x80] sm:$0xff] }
 0x788   :  { %v2487_v25 = vpack.c.bf16 %v2368_v43, %v2368_v43 }
 0x78a   :  { %2600 = vst.msk [vmem:[#allocation2 + $0x1ac] sm:$0xf] %vm2492_vm4, %v2487_v25  ;;  %5975 = vmatmul.msk.bf16.gmra.mxu2 %vm2702_vm5, %v7525_v28  ;;  %5897 = vmatmul.msk.bf16.vlgmr.msrb.gmra.mxu3 %vm2702_vm5, %v7660_v39  ;;  %v7690_v19 = vpop.f32.mrf.mxu0 }
 0x78b   :  { %v2088_v29 = vpop.f32.mrf.mxu1  ;;  %4213 = vmatpush.bf16.msrb.mxu3 %v6454_v57 }
 0x78d   :  { %v2370_v27 = vpop.f32.mrf.mxu2  ;;  %v3503_v7 = vpop.f32.mrf.mxu3 }
 0x78e   :  { %v2371_v10 = vadd.f32 %v2370_v27, %v2081_v9  ;;  %v7670_v15 = vadd.f32 %v3503_v7, %v7549_v21  ;;  %v7703_v7 = vld [vmem:[#allocation2 + $0x10c] sm:$0xff] }
 0x78f   :  { %4214 = vmatpush.bf16.msrb.mxu3 %v6455_v51  ;;  %v7718_v51 = vld [vmem:[#allocation2 + $0x114] sm:$0xff] }
 0x790   :  { %v2488_v56 = vpack.c.bf16 %v2371_v10, %v2371_v10 }
 0x792   :  { %2601 = vst.msk [vmem:[#allocation2 + $0x1b0] sm:$0xf] %vm2492_vm4, %v2488_v56  ;;  %5994 = vmatmul.msk.bf16.gmra.mxu0 %vm2702_vm5, %v7438_v41  ;;  %v7683_v41 = vld [vmem:[#allocation2 + $0x104] sm:$0xff] }
 0x793   :  { %v2753_v28 = vpop.f32.mrf.mxu1  ;;  %4215 = vmatpush.bf16.msrb.mxu3 %v6456_v54 }
 0x794   :  { %v2864_v42 = vadd.f32 %v7233_v48, %v2753_v28 }
 0x795   :  { %v2372_v9 = vpop.f32.mrf.mxu2  ;;  %v3505_v2 = vpop.f32.mrf.mxu3 }
 0x796   :  { %v3033_v38 = vadd.f32 %v7315_v14, %v2864_v42  ;;  %v2373_v21 = vadd.f32 %v2372_v9, %v2083_v6  ;;  %v7680_v49 = vadd.f32 %v3505_v2, %v7558_v63  ;;  %v7728_v9 = vld [vmem:[#allocation2 + $0x11c] sm:$0xff] }
 0x797   :  { %4216 = vmatpush.bf16.msrb.mxu3 %v6457_v22 }
 0x798   :  { %v3194_v13 = vadd.f32 %v7406_v58, %v3033_v38  ;;  %v2489_v31 = vpack.c.bf16 %v2373_v21, %v2373_v21 }
 0x79a   :  { %2602 = vst.msk [vmem:[#allocation2 + $0x1b4] sm:$0xf] %vm2492_vm4, %v2489_v31  ;;  %v3355_v48 = vadd.f32 %v7516_v36, %v3194_v13  ;;  %5898 = vmatmul.msk.bf16.gmra.mxu3 %vm2702_vm5, %v7683_v41 }
 0x79b   :  { %v2755_v38 = vpop.f32.mrf.mxu1 }
 0x79c   :  { %v3516_v14 = vadd.f32 %v7634_v47, %v3355_v48  ;;  %v2866_v21 = vadd.f32 %v7236_v30, %v2755_v38  ;;  %v6359_v38 = vld [vmem:[#allocation2 + $0x168] sm:$0xff] }
 0x79d   :  { %v2375_v6 = vpop.f32.mrf.mxu2  ;;  %v3634_v63 = vpop.f32.mrf.mxu3 }
 0x79e   :  { %v2376_v43 = vadd.f32 %v2375_v6, %v2086_v20  ;;  %v7693_v58 = vadd.f32 %v3634_v63, %v7565_v5  ;;  %v7701_v20 = vpop.f32.mrf.mxu0  ;;  %v3034_v13 = vadd.f32 %v7321_v40, %v2866_v21  ;;  %v7752_v40 = vld [vmem:[#allocation2 + $0x12c] sm:$0xff] }
 0x79f   :  { %v6363_v21 = vld [vmem:[#allocation2 + $0x16c] sm:$0xff] }
 0x7a0   :  { %v2490_v25 = vpack.c.bf16 %v2376_v43, %v2376_v43  ;;  %v3195_v31 = vadd.f32 %v7413_v11, %v3034_v13  ;;  %6060 = vmatmul.msk.bf16.vlgmr.msrb.gmra.mxu1 %vm2702_vm5, %v6363_v21  ;;  %v6467_v21 = vld [vmem:[#allocation2 + $0xb4] sm:$0xff] }
 0x7a2   :  { %2603 = vst.msk [vmem:[#allocation2 + $0x1b8] sm:$0xf] %vm2492_vm4, %v2490_v25  ;;  %5995 = vmatmul.msk.bf16.gmra.mxu0 %vm2702_vm5, %v7455_v17  ;;  %v3356_v6 = vadd.f32 %v7521_v52, %v3195_v31  ;;  %v6464_v31 = vld [vmem:[#allocation2 + $0x9c] sm:$0xff] }
 0x7a4   :  { %v3517_v30 = vadd.f32 %v7640_v44, %v3356_v6  ;;  %v6458_v44 = vld [vmem:[#allocation2 + $0x8c] sm:$0xff]  ;;  %v6364_v6 = vld [vmem:[#allocation2 + $0x174] sm:$0xff] }
 0x7a5   :  { %v2377_v36 = vpop.f32.mrf.mxu2  ;;  %v3636_v27 = vpop.f32.mrf.mxu3 }
 0x7a6   :  { %v2378_v57 = vadd.f32 %v2377_v36, %v2088_v29  ;;  %v7699_v10 = vadd.f32 %v3636_v27, %v7574_v24  ;;  %v7711_v17 = vpop.f32.mrf.mxu0  ;;  %v6459_v36 = vld [vmem:[#allocation8 + $0x118] sm:$0xff] }
 0x7a8   :  { %v2491_v47 = vpack.c.bf16 %v2378_v57, %v2378_v57 }
 0x7aa   :  { %2604 = vst.msk [vmem:[#allocation2 + $0x1bc] sm:$0xf] %vm2492_vm4, %v2491_v47  ;;  %5899 = vmatmul.msk.bf16.gmra.mxu3 %vm2702_vm5, %v7703_v7  ;;  %v6358_v47 = vld [vmem:[#allocation2 + $0x160] sm:$0xff] }
 0x7ad   :  { %v3639_v5 = vpop.f32.mrf.mxu3 }
 0x7ae   :  { %v7709_v56 = vadd.f32 %v3639_v5, %v7583_v4  ;;  %v6460_v5 = vld [vmem:[#allocation8 + $0x110] sm:$0xff] }
 0x7b0   :  { %6061 = vmatmul.msk.bf16.gmra.mxu1 %vm2702_vm5, %v6364_v6 }
 0x7b2   :  { %5996 = vmatmul.msk.bf16.gmra.mxu0 %vm2702_vm5, %v7472_v61 }
 0x7b5   :  { %v3641_v24 = vpop.f32.mrf.mxu3 }
 0x7b6   :  { %v7716_v29 = vadd.f32 %v3641_v24, %v7592_v12 }
 0x7ba   :  { %5900 = vmatmul.msk.bf16.gmra.mxu3 %vm2702_vm5, %v7718_v51 }
 0x7bd   :  { %v3644_v28 = vpop.f32.mrf.mxu3 }
 0x7be   :  { %v7723_v42 = vadd.f32 %v3644_v28, %v7601_v0  ;;  %v6462_v28 = vld [vmem:[#allocation8 + $0x100] sm:$0xff] }
 0x7c5   :  { %v3646_v4 = vpop.f32.mrf.mxu3 }
 0x7c6   :  { %v7726_v54 = vadd.f32 %v3646_v4, %v7608_v45  ;;  %v7740_v45 = vld [vmem:[#allocation2 + $0x124] sm:$0xff]  ;;  %v6463_v4 = vld [vmem:[#allocation2 + $0x94] sm:$0xff] }
 0x7ca   :  { %5901 = vmatmul.msk.bf16.gmra.mxu3 %vm2702_vm5, %v7728_v9 }
 0x7cd   :  { %v3649_v61 = vpop.f32.mrf.mxu3 }
 0x7ce   :  { %v7733_v12 = vadd.f32 %v3649_v61, %v7617_v8  ;;  %v6356_v8 = vld [vmem:[#allocation2 + $0x150] sm:$0xff] }
 0x7cf   :  { %6025 = vmatmul.msk.bf16.vlgmr.msrb.gmra.mxu2 %vm2702_vm5, %v6356_v8  ;;  %v6360_v8 = vld [vmem:[#allocation2 + $0x170] sm:$0xff] }
 0x7d5   :  { %v3651_v2 = vpop.f32.mrf.mxu3 }
 0x7d6   :  { %v7737_v0 = vadd.f32 %v3651_v2, %v7626_v50 }
 0x7da   :  { %5902 = vmatmul.msk.bf16.gmra.mxu3 %vm2702_vm5, %v7740_v45 }
 0x7dd   :  { %v3654_v22 = vpop.f32.mrf.mxu3 }
 0x7de   :  { %v7745_v48 = vadd.f32 %v3654_v22, %v3516_v14  ;;  %v6357_v14 = vld [vmem:[#allocation2 + $0x158] sm:$0xff] }
 0x7df   :  { %6026 = vmatmul.msk.bf16.gmra.mxu2 %vm2702_vm5, %v6357_v14 }
 0x7e5   :  { %v3656_v50 = vpop.f32.mrf.mxu3 }
 0x7e6   :  { %v7750_v43 = vadd.f32 %v3656_v50, %v3517_v30 }
 0x7ea   :  { %5903 = vmatmul.msk.bf16.gmra.mxu3 %vm2702_vm5, %v7752_v40 }
 0x7ed   :  { %v3659_v63 = vpop.f32.mrf.mxu3 }
 0x7ee   :  { %v7757_v11 = vadd.f32 %v3659_v63, %v7649_v16  ;;  %v6461_v16 = vld [vmem:[#allocation8 + $0x108] sm:$0xff]  ;;  %v6465_v63 = vld [vmem:[#allocation2 + $0xa4] sm:$0xff] }
 0x7ef   :  { %6027 = vmatmul.msk.bf16.gmra.mxu2 %vm2702_vm5, %v6358_v47 }
 0x7f5   :  { %v3661_v52 = vpop.f32.mrf.mxu3 }
 0x7f6   :  { %v7761_v25 = vadd.f32 %v3661_v52, %v7658_v59 }
 0x7fa   :  { %5955 = vmatmul.msk.bf16.vlgmr.msra.gmra.mxu3 %vm2702_vm5, %v6458_v44  ;;  %v6365_v44 = vld [vmem:[#allocation2 + $0x17c] sm:$0xff] }
 0x7fb   :  { %4655 = vmatpush.bf16.msra.mxu3 %v6459_v36  ;;  %6062 = vmatmul.msk.bf16.gmra.mxu1 %vm2702_vm5, %v6365_v44 }
 0x7fd   :  { %v3664_v57 = vpop.f32.mrf.mxu3 }
 0x7fe   :  { %v7765_v27 = vadd.f32 %v3664_v57, %v7670_v15 }
 0x7ff   :  { %4656 = vmatpush.bf16.msra.mxu3 %v6460_v5  ;;  %6028 = vmatmul.msk.bf16.gmra.mxu2 %vm2702_vm5, %v6359_v38 }
 0x803   :  { %4657 = vmatpush.bf16.msra.mxu3 %v6461_v16 }
 0x805   :  { %v3666_v24 = vpop.f32.mrf.mxu3 }
 0x806   :  { %v7769_v59 = vadd.f32 %v3666_v24, %v7680_v49  ;;  %v6362_v24 = vld [vmem:[#allocation2 + $0x180] sm:$0xff] }
 0x807   :  { %4658 = vmatpush.bf16.msra.mxu3 %v6462_v28  ;;  %v6366_v28 = vld [vmem:[#allocation2 + $0x184] sm:$0xff] }
 0x80a   :  { %5956 = vmatmul.msk.bf16.gmra.mxu3 %vm2702_vm5, %v6463_v4 }
 0x80b   :  { %6063 = vmatmul.msk.bf16.gmra.mxu1 %vm2702_vm5, %v6366_v28 }
 0x80d   :  { %v3795_v61 = vpop.f32.mrf.mxu3 }
 0x80e   :  { %v3830_v15 = vadd.f32 %v3795_v61, %v7693_v58  ;;  %v7780_v58 = vpop.f32.mrf.mxu2 }
 0x80f   :  { %6029 = vmatmul.msk.bf16.gmra.mxu2 %vm2702_vm5, %v6360_v8 }
 0x815   :  { %v3797_v2 = vpop.f32.mrf.mxu3 }
 0x816   :  { %v3831_v13 = vadd.f32 %v3797_v2, %v7699_v10  ;;  %v7784_v10 = vpop.f32.mrf.mxu2 }
 0x818   :  { %v7810_v8 = vadd.f32 %v7535_v53, %v3831_v13 }
 0x81a   :  { %5957 = vmatmul.msk.bf16.gmra.mxu3 %vm2702_vm5, %v6464_v31 }
 0x81d   :  { %v3800_v49 = vpop.f32.mrf.mxu3 }
 0x81e   :  { %v3832_v22 = vadd.f32 %v3800_v49, %v7709_v56  ;;  %v6361_v56 = vld [vmem:[#allocation2 + $0x178] sm:$0xff]  ;;  %v7790_v47 = vpop.f32.mrf.mxu2  ;;  %v6367_v49 = vld [vmem:[#allocation2 + $0x18c] sm:$0xff] }
 0x81f   :  { %6030 = vmatmul.msk.bf16.gmra.mxu2 %vm2702_vm5, %v6361_v56  ;;  %6064 = vmatmul.msk.bf16.gmra.mxu1 %vm2702_vm5, %v6367_v49  ;;  %v6368_v56 = vld [vmem:[#allocation2 + $0x194] sm:$0xff] }
 0x825   :  { %v3802_v30 = vpop.f32.mrf.mxu3 }
 0x826   :  { %v3833_v50 = vadd.f32 %v3802_v30, %v7716_v29  ;;  %v6466_v29 = vld [vmem:[#allocation2 + $0xac] sm:$0xff]  ;;  %v7822_v30 = vadd.f32 %v7546_v32, %v3832_v22 }
 0x82a   :  { %5958 = vmatmul.msk.bf16.gmra.mxu3 %vm2702_vm5, %v6465_v63 }
 0x82d   :  { %v3805_v14 = vpop.f32.mrf.mxu3 }
 0x82e   :  { %v3834_v52 = vadd.f32 %v3805_v14, %v7723_v42  ;;  %v7794_v42 = vpop.f32.mrf.mxu2 }
 0x82f   :  { %6031 = vmatmul.msk.bf16.gmra.mxu2 %vm2702_vm5, %v6362_v24 }
 0x835   :  { %v3807_v36 = vpop.f32.mrf.mxu3 }
 0x836   :  { %v3835_v57 = vadd.f32 %v3807_v36, %v7726_v54  ;;  %v7800_v54 = vadd.f32 %v7523_v46, %v3830_v15 }
 0x83a   :  { %5959 = vmatmul.msk.bf16.gmra.mxu3 %vm2702_vm5, %v6466_v29  ;;  %v7846_v29 = vadd.f32 %v7567_v60, %v3834_v52 }
 0x83d   :  { %v3810_v5 = vpop.f32.mrf.mxu3 }
 0x83e   :  { %v3836_v16 = vadd.f32 %v3810_v5, %v7733_v12  ;;  %v6369_v5 = vld [vmem:[#allocation2 + $0x19c] sm:$0xff] }
 0x840   :  { %v7869_v28 = vadd.f32 %v7588_v23, %v3836_v16 }
 0x842   :  { %8131 = vst [vmem:[#allocation22_spill] sm:$0xff] %v7869_v28 }
 0x845   :  { %v3812_v4 = vpop.f32.mrf.mxu3 }
 0x846   :  { %v3837_v61 = vadd.f32 %v3812_v4, %v7737_v0 }
 0x848   :  { %v7803_v38 = vadd.f32 %v7598_v1, %v3837_v61  ;;  %v7818_v1 = vpop.f32.mrf.mxu1 }
 0x84a   :  { %5960 = vmatmul.msk.bf16.gmra.mxu3 %vm2702_vm5, %v6467_v21 }
 0x84d   :  { %v3815_v2 = vpop.f32.mrf.mxu3 }
 0x84e   :  { %v3838_v31 = vadd.f32 %v3815_v2, %v7745_v48  ;;  %v4068_v2 = vpop.f32.mrf.mxu0 }
 0x850   :  { %v7813_v0 = vadd.f32 %v7610_v37, %v3838_v31  ;;  %v6468_v37 = vld [vmem:[#allocation2 + $0xbc] sm:$0xff]  ;;  %v7830_v13 = vpop.f32.mrf.mxu1  ;;  %6065 = vmatmul.msk.bf16.gmra.mxu1 %vm2702_vm5, %v6368_v56  ;;  %v4112_v31 = vpop.f32.mrf.mxu2 }
 0x855   :  { %v3817_v15 = vpop.f32.mrf.mxu3 }
 0x856   :  { %v3839_v6 = vadd.f32 %v3817_v15, %v7750_v43  ;;  %v7834_v43 = vadd.f32 %v7555_v34, %v3833_v50 }
 0x858   :  { %v7825_v48 = vadd.f32 %v7620_v35, %v3839_v6  ;;  %v7843_v36 = vpop.f32.mrf.mxu1 }
 0x85a   :  { %5961 = vmatmul.msk.bf16.gmra.mxu3 %vm2702_vm5, %v6468_v37  ;;  %v4114_v37 = vpop.f32.mrf.mxu2 }
 0x85d   :  { %v3820_v63 = vpop.f32.mrf.mxu3 }
 0x85e   :  { %v3840_v14 = vadd.f32 %v3820_v63, %v7757_v11 }
 0x860   :  { %v7837_v32 = vadd.f32 %v7632_v33, %v3840_v14  ;;  %v7862_v60 = vpop.f32.mrf.mxu1  ;;  %6066 = vmatmul.msk.bf16.gmra.mxu1 %vm2702_vm5, %v6369_v5  ;;  %v6371_v14 = vld [vmem:[#allocation2 + $0x190] sm:$0xff] }
 0x865   :  { %v3822_v22 = vpop.f32.mrf.mxu3 }
 0x866   :  { %v3841_v44 = vadd.f32 %v3822_v22, %v7761_v25  ;;  %v7857_v25 = vadd.f32 %v7579_v55, %v3835_v57 }
 0x868   :  { %v7849_v11 = vadd.f32 %v7642_v26, %v3841_v44  ;;  %8129 = vst [vmem:[#allocation21_spill] sm:$0xff] %v7857_v25  ;;  %v4170_v15 = vpop.f32.mrf.mxu1 }
 0x86a   :  { %5983 = vmatmul.msk.bf16.vlgmr.msrb.gmra.mxu3 %vm2702_vm5, %v7660_v39 }
 0x86d   :  { %v3825_v33 = vpop.f32.mrf.mxu3 }
 0x86e   :  { %v3842_v50 = vadd.f32 %v3825_v33, %v7765_v27 }
 0x870   :  { %v7860_v24 = vadd.f32 %v7651_v3, %v3842_v50  ;;  %v4172_v56 = vpop.f32.mrf.mxu1 }
 0x872   :  { %8130 = vst [vmem:[#allocation14_spill] sm:$0xff] %v7860_v24 }
 0x875   :  { %v3827_v52 = vpop.f32.mrf.mxu3 }
 0x876   :  { %v3843_v39 = vadd.f32 %v3827_v52, %v7769_v59  ;;  %v4117_v52 = vpop.f32.mrf.mxu2 }
 0x878   :  { %v7872_v27 = vadd.f32 %v7665_v62, %v3843_v39  ;;  %v4175_v39 = vpop.f32.mrf.mxu1 }
 0x87a   :  { %8132 = vst [vmem:[#allocation15_spill] sm:$0xff] %v7872_v27  ;;  %5984 = vmatmul.msk.bf16.gmra.mxu3 %vm2702_vm5, %v7683_v41 }
 0x87d   :  { %v4014_v3 = vpop.f32.mrf.mxu3 }
 0x87e   :  { %v4059_v6 = vadd.f32 %v7676_v18, %v4014_v3 }
 0x885   :  { %v4016_v57 = vpop.f32.mrf.mxu3 }
 0x886   :  { %v4061_v44 = vadd.f32 %v7690_v19, %v4016_v57  ;;  %v6372_v19 = vld [vmem:[#allocation2 + $0x198] sm:$0xff]  ;;  %v4119_v57 = vpop.f32.mrf.mxu2 }
 0x888   :  { %v4138_v18 = vadd.f32 %v7784_v10, %v4061_v44  ;;  %v4177_v10 = vpop.f32.mrf.mxu1 }
 0x88a   :  { %5985 = vmatmul.msk.bf16.gmra.mxu3 %vm2702_vm5, %v7703_v7 }
 0x88d   :  { %v4019_v4 = vpop.f32.mrf.mxu3 }
 0x88e   :  { %v4064_v3 = vadd.f32 %v7701_v20, %v4019_v4  ;;  %v4122_v4 = vpop.f32.mrf.mxu2 }
 0x895   :  { %v4021_v61 = vpop.f32.mrf.mxu3 }
 0x89a   :  { %5986 = vmatmul.msk.bf16.gmra.mxu3 %vm2702_vm5, %v7718_v51 }
 0x89d   :  { %v4024_v23 = vpop.f32.mrf.mxu3 }
 0x8a5   :  { %v4026_v59 = vpop.f32.mrf.mxu3 }
 0x8aa   :  { %5987 = vmatmul.msk.bf16.gmra.mxu3 %vm2702_vm5, %v7728_v9  ;;  %v6370_v9 = vld [vmem:[#allocation2 + $0x188] sm:$0xff] }
 0x8ad   :  { %v7884_v62 = vpop.f32.mrf.mxu3 }
 0x8b5   :  { %v7886_v16 = vpop.f32.mrf.mxu3 }
 0x8ba   :  { %5988 = vmatmul.msk.bf16.gmra.mxu3 %vm2702_vm5, %v7740_v45  ;;  %v4070_v45 = vpop.f32.mrf.mxu0 }
 0x8bd   :  { %v7890_v41 = vpop.f32.mrf.mxu3 }
 0x8c2   :  { %v4073_v22 = vpop.f32.mrf.mxu0 }
 0x8c5   :  { %v7892_v7 = vpop.f32.mrf.mxu3 }
 0x8ca   :  { %5989 = vmatmul.msk.bf16.gmra.mxu3 %vm2702_vm5, %v7752_v40  ;;  %v4137_v40 = vadd.f32 %v7780_v58, %v4059_v6  ;;  %v4196_v58 = vadd.f32 %v7830_v13, %v4138_v18 }
 0x8cc   :  { %v4195_v33 = vadd.f32 %v7818_v1, %v4137_v40  ;;  %v4066_v1 = vadd.f32 %v7711_v17, %v4021_v61 }
 0x8cd   :  { %v7896_v51 = vpop.f32.mrf.mxu3 }
 0x8ce   :  { %v4140_v13 = vadd.f32 %v7794_v42, %v4066_v1 }
 0x8d0   :  { %v4198_v18 = vadd.f32 %v7862_v60, %v4140_v13  ;;  %v4074_v60 = vadd.f32 %v4073_v22, %v7884_v62 }
 0x8d5   :  { %v7898_v21 = vpop.f32.mrf.mxu3 }
 0x8da   :  { %6095 = vmatmul.msk.bf16.vlgmr.msra.gmra.mxu3 %vm2702_vm5, %v6370_v9  ;;  %v4075_v9 = vpop.f32.mrf.mxu0 }
 0x8dd   :  { %v7901_v49 = vpop.f32.mrf.mxu3 }
 0x8e2   :  { %v4078_v20 = vpop.f32.mrf.mxu0 }
 0x8e3   :  { %v4079_v62 = vadd.f32 %v4078_v20, %v7890_v41 }
 0x8e5   :  { %v7904_v63 = vpop.f32.mrf.mxu3 }
 0x8ea   :  { %6096 = vmatmul.msk.bf16.gmra.mxu3 %vm2702_vm5, %v6371_v14  ;;  %v4139_v14 = vadd.f32 %v7790_v47, %v4064_v3  ;;  %v4080_v17 = vpop.f32.mrf.mxu0 }
 0x8ec   :  { %v4197_v40 = vadd.f32 %v7843_v36, %v4139_v14  ;;  %v4071_v36 = vadd.f32 %v4070_v45, %v4026_v59  ;;  %v4124_v14 = vpop.f32.mrf.mxu2 }
 0x8ed   :  { %v4218_v50 = vpop.f32.mrf.mxu3 }
 0x8ee   :  { %v7910_v5 = vadd.f32 %v4218_v50, %v4195_v33  ;;  %v4069_v50 = vadd.f32 %v4068_v2, %v4024_v23  ;;  %v4142_v42 = vadd.f32 %v4114_v37, %v4071_v36 }
 0x8f0   :  { %v4200_v2 = vadd.f32 %v4172_v56, %v4142_v42 }
 0x8f2   :  { %v4083_v23 = vpop.f32.mrf.mxu0 }
 0x8f5   :  { %v4220_v6 = vpop.f32.mrf.mxu3 }
 0x8f6   :  { %v7915_v55 = vadd.f32 %v4220_v6, %v4196_v58  ;;  %v4180_v58 = vpop.f32.mrf.mxu1  ;;  %v4141_v6 = vadd.f32 %v4112_v31, %v4069_v50  ;;  %v4127_v31 = vpop.f32.mrf.mxu2  ;;  %v4143_v50 = vadd.f32 %v4117_v52, %v4074_v60  ;;  %v4145_v60 = vadd.f32 %v4122_v4, %v4079_v62 }
 0x8f8   :  { %v4199_v61 = vadd.f32 %v4170_v15, %v4141_v6  ;;  %v4076_v15 = vadd.f32 %v4075_v9, %v7886_v16  ;;  %v4201_v45 = vadd.f32 %v4175_v39, %v4143_v50  ;;  %v4081_v39 = vadd.f32 %v4080_v17, %v7892_v7 }
 0x8f9   :  { %v4203_v9 = vadd.f32 %v4180_v58, %v4145_v60 }
 0x8fa   :  { %6097 = vmatmul.msk.bf16.gmra.mxu3 %vm2702_vm5, %v6372_v19  ;;  %v6373_v19 = vld [vmem:[#allocation2 + $0x1a0] sm:$0xff]  ;;  %v4085_v6 = vpop.f32.mrf.mxu0  ;;  %v4144_v36 = vadd.f32 %v4119_v57, %v4076_v15 }
 0x8fb   :  { %v4086_v7 = vadd.f32 %v4085_v6, %v7898_v21 }
 0x8fc   :  { %v4202_v56 = vadd.f32 %v4177_v10, %v4144_v36  ;;  %v4084_v10 = vadd.f32 %v4083_v23, %v7896_v51  ;;  %v6376_v36 = vld [vmem:[#allocation2 + $0x1b8] sm:$0xff] }
 0x8fd   :  { %v4223_v44 = vpop.f32.mrf.mxu3 }
 0x8fe   :  { %v7921_v33 = vadd.f32 %v4223_v44, %v4197_v40  ;;  %v4182_v1 = vpop.f32.mrf.mxu1  ;;  %v4147_v4 = vadd.f32 %v4127_v31, %v4084_v10 }
 0x902   :  { %v4088_v52 = vpop.f32.mrf.mxu0 }
 0x903   :  { %v4089_v23 = vadd.f32 %v4088_v52, %v7901_v49 }
 0x905   :  { %v4225_v47 = vpop.f32.mrf.mxu3 }
 0x906   :  { %v7925_v3 = vadd.f32 %v4225_v47, %v4198_v18  ;;  %v6374_v47 = vld [vmem:[#allocation2 + $0x1a8] sm:$0xff]  ;;  %v4185_v59 = vpop.f32.mrf.mxu1 }
 0x907   :  { %v4205_v58 = vadd.f32 %v4185_v59, %v4147_v4 }
 0x90a   :  { %6098 = vmatmul.msk.bf16.gmra.mxu3 %vm2702_vm5, %v6373_v19  ;;  %v4090_v41 = vpop.f32.mrf.mxu0 }
 0x90b   :  { %v4091_v10 = vadd.f32 %v4090_v41, %v7904_v63 }
 0x90d   :  { %v4228_v40 = vpop.f32.mrf.mxu3 }
 0x90e   :  { %v7928_v44 = vadd.f32 %v4228_v40, %v4199_v61  ;;  %v4129_v61 = vpop.f32.mrf.mxu2  ;;  %v4187_v22 = vpop.f32.mrf.mxu1 }
 0x90f   :  { %v4148_v60 = vadd.f32 %v4129_v61, %v4086_v7 }
 0x915   :  { %v4230_v13 = vpop.f32.mrf.mxu3 }
 0x916   :  { %v7931_v18 = vadd.f32 %v4230_v13, %v4200_v2  ;;  %v6375_v2 = vld [vmem:[#allocation2 + $0x1b0] sm:$0xff]  ;;  %v4132_v16 = vpop.f32.mrf.mxu2  ;;  %v4190_v57 = vpop.f32.mrf.mxu1 }
 0x91a   :  { %6099 = vmatmul.msk.bf16.gmra.mxu3 %vm2702_vm5, %v6374_v47  ;;  %v4146_v47 = vadd.f32 %v4124_v14, %v4081_v39 }
 0x91c   :  { %v4204_v20 = vadd.f32 %v4182_v1, %v4146_v47 }
 0x91d   :  { %v4233_v19 = vpop.f32.mrf.mxu3 }
 0x91e   :  { %v7935_v37 = vadd.f32 %v4233_v19, %v4201_v45  ;;  %v4134_v15 = vpop.f32.mrf.mxu2  ;;  %v4192_v62 = vpop.f32.mrf.mxu1 }
 0x920   :  { %8133 = vst [vmem:[#allocation28_spill] sm:$0xff] %v7935_v37 }
 0x925   :  { %v4235_v40 = vpop.f32.mrf.mxu3 }
 0x926   :  { %v7938_v42 = vadd.f32 %v4235_v40, %v4202_v56  ;;  %v4276_v56 = vpop.f32.mrf.mxu0  ;;  %v4404_v17 = vpop.f32.mrf.mxu2 }
 0x927   :  { %v4532_v51 = vpop.f32.mrf.mxu1  ;;  %v4311_v34 = vadd.f32 %v4276_v56, %v7910_v5 }
 0x929   :  { %v4439_v12 = vadd.f32 %v4404_v17, %v4311_v34 }
 0x92a   :  { %6100 = vmatmul.msk.bf16.gmra.mxu3 %vm2702_vm5, %v6375_v2  ;;  %v4206_v2 = vadd.f32 %v4187_v22, %v4148_v60 }
 0x92d   :  { %v4238_v13 = vpop.f32.mrf.mxu3 }
 0x92e   :  { %v7942_v50 = vadd.f32 %v4238_v13, %v4203_v9  ;;  %v4278_v1 = vpop.f32.mrf.mxu0  ;;  %v4406_v9 = vpop.f32.mrf.mxu2  ;;  %v4149_v13 = vadd.f32 %v4132_v16, %v4089_v23 }
 0x92f   :  { %v4534_v47 = vpop.f32.mrf.mxu1 }
 0x930   :  { %v4207_v21 = vadd.f32 %v4190_v57, %v4149_v13 }
 0x935   :  { %v4240_v45 = vpop.f32.mrf.mxu3 }
 0x936   :  { %v7945_v19 = vadd.f32 %v4240_v45, %v4204_v20  ;;  %v4281_v59 = vpop.f32.mrf.mxu0  ;;  %v4150_v45 = vadd.f32 %v4134_v15, %v4091_v10  ;;  %v4409_v61 = vpop.f32.mrf.mxu2 }
 0x938   :  { %v4208_v4 = vadd.f32 %v4192_v62, %v4150_v45 }
 0x93a   :  { %6101 = vmatmul.msk.bf16.gmra.mxu3 %vm2702_vm5, %v6376_v36  ;;  %v7957_v36 = vpop.f32.mrf.mxu1 }
 0x93d   :  { %v4243_v40 = vpop.f32.mrf.mxu3 }
 0x93e   :  { %v7949_v14 = vadd.f32 %v4243_v40, %v4205_v58  ;;  %v4283_v52 = vpop.f32.mrf.mxu0  ;;  %v7961_v7 = vpop.f32.mrf.mxu2 }
 0x942   :  { %v7963_v58 = vpop.f32.mrf.mxu1 }
 0x945   :  { %v4245_v39 = vpop.f32.mrf.mxu3 }
 0x946   :  { %v7952_v31 = vadd.f32 %v4245_v39, %v4206_v2  ;;  %v7965_v63 = vpop.f32.mrf.mxu0  ;;  %v7967_v57 = vpop.f32.mrf.mxu2 }
 0x94a   :  { %v7969_v40 = vpop.f32.mrf.mxu1 }
 0x94d   :  { %v4248_v6 = vpop.f32.mrf.mxu3 }
 0x94e   :  { %v7955_v20 = vadd.f32 %v4248_v6, %v4207_v21  ;;  %v7971_v15 = vpop.f32.mrf.mxu0  ;;  %v7973_v60 = vpop.f32.mrf.mxu2 }
 0x952   :  { %v7975_v23 = vpop.f32.mrf.mxu1 }
 0x953   :  { %8135 = vst [vmem:[#allocation23_spill] sm:$0xff] %v7975_v23 }
 0x955   :  { %v4250_v49 = vpop.f32.mrf.mxu3 }
 0x956   :  { %v7959_v22 = vadd.f32 %v4250_v49, %v4208_v4  ;;  %v7977_v2 = vpop.f32.mrf.mxu0  ;;  %v7981_v13 = vpop.f32.mrf.mxu2 }
 0x957   :  { %8136 = vst [vmem:[#allocation16_spill] sm:$0xff] %v7977_v2 }
 0x958   :  { %8134 = vst [vmem:[#allocation29_spill] sm:$0xff] %v7959_v22 }
 0x959   :  { %8137 = vst [vmem:[#allocation24_spill] sm:$0xff] %v7981_v13  ;;  %v4567_v13 = vadd.f32 %v4532_v51, %v4439_v12 }
 0x95a   :  { %v7983_v10 = vpop.f32.mrf.mxu1 }
 0x95b   :  { %8138 = vst [vmem:[#allocation17_spill] sm:$0xff] %v7983_v10  ;;  %v4312_v10 = vadd.f32 %v4278_v1, %v7915_v55  ;;  %v4313_v55 = vadd.f32 %v4281_v59, %v7921_v33 }
 0x95d   :  { %v4660_v16 = vpop.f32.mrf.mxu3  ;;  %v4440_v5 = vadd.f32 %v4406_v9, %v4312_v10 }
 0x95e   :  { %v4293_v6 = vpop.f32.mrf.mxu0  ;;  %v4421_v45 = vpop.f32.mrf.mxu2  ;;  %v4695_v2 = vadd.f32 %v4660_v16, %v4567_v13 }
 0x95f   :  { %v4318_v35 = vadd.f32 %v4293_v6, %v7938_v42  ;;  %v7995_v42 = vld [vmem:[#allocation10] ss:$0 sm:$0xff] }
 0x961   :  { %v4446_v27 = vadd.f32 %v4421_v45, %v4318_v35  ;;  %v8140_v35 = vmax.f32 %v7800_v54, %v7803_v38  ;;  %v4568_v45 = vadd.f32 %v4534_v47, %v4440_v5  ;;  %v8141_v38 = vmax.f32 %v7810_v8, %v7813_v0 }
 0x962   :  { %v4549_v49 = vpop.f32.mrf.mxu1 }
 0x963   :  { %v4574_v22 = vadd.f32 %v4549_v49, %v4446_v27 }
 0x965   :  { %v4662_v41 = vpop.f32.mrf.mxu3 }
 0x966   :  { %v4296_v26 = vpop.f32.mrf.mxu0  ;;  %v4424_v53 = vpop.f32.mrf.mxu2  ;;  %v4696_v1 = vadd.f32 %v4662_v41, %v4568_v45 }
 0x967   :  { %v4319_v25 = vadd.f32 %v4296_v26, %v7942_v50 }
 0x969   :  { %v4447_v6 = vadd.f32 %v4424_v53, %v4319_v25 }
 0x96a   :  { %v4552_v28 = vpop.f32.mrf.mxu1 }
 0x96b   :  { %v4575_v27 = vadd.f32 %v4552_v28, %v4447_v6  ;;  %v4314_v28 = vadd.f32 %v4283_v52, %v7925_v3  ;;  %v8142_v3 = vmax.f32 %v7822_v30, %v7825_v48 }
 0x96d   :  { %v4665_v62 = vpop.f32.mrf.mxu3 }
 0x96e   :  { %v4298_v24 = vpop.f32.mrf.mxu0  ;;  %v4426_v23 = vpop.f32.mrf.mxu2 }
 0x96f   :  { %v4320_v12 = vadd.f32 %v4298_v24, %v7945_v19 }
 0x971   :  { %v4448_v16 = vadd.f32 %v4426_v23, %v4320_v12 }
 0x972   :  { %v4554_v17 = vpop.f32.mrf.mxu1 }
 0x973   :  { %v4576_v59 = vadd.f32 %v4554_v17, %v4448_v16  ;;  %v8146_v16 = vld [vmem:[#allocation28_spill] sm:$0xff] }
 0x975   :  { %v7979_v39 = vpop.f32.mrf.mxu3 }
 0x976   :  { %v4301_v50 = vpop.f32.mrf.mxu0  ;;  %v4429_v54 = vpop.f32.mrf.mxu2 }
 0x977   :  { %v4321_v33 = vadd.f32 %v4301_v50, %v7949_v14 }
 0x979   :  { %v4449_v0 = vadd.f32 %v4429_v54, %v4321_v33  ;;  %v8147_v54 = vld [vmem:[#allocation16_spill] sm:$0xff] }
 0x97d   :  { %v7985_v21 = vpop.f32.mrf.mxu3 }
 0x97e   :  { %v4303_v10 = vpop.f32.mrf.mxu0 }
 0x985   :  { %v7987_v4 = vpop.f32.mrf.mxu3 }
 0x986   :  { %8139 = vst [vmem:[#allocation30_spill] sm:$0xff] %v7987_v4 }
 0x98d   :  { %v7991_v46 = vpop.f32.mrf.mxu3 }
 0x995   :  { %v4677_v4 = vpop.f32.mrf.mxu3 }
 0x996   :  { %v4702_v37 = vadd.f32 %v4677_v4, %v4574_v22  ;;  %v4441_v22 = vadd.f32 %v4409_v61, %v4313_v55  ;;  %v4557_v61 = vpop.f32.mrf.mxu1  ;;  %v4442_v4 = vadd.f32 %v7961_v7, %v4314_v28  ;;  %v4322_v7 = vadd.f32 %v4303_v10, %v7952_v31 }
 0x998   :  { %v4716_v56 = vmax.f32 %v4695_v2, %v4702_v37  ;;  %v4569_v19 = vadd.f32 %v7957_v36, %v4441_v22  ;;  %v4431_v36 = vpop.f32.mrf.mxu2  ;;  %v4570_v52 = vadd.f32 %v7963_v58, %v4442_v4  ;;  %v4306_v58 = vpop.f32.mrf.mxu0  ;;  %v8151_v4 = vld [vmem:[#allocation21_spill] sm:$0xff] }
 0x999   :  { %v4450_v12 = vadd.f32 %v4431_v36, %v4322_v7 }
 0x99a   :  { %v4723_v34 = vmax.f32 %v8140_v35, %v4716_v56  ;;  %v4697_v23 = vadd.f32 %v4665_v62, %v4569_v19  ;;  %v4315_v62 = vadd.f32 %v7965_v63, %v7928_v44  ;;  %v4577_v56 = vadd.f32 %v4557_v61, %v4449_v0 }
 0x99b   :  { %v4698_v35 = vadd.f32 %v7979_v39, %v4570_v52  ;;  %v8143_v44 = vmax.f32 %v7834_v43, %v7837_v32  ;;  %v4316_v63 = vadd.f32 %v7971_v15, %v7931_v18  ;;  %v4323_v39 = vadd.f32 %v4306_v58, %v7955_v20  ;;  %v8145_v15 = vld [vmem:[#allocation23_spill] sm:$0xff] }
 0x99c   :  { %v4734_v26 = vadd.f32 %v7995_v42, %v4723_v34  ;;  %v4443_v30 = vadd.f32 %v7967_v57, %v4315_v62  ;;  %v8144_v18 = vmax.f32 %v7846_v29, %v7849_v11 }
 0x99d   :  { %v4680_v51 = vpop.f32.mrf.mxu3  ;;  %v4444_v22 = vadd.f32 %v7973_v60, %v4316_v63  ;;  %v8148_v60 = vld [vmem:[#allocation29_spill] sm:$0xff] }
 0x99e   :  { %v4741_v37 = vmax.f32 %v4734_v26, 0.0  ;;  %v4703_v9 = vadd.f32 %v4680_v51, %v4575_v27  ;;  %v4559_v45 = vpop.f32.mrf.mxu1  ;;  %v4571_v57 = vadd.f32 %v7969_v40, %v4443_v30 }
 0x99f   :  { %v4578_v27 = vadd.f32 %v4559_v45, %v4450_v12  ;;  %v8156_v45 = vld [vmem:[#allocation15_spill] sm:$0xff] }
 0x9a0   :  { %v4748_v53 = vpack.c.bf16 %v4741_v37, %v4741_v37  ;;  %v4717_v25 = vmax.f32 %v4696_v1, %v4703_v9  ;;  %v4434_v50 = vpop.f32.mrf.mxu2  ;;  %v4699_v1 = vadd.f32 %v7985_v21, %v4571_v57  ;;  %v4308_v40 = vpop.f32.mrf.mxu0  ;;  %v4572_v21 = vadd.f32 %v8145_v15, %v4444_v22 }
 0x9a2   :  { %4755 = vst.msk [vmem:[%s8084_s6] sm:$0xf] %vm2492_vm4, %v4748_v53  ;;  %v4724_v24 = vmax.f32 %v8141_v38, %v4717_v25  ;;  %v4451_v53 = vadd.f32 %v4434_v50, %v4323_v39  ;;  %v4317_v38 = vadd.f32 %v8147_v54, %v8146_v16 }
 0x9a4   :  { %v4735_v47 = vadd.f32 %v7995_v42, %v4724_v24  ;;  %v4324_v24 = vadd.f32 %v4308_v40, %v8148_v60 }
 0x9a5   :  { %v4682_v41 = vpop.f32.mrf.mxu3 }
 0x9a6   :  { %v4742_v2 = vmax.f32 %v4735_v47, 0.0  ;;  %v4704_v13 = vadd.f32 %v4682_v41, %v4576_v59  ;;  %v4562_v25 = vpop.f32.mrf.mxu1  ;;  %v8149_v47 = vld [vmem:[#allocation30_spill] sm:$0xff] }
 0x9a7   :  { %v4579_v33 = vadd.f32 %v4562_v25, %v4451_v53  ;;  %v4700_v59 = vadd.f32 %v8149_v47, %v4572_v21 }
 0x9a8   :  { %v4749_v49 = vpack.c.bf16 %v4742_v2, %v4742_v2  ;;  %v4718_v8 = vmax.f32 %v4697_v23, %v4704_v13  ;;  %v4436_v23 = vpop.f32.mrf.mxu2  ;;  %v8150_v2 = vld [vmem:[#allocation24_spill] sm:$0xff] }
 0x9a9   :  { %v4445_v29 = vadd.f32 %v8150_v2, %v4317_v38  ;;  %v4452_v10 = vadd.f32 %v4436_v23, %v4324_v24 }
 0x9aa   :  { %4756 = vst.msk [vmem:[%s8084_s6 + $0x4] sm:$0xf] %vm2492_vm4, %v4749_v49  ;;  %v4725_v14 = vmax.f32 %v8142_v3, %v4718_v8  ;;  %v8152_v49 = vld [vmem:[#allocation14_spill] sm:$0xff] }
 0x9ab   :  { %v8153_v8 = vmax.f32 %v8151_v4, %v8152_v49 }
 0x9ac   :  { %v4736_v5 = vadd.f32 %v7995_v42, %v4725_v14  ;;  %v8154_v14 = vld [vmem:[#allocation17_spill] sm:$0xff] }
 0x9ad   :  { %v4685_v6 = vpop.f32.mrf.mxu3  ;;  %v4573_v36 = vadd.f32 %v8154_v14, %v4445_v29 }
 0x9ae   :  { %v4743_v34 = vmax.f32 %v4736_v5, 0.0  ;;  %v4705_v17 = vadd.f32 %v4685_v6, %v4577_v56  ;;  %v4564_v3 = vpop.f32.mrf.mxu1 }
 0x9af   :  { %v4580_v62 = vadd.f32 %v4564_v3, %v4452_v10  ;;  %v4701_v5 = vadd.f32 %v7991_v46, %v4573_v36 }
 0x9b0   :  { %v4750_v48 = vpack.c.bf16 %v4743_v34, %v4743_v34  ;;  %v4719_v55 = vmax.f32 %v4698_v35, %v4705_v17  ;;  %v8155_v17 = vld [vmem:[#allocation22_spill] sm:$0xff] }
 0x9b1   :  { %v8157_v30 = vmax.f32 %v8155_v17, %v8156_v45 }
 0x9b2   :  { %4757 = vst.msk [vmem:[%s8084_s6 + $0x8] sm:$0xf] %vm2492_vm4, %v4750_v48  ;;  %v4726_v31 = vmax.f32 %v8143_v44, %v4719_v55 }
 0x9b4   :  { %v4737_v26 = vadd.f32 %v7995_v42, %v4726_v31 }
 0x9b5   :  { %v4687_v51 = vpop.f32.mrf.mxu3 }
 0x9b6   :  { %v4744_v37 = vmax.f32 %v4737_v26, 0.0  ;;  %v4706_v9 = vadd.f32 %v4687_v51, %v4578_v27 }
 0x9b8   :  { %v4751_v43 = vpack.c.bf16 %v4744_v37, %v4744_v37  ;;  %v4720_v32 = vmax.f32 %v4699_v1, %v4706_v9 }
 0x9ba   :  { %4758 = vst.msk [vmem:[%s8084_s6 + $0xc] sm:$0xf] %vm2492_vm4, %v4751_v43  ;;  %v4727_v20 = vmax.f32 %v8144_v18, %v4720_v32 }
 0x9bc   :  { %v4738_v28 = vadd.f32 %v7995_v42, %v4727_v20 }
 0x9bd   :  { %v4690_v19 = vpop.f32.mrf.mxu3 }
 0x9be   :  { %v4745_v61 = vmax.f32 %v4738_v28, 0.0  ;;  %v4707_v41 = vadd.f32 %v4690_v19, %v4579_v33 }
 0x9c0   :  { %v4752_v11 = vpack.c.bf16 %v4745_v61, %v4745_v61  ;;  %v4721_v13 = vmax.f32 %v4700_v59, %v4707_v41 }
 0x9c2   :  { %4759 = vst.msk [vmem:[%s8084_s6 + $0x10] sm:$0xf] %vm2492_vm4, %v4752_v11  ;;  %v4728_v0 = vmax.f32 %v8153_v8, %v4721_v13 }
 0x9c4   :  { %v4739_v52 = vadd.f32 %v7995_v42, %v4728_v0 }
 0x9c5   :  { %v4692_v7 = vpop.f32.mrf.mxu3 }
 0x9c6   :  { %v4746_v56 = vmax.f32 %v4739_v52, 0.0  ;;  %v4708_v6 = vadd.f32 %v4692_v7, %v4580_v62 }
 0x9c8   :  { %v4753_v35 = vpack.c.bf16 %v4746_v56, %v4746_v56  ;;  %v4722_v34 = vmax.f32 %v4701_v5, %v4708_v6 }
 0x9ca   :  { %4760 = vst.msk [vmem:[%s8084_s6 + $0x14] sm:$0xf] %vm2492_vm4, %v4753_v35  ;;  %v4729_v48 = vmax.f32 %v8157_v30, %v4722_v34 }
 0x9cc   :  { %v4740_v55 = vadd.f32 %v7995_v42, %v4729_v48 }
 0x9ce   :  { %v4747_v12 = vmax.f32 %v4740_v55, 0.0 }
 0x9d0   :  { %v4754_v58 = vpack.c.bf16 %v4747_v12, %v4747_v12 }
 0x9d2   :  { %4762 = vst.msk [vmem:[%s8084_s6 + $0x18] sm:$0x1] %vm4761_vm6, %v4754_v58 }
 0x9d3   :  { %4767 = vsyncpa [#allocation4], 1 }
 0x9d4   :  { %4768 = vsyncpa [#allocation6], 1 }
 0x9d5   :  { %4769 = vsyncpa [#allocation9], 1 }

</bundles_post_ra>
